<compile_context>
chip_gen: v5e
topology: v5e:2x2
jax: 0.10.0
libtpu: 0.0.40
codegen_flags: <defaults>
</compile_context>

<pallas_src>
import jax
import jax.numpy as jnp
import numpy as np
from jax.experimental import pallas as pl
from jax.experimental.pallas import tpu as pltpu

# ----------------------------- problem sizes -----------------------------
N = 256         # total atoms per call (16 molecules of 16 atoms)
B = 16          # graphs in the batch
G = 2           # grid blocks ("parallel" -> both v7x TensorCores)
NG = N // G     # atoms per block  (128 -> fills a 128-wide MXU pass)
BG = B // G     # graphs per block
H = 32          # hidden_channels of the representation model
H2 = H // 2     # intermediate width of the output heads
K = 16          # number of radial basis functions
MAX_Z = 100     # atom-type vocabulary
GAMMA = 10.0
CUTOFF = 5.0
STD = 2.5       # self.std buffer   (baked into the kernel epilogue)
MEAN = -1.3     # self.mean buffer  (baked into the kernel epilogue)

HEAD_KEYS = ['Wv1a', 'Wv2a', 'W1a', 'b1a', 'W2a', 'b2a',
             'Wv1b', 'Wv2b', 'W1b', 'b1b', 'W2b', 'b2b']

# --------------------- packed weight-slab layout (host) ---------------------
# One lane-dense bf16 slab for every matmul weight: {name: (r0, c0, rows, cols)}
W_SLAB_ROWS, W_SLAB_COLS = 224, 128
W_SLAB = {
    'A_Wv':  (0,     0,  H,     3 * H),        # (32, 96)  [Wv1_s|Wv1_n|Wv2_s|Wv2_n]
    'B_W2':  (0,     96, H,     2),            # (32, 2)   [xs_s*.. | gate_n] (pruned)
    'W_cat': (H,     0,  H,     2 * H),        # (32, 64)  [W_msg | W_vec]
    'B_Wv':  (H,     64, H,     2 * H2 + 1),   # (32, 33)  [Wv1 blockdiag | Wv2_n]
    'A_W2':  (2 * H, 0,  2 * H, 4 * H2),       # (64, 64)  [xs_s|xs_n|gate_s|gate_n]
    'B_W1':  (2 * H, 64, 2 * H, 2 * H2),       # (64, 32)  stacked [W1x ; W1v] blkdiag
    'A_W1':  (4 * H, 0,  3 * H, 2 * H),        # (96, 64)  stacked [W1x ; W1v]
}
# Small f32 slab for biases.
B_SLAB_ROWS, B_SLAB_COLS = 8, 128
B_SLAB = {
    'A_b1': (0, 0,  1, 2 * H),
    'A_b2': (0, 64, 1, 4 * H2),
    'B_b1': (1, 0,  1, 2 * H2),
    'B_b2': (1, 32, 1, 2),
}


def _blkdiag(a, b):
    ra, ca = a.shape
    rb, cb = b.shape
    top = jnp.concatenate([a, jnp.zeros((ra, cb), jnp.float32)], axis=1)
    bot = jnp.concatenate([jnp.zeros((rb, ca), jnp.float32), b], axis=1)
    return jnp.concatenate([top, bot], axis=0)


def _out_proj(Ws, bs, Wn, bn, oc):
    """Fuse two (I, 2*oc) output projections -> columns [xs_s|xs_n|gate_s|gate_n]."""
    I = Ws.shape[0]
    Wf = jnp.zeros((2 * I, 4 * oc), jnp.float32)
    Wf = Wf.at[:I, 0:oc].set(Ws[:, :oc])
    Wf = Wf.at[I:, oc:2 * oc].set(Wn[:, :oc])
    Wf = Wf.at[:I, 2 * oc:3 * oc].set(Ws[:, oc:])
    Wf = Wf.at[I:, 3 * oc:].set(Wn[:, oc:])
    bf = jnp.concatenate([bs[:, :oc], bn[:, :oc], bs[:, oc:], bn[:, oc:]], axis=1)
    return Wf, bf


def pack_params(p):
    """Build (bf16 weight slab, f32 bias slab, f32 SMEM rbf params)."""
    # --- representation ---
    W_cat = jnp.concatenate([p['W_msg'], p['W_vec']], axis=1)                 # (32, 64)
    # --- gated block 1 (both heads fused side by side) ---
    A_Wv = jnp.concatenate([p['sWv1a'], p['nWv1a'],
                            p['sWv2a'], p['nWv2a']], axis=1)                  # (32, 96)
    A_W1 = jnp.concatenate([
        jnp.concatenate([p['sW1a'][:H], p['nW1a'][:H]], axis=1),              # x part
        _blkdiag(p['sW1a'][H:], p['nW1a'][H:]),                               # vec1 part
    ], axis=0)                                                                # (96, 64)
    A_W2, A_b2 = _out_proj(p['sW2a'], p['sb2a'], p['nW2a'], p['nb2a'], H2)    # (64,64),(1,64)
    A_b1 = jnp.concatenate([p['sb1a'], p['nb1a']], axis=1)                    # (1, 64)
    # --- gated block 2 (dead outputs pruned: keep only energy xs_s & noise gate/vec2) ---
    B_Wv = jnp.concatenate([
        _blkdiag(p['sWv1b'], p['nWv1b']),                                     # (32, 32)
        jnp.concatenate([jnp.zeros((H2, 1), jnp.float32), p['nWv2b']], axis=0),
    ], axis=1)                                                                # (32, 33)
    B_W1 = jnp.concatenate([
        _blkdiag(p['sW1b'][:H2], p['nW1b'][:H2]),
        _blkdiag(p['sW1b'][H2:], p['nW1b'][H2:]),
    ], axis=0)                                                                # (64, 32)
    B_W2 = jnp.zeros((2 * H2, 2), jnp.float32)
    B_W2 = B_W2.at[:H2, 0].set(p['sW2b'][:, 0])        # energy head scalar
    B_W2 = B_W2.at[H2:, 1].set(p['nW2b'][:, 1])        # noise head gate
    B_b1 = jnp.concatenate([p['sb1b'], p['nb1b']], axis=1)                    # (1, 32)
    B_b2 = jnp.stack([p['sb2b'][0, 0], p['nb2b'][0, 1]]).reshape(1, 2)

    wpieces = {'A_Wv': A_Wv, 'B_W2': B_W2, 'W_cat': W_cat, 'B_Wv': B_Wv,
               'A_W2': A_W2, 'B_W1': B_W1, 'A_W1': A_W1}
    wslab = jnp.zeros((W_SLAB_ROWS, W_SLAB_COLS), jnp.float32)
    for name, (r0, c0, r, c) in W_SLAB.items():
        a = wpieces[name]
        assert a.shape == (r, c), (name, a.shape, (r, c))
        wslab = wslab.at[r0:r0 + r, c0:c0 + c].set(a)
    wslab = wslab.astype(jnp.bfloat16)                 # single-pass MXU operands

    bpieces = {'A_b1': A_b1, 'A_b2': A_b2, 'B_b1': B_b1, 'B_b2': B_b2}
    bslab = jnp.zeros((B_SLAB_ROWS, B_SLAB_COLS), jnp.float32)
    for name, (r0, c0, r, c) in B_SLAB.items():
        a = bpieces[name]
        assert a.shape == (r, c), (name, a.shape, (r, c))
        bslab = bslab.at[r0:r0 + r, c0:c0 + c].set(a)

    rbf = jnp.concatenate([p['mu'], p['ws'], p['wv']], axis=0)                # (3, K)
    return wslab, bslab, rbf


# --------------------------- shared math (jnp) ----------------------------
def _silu(x):
    return x * (1.0 / (1.0 + jnp.exp(-x)))


def _bdot(a, b):
    """Single-pass bf16 MXU matmul with f32 accumulation."""
    return jnp.dot(a.astype(jnp.bfloat16), b.astype(jnp.bfloat16),
                   preferred_element_type=jnp.float32)


# ------------------------------ fused kernel -------------------------------
def _fused_kernel(rbf_ref, h_ref, pos_ref, posT_ref, mask_ref, onehot_ref,
                  w_ref, b_ref, out_ref, noise_ref):
    def W(name):
        r0, c0, r, c = W_SLAB[name]
        return w_ref[r0:r0 + r, c0:c0 + c]

    def Bv(name):
        r0, c0, r, c = B_SLAB[name]
        return b_ref[r0:r0 + r, c0:c0 + c]

    h = h_ref[...]                                    # (NG, H) f32
    mask = mask_ref[...]                              # (NG, NG)
    onehot = onehot_ref[...]                          # (BG, NG)

    # ------------------ representation model ------------------
    px, py, pz = pos_ref[:, 0:1], pos_ref[:, 1:2], pos_ref[:, 2:3]
    pxT, pyT, pzT = posT_ref[0:1, :], posT_ref[1:2, :], posT_ref[2:3, :]
    dx = px - pxT
    dy = py - pyT
    dz = pz - pzT
    d2 = dx * dx + dy * dy + dz * dz
    d2s = d2 + (1.0 - mask) + 1e-12                   # masked / coincident -> safe
    inv = jax.lax.rsqrt(d2s)                          # EUP rsqrt, no divide
    d = d2s * inv                                     # == sqrt(d2s)
    inv_d = mask * inv

    # Gaussian RBF: K-unrolled loop over fully lane/sublane-dense (NG,NG) tiles.
    # mu/ws/wv are scalar SMEM reads (overlap the scalar slot while EUP grinds exp).
    sfilt = jnp.zeros_like(d)
    vfilt = jnp.zeros_like(d)
    for k in range(K):
        t = d - rbf_ref[0, k]
        g = jnp.exp((-GAMMA) * (t * t))
        sfilt = sfilt + rbf_ref[1, k] * g
        vfilt = vfilt + rbf_ref[2, k] * g

    # fused message / vector projections: one (NG,H)@(H,2H) matmul
    hmv = _bdot(h, W('W_cat'))                        # (NG, 2H)
    hm = hmv[:, :H]
    hv = hmv[:, H:]
    x = h + _bdot(mask * sfilt, hm)                   # (NG, H)

    # direction-weighted vector features: one stacked (3NG,NG)@(NG,H) matmul
    wdir = inv_d * vfilt
    dirs = jnp.concatenate([dx * wdir, dy * wdir, dz * wdir], axis=0)   # (3NG, NG)
    v = _bdot(dirs, hv)                               # (3NG, H)

    # ------------- output heads: both heads fused, gated block 1 -------------
    pv = _bdot(v, W('A_Wv'))                          # (3NG, 3H) = [p1(2H) | vec2(2*H2)]
    p1 = pv[:, :2 * H]
    vec2 = pv[:, 2 * H:]
    vec1 = jnp.sqrt(p1[0:NG] ** 2 + p1[NG:2 * NG] ** 2 + p1[2 * NG:3 * NG] ** 2)
    hmid = _silu(_bdot(jnp.concatenate([x, vec1], axis=1), W('A_W1')) + Bv('A_b1'))
    o = _bdot(hmid, W('A_W2')) + Bv('A_b2')           # (NG, 4*H2)
    x2 = _silu(o[:, :2 * H2])                         # [xs_s | xs_n], scalar activation
    gate = o[:, 2 * H2:]                              # [gate_s | gate_n]
    v2 = vec2 * jnp.concatenate([gate, gate, gate], axis=0)             # (3NG, 2*H2)

    # -------------------------- gated block 2 --------------------------
    pvb = _bdot(v2, W('B_Wv'))                        # (3NG, 2*H2 + 1)
    p1b = pvb[:, :2 * H2]
    vec2n = pvb[:, 2 * H2:2 * H2 + 1]                 # noise-head vec2, (3NG, 1)
    vec1b = jnp.sqrt(p1b[0:NG] ** 2 + p1b[NG:2 * NG] ** 2 + p1b[2 * NG:3 * NG] ** 2)
    hmidb = _silu(_bdot(jnp.concatenate([x2, vec1b], axis=1), W('B_W1')) + Bv('B_b1'))
    ob = _bdot(hmidb, W('B_W2')) + Bv('B_b2')         # (NG, 2) = [xs_s | gate_n]

    xs = ob[:, 0:1]                                   # energy head per-atom scalar
    gate_n = ob[:, 1:2]                               # noise head gate

    # pre_reduce -> scatter-add (one-hot matmul) -> *std + mean (constants)
    out_ref[...] = _bdot(onehot, xs) * STD + MEAN

    # output_model_noise.pre_reduce (EquivariantVectorOutput): single (NG,3) store
    noise_ref[...] = jnp.concatenate(
        [vec2n[0:NG] * gate_n,
         vec2n[NG:2 * NG] * gate_n,
         vec2n[2 * NG:3 * NG] * gate_n], axis=1)


# ----------------------------- pallas_call glue ----------------------------
def _fused_pallas(rbf, h, pos, posT, mask, onehot, wslab, bslab):
    in_specs = [
        pl.BlockSpec((3, K), lambda i: (0, 0),
                     memory_space=pltpu.MemorySpace.SMEM),       # rbf params
        pl.BlockSpec((NG, H), lambda i: (i, 0)),                 # h
        pl.BlockSpec((NG, 3), lambda i: (i, 0)),                 # pos
        pl.BlockSpec((3, NG), lambda i: (0, i)),                 # pos^T
        pl.BlockSpec((NG, NG), lambda i: (i, i)),                # pair mask (diag blocks)
        pl.BlockSpec((BG, NG), lambda i: (i, i)),                # one-hot scatter
        pl.BlockSpec((W_SLAB_ROWS, W_SLAB_COLS), lambda i: (0, 0)),
        pl.BlockSpec((B_SLAB_ROWS, B_SLAB_COLS), lambda i: (0, 0)),
    ]
    out_specs = (
        pl.BlockSpec((BG, 1), lambda i: (i, 0)),
        pl.BlockSpec((NG, 3), lambda i: (i, 0)),
    )
    out_shape = (jax.ShapeDtypeStruct((B, 1), jnp.float32),
                 jax.ShapeDtypeStruct((N, 3), jnp.float32))
    return pl.pallas_call(
        _fused_kernel, grid=(G,), in_specs=in_specs,
        out_specs=out_specs, out_shape=out_shape,
        compiler_params=pltpu.CompilerParams(
            dimension_semantics=("parallel",)),                  # both v7x TCs
    )(rbf, h, pos, posT, mask, onehot, wslab, bslab)


def torchmd_net_forward(z, pos, batch, p):
    """Mirrors TorchMD_Net.forward(z, pos, batch) -> (out, noise_pred, mask_logits)."""
    # glue: embedding gather, pair mask, one-hot scatter matrix, weight packing
    h = p['embedding'][z]                                            # (N, H)
    same = batch[:, None] == batch[None, :]
    notself = jnp.arange(N)[:, None] != jnp.arange(N)[None, :]
    mask = (same & notself).astype(jnp.float32)                      # (N, N)
    onehot = (jnp.arange(B, dtype=batch.dtype)[:, None]
              == batch[None, :]).astype(jnp.float32)                 # (B, N)
    wslab, bslab, rbf = pack_params(p)

    # Blocks are exact because graphs never span a grid block (check it).
    b_np = np.asarray(batch).reshape(G, NG)
    assert np.all(b_np // BG == np.arange(G)[:, None]), \
        "graphs must not span grid blocks"

    out, noise_pred = _fused_pallas(rbf, h, pos, pos.T, mask, onehot, wslab, bslab)

    mask_logits = None   # output_model_mask_atom is None
    # TODO(synk): derivative=True branch (force = -autograd(out, pos)), the
    # prior_model hook, the data-dependent bond_length_scale /
    # extract_edge_feat branches, and AccumulatedNormalization training-time
    # statistics updates are not implemented (default config takes none of them).
    return out, noise_pred, mask_logits


# ------------------------------- reference ---------------------------------
def _radial_filters(d, mu, ws, wv):
    sfilt = jnp.zeros_like(d)
    vfilt = jnp.zeros_like(d)
    for k in range(K):
        g = jnp.exp(-GAMMA * (d - mu[0, k]) ** 2)
        sfilt = sfilt + ws[0, k] * g
        vfilt = vfilt + wv[0, k] * g
    return sfilt, vfilt


def _rep_math(h, px, py, pz, pxT, pyT, pzT, mask, Wmsg, Wvec, mu, ws, wv):
    dx = px - pxT
    dy = py - pyT
    dz = pz - pzT
    d2 = dx * dx + dy * dy + dz * dz
    d = jnp.sqrt(d2 + (1.0 - mask) + 1e-12)
    inv_d = mask / d
    sfilt, vfilt = _radial_filters(d, mu, ws, wv)
    hm = _bdot(h, Wmsg)
    hv = _bdot(h, Wvec)
    x = h + _bdot(mask * sfilt, hm)
    w = inv_d * vfilt
    vx = _bdot(dx * w, hv)
    vy = _bdot(dy * w, hv)
    vz = _bdot(dz * w, hv)
    return x, (vx, vy, vz)


def _gated_block(x, v3, Wv1, Wv2, W1, b1, W2, b2, out_ch, scalar_act):
    p1 = [_bdot(v, Wv1) for v in v3]
    vec1 = jnp.sqrt(p1[0] ** 2 + p1[1] ** 2 + p1[2] ** 2)
    vec2 = [_bdot(v, Wv2) for v in v3]
    xc = jnp.concatenate([x, vec1], axis=-1)
    hmid = _silu(_bdot(xc, W1) + b1)
    o = _bdot(hmid, W2) + b2
    xs = o[:, :out_ch]
    gate = o[:, out_ch:]
    vnew = [v2 * gate for v2 in vec2]
    if scalar_act:
        xs = _silu(xs)
    return xs, vnew


def _run_head(x, v3, w):
    (Wv1a, Wv2a, W1a, b1a, W2a, b2a,
     Wv1b, Wv2b, W1b, b1b, W2b, b2b) = w
    x, v3 = _gated_block(x, v3, Wv1a, Wv2a, W1a, b1a, W2a, b2a, H2, True)
    x, v3 = _gated_block(x, v3, Wv1b, Wv2b, W1b, b1b, W2b, b2b, 1, False)
    return x, v3


def reference_forward(z, pos, batch, p):
    h = p['embedding'][z]
    same = batch[:, None] == batch[None, :]
    notself = jnp.arange(N)[:, None] != jnp.arange(N)[None, :]
    mask = (same & notself).astype(jnp.float32)
    onehot = (jnp.arange(B, dtype=batch.dtype)[:, None]
              == batch[None, :]).astype(jnp.float32)
    px, py, pz = pos[:, 0:1], pos[:, 1:2], pos[:, 2:3]
    x, v3 = _rep_math(h, px, py, pz, px.T, py.T, pz.T, mask,
                      p['W_msg'], p['W_vec'], p['mu'], p['ws'], p['wv'])
    sw = [p['s' + k] for k in HEAD_KEYS]
    nw = [p['n' + k] for k in HEAD_KEYS]
    xs, _ = _run_head(x, v3, sw)
    out = _bdot(onehot, xs) * STD + MEAN
    _, vn = _run_head(x, v3, nw)
    noise = jnp.concatenate([vn[0], vn[1], vn[2]], axis=1)
    return out, noise


# ------------------------------ parameters ----------------------------------
def init_params(key):
    keys = iter(jax.random.split(key, 64))

    def nrm(shape, fan_in):
        return (jax.random.normal(next(keys), shape, dtype=jnp.float32)
                / np.sqrt(float(fan_in)))

    p = {}
    p['embedding'] = jax.random.normal(next(keys), (MAX_Z, H), dtype=jnp.float32)
    p['W_msg'] = nrm((H, H), H)
    p['W_vec'] = nrm((H, H), H)
    p['mu'] = jnp.linspace(0.0, CUTOFF, K, dtype=jnp.float32).reshape(1, K)
    p['ws'] = nrm((1, K), K)
    p['wv'] = nrm((1, K), K)
    for pre in ('s', 'n'):   # 's' = scalar/energy head, 'n' = noise head
        # GatedEquivariantBlock 1: H -> H//2 (intermediate H, scalar_activation)
        p[pre + 'Wv1a'] = nrm((H, H), H)
        p[pre + 'Wv2a'] = nrm((H, H2), H)
        p[pre + 'W1a'] = nrm((2 * H, H), 2 * H)
        p[pre + 'b1a'] = nrm((1, H), H)
        p[pre + 'W2a'] = nrm((H, 2 * H2), H)
        p[pre + 'b2a'] = nrm((1, 2 * H2), H)
        # GatedEquivariantBlock 2: H//2 -> 1 (intermediate H//2)
        p[pre + 'Wv1b'] = nrm((H2, H2), H2)
        p[pre + 'Wv2b'] = nrm((H2, 1), H2)
        p[pre + 'W1b'] = nrm((2 * H2, H2), 2 * H2)
        p[pre + 'b1b'] = nrm((1, H2), H2)
        p[pre + 'W2b'] = nrm((H2, 2), H2)
        p[pre + 'b2b'] = nrm((1, 2), H2)
    return p


# --------------------------------- main -------------------------------------
if __name__ == "__main__":
    key = jax.random.PRNGKey(0)
    kz, kpos, kparams = jax.random.split(key, 3)

    z = jax.random.randint(kz, (N,), 1, 10)                      # atom types (long in torch)
    pos = 2.0 * jax.random.normal(kpos, (N, 3), dtype=jnp.float32)
    batch = jnp.repeat(jnp.arange(B, dtype=jnp.int32), N // B)   # 16 graphs x 16 atoms
    params = init_params(kparams)

    out, noise_pred, mask_logits = torchmd_net_forward(z, pos, batch, params)
    out, noise_pred = jax.block_until_ready((out, noise_pred))

    ref_out, ref_noise = reference_forward(z, pos, batch, params)
    np.testing.assert_allclose(np.asarray(out), np.asarray(ref_out),
                               rtol=5e-3, atol=5e-3)
    np.testing.assert_allclose(np.asarray(noise_pred), np.asarray(ref_noise),
                               rtol=5e-3, atol=5e-3)
    assert mask_logits is None
    assert out.shape == (B, 1) and noise_pred.shape == (N, 3)
    print("KERNEL_OK")
</pallas_src>

<mosaic_0001>
module attributes {stable_mosaic.version = 11 : i64} {
  func.func @_fused_kernel(%arg0: i32, %arg1: memref<3x16xf32, #tpu.memory_space<smem>>, %arg2: memref<128x32xf32, #tpu.memory_space<vmem>>, %arg3: memref<128x3xf32, #tpu.memory_space<vmem>>, %arg4: memref<3x128xf32, #tpu.memory_space<vmem>>, %arg5: memref<128x128xf32, #tpu.memory_space<vmem>>, %arg6: memref<8x128xf32, #tpu.memory_space<vmem>>, %arg7: memref<224x128xbf16, #tpu.memory_space<vmem>>, %arg8: memref<8x128xf32, #tpu.memory_space<vmem>>, %arg9: memref<8x1xf32, #tpu.memory_space<vmem>>, %arg10: memref<128x3xf32, #tpu.memory_space<vmem>>) attributes {dimension_semantics = [#tpu.dimension_semantics<parallel>], iteration_bounds = array<i64: 2>, scalar_prefetch = 0 : i64, scratch_operands = 0 : i64, tpu.core_type = #tpu.core_type<tc>, window_params = [{transform_indices = @transform_0, window_bounds = array<i64: 3, 16>}, {transform_indices = @transform_1, window_bounds = array<i64: 128, 32>}, {transform_indices = @transform_2, window_bounds = array<i64: 128, 3>}, {transform_indices = @transform_3, window_bounds = array<i64: 3, 128>}, {transform_indices = @transform_4, window_bounds = array<i64: 128, 128>}, {transform_indices = @transform_5, window_bounds = array<i64: 8, 128>}, {pipeline_mode = #tpu.pipeline_mode<synchronous>, transform_indices = @transform_6, window_bounds = array<i64: 224, 128>}, {pipeline_mode = #tpu.pipeline_mode<synchronous>, transform_indices = @transform_7, window_bounds = array<i64: 8, 128>}, {transform_indices = @transform_8, window_bounds = array<i64: 8, 1>}, {transform_indices = @transform_9, window_bounds = array<i64: 128, 3>}]} {
    %c0 = arith.constant 0 : index
    %c0_0 = arith.constant 0 : index
    %0 = vector.load %arg2[%c0, %c0_0] : memref<128x32xf32, #tpu.memory_space<vmem>>, vector<128x32xf32>
    %c0_1 = arith.constant 0 : index
    %c0_2 = arith.constant 0 : index
    %1 = vector.load %arg5[%c0_1, %c0_2] : memref<128x128xf32, #tpu.memory_space<vmem>>, vector<128x128xf32>
    %c0_3 = arith.constant 0 : index
    %c0_4 = arith.constant 0 : index
    %2 = vector.load %arg6[%c0_3, %c0_4] : memref<8x128xf32, #tpu.memory_space<vmem>>, vector<8x128xf32>
    %c0_5 = arith.constant 0 : index
    %c0_6 = arith.constant 0 : index
    %3 = vector.load %arg3[%c0_5, %c0_6] : memref<128x3xf32, #tpu.memory_space<vmem>>, vector<128x1xf32>
    %c0_7 = arith.constant 0 : index
    %c1 = arith.constant 1 : index
    %4 = vector.load %arg3[%c0_7, %c1] : memref<128x3xf32, #tpu.memory_space<vmem>>, vector<128x1xf32>
    %c0_8 = arith.constant 0 : index
    %c2 = arith.constant 2 : index
    %5 = vector.load %arg3[%c0_8, %c2] : memref<128x3xf32, #tpu.memory_space<vmem>>, vector<128x1xf32>
    %c0_9 = arith.constant 0 : index
    %c0_10 = arith.constant 0 : index
    %6 = vector.load %arg4[%c0_9, %c0_10] : memref<3x128xf32, #tpu.memory_space<vmem>>, vector<1x128xf32>
    %c1_11 = arith.constant 1 : index
    %c0_12 = arith.constant 0 : index
    %7 = vector.load %arg4[%c1_11, %c0_12] : memref<3x128xf32, #tpu.memory_space<vmem>>, vector<1x128xf32>
    %c2_13 = arith.constant 2 : index
    %c0_14 = arith.constant 0 : index
    %8 = vector.load %arg4[%c2_13, %c0_14] : memref<3x128xf32, #tpu.memory_space<vmem>>, vector<1x128xf32>
    %9 = vector.broadcast %3 : vector<128x1xf32> to vector<128x128xf32>
    %10 = vector.broadcast %6 : vector<1x128xf32> to vector<128x128xf32>
    %11 = arith.subf %9, %10 : vector<128x128xf32>
    %12 = vector.broadcast %4 : vector<128x1xf32> to vector<128x128xf32>
    %13 = vector.broadcast %7 : vector<1x128xf32> to vector<128x128xf32>
    %14 = arith.subf %12, %13 : vector<128x128xf32>
    %15 = vector.broadcast %5 : vector<128x1xf32> to vector<128x128xf32>
    %16 = vector.broadcast %8 : vector<1x128xf32> to vector<128x128xf32>
    %17 = arith.subf %15, %16 : vector<128x128xf32>
    %18 = arith.mulf %11, %11 : vector<128x128xf32>
    %19 = arith.mulf %14, %14 : vector<128x128xf32>
    %20 = arith.addf %18, %19 : vector<128x128xf32>
    %21 = arith.mulf %17, %17 : vector<128x128xf32>
    %22 = arith.addf %20, %21 : vector<128x128xf32>
    %cst = arith.constant 1.000000e+00 : f32
    %23 = vector.broadcast %cst : f32 to vector<128x128xf32>
    %24 = arith.subf %23, %1 : vector<128x128xf32>
    %25 = arith.addf %22, %24 : vector<128x128xf32>
    %cst_15 = arith.constant 9.99999996E-13 : f32
    %26 = vector.broadcast %cst_15 : f32 to vector<128x128xf32>
    %27 = arith.addf %25, %26 : vector<128x128xf32>
    %28 = math.rsqrt %27 : vector<128x128xf32>
    %29 = arith.mulf %27, %28 : vector<128x128xf32>
    %30 = arith.mulf %1, %28 : vector<128x128xf32>
    %cst_16 = arith.constant 0.000000e+00 : f32
    %31 = vector.broadcast %cst_16 : f32 to vector<128x128xf32>
    %cst_17 = arith.constant 0.000000e+00 : f32
    %32 = vector.broadcast %cst_17 : f32 to vector<128x128xf32>
    %c0_18 = arith.constant 0 : index
    %c0_19 = arith.constant 0 : index
    %33 = memref.load %arg1[%c0_18, %c0_19] : memref<3x16xf32, #tpu.memory_space<smem>>
    %34 = vector.broadcast %33 : f32 to vector<128x128xf32>
    %35 = arith.subf %29, %34 : vector<128x128xf32>
    %36 = arith.mulf %35, %35 : vector<128x128xf32>
    %cst_20 = arith.constant -1.000000e+01 : f32
    %37 = vector.broadcast %cst_20 : f32 to vector<128x128xf32>
    %38 = arith.mulf %37, %36 : vector<128x128xf32>
    %39 = math.exp %38 : vector<128x128xf32>
    %c1_21 = arith.constant 1 : index
    %c0_22 = arith.constant 0 : index
    %40 = memref.load %arg1[%c1_21, %c0_22] : memref<3x16xf32, #tpu.memory_space<smem>>
    %41 = vector.broadcast %40 : f32 to vector<128x128xf32>
    %42 = arith.mulf %41, %39 : vector<128x128xf32>
    %43 = arith.addf %31, %42 : vector<128x128xf32>
    %c2_23 = arith.constant 2 : index
    %c0_24 = arith.constant 0 : index
    %44 = memref.load %arg1[%c2_23, %c0_24] : memref<3x16xf32, #tpu.memory_space<smem>>
    %45 = vector.broadcast %44 : f32 to vector<128x128xf32>
    %46 = arith.mulf %45, %39 : vector<128x128xf32>
    %47 = arith.addf %32, %46 : vector<128x128xf32>
    %c0_25 = arith.constant 0 : index
    %c1_26 = arith.constant 1 : index
    %48 = memref.load %arg1[%c0_25, %c1_26] : memref<3x16xf32, #tpu.memory_space<smem>>
    %49 = vector.broadcast %48 : f32 to vector<128x128xf32>
    %50 = arith.subf %29, %49 : vector<128x128xf32>
    %51 = arith.mulf %50, %50 : vector<128x128xf32>
    %cst_27 = arith.constant -1.000000e+01 : f32
    %52 = vector.broadcast %cst_27 : f32 to vector<128x128xf32>
    %53 = arith.mulf %52, %51 : vector<128x128xf32>
    %54 = math.exp %53 : vector<128x128xf32>
    %c1_28 = arith.constant 1 : index
    %c1_29 = arith.constant 1 : index
    %55 = memref.load %arg1[%c1_28, %c1_29] : memref<3x16xf32, #tpu.memory_space<smem>>
    %56 = vector.broadcast %55 : f32 to vector<128x128xf32>
    %57 = arith.mulf %56, %54 : vector<128x128xf32>
    %58 = arith.addf %43, %57 : vector<128x128xf32>
    %c2_30 = arith.constant 2 : index
    %c1_31 = arith.constant 1 : index
    %59 = memref.load %arg1[%c2_30, %c1_31] : memref<3x16xf32, #tpu.memory_space<smem>>
    %60 = vector.broadcast %59 : f32 to vector<128x128xf32>
    %61 = arith.mulf %60, %54 : vector<128x128xf32>
    %62 = arith.addf %47, %61 : vector<128x128xf32>
    %c0_32 = arith.constant 0 : index
    %c2_33 = arith.constant 2 : index
    %63 = memref.load %arg1[%c0_32, %c2_33] : memref<3x16xf32, #tpu.memory_space<smem>>
    %64 = vector.broadcast %63 : f32 to vector<128x128xf32>
    %65 = arith.subf %29, %64 : vector<128x128xf32>
    %66 = arith.mulf %65, %65 : vector<128x128xf32>
    %cst_34 = arith.constant -1.000000e+01 : f32
    %67 = vector.broadcast %cst_34 : f32 to vector<128x128xf32>
    %68 = arith.mulf %67, %66 : vector<128x128xf32>
    %69 = math.exp %68 : vector<128x128xf32>
    %c1_35 = arith.constant 1 : index
    %c2_36 = arith.constant 2 : index
    %70 = memref.load %arg1[%c1_35, %c2_36] : memref<3x16xf32, #tpu.memory_space<smem>>
    %71 = vector.broadcast %70 : f32 to vector<128x128xf32>
    %72 = arith.mulf %71, %69 : vector<128x128xf32>
    %73 = arith.addf %58, %72 : vector<128x128xf32>
    %c2_37 = arith.constant 2 : index
    %c2_38 = arith.constant 2 : index
    %74 = memref.load %arg1[%c2_37, %c2_38] : memref<3x16xf32, #tpu.memory_space<smem>>
    %75 = vector.broadcast %74 : f32 to vector<128x128xf32>
    %76 = arith.mulf %75, %69 : vector<128x128xf32>
    %77 = arith.addf %62, %76 : vector<128x128xf32>
    %c0_39 = arith.constant 0 : index
    %c3 = arith.constant 3 : index
    %78 = memref.load %arg1[%c0_39, %c3] : memref<3x16xf32, #tpu.memory_space<smem>>
    %79 = vector.broadcast %78 : f32 to vector<128x128xf32>
    %80 = arith.subf %29, %79 : vector<128x128xf32>
    %81 = arith.mulf %80, %80 : vector<128x128xf32>
    %cst_40 = arith.constant -1.000000e+01 : f32
    %82 = vector.broadcast %cst_40 : f32 to vector<128x128xf32>
    %83 = arith.mulf %82, %81 : vector<128x128xf32>
    %84 = math.exp %83 : vector<128x128xf32>
    %c1_41 = arith.constant 1 : index
    %c3_42 = arith.constant 3 : index
    %85 = memref.load %arg1[%c1_41, %c3_42] : memref<3x16xf32, #tpu.memory_space<smem>>
    %86 = vector.broadcast %85 : f32 to vector<128x128xf32>
    %87 = arith.mulf %86, %84 : vector<128x128xf32>
    %88 = arith.addf %73, %87 : vector<128x128xf32>
    %c2_43 = arith.constant 2 : index
    %c3_44 = arith.constant 3 : index
    %89 = memref.load %arg1[%c2_43, %c3_44] : memref<3x16xf32, #tpu.memory_space<smem>>
    %90 = vector.broadcast %89 : f32 to vector<128x128xf32>
    %91 = arith.mulf %90, %84 : vector<128x128xf32>
    %92 = arith.addf %77, %91 : vector<128x128xf32>
    %c0_45 = arith.constant 0 : index
    %c4 = arith.constant 4 : index
    %93 = memref.load %arg1[%c0_45, %c4] : memref<3x16xf32, #tpu.memory_space<smem>>
    %94 = vector.broadcast %93 : f32 to vector<128x128xf32>
    %95 = arith.subf %29, %94 : vector<128x128xf32>
    %96 = arith.mulf %95, %95 : vector<128x128xf32>
    %cst_46 = arith.constant -1.000000e+01 : f32
    %97 = vector.broadcast %cst_46 : f32 to vector<128x128xf32>
    %98 = arith.mulf %97, %96 : vector<128x128xf32>
    %99 = math.exp %98 : vector<128x128xf32>
    %c1_47 = arith.constant 1 : index
    %c4_48 = arith.constant 4 : index
    %100 = memref.load %arg1[%c1_47, %c4_48] : memref<3x16xf32, #tpu.memory_space<smem>>
    %101 = vector.broadcast %100 : f32 to vector<128x128xf32>
    %102 = arith.mulf %101, %99 : vector<128x128xf32>
    %103 = arith.addf %88, %102 : vector<128x128xf32>
    %c2_49 = arith.constant 2 : index
    %c4_50 = arith.constant 4 : index
    %104 = memref.load %arg1[%c2_49, %c4_50] : memref<3x16xf32, #tpu.memory_space<smem>>
    %105 = vector.broadcast %104 : f32 to vector<128x128xf32>
    %106 = arith.mulf %105, %99 : vector<128x128xf32>
    %107 = arith.addf %92, %106 : vector<128x128xf32>
    %c0_51 = arith.constant 0 : index
    %c5 = arith.constant 5 : index
    %108 = memref.load %arg1[%c0_51, %c5] : memref<3x16xf32, #tpu.memory_space<smem>>
    %109 = vector.broadcast %108 : f32 to vector<128x128xf32>
    %110 = arith.subf %29, %109 : vector<128x128xf32>
    %111 = arith.mulf %110, %110 : vector<128x128xf32>
    %cst_52 = arith.constant -1.000000e+01 : f32
    %112 = vector.broadcast %cst_52 : f32 to vector<128x128xf32>
    %113 = arith.mulf %112, %111 : vector<128x128xf32>
    %114 = math.exp %113 : vector<128x128xf32>
    %c1_53 = arith.constant 1 : index
    %c5_54 = arith.constant 5 : index
    %115 = memref.load %arg1[%c1_53, %c5_54] : memref<3x16xf32, #tpu.memory_space<smem>>
    %116 = vector.broadcast %115 : f32 to vector<128x128xf32>
    %117 = arith.mulf %116, %114 : vector<128x128xf32>
    %118 = arith.addf %103, %117 : vector<128x128xf32>
    %c2_55 = arith.constant 2 : index
    %c5_56 = arith.constant 5 : index
    %119 = memref.load %arg1[%c2_55, %c5_56] : memref<3x16xf32, #tpu.memory_space<smem>>
    %120 = vector.broadcast %119 : f32 to vector<128x128xf32>
    %121 = arith.mulf %120, %114 : vector<128x128xf32>
    %122 = arith.addf %107, %121 : vector<128x128xf32>
    %c0_57 = arith.constant 0 : index
    %c6 = arith.constant 6 : index
    %123 = memref.load %arg1[%c0_57, %c6] : memref<3x16xf32, #tpu.memory_space<smem>>
    %124 = vector.broadcast %123 : f32 to vector<128x128xf32>
    %125 = arith.subf %29, %124 : vector<128x128xf32>
    %126 = arith.mulf %125, %125 : vector<128x128xf32>
    %cst_58 = arith.constant -1.000000e+01 : f32
    %127 = vector.broadcast %cst_58 : f32 to vector<128x128xf32>
    %128 = arith.mulf %127, %126 : vector<128x128xf32>
    %129 = math.exp %128 : vector<128x128xf32>
    %c1_59 = arith.constant 1 : index
    %c6_60 = arith.constant 6 : index
    %130 = memref.load %arg1[%c1_59, %c6_60] : memref<3x16xf32, #tpu.memory_space<smem>>
    %131 = vector.broadcast %130 : f32 to vector<128x128xf32>
    %132 = arith.mulf %131, %129 : vector<128x128xf32>
    %133 = arith.addf %118, %132 : vector<128x128xf32>
    %c2_61 = arith.constant 2 : index
    %c6_62 = arith.constant 6 : index
    %134 = memref.load %arg1[%c2_61, %c6_62] : memref<3x16xf32, #tpu.memory_space<smem>>
    %135 = vector.broadcast %134 : f32 to vector<128x128xf32>
    %136 = arith.mulf %135, %129 : vector<128x128xf32>
    %137 = arith.addf %122, %136 : vector<128x128xf32>
    %c0_63 = arith.constant 0 : index
    %c7 = arith.constant 7 : index
    %138 = memref.load %arg1[%c0_63, %c7] : memref<3x16xf32, #tpu.memory_space<smem>>
    %139 = vector.broadcast %138 : f32 to vector<128x128xf32>
    %140 = arith.subf %29, %139 : vector<128x128xf32>
    %141 = arith.mulf %140, %140 : vector<128x128xf32>
    %cst_64 = arith.constant -1.000000e+01 : f32
    %142 = vector.broadcast %cst_64 : f32 to vector<128x128xf32>
    %143 = arith.mulf %142, %141 : vector<128x128xf32>
    %144 = math.exp %143 : vector<128x128xf32>
    %c1_65 = arith.constant 1 : index
    %c7_66 = arith.constant 7 : index
    %145 = memref.load %arg1[%c1_65, %c7_66] : memref<3x16xf32, #tpu.memory_space<smem>>
    %146 = vector.broadcast %145 : f32 to vector<128x128xf32>
    %147 = arith.mulf %146, %144 : vector<128x128xf32>
    %148 = arith.addf %133, %147 : vector<128x128xf32>
    %c2_67 = arith.constant 2 : index
    %c7_68 = arith.constant 7 : index
    %149 = memref.load %arg1[%c2_67, %c7_68] : memref<3x16xf32, #tpu.memory_space<smem>>
    %150 = vector.broadcast %149 : f32 to vector<128x128xf32>
    %151 = arith.mulf %150, %144 : vector<128x128xf32>
    %152 = arith.addf %137, %151 : vector<128x128xf32>
    %c0_69 = arith.constant 0 : index
    %c8 = arith.constant 8 : index
    %153 = memref.load %arg1[%c0_69, %c8] : memref<3x16xf32, #tpu.memory_space<smem>>
    %154 = vector.broadcast %153 : f32 to vector<128x128xf32>
    %155 = arith.subf %29, %154 : vector<128x128xf32>
    %156 = arith.mulf %155, %155 : vector<128x128xf32>
    %cst_70 = arith.constant -1.000000e+01 : f32
    %157 = vector.broadcast %cst_70 : f32 to vector<128x128xf32>
    %158 = arith.mulf %157, %156 : vector<128x128xf32>
    %159 = math.exp %158 : vector<128x128xf32>
    %c1_71 = arith.constant 1 : index
    %c8_72 = arith.constant 8 : index
    %160 = memref.load %arg1[%c1_71, %c8_72] : memref<3x16xf32, #tpu.memory_space<smem>>
    %161 = vector.broadcast %160 : f32 to vector<128x128xf32>
    %162 = arith.mulf %161, %159 : vector<128x128xf32>
    %163 = arith.addf %148, %162 : vector<128x128xf32>
    %c2_73 = arith.constant 2 : index
    %c8_74 = arith.constant 8 : index
    %164 = memref.load %arg1[%c2_73, %c8_74] : memref<3x16xf32, #tpu.memory_space<smem>>
    %165 = vector.broadcast %164 : f32 to vector<128x128xf32>
    %166 = arith.mulf %165, %159 : vector<128x128xf32>
    %167 = arith.addf %152, %166 : vector<128x128xf32>
    %c0_75 = arith.constant 0 : index
    %c9 = arith.constant 9 : index
    %168 = memref.load %arg1[%c0_75, %c9] : memref<3x16xf32, #tpu.memory_space<smem>>
    %169 = vector.broadcast %168 : f32 to vector<128x128xf32>
    %170 = arith.subf %29, %169 : vector<128x128xf32>
    %171 = arith.mulf %170, %170 : vector<128x128xf32>
    %cst_76 = arith.constant -1.000000e+01 : f32
    %172 = vector.broadcast %cst_76 : f32 to vector<128x128xf32>
    %173 = arith.mulf %172, %171 : vector<128x128xf32>
    %174 = math.exp %173 : vector<128x128xf32>
    %c1_77 = arith.constant 1 : index
    %c9_78 = arith.constant 9 : index
    %175 = memref.load %arg1[%c1_77, %c9_78] : memref<3x16xf32, #tpu.memory_space<smem>>
    %176 = vector.broadcast %175 : f32 to vector<128x128xf32>
    %177 = arith.mulf %176, %174 : vector<128x128xf32>
    %178 = arith.addf %163, %177 : vector<128x128xf32>
    %c2_79 = arith.constant 2 : index
    %c9_80 = arith.constant 9 : index
    %179 = memref.load %arg1[%c2_79, %c9_80] : memref<3x16xf32, #tpu.memory_space<smem>>
    %180 = vector.broadcast %179 : f32 to vector<128x128xf32>
    %181 = arith.mulf %180, %174 : vector<128x128xf32>
    %182 = arith.addf %167, %181 : vector<128x128xf32>
    %c0_81 = arith.constant 0 : index
    %c10 = arith.constant 10 : index
    %183 = memref.load %arg1[%c0_81, %c10] : memref<3x16xf32, #tpu.memory_space<smem>>
    %184 = vector.broadcast %183 : f32 to vector<128x128xf32>
    %185 = arith.subf %29, %184 : vector<128x128xf32>
    %186 = arith.mulf %185, %185 : vector<128x128xf32>
    %cst_82 = arith.constant -1.000000e+01 : f32
    %187 = vector.broadcast %cst_82 : f32 to vector<128x128xf32>
    %188 = arith.mulf %187, %186 : vector<128x128xf32>
    %189 = math.exp %188 : vector<128x128xf32>
    %c1_83 = arith.constant 1 : index
    %c10_84 = arith.constant 10 : index
    %190 = memref.load %arg1[%c1_83, %c10_84] : memref<3x16xf32, #tpu.memory_space<smem>>
    %191 = vector.broadcast %190 : f32 to vector<128x128xf32>
    %192 = arith.mulf %191, %189 : vector<128x128xf32>
    %193 = arith.addf %178, %192 : vector<128x128xf32>
    %c2_85 = arith.constant 2 : index
    %c10_86 = arith.constant 10 : index
    %194 = memref.load %arg1[%c2_85, %c10_86] : memref<3x16xf32, #tpu.memory_space<smem>>
    %195 = vector.broadcast %194 : f32 to vector<128x128xf32>
    %196 = arith.mulf %195, %189 : vector<128x128xf32>
    %197 = arith.addf %182, %196 : vector<128x128xf32>
    %c0_87 = arith.constant 0 : index
    %c11 = arith.constant 11 : index
    %198 = memref.load %arg1[%c0_87, %c11] : memref<3x16xf32, #tpu.memory_space<smem>>
    %199 = vector.broadcast %198 : f32 to vector<128x128xf32>
    %200 = arith.subf %29, %199 : vector<128x128xf32>
    %201 = arith.mulf %200, %200 : vector<128x128xf32>
    %cst_88 = arith.constant -1.000000e+01 : f32
    %202 = vector.broadcast %cst_88 : f32 to vector<128x128xf32>
    %203 = arith.mulf %202, %201 : vector<128x128xf32>
    %204 = math.exp %203 : vector<128x128xf32>
    %c1_89 = arith.constant 1 : index
    %c11_90 = arith.constant 11 : index
    %205 = memref.load %arg1[%c1_89, %c11_90] : memref<3x16xf32, #tpu.memory_space<smem>>
    %206 = vector.broadcast %205 : f32 to vector<128x128xf32>
    %207 = arith.mulf %206, %204 : vector<128x128xf32>
    %208 = arith.addf %193, %207 : vector<128x128xf32>
    %c2_91 = arith.constant 2 : index
    %c11_92 = arith.constant 11 : index
    %209 = memref.load %arg1[%c2_91, %c11_92] : memref<3x16xf32, #tpu.memory_space<smem>>
    %210 = vector.broadcast %209 : f32 to vector<128x128xf32>
    %211 = arith.mulf %210, %204 : vector<128x128xf32>
    %212 = arith.addf %197, %211 : vector<128x128xf32>
    %c0_93 = arith.constant 0 : index
    %c12 = arith.constant 12 : index
    %213 = memref.load %arg1[%c0_93, %c12] : memref<3x16xf32, #tpu.memory_space<smem>>
    %214 = vector.broadcast %213 : f32 to vector<128x128xf32>
    %215 = arith.subf %29, %214 : vector<128x128xf32>
    %216 = arith.mulf %215, %215 : vector<128x128xf32>
    %cst_94 = arith.constant -1.000000e+01 : f32
    %217 = vector.broadcast %cst_94 : f32 to vector<128x128xf32>
    %218 = arith.mulf %217, %216 : vector<128x128xf32>
    %219 = math.exp %218 : vector<128x128xf32>
    %c1_95 = arith.constant 1 : index
    %c12_96 = arith.constant 12 : index
    %220 = memref.load %arg1[%c1_95, %c12_96] : memref<3x16xf32, #tpu.memory_space<smem>>
    %221 = vector.broadcast %220 : f32 to vector<128x128xf32>
    %222 = arith.mulf %221, %219 : vector<128x128xf32>
    %223 = arith.addf %208, %222 : vector<128x128xf32>
    %c2_97 = arith.constant 2 : index
    %c12_98 = arith.constant 12 : index
    %224 = memref.load %arg1[%c2_97, %c12_98] : memref<3x16xf32, #tpu.memory_space<smem>>
    %225 = vector.broadcast %224 : f32 to vector<128x128xf32>
    %226 = arith.mulf %225, %219 : vector<128x128xf32>
    %227 = arith.addf %212, %226 : vector<128x128xf32>
    %c0_99 = arith.constant 0 : index
    %c13 = arith.constant 13 : index
    %228 = memref.load %arg1[%c0_99, %c13] : memref<3x16xf32, #tpu.memory_space<smem>>
    %229 = vector.broadcast %228 : f32 to vector<128x128xf32>
    %230 = arith.subf %29, %229 : vector<128x128xf32>
    %231 = arith.mulf %230, %230 : vector<128x128xf32>
    %cst_100 = arith.constant -1.000000e+01 : f32
    %232 = vector.broadcast %cst_100 : f32 to vector<128x128xf32>
    %233 = arith.mulf %232, %231 : vector<128x128xf32>
    %234 = math.exp %233 : vector<128x128xf32>
    %c1_101 = arith.constant 1 : index
    %c13_102 = arith.constant 13 : index
    %235 = memref.load %arg1[%c1_101, %c13_102] : memref<3x16xf32, #tpu.memory_space<smem>>
    %236 = vector.broadcast %235 : f32 to vector<128x128xf32>
    %237 = arith.mulf %236, %234 : vector<128x128xf32>
    %238 = arith.addf %223, %237 : vector<128x128xf32>
    %c2_103 = arith.constant 2 : index
    %c13_104 = arith.constant 13 : index
    %239 = memref.load %arg1[%c2_103, %c13_104] : memref<3x16xf32, #tpu.memory_space<smem>>
    %240 = vector.broadcast %239 : f32 to vector<128x128xf32>
    %241 = arith.mulf %240, %234 : vector<128x128xf32>
    %242 = arith.addf %227, %241 : vector<128x128xf32>
    %c0_105 = arith.constant 0 : index
    %c14 = arith.constant 14 : index
    %243 = memref.load %arg1[%c0_105, %c14] : memref<3x16xf32, #tpu.memory_space<smem>>
    %244 = vector.broadcast %243 : f32 to vector<128x128xf32>
    %245 = arith.subf %29, %244 : vector<128x128xf32>
    %246 = arith.mulf %245, %245 : vector<128x128xf32>
    %cst_106 = arith.constant -1.000000e+01 : f32
    %247 = vector.broadcast %cst_106 : f32 to vector<128x128xf32>
    %248 = arith.mulf %247, %246 : vector<128x128xf32>
    %249 = math.exp %248 : vector<128x128xf32>
    %c1_107 = arith.constant 1 : index
    %c14_108 = arith.constant 14 : index
    %250 = memref.load %arg1[%c1_107, %c14_108] : memref<3x16xf32, #tpu.memory_space<smem>>
    %251 = vector.broadcast %250 : f32 to vector<128x128xf32>
    %252 = arith.mulf %251, %249 : vector<128x128xf32>
    %253 = arith.addf %238, %252 : vector<128x128xf32>
    %c2_109 = arith.constant 2 : index
    %c14_110 = arith.constant 14 : index
    %254 = memref.load %arg1[%c2_109, %c14_110] : memref<3x16xf32, #tpu.memory_space<smem>>
    %255 = vector.broadcast %254 : f32 to vector<128x128xf32>
    %256 = arith.mulf %255, %249 : vector<128x128xf32>
    %257 = arith.addf %242, %256 : vector<128x128xf32>
    %c0_111 = arith.constant 0 : index
    %c15 = arith.constant 15 : index
    %258 = memref.load %arg1[%c0_111, %c15] : memref<3x16xf32, #tpu.memory_space<smem>>
    %259 = vector.broadcast %258 : f32 to vector<128x128xf32>
    %260 = arith.subf %29, %259 : vector<128x128xf32>
    %261 = arith.mulf %260, %260 : vector<128x128xf32>
    %cst_112 = arith.constant -1.000000e+01 : f32
    %262 = vector.broadcast %cst_112 : f32 to vector<128x128xf32>
    %263 = arith.mulf %262, %261 : vector<128x128xf32>
    %264 = math.exp %263 : vector<128x128xf32>
    %c1_113 = arith.constant 1 : index
    %c15_114 = arith.constant 15 : index
    %265 = memref.load %arg1[%c1_113, %c15_114] : memref<3x16xf32, #tpu.memory_space<smem>>
    %266 = vector.broadcast %265 : f32 to vector<128x128xf32>
    %267 = arith.mulf %266, %264 : vector<128x128xf32>
    %268 = arith.addf %253, %267 : vector<128x128xf32>
    %c2_115 = arith.constant 2 : index
    %c15_116 = arith.constant 15 : index
    %269 = memref.load %arg1[%c2_115, %c15_116] : memref<3x16xf32, #tpu.memory_space<smem>>
    %270 = vector.broadcast %269 : f32 to vector<128x128xf32>
    %271 = arith.mulf %270, %264 : vector<128x128xf32>
    %272 = arith.addf %257, %271 : vector<128x128xf32>
    %c32 = arith.constant 32 : index
    %c0_117 = arith.constant 0 : index
    %273 = vector.load %arg7[%c32, %c0_117] : memref<224x128xbf16, #tpu.memory_space<vmem>>, vector<32x64xbf16>
    %274 = arith.truncf %0 : vector<128x32xf32> to vector<128x32xbf16>
    %cst_118 = arith.constant dense<0.000000e+00> : vector<128x64xf32>
    %275 = tpu.matmul %274, %273, %cst_118 {dimension_numbers = #tpu.dot_dimension_numbers<[1], [0], [0], [1], [0, 0, 1, 1], [], []>} : vector<128x32xbf16>, vector<32x64xbf16>, vector<128x64xf32> -> vector<128x64xf32>
    %276 = vector.extract_strided_slice %275 {offsets = [0, 0], sizes = [128, 32], strides = [1, 1]} : vector<128x64xf32> to vector<128x32xf32>
    %277 = vector.extract_strided_slice %275 {offsets = [0, 32], sizes = [128, 32], strides = [1, 1]} : vector<128x64xf32> to vector<128x32xf32>
    %278 = arith.mulf %1, %268 : vector<128x128xf32>
    %279 = arith.truncf %278 : vector<128x128xf32> to vector<128x128xbf16>
    %280 = arith.truncf %276 : vector<128x32xf32> to vector<128x32xbf16>
    %cst_119 = arith.constant dense<0.000000e+00> : vector<128x32xf32>
    %281 = tpu.matmul %279, %280, %cst_119 {dimension_numbers = #tpu.dot_dimension_numbers<[1], [0], [0], [1], [0, 0, 1, 1], [], []>} : vector<128x128xbf16>, vector<128x32xbf16>, vector<128x32xf32> -> vector<128x32xf32>
    %282 = arith.addf %0, %281 : vector<128x32xf32>
    %283 = arith.mulf %30, %272 : vector<128x128xf32>
    %284 = arith.mulf %11, %283 : vector<128x128xf32>
    %285 = arith.mulf %14, %283 : vector<128x128xf32>
    %286 = arith.mulf %17, %283 : vector<128x128xf32>
    %287 = tpu.concatenate %284, %285, %286 in 0 : vector<128x128xf32>, vector<128x128xf32>, vector<128x128xf32> -> vector<384x128xf32>
    %288 = arith.truncf %287 : vector<384x128xf32> to vector<384x128xbf16>
    %289 = arith.truncf %277 : vector<128x32xf32> to vector<128x32xbf16>
    %cst_120 = arith.constant dense<0.000000e+00> : vector<384x32xf32>
    %290 = tpu.matmul %288, %289, %cst_120 {dimension_numbers = #tpu.dot_dimension_numbers<[1], [0], [0], [1], [0, 0, 1, 1], [], []>} : vector<384x128xbf16>, vector<128x32xbf16>, vector<384x32xf32> -> vector<384x32xf32>
    %c0_121 = arith.constant 0 : index
    %c0_122 = arith.constant 0 : index
    %291 = vector.load %arg7[%c0_121, %c0_122] : memref<224x128xbf16, #tpu.memory_space<vmem>>, vector<32x96xbf16>
    %292 = arith.truncf %290 : vector<384x32xf32> to vector<384x32xbf16>
    %cst_123 = arith.constant dense<0.000000e+00> : vector<384x96xf32>
    %293 = tpu.matmul %292, %291, %cst_123 {dimension_numbers = #tpu.dot_dimension_numbers<[1], [0], [0], [1], [0, 0, 1, 1], [], []>} : vector<384x32xbf16>, vector<32x96xbf16>, vector<384x96xf32> -> vector<384x96xf32>
    %294 = vector.extract_strided_slice %293 {offsets = [0, 0], sizes = [384, 64], strides = [1, 1]} : vector<384x96xf32> to vector<384x64xf32>
    %295 = vector.extract_strided_slice %293 {offsets = [0, 64], sizes = [384, 32], strides = [1, 1]} : vector<384x96xf32> to vector<384x32xf32>
    %296 = vector.extract_strided_slice %294 {offsets = [0, 0], sizes = [128, 64], strides = [1, 1]} : vector<384x64xf32> to vector<128x64xf32>
    %297 = arith.mulf %296, %296 : vector<128x64xf32>
    %298 = vector.extract_strided_slice %294 {offsets = [128, 0], sizes = [128, 64], strides = [1, 1]} : vector<384x64xf32> to vector<128x64xf32>
    %299 = arith.mulf %298, %298 : vector<128x64xf32>
    %300 = arith.addf %297, %299 : vector<128x64xf32>
    %301 = vector.extract_strided_slice %294 {offsets = [256, 0], sizes = [128, 64], strides = [1, 1]} : vector<384x64xf32> to vector<128x64xf32>
    %302 = arith.mulf %301, %301 : vector<128x64xf32>
    %303 = arith.addf %300, %302 : vector<128x64xf32>
    %304 = math.sqrt %303 : vector<128x64xf32>
    %305 = tpu.concatenate %282, %304 in 1 : vector<128x32xf32>, vector<128x64xf32> -> vector<128x96xf32>
    %c128 = arith.constant 128 : index
    %c0_124 = arith.constant 0 : index
    %306 = vector.load %arg7[%c128, %c0_124] : memref<224x128xbf16, #tpu.memory_space<vmem>>, vector<96x64xbf16>
    %307 = arith.truncf %305 : vector<128x96xf32> to vector<128x96xbf16>
    %cst_125 = arith.constant dense<0.000000e+00> : vector<128x64xf32>
    %308 = tpu.matmul %307, %306, %cst_125 {dimension_numbers = #tpu.dot_dimension_numbers<[1], [0], [0], [1], [0, 0, 1, 1], [], []>} : vector<128x96xbf16>, vector<96x64xbf16>, vector<128x64xf32> -> vector<128x64xf32>
    %c0_126 = arith.constant 0 : index
    %c0_127 = arith.constant 0 : index
    %309 = vector.load %arg8[%c0_126, %c0_127] : memref<8x128xf32, #tpu.memory_space<vmem>>, vector<1x64xf32>
    %310 = vector.broadcast %309 : vector<1x64xf32> to vector<128x64xf32>
    %311 = arith.addf %308, %310 : vector<128x64xf32>
    %cst_128 = arith.constant 0.000000e+00 : f32
    %312 = vector.broadcast %cst_128 : f32 to vector<128x64xf32>
    %313 = arith.subf %312, %311 : vector<128x64xf32>
    %314 = math.exp %313 : vector<128x64xf32>
    %cst_129 = arith.constant 1.000000e+00 : f32
    %315 = vector.broadcast %cst_129 : f32 to vector<128x64xf32>
    %316 = arith.addf %315, %314 : vector<128x64xf32>
    %cst_130 = arith.constant 1.000000e+00 : f32
    %317 = vector.broadcast %cst_130 : f32 to vector<128x64xf32>
    %318 = arith.divf %317, %316 : vector<128x64xf32>
    %319 = arith.mulf %311, %318 : vector<128x64xf32>
    %c64 = arith.constant 64 : index
    %c0_131 = arith.constant 0 : index
    %320 = vector.load %arg7[%c64, %c0_131] : memref<224x128xbf16, #tpu.memory_space<vmem>>, vector<64x64xbf16>
    %321 = arith.truncf %319 : vector<128x64xf32> to vector<128x64xbf16>
    %cst_132 = arith.constant dense<0.000000e+00> : vector<128x64xf32>
    %322 = tpu.matmul %321, %320, %cst_132 {dimension_numbers = #tpu.dot_dimension_numbers<[1], [0], [0], [1], [0, 0, 1, 1], [], []>} : vector<128x64xbf16>, vector<64x64xbf16>, vector<128x64xf32> -> vector<128x64xf32>
    %c0_133 = arith.constant 0 : index
    %c64_134 = arith.constant 64 : index
    %323 = vector.load %arg8[%c0_133, %c64_134] : memref<8x128xf32, #tpu.memory_space<vmem>>, vector<1x64xf32>
    %324 = vector.broadcast %323 : vector<1x64xf32> to vector<128x64xf32>
    %325 = arith.addf %322, %324 : vector<128x64xf32>
    %326 = vector.extract_strided_slice %325 {offsets = [0, 0], sizes = [128, 32], strides = [1, 1]} : vector<128x64xf32> to vector<128x32xf32>
    %cst_135 = arith.constant 0.000000e+00 : f32
    %327 = vector.broadcast %cst_135 : f32 to vector<128x32xf32>
    %328 = arith.subf %327, %326 : vector<128x32xf32>
    %329 = math.exp %328 : vector<128x32xf32>
    %cst_136 = arith.constant 1.000000e+00 : f32
    %330 = vector.broadcast %cst_136 : f32 to vector<128x32xf32>
    %331 = arith.addf %330, %329 : vector<128x32xf32>
    %cst_137 = arith.constant 1.000000e+00 : f32
    %332 = vector.broadcast %cst_137 : f32 to vector<128x32xf32>
    %333 = arith.divf %332, %331 : vector<128x32xf32>
    %334 = arith.mulf %326, %333 : vector<128x32xf32>
    %335 = vector.extract_strided_slice %325 {offsets = [0, 32], sizes = [128, 32], strides = [1, 1]} : vector<128x64xf32> to vector<128x32xf32>
    %336 = tpu.concatenate %335, %335, %335 in 0 : vector<128x32xf32>, vector<128x32xf32>, vector<128x32xf32> -> vector<384x32xf32>
    %337 = arith.mulf %295, %336 : vector<384x32xf32>
    %c32_138 = arith.constant 32 : index
    %c64_139 = arith.constant 64 : index
    %338 = vector.load %arg7[%c32_138, %c64_139] : memref<224x128xbf16, #tpu.memory_space<vmem>>, vector<32x33xbf16>
    %339 = arith.truncf %337 : vector<384x32xf32> to vector<384x32xbf16>
    %cst_140 = arith.constant dense<0.000000e+00> : vector<384x33xf32>
    %340 = tpu.matmul %339, %338, %cst_140 {dimension_numbers = #tpu.dot_dimension_numbers<[1], [0], [0], [1], [0, 0, 1, 1], [], []>} : vector<384x32xbf16>, vector<32x33xbf16>, vector<384x33xf32> -> vector<384x33xf32>
    %341 = vector.extract_strided_slice %340 {offsets = [0, 0], sizes = [384, 32], strides = [1, 1]} : vector<384x33xf32> to vector<384x32xf32>
    %342 = vector.extract_strided_slice %340 {offsets = [0, 32], sizes = [384, 1], strides = [1, 1]} : vector<384x33xf32> to vector<384x1xf32>
    %343 = vector.extract_strided_slice %341 {offsets = [0, 0], sizes = [128, 32], strides = [1, 1]} : vector<384x32xf32> to vector<128x32xf32>
    %344 = arith.mulf %343, %343 : vector<128x32xf32>
    %345 = vector.extract_strided_slice %341 {offsets = [128, 0], sizes = [128, 32], strides = [1, 1]} : vector<384x32xf32> to vector<128x32xf32>
    %346 = arith.mulf %345, %345 : vector<128x32xf32>
    %347 = arith.addf %344, %346 : vector<128x32xf32>
    %348 = vector.extract_strided_slice %341 {offsets = [256, 0], sizes = [128, 32], strides = [1, 1]} : vector<384x32xf32> to vector<128x32xf32>
    %349 = arith.mulf %348, %348 : vector<128x32xf32>
    %350 = arith.addf %347, %349 : vector<128x32xf32>
    %351 = math.sqrt %350 : vector<128x32xf32>
    %352 = tpu.concatenate %334, %351 in 1 : vector<128x32xf32>, vector<128x32xf32> -> vector<128x64xf32>
    %c64_141 = arith.constant 64 : index
    %c64_142 = arith.constant 64 : index
    %353 = vector.load %arg7[%c64_141, %c64_142] : memref<224x128xbf16, #tpu.memory_space<vmem>>, vector<64x32xbf16>
    %354 = arith.truncf %352 : vector<128x64xf32> to vector<128x64xbf16>
    %cst_143 = arith.constant dense<0.000000e+00> : vector<128x32xf32>
    %355 = tpu.matmul %354, %353, %cst_143 {dimension_numbers = #tpu.dot_dimension_numbers<[1], [0], [0], [1], [0, 0, 1, 1], [], []>} : vector<128x64xbf16>, vector<64x32xbf16>, vector<128x32xf32> -> vector<128x32xf32>
    %c1_144 = arith.constant 1 : index
    %c0_145 = arith.constant 0 : index
    %356 = vector.load %arg8[%c1_144, %c0_145] : memref<8x128xf32, #tpu.memory_space<vmem>>, vector<1x32xf32>
    %357 = vector.broadcast %356 : vector<1x32xf32> to vector<128x32xf32>
    %358 = arith.addf %355, %357 : vector<128x32xf32>
    %cst_146 = arith.constant 0.000000e+00 : f32
    %359 = vector.broadcast %cst_146 : f32 to vector<128x32xf32>
    %360 = arith.subf %359, %358 : vector<128x32xf32>
    %361 = math.exp %360 : vector<128x32xf32>
    %cst_147 = arith.constant 1.000000e+00 : f32
    %362 = vector.broadcast %cst_147 : f32 to vector<128x32xf32>
    %363 = arith.addf %362, %361 : vector<128x32xf32>
    %cst_148 = arith.constant 1.000000e+00 : f32
    %364 = vector.broadcast %cst_148 : f32 to vector<128x32xf32>
    %365 = arith.divf %364, %363 : vector<128x32xf32>
    %366 = arith.mulf %358, %365 : vector<128x32xf32>
    %c0_149 = arith.constant 0 : index
    %c96 = arith.constant 96 : index
    %367 = vector.load %arg7[%c0_149, %c96] : memref<224x128xbf16, #tpu.memory_space<vmem>>, vector<32x2xbf16>
    %368 = arith.truncf %366 : vector<128x32xf32> to vector<128x32xbf16>
    %cst_150 = arith.constant dense<0.000000e+00> : vector<128x2xf32>
    %369 = tpu.matmul %368, %367, %cst_150 {dimension_numbers = #tpu.dot_dimension_numbers<[1], [0], [0], [1], [0, 0, 1, 1], [], []>} : vector<128x32xbf16>, vector<32x2xbf16>, vector<128x2xf32> -> vector<128x2xf32>
    %c1_151 = arith.constant 1 : index
    %c32_152 = arith.constant 32 : index
    %370 = vector.load %arg8[%c1_151, %c32_152] : memref<8x128xf32, #tpu.memory_space<vmem>>, vector<1x2xf32>
    %371 = vector.broadcast %370 : vector<1x2xf32> to vector<128x2xf32>
    %372 = arith.addf %369, %371 : vector<128x2xf32>
    %373 = vector.extract_strided_slice %372 {offsets = [0, 0], sizes = [128, 1], strides = [1, 1]} : vector<128x2xf32> to vector<128x1xf32>
    %374 = vector.extract_strided_slice %372 {offsets = [0, 1], sizes = [128, 1], strides = [1, 1]} : vector<128x2xf32> to vector<128x1xf32>
    %375 = arith.truncf %2 : vector<8x128xf32> to vector<8x128xbf16>
    %376 = arith.truncf %373 : vector<128x1xf32> to vector<128x1xbf16>
    %cst_153 = arith.constant dense<0.000000e+00> : vector<8x1xf32>
    %377 = tpu.matmul %375, %376, %cst_153 {dimension_numbers = #tpu.dot_dimension_numbers<[1], [0], [0], [1], [0, 0, 1, 1], [], []>} : vector<8x128xbf16>, vector<128x1xbf16>, vector<8x1xf32> -> vector<8x1xf32>
    %cst_154 = arith.constant 2.500000e+00 : f32
    %378 = vector.broadcast %cst_154 : f32 to vector<8x1xf32>
    %379 = arith.mulf %377, %378 : vector<8x1xf32>
    %cst_155 = arith.constant -1.300000e+00 : f32
    %380 = vector.broadcast %cst_155 : f32 to vector<8x1xf32>
    %381 = arith.addf %379, %380 : vector<8x1xf32>
    %c0_156 = arith.constant 0 : index
    %c0_157 = arith.constant 0 : index
    %382 = vector.load %arg9[%c0_156, %c0_157] : memref<8x1xf32, #tpu.memory_space<vmem>>, vector<8x1xf32>
    tpu.vector_store %arg9[%c0_156, %c0_157], %381 {strides = array<i32>} : memref<8x1xf32, #tpu.memory_space<vmem>>, vector<8x1xf32>,
    %383 = vector.extract_strided_slice %342 {offsets = [0, 0], sizes = [128, 1], strides = [1, 1]} : vector<384x1xf32> to vector<128x1xf32>
    %384 = arith.mulf %383, %374 : vector<128x1xf32>
    %385 = vector.extract_strided_slice %342 {offsets = [128, 0], sizes = [128, 1], strides = [1, 1]} : vector<384x1xf32> to vector<128x1xf32>
    %386 = arith.mulf %385, %374 : vector<128x1xf32>
    %387 = vector.extract_strided_slice %342 {offsets = [256, 0], sizes = [128, 1], strides = [1, 1]} : vector<384x1xf32> to vector<128x1xf32>
    %388 = arith.mulf %387, %374 : vector<128x1xf32>
    %389 = tpu.concatenate %384, %386, %388 in 1 : vector<128x1xf32>, vector<128x1xf32>, vector<128x1xf32> -> vector<128x3xf32>
    %c0_158 = arith.constant 0 : index
    %c0_159 = arith.constant 0 : index
    %390 = vector.load %arg10[%c0_158, %c0_159] : memref<128x3xf32, #tpu.memory_space<vmem>>, vector<128x3xf32>
    tpu.vector_store %arg10[%c0_158, %c0_159], %389 {strides = array<i32>} : memref<128x3xf32, #tpu.memory_space<vmem>>, vector<128x3xf32>,
    return
  }
  func.func @transform_0(%arg0: i32) -> (i32, i32) {
    %c0_i32 = arith.constant 0 : i32
    %c0_i32_0 = arith.constant 0 : i32
    %c0_i32_1 = arith.constant 0 : i32
    return %c0_i32, %c0_i32_0 : i32, i32
  }
  func.func @transform_1(%arg0: i32) -> (i32, i32) {
    %c0_i32 = arith.constant 0 : i32
    %c0_i32_0 = arith.constant 0 : i32
    return %arg0, %c0_i32 : i32, i32
  }
  func.func @transform_2(%arg0: i32) -> (i32, i32) {
    %c0_i32 = arith.constant 0 : i32
    %c0_i32_0 = arith.constant 0 : i32
    return %arg0, %c0_i32 : i32, i32
  }
  func.func @transform_3(%arg0: i32) -> (i32, i32) {
    %c0_i32 = arith.constant 0 : i32
    %c0_i32_0 = arith.constant 0 : i32
    return %c0_i32, %arg0 : i32, i32
  }
  func.func @transform_4(%arg0: i32) -> (i32, i32) {
    %c0_i32 = arith.constant 0 : i32
    return %arg0, %arg0 : i32, i32
  }
  func.func @transform_5(%arg0: i32) -> (i32, i32) {
    %c0_i32 = arith.constant 0 : i32
    return %arg0, %arg0 : i32, i32
  }
  func.func @transform_6(%arg0: i32) -> (i32, i32) {
    %c0_i32 = arith.constant 0 : i32
    %c0_i32_0 = arith.constant 0 : i32
    %c0_i32_1 = arith.constant 0 : i32
    return %c0_i32, %c0_i32_0 : i32, i32
  }
  func.func @transform_7(%arg0: i32) -> (i32, i32) {
    %c0_i32 = arith.constant 0 : i32
    %c0_i32_0 = arith.constant 0 : i32
    %c0_i32_1 = arith.constant 0 : i32
    return %c0_i32, %c0_i32_0 : i32, i32
  }
  func.func @transform_8(%arg0: i32) -> (i32, i32) {
    %c0_i32 = arith.constant 0 : i32
    %c0_i32_0 = arith.constant 0 : i32
    return %arg0, %c0_i32 : i32, i32
  }
  func.func @transform_9(%arg0: i32) -> (i32, i32) {
    %c0_i32 = arith.constant 0 : i32
    %c0_i32_0 = arith.constant 0 : i32
    return %arg0, %c0_i32 : i32, i32
  }
}

</mosaic_0001>

<bundles_post_ra>
// kernel: tpu_custom_call.1
= control target key start
LH: loop header
LB: loop body
LE: loop exit
PB: predicated region body
PF: predicated region fallthrough
CT: control target
= control target key end

     0   :  { %15 = vsyncpa [#allocation4], 0  ;;  %s14164_s0 = inlined_call_operand.vmem [shape: f32[3,16], index: 0, kind: input, shape index: {}]   ;;  %s14165_s1 = inlined_call_operand.vmem [shape: f32[256,32], index: 1, kind: input, shape index: {}]   ;;  %s14166_s2 = inlined_call_operand.vmem [shape: f32[256,3], index: 2, kind: input, shape index: {}]   ;;  %s14167_s3 = inlined_call_operand.vmem [shape: f32[3,256], index: 3, kind: input, shape index: {}]   ;;  %s14168_s4 = inlined_call_operand.vmem [shape: f32[256,256], index: 4, kind: input, shape index: {}]   ;;  %s14169_s5 = inlined_call_operand.vmem [shape: f32[16,256], index: 5, kind: input, shape index: {}]   ;;  %s14170_s6 = inlined_call_operand.hbm [shape: bf16[224,128], index: 6, kind: input, shape index: {}]   ;;  %s14171_s7 = inlined_call_operand.vmem [shape: f32[8,128], index: 7, kind: input, shape index: {}]   ;;  %s14172_s8 = inlined_call_operand.vmem [shape: f32[16,1], index: 8, kind: output, shape index: {0}]   ;;  %s14173_s9 = inlined_call_operand.vmem [shape: f32[256,3], index: 9, kind: output, shape index: {1}]  }
   0x1   :  { %16 = vsyncpa [#allocation3], 0  ;;  %s8769_s30 = smov 0   ;;  %s8771_s10 = smov 0  }
   0x2   :  { %s8773_s11 = smov 0  }
   0x3 LB: > { %s8785_s12 = sadd.s32 4294967295, %s8704_s11   ;;  %s8788_s13 = sadd.s32 1, %s8704_s11   ;;  %s8704_s11 = sphi %s8773_s11, %s15756_s11   ;;  %s8700_s10 = sphi %s8771_s10, %s15755_s10   ;;  %s8696_s30 = sphi %s8769_s30, %s15754_s30  }
   0x4   : > { %s125_s14 = ssub.s32 %s8704_s11, %s8788_s13  ;;  %s130_s15 = sadd.s32 1, %s8700_s10 }
   0x5   : > { %s127_s16 = sor.u32 %s125_s14, %s125_s14  ;;  %p137_p0 = scmp.ne.s32.totalorder %s8700_s10, %s8696_s30 }
   0x6   : > { %p128_p1 = scmp.eq.s32.totalorder %s127_s16, 0  ;;  %p138_p2 = scmp.eq.s32.totalorder %s8704_s11, 0 }
   0x7   : > { %p7356_p3 = scmp.ge.s32.totalorder %s8704_s11, 1  ;;  %p276_p4 = scmp.lt.s32.totalorder %s8704_s11, 3 }
   0x8   : > { %s8799_s17 = scalar_select %p128_p1, %s8700_s10, %s130_s15  }
   0x9   : > { %p8801_p5 = por %p138_p2, %p137_p0  ;;  %p8805_p6 = pnand %p7356_p3, %p276_p4 }
   0xa   : > { %p7607_p7 = scmp.eq.s32.totalorder %s8785_s12, 0  ;;  %s288_s22 = sshll.u32 %s14164_s0, 4  ;;  %s289_s22 = int_to_ptr.vmem [resolvable:$true] %s288_s22 }
   0xb   : > { %p7600_p8 = pneg %p8805_p6  ;;  %s297_s25 = sshll.u32 %s14170_s6, 4  ;;  %s298_s25 = int_to_ptr.hbm [resolvable:$true] %s297_s25 }
   0xc   : > { %s8706_s26 = smov [#allocation6]   ;;  %s8707_s28 = smov [#allocation2]  }
   0xd   : > { %p7601_p9 = pnand %p7607_p7, %p7600_p8  ;;  %s299_s27 = sshll.u32 %s8706_s26, 4  ;;  %s300_s27 = int_to_ptr.vmem [resolvable:$true] %s299_s27 }
   0xe   : > { %s8708_s29 = smov 64   ;;  %s8709_s14 = smov 4  }
   0xf   : > { %7603 = dma.vmem_to_smem (!%p7601_p9), %s289_s22, 64, %s8707_s28, [#allocation4]  }
  0x10   : > { %7606 = dma.hbm_to_vmem [thread:$0]  (!%p7601_p9), %s298_s25, 1792, %s300_s27, [#allocation3], %s8708_s29, %s8708_s29, %s8709_s14  }
  0x11   : > { %p7359_p10 = scmp.ge.s32.totalorder %s8704_s11, 2 }
  0x13   : > { %312 = sbr.rel (%p7359_p10) target bundleno = 46 (0x2e), region = 28 }
  0x18   : > { %340 = sbr.rel (!%p8801_p5) target bundleno = 46 (0x2e), region = 44  ;;  %s342_s15 = sand.u32 (%p8801_p5), 1, %s8700_s10  }
  0x19   : > { %s7571_s16 = sshll.u32 (%p8801_p5), %s8704_s11, 5  ;;  %s7360_s20 = sshll.u32 (%p8801_p5), %s342_s15, 7 }
  0x1a   : > { %s347_s21 = sadd.s32 (%p8801_p5), %s8704_s11, %s7571_s16  ;;  %s344_s11 = scalar_lea.vmem (%p8801_p5), [#allocation5], %s7360_s20 }
  0x1b   : > { %s7363_s23 = sshll.u32 (%p8801_p5), %s347_s21, 3 }
  0x1c   : > { %s8829_s26 = scalar_lea.vmem (%p8801_p5), %s14168_s4, %s7363_s23 }
  0x1d   : > { %v408_v0 = vld [vmem:[%s8829_s26] sm:$0xff]  ;;  %v410_v1 = vld [vmem:[%s8829_s26 + $0x10] sm:$0xff] }
  0x1e   : > { %v412_v2 = vld [vmem:[%s8829_s26 + $0x20] sm:$0xff]  ;;  %409 = vst [vmem:[%s344_s11] sm:$0xff] %v408_v0  ;;  %v414_v3 = vld [vmem:[%s8829_s26 + $0x30] sm:$0xff] }
  0x1f   : > { %411 = vst [vmem:[%s344_s11 + $0x8] sm:$0xff] %v410_v1  ;;  %v416_v4 = vld [vmem:[%s8829_s26 + $0x40] sm:$0xff]  ;;  %v418_v5 = vld [vmem:[%s8829_s26 + $0x50] sm:$0xff] }
  0x20   : > { %413 = vst [vmem:[%s344_s11 + $0x10] sm:$0xff] %v412_v2  ;;  %v420_v6 = vld [vmem:[%s8829_s26 + $0x60] sm:$0xff]  ;;  %v422_v7 = vld [vmem:[%s8829_s26 + $0x70] sm:$0xff] }
  0x21   : > { %415 = vst [vmem:[%s344_s11 + $0x18] sm:$0xff] %v414_v3  ;;  %v424_v8 = vld [vmem:[%s8829_s26 + $0x80] sm:$0xff]  ;;  %v426_v9 = vld [vmem:[%s8829_s26 + $0x90] sm:$0xff] }
  0x22   : > { %417 = vst [vmem:[%s344_s11 + $0x20] sm:$0xff] %v416_v4  ;;  %v428_v10 = vld [vmem:[%s8829_s26 + $0xa0] sm:$0xff]  ;;  %v430_v11 = vld [vmem:[%s8829_s26 + $0xb0] sm:$0xff] }
  0x23   : > { %419 = vst [vmem:[%s344_s11 + $0x28] sm:$0xff] %v418_v5  ;;  %v432_v12 = vld [vmem:[%s8829_s26 + $0xc0] sm:$0xff]  ;;  %v434_v13 = vld [vmem:[%s8829_s26 + $0xd0] sm:$0xff] }
  0x24   : > { %421 = vst [vmem:[%s344_s11 + $0x30] sm:$0xff] %v420_v6  ;;  %v436_v14 = vld [vmem:[%s8829_s26 + $0xe0] sm:$0xff]  ;;  %v438_v15 = vld [vmem:[%s8829_s26 + $0xf0] sm:$0xff] }
  0x25   : > { %423 = vst [vmem:[%s344_s11 + $0x38] sm:$0xff] %v422_v7 }
  0x26   : > { %425 = vst [vmem:[%s344_s11 + $0x40] sm:$0xff] %v424_v8 }
  0x27   : > { %427 = vst [vmem:[%s344_s11 + $0x48] sm:$0xff] %v426_v9 }
  0x28   : > { %429 = vst [vmem:[%s344_s11 + $0x50] sm:$0xff] %v428_v10 }
  0x29   : > { %431 = vst [vmem:[%s344_s11 + $0x58] sm:$0xff] %v430_v11 }
  0x2a   : > { %433 = vst [vmem:[%s344_s11 + $0x60] sm:$0xff] %v432_v12 }
  0x2b   : > { %435 = vst [vmem:[%s344_s11 + $0x68] sm:$0xff] %v434_v13 }
  0x2c   : > { %437 = vst [vmem:[%s344_s11 + $0x70] sm:$0xff] %v436_v14 }
  0x2d   : > { %439 = vst [vmem:[%s344_s11 + $0x78] sm:$0xff] %v438_v15 }
  0x2e PF: > { %459 = sbr.rel (%p8805_p6) target bundleno = 3228 (0xc9c), region = 86 }
  0x33   : > { %8687 = dma.done.wait (%p7607_p7), [#allocation4], 64  }
  0x34   : > { %8689 = vsyncadd (%p7607_p7), [#allocation4], 4294967232  ;;  %s467_s18 = sand.u32 1, %s8696_s30  }
  0x35   : > { %s7366_s25 = sshll.u32 %s467_s18, 7 }
  0x36   : > { %s8854_s27 = scalar_lea.vmem [#allocation5], %s7366_s25 }
  0x37   : > { %8691 = dma.done.wait (%p7607_p7), [#allocation3], 1792  }
  0x38   : > { %8693 = vsyncadd (%p7607_p7), [#allocation3], 4294965504 }
  0x39   : > { %478 = sfence }
  0x3a   : > { %v7573_v16 = vld [vmem:[#allocation6 + $0x18] sm:$0xff]  ;;  %s7368_s19 = sshll.u32 %s8785_s12, 4  ;;  %v14178_v17 = vmov 1   ;;  %v7572_v18 = vld [vmem:[#allocation6 + $0x10] sm:$0xff]  ;;  %vm3625_vm0 = vcmask 261120   ;;  %v14174_v23 = vmov 0  }
  0x3b   : > { %p535_p11 = scmp.lt.s32.totalorder %s7368_s19, 31  ;;  %7649 = vset.pattern.permute.xlu1 %v14178_v17  ;;  %3656 = vmatpush.bf16.msra.mxu2 %v7573_v16  ;;  %v14176_v30 = vmov 2   ;;  %p546_p12 = scmp.lt.s32.totalorder %s8785_s12, 1  ;;  %v586_v4 = vld [vmem:[%s8854_s27] sm:$0xff] }
  0x3c   : > { %7648 = vset.pattern.permute.xlu0 %v14174_v23  ;;  %7650 = vset.pattern.permute.xlu2 %v14176_v30  ;;  %v961_v5 = vsub.f32 1.0, %v586_v4  ;;  %s1201_s26 = sld [smem:[#allocation2]] }
  0x3d   : > { %s15758_s19 = smov (!%p535_p11, %s7368_s19), 31  ;;  %s15760_s12 = smov (!%p546_p12, %s8785_s12), 1 }
  0x3e   : > { %s8862_s30 = sshll.u32 %s15758_s19, 3  ;;  %s7372_s21 = sshll.u32 %s15760_s12, 2 }
  0x3f   : > { %3657 = vmatpush.bf16.msra.mxu2 %v7572_v18  ;;  %s8868_s14 = scalar_lea.vmem %s14165_s1, %s8862_s30  ;;  %s8874_s20 = scalar_lea.vmem %s14166_s2, %s8862_s30 }
  0x40   : > { %v570_v19 = vld [vmem:[%s8868_s14] sm:$0xff]  ;;  %v571_v20 = vld [vmem:[%s8868_s14 + $0x8] sm:$0xff]  ;;  %v572_v25 = vld [vmem:[%s8868_s14 + $0x10] sm:$0xff]  ;;  %s8900_s22 = scalar_lea.vmem %s14167_s3, %s7372_s21  ;;  %s7380_s11 = sld [smem:[#allocation2 + $0x1]] }
  0x41   : > { %v3605_v21 = vpack.c.bf16 %v571_v20, %v570_v19  ;;  %v603_v22 = vld [vmem:[%s8874_s20] sm:$0xff]  ;;  %v604_v24 = vld [vmem:[%s8874_s20 + $0x8] sm:$0xff]  ;;  %v573_v26 = vld [vmem:[%s8868_s14 + $0x18] sm:$0xff]  ;;  %s7383_s18 = sld [smem:[#allocation2 + $0x2]] }
  0x42   : > { %720 = vperm.xlu1 %7649, %v603_v22   ;;  %624 = vperm.xlu0 %7648, %v603_v22   ;;  %v3606_v27 = vpack.c.bf16 %v573_v26, %v572_v25  ;;  %v606_v28 = vld [vmem:[%s8874_s20 + $0x18] sm:$0xff]  ;;  %v605_v29 = vld [vmem:[%s8874_s20 + $0x10] sm:$0xff]  ;;  %v574_v31 = vld [vmem:[%s8868_s14 + $0x20] sm:$0xff]  ;;  %s7386_s25 = sld [smem:[#allocation2 + $0x3]] }
  0x43   : > { %7433 = vmatmul.msk.bf16.vlgmr.msra.gmra.mxu2 %vm3625_vm0, %v3605_v21  ;;  %801 = vperm.xlu2 %7650, %v603_v22   ;;  %v575_v32 = vld [vmem:[%s8868_s14 + $0x28] sm:$0xff]  ;;  %v607_v34 = vld [vmem:[%s8874_s20 + $0x20] sm:$0xff]  ;;  %v576_v36 = vld [vmem:[%s8868_s14 + $0x30] sm:$0xff]  ;;  %s7389_s19 = sld [smem:[#allocation2 + $0x4]] }
  0x44   : > { %v3607_v33 = vpack.c.bf16 %v575_v32, %v574_v31  ;;  %v608_v35 = vld [vmem:[%s8874_s20 + $0x28] sm:$0xff]  ;;  %v577_v37 = vld [vmem:[%s8868_s14 + $0x38] sm:$0xff]  ;;  %v609_v39 = vld [vmem:[%s8874_s20 + $0x30] sm:$0xff]  ;;  %s7392_s28 = sld [smem:[#allocation2 + $0x5]] }
  0x45   : > { %v3608_v38 = vpack.c.bf16 %v577_v37, %v576_v36  ;;  %v578_v40 = vld [vmem:[%s8868_s14 + $0x40] sm:$0xff]  ;;  %v579_v41 = vld [vmem:[%s8868_s14 + $0x48] sm:$0xff]  ;;  %v610_v43 = vld [vmem:[%s8874_s20 + $0x38] sm:$0xff]  ;;  %s7395_s29 = sld [smem:[#allocation2 + $0x6]] }
  0x46   : > { %v3609_v42 = vpack.c.bf16 %v579_v41, %v578_v40  ;;  %v580_v44 = vld [vmem:[%s8868_s14 + $0x50] sm:$0xff]  ;;  %v581_v45 = vld [vmem:[%s8868_s14 + $0x58] sm:$0xff]  ;;  %v611_v47 = vld [vmem:[%s8874_s20 + $0x40] sm:$0xff]  ;;  %s7398_s15 = sld [smem:[#allocation2 + $0x7]] }
  0x47   : > { %v3610_v46 = vpack.c.bf16 %v581_v45, %v580_v44  ;;  %v612_v48 = vld [vmem:[%s8874_s20 + $0x48] sm:$0xff]  ;;  %v582_v49 = vld [vmem:[%s8868_s14 + $0x60] sm:$0xff]  ;;  %v584_v52 = vld [vmem:[%s8868_s14 + $0x70] sm:$0xff]  ;;  %s9029_s16 = sld [smem:[#allocation2 + $0x100]] }
  0x48   : > { %v583_v50 = vld [vmem:[%s8868_s14 + $0x68] sm:$0xff]  ;;  %v585_v53 = vld [vmem:[%s8868_s14 + $0x78] sm:$0xff]  ;;  %v8947_v55 = vld [vmem:[%s8900_s22 + $0x1] ss:$0 sm:$0xff]  ;;  %s9033_s21 = sld [smem:[#allocation2 + $0x101]] }
  0x49   : > { %v3611_v51 = vpack.c.bf16 %v583_v50, %v582_v49  ;;  %v3612_v54 = vpack.c.bf16 %v585_v53, %v584_v52  ;;  %14726 = vst [vmem:[#allocation9_spill] sm:$0xff] %v8947_v55  ;;  %v8950_v56 = vld [vmem:[%s8900_s22] ss:$0 sm:$0xff]  ;;  %v8959_v61 = vld [vmem:[%s8900_s22 + $0x2] ss:$0 sm:$0xff]  ;;  %v587_v32 = vld [vmem:[%s8854_s27 + $0x8] sm:$0xff]  ;;  %v9018_v49 = vstv %s7386_s25 }
  0x4a   : > { %724 = vperm.xlu1 %7649, %v604_v24   ;;  %629 = vperm.xlu0 %7648, %v604_v24   ;;  %14729 = vst [vmem:[#allocation12_spill] sm:$0xff] %v8959_v61  ;;  %s9035_s23 = sld [smem:[#allocation2 + $0x8]] }
  0x4b   : > { %805 = vperm.xlu2 %7650, %v604_v24   ;;  %14744 = vst [vmem:[#allocation27_spill] sm:$0xff] %v9018_v49  ;;  %s9043_s24 = sld [smem:[#allocation2 + $0x102]] }
  0x4c   : > { %s9100_s25 = sld [smem:[#allocation2 + $0xa]] }
  0x52   : > { %7651 = vset.pattern.permute.xlu1 %v14174_v23  ;;  %634 = vperm.xlu0 %7648, %v605_v29  }
  0x53   : > { %7434 = vmatmul.msk.bf16.gmra.mxu2 %vm3625_vm0, %v3606_v27  ;;  %639 = vperm.xlu1 %7651, %v606_v28  }
  0x54   : > { %7652 = vset.pattern.permute.xlu2 %v14178_v17 }
  0x55   : > { %728 = vperm.xlu2 %7652, %v605_v29  }
  0x5a   : > { %7653 = vset.pattern.permute.xlu0 %v14178_v17 }
  0x5b   : > { %7654 = vset.pattern.permute.xlu1 %v14176_v30  ;;  %732 = vperm.xlu0 %7653, %v606_v28  }
  0x5c   : > { %809 = vperm.xlu1 %7654, %v605_v29  }
  0x5d   : > { %7655 = vset.pattern.permute.xlu2 %v14176_v30 }
  0x5e   : > { %813 = vperm.xlu2 %7655, %v606_v28  }
  0x63   : > { %7435 = vmatmul.msk.bf16.gmra.mxu2 %vm3625_vm0, %v3607_v33  ;;  %736 = vperm.xlu0 %7653, %v607_v34  }
  0x64   : > { %7656 = vset.pattern.permute.xlu1 %v14174_v23 }
  0x65   : > { %644 = vperm.xlu1 %7656, %v607_v34  }
  0x66   : > { %7657 = vset.pattern.permute.xlu2 %v14174_v23 }
  0x67   : > { %649 = vperm.xlu2 %7657, %v608_v35  }
  0x6b   : > { %7660 = vset.pattern.permute.xlu0 %v14176_v30 }
  0x6c   : > { %821 = vperm.xlu0 %7660, %v608_v35  }
  0x6d   : > { %7658 = vset.pattern.permute.xlu1 %v14178_v17 }
  0x6e   : > { %740 = vperm.xlu1 %7658, %v608_v35  }
  0x6f   : > { %7659 = vset.pattern.permute.xlu2 %v14176_v30 }
  0x70   : > { %817 = vperm.xlu2 %7659, %v607_v34   ;;  %v962_v34 = vsub.f32 1.0, %v587_v32 }
  0x73   : > { %7436 = vmatmul.msk.bf16.gmra.mxu2 %vm3625_vm0, %v3608_v38  ;;  %v9002_v38 = vstv %s1201_s26  ;;  %s9051_s26 = sld [smem:[#allocation2 + $0x9]] }
  0x74   : > { %825 = vperm.xlu0 %7660, %v609_v39   ;;  %14740 = vst [vmem:[#allocation23_spill] sm:$0xff] %v9002_v38 }
  0x76   : > { %7661 = vset.pattern.permute.xlu1 %v14174_v23 }
  0x77   : > { %654 = vperm.xlu1 %7661, %v609_v39  }
  0x78   : > { %7662 = vset.pattern.permute.xlu2 %v14174_v23 }
  0x79   : > { %659 = vperm.xlu2 %7662, %v610_v43  }
  0x7c   : > { %7667 = vset.pattern.permute.xlu0 %v14174_v23 }
  0x7d   : > { %669 = vperm.xlu0 %7667, %v612_v48  }
  0x7f   : > { %7663 = vset.pattern.permute.xlu1 %v14178_v17 }
  0x80   : > { %744 = vperm.xlu1 %7663, %v609_v39   ;;  %v9004_v39 = vstv %s7380_s11  ;;  %s9081_s11 = sld [smem:[#allocation2 + $0x103]] }
  0x81   : > { %7664 = vset.pattern.permute.xlu2 %v14178_v17  ;;  %14741 = vst [vmem:[#allocation24_spill] sm:$0xff] %v9004_v39 }
  0x82   : > { %748 = vperm.xlu2 %7664, %v610_v43  }
  0x83   : > { %7437 = vmatmul.msk.bf16.gmra.mxu2 %vm3625_vm0, %v3609_v42 }
  0x85   : > { %7674 = vset.pattern.permute.xlu0 %v14178_v17 }
  0x88   : > { %7665 = vset.pattern.permute.xlu1 %v14176_v30 }
  0x89   : > { %829 = vperm.xlu1 %7665, %v610_v43   ;;  %v9010_v43 = vstv %s7383_s18  ;;  %s9098_s18 = sld [smem:[#allocation2 + $0x104]] }
  0x8a   : > { %7666 = vset.pattern.permute.xlu2 %v14174_v23  ;;  %14742 = vst [vmem:[#allocation25_spill] sm:$0xff] %v9010_v43 }
  0x8b   : > { %664 = vperm.xlu2 %7666, %v611_v47  }
  0x91   : > { %7668 = vset.pattern.permute.xlu1 %v14178_v17 }
  0x92   : > { %752 = vperm.xlu1 %7668, %v611_v47  }
  0x93   : > { %7438 = vmatmul.msk.bf16.gmra.mxu2 %vm3625_vm0, %v3610_v46  ;;  %7669 = vset.pattern.permute.xlu2 %v14178_v17 }
  0x94   : > { %756 = vperm.xlu2 %7669, %v612_v48  }
  0x9a   : > { %7670 = vset.pattern.permute.xlu1 %v14176_v30 }
  0x9b   : > { %833 = vperm.xlu1 %7670, %v611_v47  }
  0x9c   : > { %7671 = vset.pattern.permute.xlu2 %v14176_v30 }
  0x9d   : > { %837 = vperm.xlu2 %7671, %v612_v48   ;;  %v802_v62 = vpop.permute.xlu2 %801 }
  0x9e   : > { %v8966_v1 = vsub.f32 %v802_v62, %v8959_v61 }
  0xa0   : > { %14730 = vst [vmem:[#allocation13_spill] sm:$0xff] %v8966_v1  ;;  %v929_v3 = vmul.f32 %v8966_v1, %v8966_v1 }
  0xa3   : > { %7439 = vmatmul.msk.bf16.gmra.mxu2 %vm3625_vm0, %v3611_v51  ;;  %7672 = vset.pattern.permute.xlu1 %v14174_v23 }
  0xa5   : > { %7673 = vset.pattern.permute.xlu2 %v14174_v23  ;;  %v806_v21 = vpop.permute.xlu2 %805 }
  0xa6   : > { %v8990_v27 = vsub.f32 %v806_v21, %v8959_v61 }
  0xa8   : > { %14737 = vst [vmem:[#allocation20_spill] sm:$0xff] %v8990_v27  ;;  %v930_v31 = vmul.f32 %v8990_v27, %v8990_v27 }
  0xaf   : > { %v729_v62 = vpop.permute.xlu2 %728 }
  0xb3   : > { %7440 = vmatmul.msk.bf16.gmra.mxu2 %vm3625_vm0, %v3612_v54 }
  0xb4   : > { %v721_v57 = vpop.permute.xlu1 %720  ;;  %v625_v58 = vpop.permute.xlu0 %624 }
  0xb5   : > { %v8953_v59 = vsub.f32 %v721_v57, %v8947_v55  ;;  %v8956_v60 = vsub.f32 %v625_v58, %v8950_v56  ;;  %v9023_v57 = vstv %s7389_s19  ;;  %s9110_s19 = sld [smem:[#allocation2 + $0x105]] }
  0xb6   : > { %14745 = vst [vmem:[#allocation28_spill] sm:$0xff] %v9023_v57 }
  0xb7   : > { %14727 = vst [vmem:[#allocation10_spill] sm:$0xff] %v8953_v59  ;;  %v897_v63 = vmul.f32 %v8953_v59, %v8953_v59  ;;  %v881_v0 = vmul.f32 %v8956_v60, %v8956_v60 }
  0xb8   : > { %14728 = vst [vmem:[#allocation11_spill] sm:$0xff] %v8956_v60 }
  0xb9   : > { %v913_v2 = vadd.f32 %v897_v63, %v881_v0  ;;  %v9027_v0 = vstv %s7392_s28  ;;  %s9120_s28 = sld [smem:[#allocation2 + $0xb]] }
  0xba   : > { %14746 = vst [vmem:[#allocation29_spill] sm:$0xff] %v9027_v0 }
  0xbb   : > { %v945_v6 = vadd.f32 %v929_v3, %v913_v2 }
  0xbc   : > { %v725_v15 = vpop.permute.xlu1 %724  ;;  %v630_v16 = vpop.permute.xlu0 %629 }
  0xbd   : > { %v977_v8 = vadd.f32 %v961_v5, %v945_v6  ;;  %v8978_v19 = vsub.f32 %v725_v15, %v8947_v55  ;;  %v8981_v20 = vsub.f32 %v630_v16, %v8950_v56 }
  0xbf   : > { %v993_v9 = vadd.f32 1e-12, %v977_v8  ;;  %14734 = vst [vmem:[#allocation17_spill] sm:$0xff] %v8978_v19  ;;  %v898_v25 = vmul.f32 %v8978_v19, %v8978_v19  ;;  %v882_v26 = vmul.f32 %v8981_v20, %v8981_v20 }
  0xc0   : > { %14735 = vst [vmem:[#allocation18_spill] sm:$0xff] %v8981_v20 }
  0xc1   : > { %7774 = vrsqrt.f32 %v993_v9  ;;  %vm1015_vm1 = vweird.f32 %v993_v9  ;;  %v914_v29 = vadd.f32 %v898_v25, %v882_v26  ;;  %v9054_v26 = vstv %s7398_s15  ;;  %s14183_s15 = smov 96  }
  0xc2   : > { %14750 = vst [vmem:[#allocation33_spill] sm:$0xff] %v9054_v26 }
  0xc3   : > { %v946_v35 = vadd.f32 %v930_v31, %v914_v29 }
  0xc4   : > { %v635_v50 = vpop.permute.xlu0 %634 }
  0xc5   : > { %v978_v40 = vadd.f32 %v962_v34, %v946_v35  ;;  %v640_v58 = vpop.permute.xlu1 %639  ;;  %v9046_v21 = vsub.f32 %v635_v50, %v8950_v56 }
  0xc6   : > { %v8971_v7 = vpop.f32.mrf.mxu2  ;;  %v9059_v29 = vsub.f32 %v640_v58, %v8950_v56 }
  0xc7   : > { %14731 = vst [vmem:[#allocation14_spill] sm:$0xff] %v8971_v7  ;;  %v7775_v11 = vpop.eup %7774  ;;  %v9012_v44 = vadd.f32 1e-12, %v978_v40 }
  0xc8   : > { %v1010_v12 = vmul.f32 %v7775_v11, %v993_v9  ;;  %vm1016_vm2 = vweird.f32 %v7775_v11  ;;  %14748 = vst [vmem:[#allocation31_spill] sm:$0xff] %v9046_v21 }
  0xc9   : > { %vm1017_vm3 = vmor %vm1015_vm1, %vm1016_vm2  ;;  %7776 = vrsqrt.f32 %v9012_v44  ;;  %14751 = vst [vmem:[#allocation34_spill] sm:$0xff] %v9059_v29  ;;  %vm1025_vm4 = vweird.f32 %v9012_v44 }
  0xca   : > { %v1011_v14 = vmul.f32 %v7775_v11, %v1010_v12 }
  0xcc   : > { %v1012_v18 = vmul.f32 0.5, %v1011_v14 }
  0xce   : > { %v8973_v10 = vpop.f32.mrf.mxu2  ;;  %v1013_v24 = vsub.f32 1.5, %v1012_v18  ;;  %v733_v18 = vpop.permute.xlu0 %732 }
  0xcf   : > { %14732 = vst [vmem:[#allocation15_spill] sm:$0xff] %v8973_v10  ;;  %v9025_v63 = vpop.eup %7776  ;;  %v9062_v31 = vsub.f32 %v733_v18, %v8947_v55  ;;  %v810_v40 = vpop.permute.xlu1 %809 }
  0xd0   : > { %v1014_v28 = vmul.f32 %v7775_v11, %v1013_v24  ;;  %v9049_v24 = vsub.f32 %v729_v62, %v8947_v55  ;;  %v9074_v50 = vsub.f32 %v810_v40, %v8959_v61  ;;  %vm1026_vm5 = vweird.f32 %v9025_v63 }
  0xd1   : > { %14752 = vst [vmem:[#allocation35_spill] sm:$0xff] %v9062_v31  ;;  %vm9151_vm6 = vmor %vm1025_vm4, %vm1026_vm5 }
  0xd2   : > { %v8995_v33 = vsel %vm1017_vm3, %v7775_v11, %v1014_v28  ;;  %v9039_v11 = vstv %s7395_s29  ;;  %14749 = vst [vmem:[#allocation32_spill] sm:$0xff] %v9049_v24  ;;  %v931_v18 = vmul.f32 %v9074_v50, %v9074_v50  ;;  %s9124_s29 = sld [smem:[#allocation2 + $0xc]] }
  0xd3   : > { %14738 = vst [vmem:[#allocation21_spill] sm:$0xff] %v8995_v33  ;;  %v9000_v37 = vmul.f32 %v8995_v33, %v993_v9  ;;  %v1020_v9 = vmul.f32 %v9025_v63, %v9012_v44 }
  0xd4   : > { %14747 = vst [vmem:[#allocation30_spill] sm:$0xff] %v9039_v11 }
  0xd5   : > { %v1203_v41 = vsub.f32 %v9000_v37, %v9002_v38  ;;  %v1353_v42 = vsub.f32 %v9000_v37, %v9004_v39  ;;  %v1503_v48 = vsub.f32 %v9000_v37, %v9010_v43  ;;  %v1653_v54 = vsub.f32 %v9000_v37, %v9018_v49  ;;  %14755 = vst [vmem:[#allocation38_spill] sm:$0xff] %v9074_v50 }
  0xd6   : > { %v8975_v13 = vpop.f32.mrf.mxu2  ;;  %v1803_v6 = vsub.f32 %v9000_v37, %v9023_v57  ;;  %v1953_v12 = vsub.f32 %v9000_v37, %v9027_v0  ;;  %v1021_v25 = vmul.f32 %v9025_v63, %v1020_v9  ;;  %v2103_v28 = vsub.f32 %v9000_v37, %v9039_v11 }
  0xd7   : > { %14733 = vst [vmem:[#allocation16_spill] sm:$0xff] %v8975_v13  ;;  %v1219_v45 = vmul.f32 %v1203_v41, %v1203_v41  ;;  %v1369_v47 = vmul.f32 %v1353_v42, %v1353_v42  ;;  %v1519_v53 = vmul.f32 %v1503_v48, %v1503_v48  ;;  %v1669_v5 = vmul.f32 %v1653_v54, %v1653_v54  ;;  %v814_v41 = vpop.permute.xlu2 %813 }
  0xd8   : > { %v1819_v16 = vmul.f32 %v1803_v6, %v1803_v6  ;;  %v1969_v35 = vmul.f32 %v1953_v12, %v1953_v12  ;;  %v899_v48 = vmul.f32 %v9049_v24, %v9049_v24  ;;  %v2253_v54 = vsub.f32 %v9000_v37, %v9054_v26 }
  0xd9   : > { %v1235_v51 = vmul.f32 -10.0, %v1219_v45  ;;  %v1385_v52 = vmul.f32 -10.0, %v1369_v47  ;;  %v1535_v4 = vmul.f32 -10.0, %v1519_v53  ;;  %v1685_v15 = vmul.f32 -10.0, %v1669_v5 }
  0xda   : > { %v1835_v34 = vmul.f32 -10.0, %v1819_v16  ;;  %v9067_v45 = vstv %s9029_s16  ;;  %v883_v47 = vmul.f32 %v9046_v21, %v9046_v21  ;;  %v9084_v53 = vstv %s9035_s23  ;;  %s9131_s16 = sld [smem:[#allocation2 + $0x106]] }
  0xdb   : > { %v1251_v2 = vmul.f32 1.442695, %v1235_v51  ;;  %v1401_v3 = vmul.f32 1.442695, %v1385_v52  ;;  %v1551_v14 = vmul.f32 1.442695, %v1535_v4  ;;  %v9079_v52 = vstv %s9033_s21 }
  0xdc   : > { %v1701_v32 = vmul.f32 1.442695, %v1685_v15  ;;  %14754 = vst [vmem:[#allocation37_spill] sm:$0xff] %v9067_v45  ;;  %v1022_v58 = vmul.f32 0.5, %v1021_v25  ;;  %v2119_v62 = vmul.f32 %v2103_v28, %v2103_v28  ;;  %v9093_v4 = vsub.f32 %v814_v41, %v8959_v61  ;;  %s9140_s21 = sld [smem:[#allocation2 + $0xd]] }
  0xdd   : > { %7778 = vpow2.f32 %v1251_v2  ;;  %14757 = vst [vmem:[#allocation40_spill] sm:$0xff] %v9079_v52  ;;  %v884_v2 = vmul.f32 %v9059_v29, %v9059_v29  ;;  %v9096_v6 = vstv %s9043_s24  ;;  %v1851_v9 = vmul.f32 1.442695, %v1835_v34  ;;  %s9143_s23 = sld [smem:[#allocation2 + $0x107]] }
  0xde   : > { %v8983_v22 = vpop.f32.mrf.mxu2  ;;  %7780 = vpow2.f32 %v1401_v3  ;;  %14758 = vst [vmem:[#allocation41_spill] sm:$0xff] %v9084_v53  ;;  %v900_v3 = vmul.f32 %v9062_v31, %v9062_v31  ;;  %v1985_v12 = vmul.f32 -10.0, %v1969_v35  ;;  %v915_v16 = vadd.f32 %v899_v48, %v883_v47  ;;  %v588_v35 = vld [vmem:[%s8854_s27 + $0x10] sm:$0xff]  ;;  %s9155_s24 = sld [smem:[#allocation2 + $0x108]] }
  0xdf   : > { %14736 = vst [vmem:[#allocation19_spill] sm:$0xff] %v8983_v22  ;;  %7782 = vpow2.f32 %v1551_v14  ;;  %v9113_v28 = vstv %s9051_s26  ;;  %v1023_v34 = vsub.f32 1.5, %v1022_v58  ;;  %v2135_v41 = vmul.f32 -10.0, %v2119_v62  ;;  %v589_v58 = vld [vmem:[%s8854_s27 + $0x18] sm:$0xff]  ;;  %s9157_s26 = sld [smem:[#allocation2 + $0x109]] }
  0xe0   : > { %14759 = vst [vmem:[#allocation42_spill] sm:$0xff] %v9093_v4  ;;  %7784 = vpow2.f32 %v1701_v32  ;;  %v2403_v32 = vsub.f32 %v9000_v37, %v9084_v53  ;;  %v2269_v47 = vmul.f32 %v2253_v54, %v2253_v54  ;;  %v916_v48 = vadd.f32 %v900_v3, %v884_v2 }
  0xe1   : > { %14760 = vst [vmem:[#allocation43_spill] sm:$0xff] %v9096_v6  ;;  %v932_v23 = vmul.f32 %v9093_v4, %v9093_v4  ;;  %7786 = vpow2.f32 %v1851_v9  ;;  %v2001_v30 = vmul.f32 1.442695, %v1985_v12  ;;  %v963_v62 = vsub.f32 1.0, %v588_v35 }
  0xe2   : > { %14762 = vst [vmem:[#allocation45_spill] sm:$0xff] %v9113_v28  ;;  %v947_v2 = vadd.f32 %v931_v18, %v915_v16  ;;  %v2419_v9 = vmul.f32 %v2403_v32, %v2403_v32  ;;  %v1024_v12 = vmul.f32 %v9025_v63, %v1023_v34  ;;  %v964_v16 = vsub.f32 1.0, %v589_v58 }
  0xe3   : > { %v9064_v42 = vpop.eup %7778  ;;  %v948_v18 = vadd.f32 %v932_v23, %v916_v48  ;;  %7788 = vpow2.f32 %v2001_v30  ;;  %v2151_v32 = vmul.f32 1.442695, %v2135_v41  ;;  %v2285_v34 = vmul.f32 -10.0, %v2269_v47 }
  0xe4   : > { %14753 = vst [vmem:[#allocation36_spill] sm:$0xff] %v9064_v42  ;;  %v9076_v51 = vpop.eup %7780  ;;  %v1319_v14 = vmul.f32 %v9064_v42, %v9067_v45  ;;  %v9160_v35 = vstv %s9100_s25  ;;  %v979_v50 = vadd.f32 %v963_v62, %v947_v2  ;;  %v9167_v58 = vstv %s9098_s18  ;;  %s9179_s25 = sld [smem:[#allocation2 + $0x10b]] }
  0xe5   : > { %14756 = vst [vmem:[#allocation39_spill] sm:$0xff] %v9076_v51  ;;  %v1469_v15 = vmul.f32 %v9076_v51, %v9079_v52  ;;  %v9108_v25 = vpop.eup %7782  ;;  %v2435_v23 = vmul.f32 -10.0, %v2419_v9  ;;  %v9174_v30 = vsel %vm9151_vm6, %v9025_v63, %v1024_v12  ;;  %v9177_v41 = vstv %s9120_s28  ;;  %s9184_s18 = sld [smem:[#allocation2 + $0xe]] }
  0xe6   : > { %v8997_v36 = vpop.f32.mrf.mxu2  ;;  %14761 = vst [vmem:[#allocation44_spill] sm:$0xff] %v9108_v25  ;;  %v1619_v54 = vmul.f32 %v9108_v25, %v9096_v6  ;;  %v9135_v3 = vpop.eup %7784  ;;  %v980_v48 = vadd.f32 %v964_v16, %v948_v18  ;;  %7790 = vpow2.f32 %v2151_v32  ;;  %v2703_v62 = vsub.f32 %v9000_v37, %v9160_v35  ;;  %s9206_s28 = sld [smem:[#allocation2 + $0x10d]] }
  0xe7   : > { %14739 = vst [vmem:[#allocation22_spill] sm:$0xff] %v8997_v36  ;;  %v9164_v27 = vpop.eup %7786  ;;  %v9194_v9 = vmul.f32 %v9174_v30, %v9012_v44  ;;  %v9196_v12 = vadd.f32 1e-12, %v979_v50  ;;  %v9204_v16 = vstv %s9140_s21  ;;  %v2451_v18 = vmul.f32 1.442695, %v2435_v23  ;;  %s10323_s21 = sld [smem:[#allocation2 + $0x80]] }
  0xe8   : > { %14764 = vst [vmem:[#allocation47_spill] sm:$0xff] %v9135_v3  ;;  %v1919_v2 = vmul.f32 %v9164_v27, %v9167_v58  ;;  %v9214_v50 = vadd.f32 1e-12, %v980_v48  ;;  %v9217_v32 = vstv %s9131_s16  ;;  %v2719_v23 = vmul.f32 %v2703_v62, %v2703_v62  ;;  %s14821_s16 = smov 96  }
  0xe9   : > { %14768 = vst [vmem:[#allocation49_spill] sm:$0xff] %v9160_v35  ;;  %v1204_v48 = vsub.f32 %v9194_v9, %v9002_v38  ;;  %v9232_v24 = vstv %s9155_s24  ;;  %v1354_v62 = vsub.f32 %v9194_v9, %v9004_v39  ;;  %v9240_v59 = vstv %s9157_s26  ;;  %s10337_s24 = sld [smem:[#allocation2 + $0x82]] }
  0xea   : > { %14769 = vst [vmem:[#allocation50_spill] sm:$0xff] %v9164_v27  ;;  %v2735_v20 = vmul.f32 -10.0, %v2719_v23  ;;  %v1504_v25 = vsub.f32 %v9194_v9, %v9010_v43  ;;  %vm1035_vm7 = vweird.f32 %v9196_v12  ;;  %vm1045_vm9 = vweird.f32 %v9214_v50  ;;  %s10499_s26 = sld [smem:[#allocation2 + $0x83]] }
  0xeb   : > { %14770 = vst [vmem:[#allocation51_spill] sm:$0xff] %v9167_v58  ;;  %v9246_v21 = vstv %s9184_s18  ;;  %s10528_s18 = sld [smem:[#allocation2 + $0x86]] }
  0xec   : > { %14771 = vst [vmem:[#allocation52_spill] sm:$0xff] %v9174_v30 }
  0xed   : > { %14772 = vst [vmem:[#allocation53_spill] sm:$0xff] %v9177_v41 }
  0xee   : > { %v9014_v46 = vpop.f32.mrf.mxu2  ;;  %14776 = vst [vmem:[#allocation57_spill] sm:$0xff] %v9204_v16 }
  0xef   : > { %14743 = vst [vmem:[#allocation26_spill] sm:$0xff] %v9014_v46  ;;  %v1520_v46 = vmul.f32 %v1504_v25, %v1504_v25 }
  0xf0   : > { %14777 = vst [vmem:[#allocation58_spill] sm:$0xff] %v9217_v32 }
  0xf1   : > { %14780 = vst [vmem:[#allocation61_spill] sm:$0xff] %v9232_v24  ;;  %v1536_v61 = vmul.f32 -10.0, %v1520_v46 }
  0xf2   : > { %14781 = vst [vmem:[#allocation62_spill] sm:$0xff] %v9240_v59 }
  0xf3   : > { %14783 = vst [vmem:[#allocation64_spill] sm:$0xff] %v9246_v21 }
  0xf6   : > { %v3674_v8 = vpop.f32.mrf.mxu2 }
  0xfe   : > { %v3676_v5 = vpop.f32.mrf.mxu2 }
  0xff   : > { %v9118_v40 = vpack.c.bf16 %v3676_v5, %v3674_v8  ;;  %v1485_v8 = vadd.f32 %v1469_v15, %v1319_v14  ;;  %v9138_v5 = vstv %s9081_s11  ;;  %v2553_v14 = vsub.f32 %v9000_v37, %v9113_v28  ;;  %s9169_s11 = sld [smem:[#allocation2 + $0x10a]] }
 0x100   : > { %14765 = vst [vmem:[#allocation48_spill] sm:$0xff] %v9138_v5  ;;  %v1769_v4 = vmul.f32 %v9135_v3, %v9138_v5  ;;  %v9201_v15 = vstv %s9110_s19  ;;  %s9222_s19 = sld [smem:[#allocation2 + $0xf]]  ;;  %v1370_v3 = vmul.f32 %v1354_v62, %v1354_v62 }
 0x101   : > { %14763 = vst [vmem:[#allocation46_spill] sm:$0xff] %v9118_v40  ;;  %3898 = vrot.lane.b32.xlu1 %v9118_v40, %s14183_s15  ;;  %v1635_v17 = vadd.f32 %v1619_v54, %v1485_v8  ;;  %v2569_v47 = vmul.f32 %v2553_v14, %v2553_v14  ;;  %v9182_v8 = vstv %s9124_s29  ;;  %v2301_v54 = vmul.f32 1.442695, %v2285_v34  ;;  %s9188_s15 = sld [smem:[#allocation2 + $0x10c]]  ;;  %v9198_v14 = vpop.eup %7788 }
 0x102   : > { %14773 = vst [vmem:[#allocation54_spill] sm:$0xff] %v9182_v8  ;;  %s9208_s29 = sld [smem:[#allocation2 + $0x10e]]  ;;  %v3003_v44 = vsub.f32 %v9000_v37, %v9182_v8  ;;  %v9220_v34 = vstv %s9143_s23  ;;  %v2069_v1 = vmul.f32 %v9198_v14, %v9201_v15  ;;  %v9229_v31 = vpop.eup %7790  ;;  %v1386_v30 = vmul.f32 -10.0, %v1370_v3 }
 0x103   : > { %v1785_v63 = vadd.f32 %v1769_v4, %v1635_v17  ;;  %14774 = vst [vmem:[#allocation55_spill] sm:$0xff] %v9198_v14  ;;  %v2585_v17 = vmul.f32 -10.0, %v2569_v47  ;;  %v2853_v4 = vsub.f32 %v9000_v37, %v9177_v41  ;;  %7792 = vpow2.f32 %v2301_v54  ;;  %s10329_s23 = sld [smem:[#allocation2 + $0x81]] }
 0x104   : > { %14775 = vst [vmem:[#allocation56_spill] sm:$0xff] %v9201_v15  ;;  %7794 = vrsqrt.f32 %v9196_v12  ;;  %v3153_v54 = vsub.f32 %v9000_v37, %v9204_v16  ;;  %v3019_v19 = vmul.f32 %v3003_v44, %v3003_v44 }
 0x105   : > { %14778 = vst [vmem:[#allocation59_spill] sm:$0xff] %v9220_v34  ;;  %v1935_v47 = vadd.f32 %v1919_v2, %v1785_v63  ;;  %7796 = vpow2.f32 %v2451_v18  ;;  %v2601_v63 = vmul.f32 1.442695, %v2585_v17  ;;  %v2869_v2 = vmul.f32 %v2853_v4, %v2853_v4 }
 0x106   : > { %14779 = vst [vmem:[#allocation60_spill] sm:$0xff] %v9229_v31  ;;  %7798 = vrsqrt.f32 %v9214_v50  ;;  %v9243_v29 = vstv %s9169_s11  ;;  %v9249_v18 = vstv %s9179_s25  ;;  %v2219_v17 = vmul.f32 %v9229_v31, %v9217_v32  ;;  %s10508_s11 = sld [smem:[#allocation2 + $0x84]] }
 0x107   : > { %14782 = vst [vmem:[#allocation63_spill] sm:$0xff] %v9243_v29  ;;  %v2085_v60 = vadd.f32 %v2069_v1, %v1935_v47  ;;  %v1220_v4 = vmul.f32 %v1204_v48, %v1204_v48  ;;  %v9256_v14 = vstv %s9188_s15  ;;  %v3169_v27 = vmul.f32 %v3153_v54, %v3153_v54  ;;  %s9351_s15 = sld [smem:[#allocation2 + $0x10f]] }
 0x108   : > { %14784 = vst [vmem:[#allocation65_spill] sm:$0xff] %v9249_v18  ;;  %7800 = vpow2.f32 %v2601_v63  ;;  %v2885_v51 = vmul.f32 -10.0, %v2869_v2  ;;  %v3035_v42 = vmul.f32 -10.0, %v3019_v19  ;;  %v3303_v1 = vsub.f32 %v9000_v37, %v9246_v21  ;;  %s10518_s25 = sld [smem:[#allocation2 + $0x85]] }
 0x109   : > { %v9253_v44 = vpop.eup %7792  ;;  %14786 = vst [vmem:[#allocation67_spill] sm:$0xff] %v9256_v14  ;;  %v9267_v48 = vstv %s9206_s28  ;;  %v9270_v31 = vstv %s9208_s29  ;;  %v9273_v40 = vstv %s9222_s19  ;;  %v2751_v54 = vmul.f32 1.442695, %v2735_v20  ;;  %s10532_s28 = sld [smem:[#allocation2 + $0x87]] }
 0x10a   : > { %14785 = vst [vmem:[#allocation66_spill] sm:$0xff] %v9253_v44  ;;  %v9260_v23 = vpop.eup %7794  ;;  %v2235_v10 = vadd.f32 %v2219_v17, %v2085_v60  ;;  %v2369_v63 = vmul.f32 %v9253_v44, %v9220_v34  ;;  %v1236_v2 = vmul.f32 -10.0, %v1220_v4  ;;  %v1654_v19 = vsub.f32 %v9194_v9, %v9018_v49  ;;  %s10538_s29 = sld [smem:[#allocation2 + $0x88]] }
 0x10b   : > { %v9264_v47 = vpop.eup %7796  ;;  %14788 = vst [vmem:[#allocation69_spill] sm:$0xff] %v9267_v48  ;;  %v3185_v7 = vmul.f32 -10.0, %v3169_v27  ;;  %v1030_v36 = vmul.f32 %v9260_v23, %v9196_v12  ;;  %v2901_v22 = vmul.f32 1.442695, %v2885_v51  ;;  %v3051_v13 = vmul.f32 1.442695, %v3035_v42 }
 0x10c   : > { %14787 = vst [vmem:[#allocation68_spill] sm:$0xff] %v9264_v47  ;;  %v9275_v62 = vpop.eup %7798  ;;  %v3319_v33 = vmul.f32 %v3303_v1, %v3303_v1  ;;  %v1804_v20 = vsub.f32 %v9194_v9, %v9023_v57  ;;  %v2519_v60 = vmul.f32 %v9264_v47, %v9232_v24  ;;  %7802 = vpow2.f32 %v2751_v54  ;;  %s10543_s19 = sld [smem:[#allocation2 + $0x89]] }
 0x10d   : > { %14789 = vst [vmem:[#allocation70_spill] sm:$0xff] %v9270_v31  ;;  %v3453_v17 = vsub.f32 %v9000_v37, %v9273_v40  ;;  %v1040_v27 = vmul.f32 %v9275_v62, %v9214_v50  ;;  %v2385_v3 = vadd.f32 %v2369_v63, %v2235_v10  ;;  %v1253_v4 = vmul.f32 1.442695, %v1236_v2 }
 0x10e   : > { %14790 = vst [vmem:[#allocation71_spill] sm:$0xff] %v9273_v40  ;;  %v9291_v25 = vpop.eup %7800  ;;  %v1670_v51 = vmul.f32 %v1654_v19, %v1654_v19  ;;  %v1954_v42 = vsub.f32 %v9194_v9, %v9027_v0  ;;  %v3201_v1 = vmul.f32 1.442695, %v3185_v7  ;;  %v1403_v44 = vmul.f32 1.442695, %v1386_v30 }
 0x10f   : > { %14791 = vst [vmem:[#allocation72_spill] sm:$0xff] %v9291_v25  ;;  %v1031_v47 = vmul.f32 %v9260_v23, %v1030_v36  ;;  %7804 = vpow2.f32 %v2901_v22  ;;  %v3335_v54 = vmul.f32 -10.0, %v3319_v33  ;;  %v1820_v57 = vmul.f32 %v1804_v20, %v1804_v20 }
 0x110   : > { %v2104_v37 = vsub.f32 %v9194_v9, %v9039_v11  ;;  %v2669_v55 = vmul.f32 %v9291_v25, %v9240_v59  ;;  %7806 = vpow2.f32 %v3051_v13  ;;  %v3469_v10 = vmul.f32 %v3453_v17, %v3453_v17 }
 0x111   : > { %v1041_v63 = vmul.f32 %v9275_v62, %v1040_v27  ;;  %v2535_v2 = vadd.f32 %v2519_v60, %v2385_v3  ;;  %7808 = vpow2.f32 %v1253_v4  ;;  %v1686_v7 = vmul.f32 -10.0, %v1670_v51 }
 0x112   : > { %v1970_v30 = vmul.f32 %v1954_v42, %v1954_v42  ;;  %v9301_v46 = vpop.eup %7802  ;;  %7810 = vpow2.f32 %v1403_v44  ;;  %v1553_v22 = vmul.f32 1.442695, %v1536_v61  ;;  %v2254_v33 = vsub.f32 %v9194_v9, %v9054_v26 }
 0x113   : > { %14792 = vst [vmem:[#allocation73_spill] sm:$0xff] %v9301_v46  ;;  %v1032_v36 = vmul.f32 0.5, %v1031_v47  ;;  %7812 = vpow2.f32 %v3201_v1  ;;  %v1836_v19 = vmul.f32 -10.0, %v1820_v57  ;;  %v2120_v20 = vmul.f32 %v2104_v37, %v2104_v37 }
 0x114   : > { %v2404_v13 = vsub.f32 %v9194_v9, %v9084_v53  ;;  %v3351_v17 = vmul.f32 1.442695, %v3335_v54  ;;  %v9307_v27 = vmul.f32 -10.0, %v3469_v10  ;;  %v2554_v60 = vsub.f32 %v9194_v9, %v9113_v28 }
 0x115   : > { %v1042_v3 = vmul.f32 0.5, %v1041_v63  ;;  %v9311_v4 = vpop.eup %7804  ;;  %v2819_v61 = vmul.f32 %v9301_v46, %v9243_v29  ;;  %v1703_v44 = vmul.f32 1.442695, %v1686_v7  ;;  %v1986_v47 = vmul.f32 -10.0, %v1970_v30 }
 0x116   : > { %14793 = vst [vmem:[#allocation74_spill] sm:$0xff] %v9311_v4  ;;  %v2704_v57 = vsub.f32 %v9194_v9, %v9160_v35  ;;  %v9317_v51 = vpop.eup %7806  ;;  %v2685_v42 = vadd.f32 %v2669_v55, %v2535_v2  ;;  %7814 = vpow2.f32 %v1553_v22  ;;  %v2270_v1 = vmul.f32 %v2254_v33, %v2254_v33 }
 0x117   : > { %14794 = vst [vmem:[#allocation75_spill] sm:$0xff] %v9317_v51  ;;  %v1033_v54 = vsub.f32 1.5, %v1032_v36  ;;  %v9319_v37 = vpop.eup %7808  ;;  %v1853_v10 = vmul.f32 1.442695, %v1836_v19  ;;  %v2136_v63 = vmul.f32 -10.0, %v2120_v20  ;;  %v2420_v25 = vmul.f32 %v2404_v13, %v2404_v13 }
 0x118   : > { %14795 = vst [vmem:[#allocation76_spill] sm:$0xff] %v9319_v37  ;;  %v9322_v28 = vpop.eup %7810  ;;  %v2570_v7 = vmul.f32 %v2554_v60, %v2554_v60  ;;  %v2854_v30 = vsub.f32 %v9194_v9, %v9177_v41  ;;  %vm1036_vm8 = vweird.f32 %v9260_v23  ;;  %v1043_v46 = vsub.f32 1.5, %v1042_v3 }
 0x119   : > { %14796 = vst [vmem:[#allocation77_spill] sm:$0xff] %v9322_v28  ;;  %v9327_v55 = vpop.eup %7812  ;;  %7816 = vpow2.f32 %v1703_v44  ;;  %v2003_v2 = vmul.f32 1.442695, %v1986_v47  ;;  %v2720_v22 = vmul.f32 %v2704_v57, %v2704_v57  ;;  %v3004_v33 = vsub.f32 %v9194_v9, %v9182_v8  ;;  %vm1037_vm11 = vmor %vm1035_vm7, %vm1036_vm8 }
 0x11a   : > { %14797 = vst [vmem:[#allocation78_spill] sm:$0xff] %v9327_v55  ;;  %v2286_v36 = vmul.f32 -10.0, %v2270_v1  ;;  %v1034_v19 = vmul.f32 %v9260_v23, %v1033_v54  ;;  %vm1046_vm10 = vweird.f32 %v9275_v62  ;;  %v1320_v20 = vmul.f32 %v9319_v37, %v9067_v45 }
 0x11b   : > { %v1470_v13 = vmul.f32 %v9322_v28, %v9079_v52  ;;  %v2153_v60 = vmul.f32 1.442695, %v2136_v63  ;;  %v2436_v3 = vmul.f32 -10.0, %v2420_v25  ;;  %7818 = vpow2.f32 %v3351_v17  ;;  %vm1047_vm12 = vmor %vm1045_vm9, %vm1046_vm10 }
 0x11c   : > { %v9342_v44 = vpop.eup %7814  ;;  %v2586_v47 = vmul.f32 -10.0, %v2570_v7  ;;  %v2870_v57 = vmul.f32 %v2854_v30, %v2854_v30  ;;  %v1044_v1 = vmul.f32 %v9275_v62, %v1043_v46  ;;  %v2835_v54 = vadd.f32 %v2819_v61, %v2685_v42 }
 0x11d   : > { %14798 = vst [vmem:[#allocation79_spill] sm:$0xff] %v9342_v44  ;;  %v2969_v37 = vmul.f32 %v9311_v4, %v9249_v18  ;;  %7820 = vpow2.f32 %v1853_v10  ;;  %v2736_v28 = vmul.f32 -10.0, %v2720_v22  ;;  %v2303_v25 = vmul.f32 1.442695, %v2286_v36 }
 0x11e   : > { %7822 = vpow2.f32 %v2003_v2  ;;  %v3020_v17 = vmul.f32 %v3004_v33, %v3004_v33  ;;  %v9354_v63 = vsel %vm1037_vm11, %v9260_v23, %v1034_v19  ;;  %v1486_v61 = vadd.f32 %v1470_v13, %v1320_v20 }
 0x11f   : > { %14799 = vst [vmem:[#allocation80_spill] sm:$0xff] %v9354_v63  ;;  %v9356_v46 = vpop.eup %7816  ;;  %v1620_v42 = vmul.f32 %v9342_v44, %v9096_v6  ;;  %7824 = vpow2.f32 %v2153_v60  ;;  %v2453_v10 = vmul.f32 1.442695, %v2436_v3  ;;  %v2603_v7 = vmul.f32 1.442695, %v2586_v47  ;;  %v9386_v47 = vpop.f32.mrf.mxu2 }
 0x120   : > { %14800 = vst [vmem:[#allocation81_spill] sm:$0xff] %v9356_v46  ;;  %v2886_v30 = vmul.f32 -10.0, %v2870_v57  ;;  %v3154_v22 = vsub.f32 %v9194_v9, %v9204_v16  ;;  %v9363_v2 = vsel %vm1047_vm12, %v9275_v62, %v1044_v1  ;;  %v2753_v33 = vmul.f32 1.442695, %v2736_v28 }
 0x121   : > { %14801 = vst [vmem:[#allocation82_spill] sm:$0xff] %v9363_v2  ;;  %v3304_v23 = vsub.f32 %v9194_v9, %v9246_v21  ;;  %v3454_v36 = vsub.f32 %v9194_v9, %v9273_v40  ;;  %v9371_v19 = vmul.f32 %v9354_v63, %v9196_v12  ;;  %v9373_v20 = vpop.eup %7818  ;;  %v3119_v13 = vmul.f32 %v9317_v51, %v9256_v14 }
 0x122   : > { %14802 = vst [vmem:[#allocation83_spill] sm:$0xff] %v9373_v20  ;;  %v3501_v60 = vmul.f32 1.442695, %v9307_v27  ;;  %7826 = vpow2.f32 %v2303_v25  ;;  %v3036_v62 = vmul.f32 -10.0, %v3020_v17  ;;  %v1636_v3 = vadd.f32 %v1620_v42, %v1486_v61 }
 0x123   : > { %v9378_v28 = vpop.eup %7820  ;;  %v1770_v9 = vmul.f32 %v9356_v46, %v9138_v5  ;;  %7828 = vpow2.f32 %v2453_v10  ;;  %v9384_v12 = vmul.f32 %v9363_v2, %v9214_v50  ;;  %v2985_v1 = vadd.f32 %v2969_v37, %v2835_v54 }
 0x124   : > { %14803 = vst [vmem:[#allocation84_spill] sm:$0xff] %v9378_v28  ;;  %v9388_v57 = vpop.eup %7822  ;;  %7830 = vpow2.f32 %v2603_v7  ;;  %v2903_v27 = vmul.f32 1.442695, %v2886_v30  ;;  %v3170_v25 = vmul.f32 %v3154_v22, %v3154_v22  ;;  %v3320_v61 = vmul.f32 %v3304_v23, %v3304_v23 }
 0x125   : > { %14804 = vst [vmem:[#allocation85_spill] sm:$0xff] %v9388_v57  ;;  %v9390_v17 = vpop.eup %7824  ;;  %7832 = vpow2.f32 %v2753_v33  ;;  %v3470_v42 = vmul.f32 %v3454_v36, %v3454_v36  ;;  %v1205_v10 = vsub.f32 %v9371_v19, %v9002_v38  ;;  %v9395_v51 = vstv %s9351_s15  ;;  %s10564_s15 = sld [smem:[#allocation2 + $0x8a]] }
 0x126   : > { %14805 = vst [vmem:[#allocation86_spill] sm:$0xff] %v9390_v17  ;;  %7834 = vpow2.f32 %v3501_v60  ;;  %v3053_v50 = vmul.f32 1.442695, %v3036_v62  ;;  %v1355_v4 = vsub.f32 %v9371_v19, %v9004_v39  ;;  %v9401_v37 = vmul.f32 %v9327_v55, %v9267_v48 }
 0x127   : > { %14806 = vst [vmem:[#allocation87_spill] sm:$0xff] %v9395_v51  ;;  %v1786_v54 = vadd.f32 %v1770_v9, %v1636_v3  ;;  %v1920_v7 = vmul.f32 %v9378_v28, %v9167_v58  ;;  %v1206_v30 = vsub.f32 %v9384_v12, %v9002_v38  ;;  %v9411_v33 = vmul.f32 %v9373_v20, %v9270_v31  ;;  %v9419_v28 = vpop.permute.xlu2 %649  ;;  %v3681_v63 = vpop.f32.mrf.mxu2 }
 0x128   : > { %v9407_v22 = vpop.eup %7826  ;;  %7836 = vpow2.f32 %v2903_v27  ;;  %v3186_v23 = vmul.f32 -10.0, %v3170_v25  ;;  %v1356_v36 = vsub.f32 %v9384_v12, %v9004_v39  ;;  %v9417_v62 = vadd.f32 %v3119_v13, %v2985_v1  ;;  %v737_v38 = vpop.permute.xlu0 %736 }
 0x129   : > { %14807 = vst [vmem:[#allocation88_spill] sm:$0xff] %v9407_v22  ;;  %v9415_v60 = vpop.eup %7828  ;;  %v3336_v3 = vmul.f32 -10.0, %v3320_v61  ;;  %v3486_v9 = vmul.f32 -10.0, %v3470_v42  ;;  %v1221_v55 = vmul.f32 %v1205_v10, %v1205_v10  ;;  %v2070_v20 = vmul.f32 %v9388_v57, %v9201_v15 }
 0x12a   : > { %14808 = vst [vmem:[#allocation89_spill] sm:$0xff] %v9411_v33  ;;  %v9421_v46 = vpop.eup %7830  ;;  %7838 = vpow2.f32 %v3053_v50  ;;  %v1371_v27 = vmul.f32 %v1355_v4, %v1355_v4  ;;  %v1505_v25 = vsub.f32 %v9371_v19, %v9010_v43  ;;  %v1936_v2 = vadd.f32 %v1920_v7, %v1786_v54  ;;  %v645_v54 = vpop.permute.xlu1 %644 }
 0x12b   : > { %14809 = vst [vmem:[#allocation90_spill] sm:$0xff] %v9415_v60  ;;  %v9427_v44 = vpop.eup %7832  ;;  %v2220_v13 = vmul.f32 %v9390_v17, %v9217_v32  ;;  %v9433_v1 = vmul.f32 %v9407_v22, %v9220_v34  ;;  %v1222_v61 = vmul.f32 %v1206_v30, %v1206_v30  ;;  %v9439_v10 = vmul.f32 %v9415_v60, %v9232_v24 }
 0x12c   : > { %14810 = vst [vmem:[#allocation91_spill] sm:$0xff] %v9421_v46  ;;  %v9435_v42 = vpop.eup %7834  ;;  %v3203_v4 = vmul.f32 1.442695, %v3186_v23  ;;  %v1372_v50 = vmul.f32 %v1356_v36, %v1356_v36  ;;  %v1506_v57 = vsub.f32 %v9384_v12, %v9010_v43  ;;  %v9445_v7 = vmul.f32 %v9421_v46, %v9240_v59 }
 0x12d   : > { %14811 = vst [vmem:[#allocation92_spill] sm:$0xff] %v9427_v44  ;;  %v3353_v17 = vmul.f32 1.442695, %v3336_v3  ;;  %v9447_v22 = vmul.f32 1.442695, %v3486_v9  ;;  %v1237_v30 = vmul.f32 -10.0, %v1221_v55  ;;  %v9453_v60 = vmul.f32 %v9427_v44, %v9243_v29 }
 0x12e   : > { %14812 = vst [vmem:[#allocation93_spill] sm:$0xff] %v9435_v42  ;;  %v9449_v39 = vpop.eup %7836  ;;  %v1387_v23 = vmul.f32 -10.0, %v1371_v27  ;;  %v1521_v36 = vmul.f32 %v1505_v25, %v1505_v25  ;;  %v1655_v43 = vsub.f32 %v9371_v19, %v9018_v49  ;;  %v2086_v31 = vadd.f32 %v2070_v20, %v1936_v2  ;;  %v14816_v9 = vld [vmem:[#allocation9_spill] sm:$0xff] }
 0x12f   : > { %14813 = vst [vmem:[#allocation94_spill] sm:$0xff] %v9447_v22  ;;  %v1238_v46 = vmul.f32 -10.0, %v1222_v61  ;;  %v9458_v3 = vsub.f32 %v645_v54, %v8950_v56  ;;  %v9461_v55 = vsub.f32 %v737_v38, %v14816_v9  ;;  %v1388_v42 = vmul.f32 -10.0, %v1372_v50  ;;  %v14820_v61 = vld [vmem:[#allocation28_spill] sm:$0xff]  ;;  %v9506_v22 = vld [vmem:[%s8854_s27 + $0x20] sm:$0xff] }
 0x130   : > { %14814 = vst [vmem:[#allocation95_spill] sm:$0xff] %v9449_v39  ;;  %v9463_v33 = vpop.eup %7838  ;;  %v1522_v51 = vmul.f32 %v1506_v57, %v1506_v57  ;;  %v1656_v27 = vsub.f32 %v9384_v12, %v9018_v49  ;;  %v9468_v25 = vpack.c.bf16 %v3681_v63, %v9386_v47  ;;  %v9472_v2 = vmul.f32 %v9449_v39, %v9249_v18 }
 0x131   : > { %14815 = vst [vmem:[#allocation96_spill] sm:$0xff] %v9458_v3  ;;  %7840 = vpow2.f32 %v3203_v4  ;;  %v1255_v20 = vmul.f32 1.442695, %v1237_v30  ;;  %v1805_v38 = vsub.f32 %v9371_v19, %v14820_v61  ;;  %v1405_v54 = vmul.f32 1.442695, %v1387_v23  ;;  %v818_v4 = vpop.permute.xlu2 %817 }
 0x132   : > { %14817 = vst [vmem:[#allocation9_spill] sm:$0xff] %v9461_v55  ;;  %7842 = vpow2.f32 %v3353_v17  ;;  %v1537_v44 = vmul.f32 -10.0, %v1521_v36  ;;  %v1671_v50 = vmul.f32 %v1655_v43, %v1655_v43  ;;  %3900 = vrot.lane.b32.xlu0 %v9468_v25, %s14821_s16  ;;  %v2236_v57 = vadd.f32 %v2220_v13, %v2086_v31  ;;  %v741_v36 = vpop.permute.xlu1 %740 }
 0x133   : > { %14818 = vst [vmem:[#allocation97_spill] sm:$0xff] %v9463_v33  ;;  %v1257_v49 = vmul.f32 1.442695, %v1238_v46  ;;  %v885_v63 = vmul.f32 %v9458_v3, %v9458_v3  ;;  %v901_v47 = vmul.f32 %v9461_v55, %v9461_v55  ;;  %v1407_v30 = vmul.f32 1.442695, %v1388_v42  ;;  %v14822_v55 = vld [vmem:[#allocation12_spill] sm:$0xff] }
 0x134   : > { %14819 = vst [vmem:[#allocation98_spill] sm:$0xff] %v9468_v25  ;;  %v1538_v39 = vmul.f32 -10.0, %v1522_v51  ;;  %v1672_v18 = vmul.f32 %v1656_v27, %v1656_v27  ;;  %v1806_v17 = vsub.f32 %v9384_v12, %v14820_v61  ;;  %7844 = vpow2.f32 %v1255_v20 }
 0x135   : > { %v1821_v43 = vmul.f32 %v1805_v38, %v1805_v38  ;;  %v1955_v23 = vsub.f32 %v9371_v19, %v9027_v0  ;;  %v2105_v31 = vsub.f32 %v9371_v19, %v9039_v11  ;;  %7846 = vpow2.f32 %v1405_v54 }
 0x136   : > { %v1555_v46 = vmul.f32 1.442695, %v1537_v44  ;;  %v1687_v13 = vmul.f32 -10.0, %v1671_v50  ;;  %v9489_v3 = vsub.f32 %v818_v4, %v14822_v55  ;;  %7848 = vpow2.f32 %v1257_v49 }
 0x137   : > { %v9491_v51 = vpop.eup %7840  ;;  %v1956_v42 = vsub.f32 %v9384_v12, %v9027_v0  ;;  %v9497_v27 = vsub.f32 %v9419_v28, %v8950_v56  ;;  %v9500_v20 = vsub.f32 %v741_v36, %v14816_v9  ;;  %7850 = vpow2.f32 %v1407_v30 }
 0x138   : > { %14823 = vst [vmem:[#allocation12_spill] sm:$0xff] %v9489_v3  ;;  %v9502_v44 = vpop.eup %7842  ;;  %v1557_v38 = vmul.f32 1.442695, %v1538_v39  ;;  %v1688_v55 = vmul.f32 -10.0, %v1672_v18  ;;  %v1822_v54 = vmul.f32 %v1806_v17, %v1806_v17  ;;  %v2386_v50 = vadd.f32 %v9433_v1, %v2236_v57 }
 0x139   : > { %14824 = vst [vmem:[#allocation99_spill] sm:$0xff] %v9491_v51  ;;  %v1971_v49 = vmul.f32 %v1955_v23, %v1955_v23  ;;  %v2121_v4 = vmul.f32 %v2105_v31, %v2105_v31  ;;  %v917_v25 = vadd.f32 %v901_v47, %v885_v63  ;;  %7852 = vpow2.f32 %v1555_v46 }
 0x13a   : > { %14825 = vst [vmem:[#allocation100_spill] sm:$0xff] %v9497_v27  ;;  %v1705_v0 = vmul.f32 1.442695, %v1687_v13  ;;  %v1837_v61 = vmul.f32 -10.0, %v1821_v43  ;;  %v933_v56 = vmul.f32 %v9489_v3, %v9489_v3  ;;  %v9510_v28 = vpop.eup %7844  ;;  %v9514_v39 = vmul.f32 %v9463_v33, %v9256_v14 }
 0x13b   : > { %14826 = vst [vmem:[#allocation101_spill] sm:$0xff] %v9500_v20  ;;  %v1972_v18 = vmul.f32 %v1956_v42, %v1956_v42  ;;  %v886_v1 = vmul.f32 %v9497_v27, %v9497_v27  ;;  %v902_v9 = vmul.f32 %v9500_v20, %v9500_v20  ;;  %v9520_v57 = vpop.eup %7846  ;;  %7854 = vpow2.f32 %v1557_v38 }
 0x13c   : > { %14827 = vst [vmem:[#allocation102_spill] sm:$0xff] %v9502_v44  ;;  %v1707_v63 = vmul.f32 1.442695, %v1688_v55  ;;  %v1838_v47 = vmul.f32 -10.0, %v1822_v54  ;;  %v2106_v30 = vsub.f32 %v9384_v12, %v9039_v11  ;;  %v9524_v17 = vpop.eup %7848  ;;  %v9527_v43 = vadd.f32 %v9439_v10, %v2386_v50 }
 0x13d   : > { %14828 = vst [vmem:[#allocation103_spill] sm:$0xff] %v9510_v28  ;;  %v1987_v23 = vmul.f32 -10.0, %v1971_v49  ;;  %v2137_v31 = vmul.f32 -10.0, %v2121_v4  ;;  %v965_v46 = vsub.f32 1.0, %v9506_v22  ;;  %v9530_v13 = vpop.eup %7850  ;;  %7856 = vpow2.f32 %v1705_v0 }
 0x13e   : > { %14829 = vst [vmem:[#allocation104_spill] sm:$0xff] %v9520_v57  ;;  %v1855_v36 = vmul.f32 1.442695, %v1837_v61  ;;  %v2255_v42 = vsub.f32 %v9371_v19, %v9054_v26  ;;  %v949_v38 = vadd.f32 %v933_v56, %v917_v25  ;;  %v1321_v55 = vmul.f32 %v9510_v28, %v9067_v45 }
 0x13f   : > { %14830 = vst [vmem:[#allocation105_spill] sm:$0xff] %v9524_v17  ;;  %v1471_v54 = vmul.f32 %v9520_v57, %v9079_v52  ;;  %v1988_v10 = vmul.f32 -10.0, %v1972_v18  ;;  %v9538_v50 = vadd.f32 %v902_v9, %v886_v1  ;;  %v9540_v49 = vpop.eup %7852  ;;  %7858 = vpow2.f32 %v1707_v63  ;;  %v822_v63 = vpop.permute.xlu0 %821 }
 0x140   : > { %14831 = vst [vmem:[#allocation106_spill] sm:$0xff] %v9530_v13  ;;  %v1857_v4 = vmul.f32 1.442695, %v1838_v47  ;;  %v2122_v3 = vmul.f32 %v2106_v30, %v2106_v30  ;;  %v2256_v0 = vsub.f32 %v9384_v12, %v9054_v26  ;;  %v2005_v61 = vmul.f32 1.442695, %v1987_v23  ;;  %v14834_v23 = vld [vmem:[#allocation45_spill] sm:$0xff] }
 0x141   : > { %14832 = vst [vmem:[#allocation107_spill] sm:$0xff] %v9540_v49  ;;  %v2155_v20 = vmul.f32 1.442695, %v2137_v31  ;;  %v1322_v25 = vmul.f32 %v9524_v17, %v9067_v45  ;;  %v1472_v56 = vmul.f32 %v9530_v13, %v9079_v52  ;;  %v9548_v27 = vpop.eup %7854  ;;  %7860 = vpow2.f32 %v1855_v36  ;;  %v591_v45 = vld [vmem:[%s8854_s27 + $0x28] sm:$0xff] }
 0x142   : > { %14833 = vst [vmem:[#allocation108_spill] sm:$0xff] %v9548_v27  ;;  %v2271_v18 = vmul.f32 %v2255_v42, %v2255_v42  ;;  %v2405_v1 = vsub.f32 %v9371_v19, %v9084_v53  ;;  %v981_v9 = vadd.f32 %v965_v46, %v949_v38  ;;  %v1487_v47 = vadd.f32 %v1471_v54, %v1321_v55  ;;  %v9565_v54 = vld [vmem:[%s8900_s22 + $0x2] ss:$0 sm:$0xff] }
 0x143   : > { %v1621_v30 = vmul.f32 %v9540_v49, %v9096_v6  ;;  %v2555_v31 = vsub.f32 %v9371_v19, %v14834_v23  ;;  %v2007_v57 = vmul.f32 1.442695, %v1988_v10  ;;  %v9556_v17 = vpop.eup %7856  ;;  %7862 = vpow2.f32 %v1857_v4 }
 0x144   : > { %14835 = vst [vmem:[#allocation109_spill] sm:$0xff] %v9556_v17  ;;  %v2138_v13 = vmul.f32 -10.0, %v2122_v3  ;;  %v2272_v36 = vmul.f32 %v2256_v0, %v2256_v0  ;;  %v2406_v42 = vsub.f32 %v9384_v12, %v9084_v53  ;;  %v2705_v46 = vsub.f32 %v9371_v19, %v9160_v35 }
 0x145   : > { %v1488_v38 = vadd.f32 %v1472_v56, %v1322_v25  ;;  %v1622_v55 = vmul.f32 %v9548_v27, %v9096_v6  ;;  %v9568_v49 = vsub.f32 %v822_v63, %v9565_v54  ;;  %v9570_v10 = vpop.eup %7858  ;;  %7864 = vpow2.f32 %v2005_v61 }
 0x146   : > { %14837 = vst [vmem:[#allocation111_spill] sm:$0xff] %v9570_v10  ;;  %v2287_v3 = vmul.f32 -10.0, %v2271_v18  ;;  %v2421_v4 = vmul.f32 %v2405_v1, %v2405_v1  ;;  %v9572_v0 = vadd.f32 1e-12, %v981_v9  ;;  %v1637_v28 = vadd.f32 %v1621_v30, %v1487_v47 }
 0x147   : > { %14836 = vst [vmem:[#allocation110_spill] sm:$0xff] %v9568_v49  ;;  %v1771_v33 = vmul.f32 %v9556_v17, %v9138_v5  ;;  %v2855_v25 = vsub.f32 %v9371_v19, %v9177_v41  ;;  %v2556_v56 = vsub.f32 %v9384_v12, %v14834_v23  ;;  %v9580_v63 = vpop.eup %7860  ;;  %7866 = vpow2.f32 %v2007_v57 }
 0x148   : > { %14838 = vst [vmem:[#allocation112_spill] sm:$0xff] %v9580_v63  ;;  %v2157_v27 = vmul.f32 1.442695, %v2138_v13  ;;  %v2288_v61 = vmul.f32 -10.0, %v2272_v36  ;;  %v2422_v18 = vmul.f32 %v2406_v42, %v2406_v42  ;;  %7868 = vpow2.f32 %v2155_v20 }
 0x149   : > { %v1638_v1 = vadd.f32 %v1622_v55, %v1488_v38  ;;  %v1772_v9 = vmul.f32 %v9570_v10, %v9138_v5  ;;  %v934_v47 = vmul.f32 %v9568_v49, %v9568_v49  ;;  %v9586_v30 = vpop.eup %7862  ;;  %v2305_v17 = vmul.f32 1.442695, %v2287_v3 }
 0x14a   : > { %14839 = vst [vmem:[#allocation113_spill] sm:$0xff] %v9586_v30  ;;  %v2437_v6 = vmul.f32 -10.0, %v2421_v4  ;;  %v2571_v52 = vmul.f32 %v2555_v31, %v2555_v31  ;;  %7870 = vrsqrt.f32 %v9572_v0  ;;  %v1787_v57 = vadd.f32 %v1771_v33, %v1637_v28 }
 0x14b   : > { %v1921_v13 = vmul.f32 %v9580_v63, %v9167_v58  ;;  %v2721_v20 = vmul.f32 %v2705_v46, %v2705_v46  ;;  %v2706_v36 = vsub.f32 %v9384_v12, %v9160_v35  ;;  %v9594_v42 = vpop.eup %7864  ;;  %7872 = vpow2.f32 %v2157_v27 }
 0x14c   : > { %14840 = vst [vmem:[#allocation114_spill] sm:$0xff] %v9594_v42  ;;  %v2307_v38 = vmul.f32 1.442695, %v2288_v61  ;;  %v2438_v55 = vmul.f32 -10.0, %v2422_v18  ;;  %v2572_v49 = vmul.f32 %v2556_v56, %v2556_v56  ;;  %v1788_v3 = vadd.f32 %v1772_v9, %v1638_v1 }
 0x14d   : > { %v1922_v31 = vmul.f32 %v9586_v30, %v9167_v58  ;;  %v966_v4 = vsub.f32 1.0, %v591_v45  ;;  %v950_v33 = vadd.f32 %v934_v47, %v9538_v50  ;;  %v9599_v28 = vpop.eup %7866  ;;  %7874 = vpow2.f32 %v2305_v17 }
 0x14e   : > { %14841 = vst [vmem:[#allocation115_spill] sm:$0xff] %v9599_v28  ;;  %v2455_v46 = vmul.f32 1.442695, %v2437_v6  ;;  %v2587_v63 = vmul.f32 -10.0, %v2571_v52  ;;  %v2871_v10 = vmul.f32 %v2855_v25, %v2855_v25  ;;  %v9601_v5 = vpop.eup %7868  ;;  %v9605_v27 = vadd.f32 %v9445_v7, %v9527_v43 }
 0x14f   : > { %14842 = vst [vmem:[#allocation116_spill] sm:$0xff] %v9601_v5  ;;  %v1937_v56 = vadd.f32 %v1921_v13, %v1787_v57  ;;  %v2071_v61 = vmul.f32 %v9594_v42, %v9201_v15  ;;  %v2722_v18 = vmul.f32 %v2706_v36, %v2706_v36  ;;  %7876 = vpow2.f32 %v2307_v38 }
 0x150   : > { %v9609_v45 = vpop.eup %7870  ;;  %v2457_v50 = vmul.f32 1.442695, %v2438_v55  ;;  %v2588_v1 = vmul.f32 -10.0, %v2572_v49  ;;  %v2856_v52 = vsub.f32 %v9384_v12, %v9177_v41  ;;  %v2737_v6 = vmul.f32 -10.0, %v2721_v20 }
 0x151   : > { %v1938_v17 = vadd.f32 %v1922_v31, %v1788_v3  ;;  %v2072_v25 = vmul.f32 %v9599_v28, %v9201_v15  ;;  %v982_v7 = vadd.f32 %v966_v4, %v950_v33  ;;  %v9615_v43 = vpop.eup %7872  ;;  %7878 = vpow2.f32 %v2455_v46 }
 0x152   : > { %14843 = vst [vmem:[#allocation117_spill] sm:$0xff] %v9615_v43  ;;  %v2605_v9 = vmul.f32 1.442695, %v2587_v63  ;;  %v2887_v47 = vmul.f32 -10.0, %v2871_v10  ;;  %v3005_v57 = vsub.f32 %v9371_v19, %v9182_v8  ;;  %v2087_v13 = vadd.f32 %v2071_v61, %v1937_v56 }
 0x153   : > { %v2221_v49 = vmul.f32 %v9601_v5, %v9217_v32  ;;  %v2738_v36 = vmul.f32 -10.0, %v2722_v18  ;;  %v1050_v20 = vmul.f32 %v9609_v45, %v9572_v0  ;;  %v9623_v38 = vpop.eup %7874  ;;  %7880 = vpow2.f32 %v2457_v50  ;;  %v9635_v50 = vpop.permute.xlu1 %654 }
 0x154   : > { %14844 = vst [vmem:[#allocation118_spill] sm:$0xff] %v9623_v38  ;;  %v2607_v55 = vmul.f32 1.442695, %v2588_v1  ;;  %v2872_v3 = vmul.f32 %v2856_v52, %v2856_v52  ;;  %v3006_v63 = vsub.f32 %v9384_v12, %v9182_v8  ;;  %v2755_v10 = vmul.f32 1.442695, %v2737_v6 }
 0x155   : > { %v2088_v31 = vadd.f32 %v2072_v25, %v1938_v17  ;;  %v2222_v4 = vmul.f32 %v9615_v43, %v9217_v32  ;;  %v9629_v33 = vadd.f32 1e-12, %v982_v7  ;;  %v9631_v46 = vpop.eup %7876  ;;  %7882 = vpow2.f32 %v2605_v9 }
 0x156   : > { %14845 = vst [vmem:[#allocation119_spill] sm:$0xff] %v9631_v46  ;;  %v2905_v56 = vmul.f32 1.442695, %v2887_v47  ;;  %v3021_v61 = vmul.f32 %v3005_v57, %v3005_v57  ;;  %v3155_v18 = vsub.f32 %v9371_v19, %v9204_v16  ;;  %v2237_v1 = vadd.f32 %v2221_v49, %v2087_v13 }
 0x157   : > { %v2371_v52 = vmul.f32 %v9623_v38, %v9220_v34  ;;  %v2757_v6 = vmul.f32 1.442695, %v2738_v36  ;;  %v1051_v17 = vmul.f32 %v9609_v45, %v1050_v20  ;;  %v9640_v25 = vpop.eup %7878  ;;  %7884 = vpow2.f32 %v2607_v55 }
 0x158   : > { %14846 = vst [vmem:[#allocation120_spill] sm:$0xff] %v9640_v25  ;;  %v2888_v7 = vmul.f32 -10.0, %v2872_v3  ;;  %v3022_v43 = vmul.f32 %v3006_v63, %v3006_v63  ;;  %v3156_v9 = vsub.f32 %v9384_v12, %v9204_v16  ;;  %v3305_v47 = vsub.f32 %v9371_v19, %v9246_v21 }
 0x159   : > { %v2238_v57 = vadd.f32 %v2222_v4, %v2088_v31  ;;  %v2372_v13 = vmul.f32 %v9631_v46, %v9220_v34  ;;  %7886 = vrsqrt.f32 %v9629_v33  ;;  %v9649_v49 = vpop.eup %7880  ;;  %v3037_v36 = vmul.f32 -10.0, %v3021_v61 }
 0x15a   : > { %14847 = vst [vmem:[#allocation121_spill] sm:$0xff] %v9649_v49  ;;  %7888 = vpow2.f32 %v2755_v10  ;;  %v3171_v20 = vmul.f32 %v3155_v18, %v3155_v18  ;;  %v3455_v55 = vsub.f32 %v9371_v19, %v9273_v40  ;;  %v2387_v3 = vadd.f32 %v2371_v52, %v2237_v1  ;;  %v9663_v18 = vpop.permute.xlu2 %659 }
 0x15b   : > { %v2521_v63 = vmul.f32 %v9640_v25, %v9232_v24  ;;  %7890 = vpow2.f32 %v2757_v6  ;;  %v1052_v38 = vmul.f32 0.5, %v1051_v17  ;;  %v9655_v31 = vpop.eup %7882  ;;  %v2907_v4 = vmul.f32 1.442695, %v2888_v7 }
 0x15c   : > { %14848 = vst [vmem:[#allocation122_spill] sm:$0xff] %v9655_v31  ;;  %v3038_v46 = vmul.f32 -10.0, %v3022_v43  ;;  %v3172_v5 = vmul.f32 %v3156_v9, %v3156_v9  ;;  %v3306_v28 = vsub.f32 %v9384_v12, %v9246_v21  ;;  %v2836_v10 = vadd.f32 %v9453_v60, %v9605_v27 }
 0x15d   : > { %7892 = vpow2.f32 %v2905_v56  ;;  %v2388_v61 = vadd.f32 %v2372_v13, %v2238_v57  ;;  %v2522_v19 = vmul.f32 %v9649_v49, %v9232_v24  ;;  %v9665_v1 = vpop.eup %7884  ;;  %v3055_v52 = vmul.f32 1.442695, %v3037_v36  ;;  %v9675_v36 = vpop.permute.xlu1 %744 }
 0x15e   : > { %14849 = vst [vmem:[#allocation123_spill] sm:$0xff] %v9665_v1  ;;  %v3187_v6 = vmul.f32 -10.0, %v3171_v20  ;;  %v3321_v17 = vmul.f32 %v3305_v47, %v3305_v47  ;;  %v3471_v43 = vmul.f32 %v3455_v55, %v3455_v55  ;;  %v2537_v9 = vadd.f32 %v2521_v63, %v2387_v3 }
 0x15f   : > { %v9667_v7 = vpop.eup %7886  ;;  %v2671_v25 = vmul.f32 %v9655_v31, %v9240_v59  ;;  %v3456_v60 = vsub.f32 %v9384_v12, %v9273_v40  ;;  %v1053_v27 = vsub.f32 1.5, %v1052_v38  ;;  %7894 = vpow2.f32 %v2907_v4 }
 0x160   : > { %v9673_v56 = vpop.eup %7888  ;;  %v3057_v57 = vmul.f32 1.442695, %v3038_v46  ;;  %v3188_v13 = vmul.f32 -10.0, %v3172_v5  ;;  %v3322_v49 = vmul.f32 %v3306_v28, %v3306_v28  ;;  %v2538_v20 = vadd.f32 %v2522_v19, %v2388_v61 }
 0x161   : > { %14850 = vst [vmem:[#allocation124_spill] sm:$0xff] %v9673_v56  ;;  %v9677_v47 = vpop.eup %7890  ;;  %v2672_v55 = vmul.f32 %v9665_v1, %v9240_v59  ;;  %vm1055_vm13 = vweird.f32 %v9572_v0  ;;  %vm1056_vm14 = vweird.f32 %v9609_v45  ;;  %v2986_v12 = vadd.f32 %v9472_v2, %v2836_v10 }
 0x162   : > { %14851 = vst [vmem:[#allocation125_spill] sm:$0xff] %v9677_v47  ;;  %v3205_v38 = vmul.f32 1.442695, %v3187_v6  ;;  %v3337_v3 = vmul.f32 -10.0, %v3321_v17  ;;  %v1060_v5 = vmul.f32 %v9667_v7, %v9629_v33  ;;  %v2821_v46 = vmul.f32 %v9673_v56, %v9243_v29  ;;  %vm1057_vm15 = vmor %vm1055_vm13, %vm1056_vm14 }
 0x163   : > { %v9686_v28 = vpop.eup %7892  ;;  %7896 = vpow2.f32 %v3055_v52  ;;  %v3472_v63 = vmul.f32 %v3456_v60, %v3456_v60  ;;  %v1054_v4 = vmul.f32 %v9609_v45, %v1053_v27  ;;  %v2687_v61 = vadd.f32 %v2671_v25, %v2537_v9  ;;  %v14854_v9 = vld [vmem:[#allocation94_spill] sm:$0xff] }
 0x164   : > { %14852 = vst [vmem:[#allocation126_spill] sm:$0xff] %v9686_v28  ;;  %7898 = vpow2.f32 %v3057_v57  ;;  %v3207_v19 = vmul.f32 1.442695, %v3188_v13  ;;  %v3338_v1 = vmul.f32 -10.0, %v3322_v49  ;;  %v3285_v2 = vadd.f32 %v9401_v37, %v9417_v62  ;;  %v14855_v57 = vld [vmem:[#allocation65_spill] sm:$0xff] }
 0x165   : > { %v3487_v10 = vmul.f32 -10.0, %v3471_v43  ;;  %v2688_v6 = vadd.f32 %v2672_v55, %v2538_v20  ;;  %v2822_v17 = vmul.f32 %v9677_v47, %v9243_v29  ;;  %v9697_v56 = vpop.eup %7894  ;;  %v3136_v52 = vadd.f32 %v9514_v39, %v2986_v12  ;;  %v749_v43 = vpop.permute.xlu2 %748  ;;  %v14857_v55 = vld [vmem:[#allocation87_spill] sm:$0xff]  ;;  %v14858_v12 = vld [vmem:[#allocation93_spill] sm:$0xff] }
 0x166   : > { %14853 = vst [vmem:[#allocation127_spill] sm:$0xff] %v9697_v56  ;;  %v3270_v25 = vmul.f32 %v9491_v51, %v9267_v48  ;;  %7900 = vpow2.f32 %v14854_v9  ;;  %v1061_v49 = vmul.f32 %v9667_v7, %v1060_v5  ;;  %v3355_v60 = vmul.f32 1.442695, %v3337_v3 }
 0x167   : > { %7902 = vpow2.f32 %v3205_v38  ;;  %v3488_v37 = vmul.f32 -10.0, %v3472_v63  ;;  %v9705_v62 = vsel %vm1057_vm15, %v9609_v45, %v1054_v4  ;;  %v2837_v27 = vadd.f32 %v2821_v46, %v2687_v61  ;;  %v9722_v61 = vld [vmem:[%s8900_s22] ss:$0 sm:$0xff] }
 0x168   : > { %v2971_v39 = vmul.f32 %v9686_v28, %v14855_v57  ;;  %7904 = vpow2.f32 %v3207_v19  ;;  %v3357_v13 = vmul.f32 1.442695, %v3338_v1  ;;  %v3569_v5 = vmul.f32 %v14858_v12, %v14857_v55  ;;  %v9729_v19 = vld [vmem:[%s8900_s22 + $0x1] ss:$0 sm:$0xff]  ;;  %v8579_v12 = vld [vmem:[%s8854_s27 + $0x10] sm:$0xff] }
 0x169   : > { %v9709_v20 = vpop.eup %7896  ;;  %v3505_v38 = vmul.f32 1.442695, %v3487_v10  ;;  %v2838_v3 = vadd.f32 %v2822_v17, %v2688_v6  ;;  %v2972_v63 = vmul.f32 %v9697_v56, %v14855_v57  ;;  %v9719_v46 = vmul.f32 %v9705_v62, %v9572_v0  ;;  %v830_v6 = vpop.permute.xlu1 %829  ;;  %v14862_v17 = vld [vmem:[#allocation89_spill] sm:$0xff]  ;;  %v14863_v57 = vld [vmem:[#allocation70_spill] sm:$0xff] }
 0x16a   : > { %14856 = vst [vmem:[#allocation94_spill] sm:$0xff] %v9709_v20  ;;  %v9715_v45 = vpop.eup %7898  ;;  %v1062_v4 = vmul.f32 0.5, %v1061_v49  ;;  %v9726_v1 = vsub.f32 %v9663_v18, %v9722_v61  ;;  %v9732_v10 = vsub.f32 %v749_v43, %v9729_v19  ;;  %v3435_v9 = vadd.f32 %v14862_v17, %v3285_v2 }
 0x16b   : > { %14859 = vst [vmem:[#allocation128_spill] sm:$0xff] %v9715_v45  ;;  %v3420_v56 = vmul.f32 %v9502_v44, %v14863_v57  ;;  %7906 = vpow2.f32 %v3355_v60  ;;  %v3507_v0 = vmul.f32 1.442695, %v3488_v37  ;;  %v3286_v28 = vadd.f32 %v3270_v25, %v3136_v52  ;;  %v14868_v37 = vld [vmem:[#allocation23_spill] sm:$0xff]  ;;  %v14884_v44 = vld [vmem:[#allocation80_spill] sm:$0xff] }
 0x16c   : > { %14860 = vst [vmem:[#allocation129_spill] sm:$0xff] %v9726_v1  ;;  %v9737_v49 = vpop.eup %7900  ;;  %v2987_v47 = vadd.f32 %v2971_v39, %v2837_v27  ;;  %v3121_v18 = vmul.f32 %v9709_v20, %v9256_v14  ;;  %7908 = vpow2.f32 %v3357_v13  ;;  %v2988_v43 = vadd.f32 %v2972_v63, %v2838_v3  ;;  %v8577_v13 = vld [vmem:[%s8854_s27] sm:$0xff] }
 0x16d   : > { %14861 = vst [vmem:[#allocation130_spill] sm:$0xff] %v9732_v10  ;;  %v9741_v31 = vpop.eup %7902  ;;  %7910 = vpow2.f32 %v3505_v38  ;;  %v3122_v2 = vmul.f32 %v9715_v45, %v9256_v14  ;;  %v9746_v17 = vsub.f32 %v830_v6, %v9565_v54  ;;  %v1207_v52 = vsub.f32 %v9719_v46, %v14868_v37  ;;  %v14869_v38 = vld [vmem:[#allocation21_spill] sm:$0xff]  ;;  %v14870_v14 = vld [vmem:[#allocation24_spill] sm:$0xff] }
 0x16e   : > { %14864 = vst [vmem:[#allocation89_spill] sm:$0xff] %v9737_v49  ;;  %v9748_v60 = vpop.eup %7904  ;;  %v1063_v25 = vsub.f32 1.5, %v1062_v4  ;;  %v888_v27 = vmul.f32 %v9726_v1, %v9726_v1  ;;  %v904_v39 = vmul.f32 %v9732_v10, %v9732_v10  ;;  %v1185_v3 = vmul.f32 %v8577_v13, %v14869_v38 }
 0x16f   : > { %14865 = vst [vmem:[#allocation131_spill] sm:$0xff] %v9741_v31  ;;  %v3585_v63 = vadd.f32 %v3569_v5, %v3435_v9  ;;  %7912 = vpow2.f32 %v3507_v0  ;;  %v1357_v6 = vsub.f32 %v9719_v46, %v14870_v14  ;;  %v3137_v45 = vadd.f32 %v3121_v18, %v2987_v47 }
 0x170   : > { %14866 = vst [vmem:[#allocation132_spill] sm:$0xff] %v9746_v17  ;;  %v3271_v20 = vmul.f32 %v9741_v31, %v9267_v48  ;;  %vm1065_vm1 = vweird.f32 %v9629_v33  ;;  %vm1066_vm2 = vweird.f32 %v9667_v7  ;;  %v3436_v10 = vadd.f32 %v3420_v56, %v3286_v28  ;;  %v14874_v56 = vld [vmem:[#allocation16_spill] sm:$0xff]  ;;  %v14875_v28 = vld [vmem:[#allocation19_spill] sm:$0xff] }
 0x171   : > { %14867 = vst [vmem:[#allocation133_spill] sm:$0xff] %v9748_v60  ;;  %v9764_v4 = vpop.eup %7906  ;;  %v3570_v13 = vmul.f32 %v9737_v49, %v14857_v55  ;;  %v3138_v5 = vadd.f32 %v3122_v2, %v2988_v43  ;;  %v3272_v9 = vmul.f32 %v9748_v60, %v9267_v48  ;;  %v1223_v0 = vmul.f32 %v1207_v52, %v1207_v52  ;;  %v14877_v43 = vld [vmem:[#allocation22_spill] sm:$0xff]  ;;  %v14880_v60 = vld [vmem:[#allocation25_spill] sm:$0xff]  ;;  %vm1067_vm3 = vmor %vm1065_vm1, %vm1066_vm2 }
 0x172   : > { %14871 = vst [vmem:[#allocation21_spill] sm:$0xff] %v9764_v4  ;;  %v9770_v47 = vpop.eup %7908  ;;  %v1064_v18 = vmul.f32 %v9667_v7, %v1063_v25  ;;  %v920_v38 = vadd.f32 %v904_v39, %v888_v27  ;;  %v936_v1 = vmul.f32 %v9746_v17, %v9746_v17  ;;  %v9779_v42 = vpack.c.bf16 %v14875_v28, %v14874_v56  ;;  %v14878_v2 = vld [vmem:[#allocation26_spill] sm:$0xff]  ;;  %v8578_v39 = vld [vmem:[%s8854_s27 + $0x8] sm:$0xff] }
 0x173   : > { %14872 = vst [vmem:[#allocation134_spill] sm:$0xff] %v9770_v47  ;;  %v9775_v31 = vpop.eup %7910  ;;  %v9783_v30 = vpack.c.bf16 %v14878_v2, %v14877_v43  ;;  %v1373_v48 = vmul.f32 %v1357_v6, %v1357_v6  ;;  %v1507_v52 = vsub.f32 %v9719_v46, %v14880_v60  ;;  %v593_v25 = vld [vmem:[%s8854_s27 + $0x38] sm:$0xff]  ;;  %v9792_v27 = vmul.f32 %v3585_v63, %v1185_v3  ;;  %v14882_v17 = vld [vmem:[#allocation52_spill] sm:$0xff]  ;;  %v3684_v2 = vpop.f32.mrf.mxu2 }
 0x174   : > { %14873 = vst [vmem:[#allocation135_spill] sm:$0xff] %v9775_v31  ;;  %v1186_v56 = vmul.f32 %v8578_v39, %v14882_v17  ;;  %v3287_v28 = vadd.f32 %v3271_v20, %v3137_v45  ;;  %v3421_v43 = vmul.f32 %v9764_v4, %v14863_v57  ;;  %v3586_v49 = vadd.f32 %v3570_v13, %v3436_v10  ;;  %v14886_v10 = vld [vmem:[#allocation27_spill] sm:$0xff] }
 0x175   : > { %14876 = vst [vmem:[#allocation16_spill] sm:$0xff] %v9779_v42  ;;  %v9798_v6 = vpop.eup %7912  ;;  %v1187_v51 = vmul.f32 %v8579_v12, %v14884_v44  ;;  %v3422_v42 = vmul.f32 %v9770_v47, %v14863_v57  ;;  %v1239_v3 = vmul.f32 -10.0, %v1223_v0  ;;  %v9805_v63 = vsel %vm1067_vm3, %v9667_v7, %v1064_v18  ;;  %v14890_v0 = vld [vmem:[#allocation29_spill] sm:$0xff] }
 0x176   : > { %14879 = vst [vmem:[#allocation19_spill] sm:$0xff] %v9783_v30  ;;  %v3288_v30 = vadd.f32 %v3272_v9, %v3138_v5  ;;  %v968_v17 = vsub.f32 1.0, %v593_v25  ;;  %v952_v20 = vadd.f32 %v936_v1, %v920_v38  ;;  %v3571_v45 = vmul.f32 %v9775_v31, %v14857_v55  ;;  %v14889_v9 = vld [vmem:[#allocation28_spill] sm:$0xff] }
 0x177   : > { %14881 = vst [vmem:[#allocation22_spill] sm:$0xff] %v9792_v27  ;;  %v1389_v39 = vmul.f32 -10.0, %v1373_v48  ;;  %v1523_v27 = vmul.f32 %v1507_v52, %v1507_v52  ;;  %v1657_v13 = vsub.f32 %v9719_v46, %v14886_v10  ;;  %v3437_v44 = vadd.f32 %v3421_v43, %v3287_v28  ;;  %v14892_v43 = vld [vmem:[#allocation82_spill] sm:$0xff] }
 0x178   : > { %14883 = vst [vmem:[#allocation26_spill] sm:$0xff] %v9798_v6  ;;  %v3572_v12 = vmul.f32 %v9798_v6, %v14857_v55  ;;  %v9815_v5 = vsub.f32 %v9635_v50, %v9722_v61  ;;  %v9819_v7 = vsub.f32 %v9675_v36, %v9729_v19  ;;  %v3438_v1 = vadd.f32 %v3422_v42, %v3288_v30  ;;  %v8580_v36 = vld [vmem:[%s8854_s27 + $0x18] sm:$0xff] }
 0x179   : > { %14885 = vst [vmem:[#allocation52_spill] sm:$0xff] %v9805_v63  ;;  %v1807_v48 = vsub.f32 %v9719_v46, %v14889_v9  ;;  %v1957_v18 = vsub.f32 %v9719_v46, %v14890_v0  ;;  %v9827_v38 = vmul.f32 %v9805_v63, %v9629_v33  ;;  %v9829_v52 = vmul.f32 %v3586_v49, %v1186_v56 }
 0x17a   : > { %14887 = vst [vmem:[#allocation80_spill] sm:$0xff] %v9815_v5  ;;  %v1259_v25 = vmul.f32 1.442695, %v1239_v3  ;;  %v2107_v50 = vsub.f32 %v9719_v46, %v9039_v11  ;;  %v984_v28 = vadd.f32 %v968_v17, %v952_v20  ;;  %v1188_v30 = vmul.f32 %v8580_v36, %v14892_v43 }
 0x17b   : > { %14888 = vst [vmem:[#allocation136_spill] sm:$0xff] %v9819_v7  ;;  %v1409_v42 = vmul.f32 1.442695, %v1389_v39  ;;  %v1539_v55 = vmul.f32 -10.0, %v1523_v27  ;;  %v1673_v57 = vmul.f32 %v1657_v13, %v1657_v13  ;;  %v3587_v6 = vadd.f32 %v3571_v45, %v3437_v44  ;;  %v3686_v39 = vpop.f32.mrf.mxu2 }
 0x17c   : > { %14891 = vst [vmem:[#allocation137_spill] sm:$0xff] %v9829_v52  ;;  %v2257_v31 = vsub.f32 %v9719_v46, %v9054_v26  ;;  %v887_v33 = vmul.f32 %v9815_v5, %v9815_v5  ;;  %v903_v49 = vmul.f32 %v9819_v7, %v9819_v7  ;;  %v3588_v56 = vadd.f32 %v3572_v12, %v3438_v1 }
 0x17d   : > { %v1823_v3 = vmul.f32 %v1807_v48, %v1807_v48  ;;  %v1973_v52 = vmul.f32 %v1957_v18, %v1957_v18  ;;  %v1208_v17 = vsub.f32 %v9827_v38, %v14868_v37  ;;  %7914 = vpow2.f32 %v1259_v25 }
 0x17e   : > { %v2123_v20 = vmul.f32 %v2107_v50, %v2107_v50  ;;  %v1358_v27 = vsub.f32 %v9827_v38, %v14870_v14  ;;  %v9845_v45 = vadd.f32 1e-12, %v984_v28  ;;  %7916 = vpow2.f32 %v1409_v42 }
 0x17f   : > { %v1559_v13 = vmul.f32 1.442695, %v1539_v55  ;;  %v1689_v44 = vmul.f32 -10.0, %v1673_v57  ;;  %v2407_v36 = vsub.f32 %v9719_v46, %v9084_v53  ;;  %v9849_v12 = vmul.f32 %v3587_v6, %v1187_v51 }
 0x180   : > { %v2273_v1 = vmul.f32 %v2257_v31, %v2257_v31  ;;  %v2557_v48 = vsub.f32 %v9719_v46, %v14834_v23  ;;  %v9853_v18 = vadd.f32 %v903_v49, %v887_v33  ;;  %v1839_v25 = vmul.f32 -10.0, %v1823_v3 }
 0x181   : > { %14893 = vst [vmem:[#allocation82_spill] sm:$0xff] %v9849_v12  ;;  %v1989_v50 = vmul.f32 -10.0, %v1973_v52  ;;  %v1224_v43 = vmul.f32 %v1208_v17, %v1208_v17  ;;  %v9855_v28 = vpack.c.bf16 %v3686_v39, %v3684_v2  ;;  %v2139_v7 = vmul.f32 -10.0, %v2123_v20 }
 0x182   : > { %v1374_v42 = vmul.f32 %v1358_v27, %v1358_v27  ;;  %v1508_v57 = vsub.f32 %v9827_v38, %v14880_v60  ;;  %7918 = vrsqrt.f32 %v9845_v45  ;;  %v9860_v51 = vmul.f32 %v3588_v56, %v1188_v30 }
 0x183   : > { %14894 = vst [vmem:[#allocation138_spill] sm:$0xff] %v9855_v28  ;;  %7920 = vpow2.f32 %v1559_v13  ;;  %v1709_v31 = vmul.f32 1.442695, %v1689_v44  ;;  %v2423_v55 = vmul.f32 %v2407_v36, %v2407_v36  ;;  %3902 = vrot.lane.b32.xlu1 %v9855_v28, %s14821_s16  ;;  %v9864_v6 = vpop.eup %7914  ;;  %v9868_v2 = vmul.f32 %v9705_v62, %v9506_v22  ;;  %v14902_v28 = vld [vmem:[#allocation43_spill] sm:$0xff] }
 0x184   : > { %14895 = vst [vmem:[#allocation139_spill] sm:$0xff] %v9860_v51  ;;  %v2289_v52 = vmul.f32 -10.0, %v2273_v1  ;;  %v2573_v33 = vmul.f32 %v2557_v48, %v2557_v48  ;;  %v1658_v49 = vsub.f32 %v9827_v38, %v14886_v10  ;;  %v9872_v3 = vpop.eup %7916  ;;  %v1859_v30 = vmul.f32 1.442695, %v1839_v25  ;;  %v14899_v48 = vld [vmem:[#allocation37_spill] sm:$0xff] }
 0x185   : > { %14896 = vst [vmem:[#allocation140_spill] sm:$0xff] %v9864_v6  ;;  %v2009_v56 = vmul.f32 1.442695, %v1989_v50  ;;  %v2707_v17 = vsub.f32 %v9719_v46, %v9160_v35  ;;  %v1240_v20 = vmul.f32 -10.0, %v1224_v43  ;;  %v2159_v27 = vmul.f32 1.442695, %v2139_v7 }
 0x186   : > { %14897 = vst [vmem:[#allocation141_spill] sm:$0xff] %v9868_v2  ;;  %v2857_v39 = vsub.f32 %v9719_v46, %v9177_v41  ;;  %v1390_v22 = vmul.f32 -10.0, %v1374_v42  ;;  %v1524_v62 = vmul.f32 %v1508_v57, %v1508_v57  ;;  %7922 = vpow2.f32 %v1709_v31  ;;  %v14900_v50 = vld [vmem:[#allocation40_spill] sm:$0xff]  ;;  %v9889_v42 = vld [vmem:[%s8874_s20 + $0x50] sm:$0xff] }
 0x187   : > { %14898 = vst [vmem:[#allocation142_spill] sm:$0xff] %v9872_v3  ;;  %v2439_v13 = vmul.f32 -10.0, %v2423_v55  ;;  %v3007_v44 = vsub.f32 %v9719_v46, %v9182_v8  ;;  %v3157_v36 = vsub.f32 %v9719_v46, %v9204_v16  ;;  %v1323_v25 = vmul.f32 %v9864_v6, %v14899_v48 }
 0x188   : > { %v9882_v1 = vpop.eup %7918  ;;  %v1473_v7 = vmul.f32 %v9872_v3, %v14900_v50  ;;  %v2589_v43 = vmul.f32 -10.0, %v2573_v33  ;;  %v1674_v5 = vmul.f32 %v1658_v49, %v1658_v49  ;;  %v2309_v31 = vmul.f32 1.442695, %v2289_v52  ;;  %v826_v33 = vpop.permute.xlu0 %825 }
 0x189   : > { %v9891_v57 = vpop.eup %7920  ;;  %v2723_v55 = vmul.f32 %v2707_v17, %v2707_v17  ;;  %v1261_v2 = vmul.f32 1.442695, %v1240_v20  ;;  %v1808_v51 = vsub.f32 %v9827_v38, %v14889_v9  ;;  %7924 = vpow2.f32 %v1859_v30 }
 0x18a   : > { %14901 = vst [vmem:[#allocation143_spill] sm:$0xff] %v9891_v57  ;;  %v2873_v12 = vmul.f32 %v2857_v39, %v2857_v39  ;;  %v1411_v63 = vmul.f32 1.442695, %v1390_v22  ;;  %v1540_v47 = vmul.f32 -10.0, %v1524_v62  ;;  %7926 = vpow2.f32 %v2009_v56 }
 0x18b   : > { %v2459_v4 = vmul.f32 1.442695, %v2439_v13  ;;  %v3023_v6 = vmul.f32 %v3007_v44, %v3007_v44  ;;  %v3173_v3 = vmul.f32 %v3157_v36, %v3157_v36  ;;  %674 = vperm.xlu1 %7672, %v9889_v42   ;;  %v1489_v49 = vadd.f32 %v1473_v7, %v1323_v25 }
 0x18c   : > { %v1623_v52 = vmul.f32 %v9891_v57, %v14902_v28  ;;  %v2609_v17 = vmul.f32 1.442695, %v2589_v43  ;;  %v1690_v20 = vmul.f32 -10.0, %v1674_v5  ;;  %v9898_v10 = vpop.eup %7922  ;;  %v2739_v9 = vmul.f32 -10.0, %v2723_v55  ;;  %v592_v55 = vld [vmem:[%s8854_s27 + $0x30] sm:$0xff] }
 0x18d   : > { %14903 = vst [vmem:[#allocation144_spill] sm:$0xff] %v9898_v10  ;;  %7928 = vpow2.f32 %v1261_v2  ;;  %v1824_v30 = vmul.f32 %v1808_v51, %v1808_v51  ;;  %v1958_v56 = vsub.f32 %v9827_v38, %v14890_v0  ;;  %v2889_v39 = vmul.f32 -10.0, %v2873_v12  ;;  %v14906_v2 = vld [vmem:[#allocation48_spill] sm:$0xff] }
 0x18e   : > { %7930 = vpow2.f32 %v1411_v63  ;;  %v1561_v22 = vmul.f32 1.442695, %v1540_v47  ;;  %v9903_v62 = vsub.f32 %v826_v33, %v9565_v54  ;;  %v3039_v13 = vmul.f32 -10.0, %v3023_v6 }
 0x18f   : > { %7932 = vpow2.f32 %v2159_v27  ;;  %v3189_v44 = vmul.f32 -10.0, %v3173_v3  ;;  %v3307_v5 = vsub.f32 %v9719_v46, %v9246_v21  ;;  %v9907_v36 = vpop.eup %7924  ;;  %v1639_v51 = vadd.f32 %v1623_v52, %v1489_v49  ;;  %v9916_v3 = vld [vmem:[%s8874_s20 + $0x58] sm:$0xff] }
 0x190   : > { %14904 = vst [vmem:[#allocation145_spill] sm:$0xff] %v9903_v62  ;;  %v1773_v25 = vmul.f32 %v9898_v10, %v14906_v2  ;;  %7934 = vpow2.f32 %v2309_v31  ;;  %v1711_v63 = vmul.f32 1.442695, %v1690_v20  ;;  %v9911_v47 = vpop.eup %7926  ;;  %v1840_v12 = vmul.f32 -10.0, %v1824_v30 }
 0x191   : > { %14905 = vst [vmem:[#allocation146_spill] sm:$0xff] %v9907_v36  ;;  %7936 = vpow2.f32 %v2459_v4  ;;  %v1974_v7 = vmul.f32 %v1958_v56, %v1958_v56  ;;  %v1080_v6 = vmul.f32 %v9882_v1, %v9845_v45  ;;  %v2759_v27 = vmul.f32 1.442695, %v2739_v9 }
 0x192   : > { %14907 = vst [vmem:[#allocation147_spill] sm:$0xff] %v9911_v47  ;;  %7938 = vpow2.f32 %v1561_v22  ;;  %v2108_v43 = vsub.f32 %v9827_v38, %v9039_v11  ;;  %v935_v31 = vmul.f32 %v9903_v62, %v9903_v62  ;;  %v2909_v4 = vmul.f32 1.442695, %v2889_v39 }
 0x193   : > { %v9923_v33 = vpop.eup %7928  ;;  %7940 = vpow2.f32 %v2609_v17  ;;  %v3059_v49 = vmul.f32 1.442695, %v3039_v13  ;;  %v3209_v52 = vmul.f32 1.442695, %v3189_v44  ;;  %v14909_v20 = vmov 1  }
 0x194   : > { %14908 = vst [vmem:[#allocation148_spill] sm:$0xff] %v9923_v33  ;;  %7675 = vset.pattern.permute.xlu1 %v14909_v20  ;;  %v9926_v30 = vpop.eup %7930  ;;  %v1789_v56 = vadd.f32 %v1773_v25, %v1639_v51  ;;  %v1923_v9 = vmul.f32 %v9907_v36, %v9167_v58  ;;  %v3323_v22 = vmul.f32 %v3307_v5, %v3307_v5  ;;  %7942 = vpow2.f32 %v1711_v63  ;;  %v9941_v63 = vpop.permute.xlu2 %664 }
 0x195   : > { %14910 = vst [vmem:[#allocation149_spill] sm:$0xff] %v9926_v30  ;;  %764 = vperm.xlu1 %7675, %v9916_v3   ;;  %v9931_v10 = vpop.eup %7932  ;;  %v1861_v62 = vmul.f32 1.442695, %v1840_v12  ;;  %v1990_v57 = vmul.f32 -10.0, %v1974_v7  ;;  %v2258_v17 = vsub.f32 %v9827_v38, %v9054_v26  ;;  %v1081_v39 = vmul.f32 %v9882_v1, %v1080_v6  ;;  %v9943_v36 = vpop.f32.mrf.mxu2 }
 0x196   : > { %14911 = vst [vmem:[#allocation150_spill] sm:$0xff] %v9931_v10  ;;  %v9936_v13 = vpop.eup %7934  ;;  %v2124_v44 = vmul.f32 %v2108_v43, %v2108_v43  ;;  %v2408_v51 = vsub.f32 %v9827_v38, %v9084_v53  ;;  %v967_v25 = vsub.f32 1.0, %v592_v55  ;;  %v951_v5 = vadd.f32 %v935_v31, %v9853_v18 }
 0x197   : > { %14912 = vst [vmem:[#allocation151_spill] sm:$0xff] %v9936_v13  ;;  %v9945_v12 = vpop.eup %7936  ;;  %7944 = vpow2.f32 %v2759_v27  ;;  %v3457_v7 = vsub.f32 %v9719_v46, %v9273_v40  ;;  %v1324_v6 = vmul.f32 %v9923_v33, %v14899_v48  ;;  %v1474_v43 = vmul.f32 %v9926_v30, %v14900_v50 }
 0x198   : > { %14913 = vst [vmem:[#allocation152_spill] sm:$0xff] %v9941_v63  ;;  %v9953_v20 = vpop.eup %7938  ;;  %v1939_v55 = vadd.f32 %v1923_v9, %v1789_v56  ;;  %v2073_v18 = vmul.f32 %v9911_v47, %v9201_v15  ;;  %7946 = vpow2.f32 %v2909_v4  ;;  %v3339_v31 = vmul.f32 -10.0, %v3323_v22 }
 0x199   : > { %14914 = vst [vmem:[#allocation153_spill] sm:$0xff] %v9945_v12  ;;  %v9957_v63 = vpop.eup %7940  ;;  %7948 = vpow2.f32 %v1861_v62  ;;  %v2274_v27 = vmul.f32 %v2258_v17, %v2258_v17  ;;  %v2558_v46 = vsub.f32 %v9827_v38, %v14834_v23  ;;  %v1082_v53 = vmul.f32 0.5, %v1081_v39 }
 0x19a   : > { %14915 = vst [vmem:[#allocation154_spill] sm:$0xff] %v9953_v20  ;;  %v9961_v33 = vpop.eup %7942  ;;  %v2011_v48 = vmul.f32 1.442695, %v1990_v57  ;;  %v2140_v30 = vmul.f32 -10.0, %v2124_v44  ;;  %v2424_v50 = vmul.f32 %v2408_v51, %v2408_v51  ;;  %v983_v26 = vadd.f32 %v967_v25, %v951_v5 }
 0x19b   : > { %14916 = vst [vmem:[#allocation155_spill] sm:$0xff] %v9957_v63  ;;  %7950 = vpow2.f32 %v3059_v49  ;;  %v3473_v56 = vmul.f32 %v3457_v7, %v3457_v7  ;;  %v1490_v9 = vadd.f32 %v1474_v43, %v1324_v6  ;;  %v1624_v4 = vmul.f32 %v9953_v20, %v14902_v28 }
 0x19c   : > { %14917 = vst [vmem:[#allocation156_spill] sm:$0xff] %v9961_v33  ;;  %v2223_v62 = vmul.f32 %v9931_v10, %v9217_v32  ;;  %7952 = vpow2.f32 %v3209_v52  ;;  %v3359_v22 = vmul.f32 1.442695, %v3339_v31  ;;  %v2708_v17 = vsub.f32 %v9827_v38, %v9160_v35 }
 0x19d   : > { %v14918_v39 = vmov 2   ;;  %v9970_v57 = vpop.eup %7944  ;;  %v2089_v44 = vadd.f32 %v2073_v18, %v1939_v55  ;;  %v2290_v51 = vmul.f32 -10.0, %v2274_v27  ;;  %v2574_v49 = vmul.f32 %v2558_v46, %v2558_v46 }
 0x19e   : > { %7677 = vset.pattern.permute.xlu1 %v14918_v39  ;;  %14919 = vst [vmem:[#allocation157_spill] sm:$0xff] %v9970_v57  ;;  %v1083_v25 = vsub.f32 1.5, %v1082_v53  ;;  %v9973_v5 = vpop.eup %7946  ;;  %7954 = vpow2.f32 %v2011_v48  ;;  %v2161_v7 = vmul.f32 1.442695, %v2140_v30  ;;  %v2440_v6 = vmul.f32 -10.0, %v2424_v50  ;;  %v757_v48 = vpop.permute.xlu2 %756 }
 0x19f   : > { %845 = vperm.xlu1 %7677, %v9916_v3   ;;  %14920 = vst [vmem:[#allocation158_spill] sm:$0xff] %v9973_v5  ;;  %v9975_v52 = vadd.f32 1e-12, %v983_v26  ;;  %v9977_v43 = vpop.eup %7948  ;;  %v1640_v31 = vadd.f32 %v1624_v4, %v1490_v9  ;;  %v1774_v10 = vmul.f32 %v9961_v33, %v14906_v2  ;;  %vm1085_vm4 = vweird.f32 %v9845_v45  ;;  %v3691_v26 = vpop.f32.mrf.mxu2 }
 0x1a0   : > { %14921 = vst [vmem:[#allocation159_spill] sm:$0xff] %v9977_v43  ;;  %vm1086_vm5 = vweird.f32 %v9882_v1  ;;  %v2373_v53 = vmul.f32 %v9936_v13, %v9220_v34  ;;  %v3489_v55 = vmul.f32 -10.0, %v3473_v56  ;;  %v2724_v18 = vmul.f32 %v2708_v17, %v2708_v17 }
 0x1a1   : > { %7956 = vrsqrt.f32 %v9975_v52  ;;  %v9986_v50 = vpop.eup %7950  ;;  %v2239_v30 = vadd.f32 %v2223_v62, %v2089_v44  ;;  %v2311_v27 = vmul.f32 1.442695, %v2290_v51  ;;  %v2590_v46 = vmul.f32 -10.0, %v2574_v49  ;;  %vm1087_vm6 = vmor %vm1085_vm4, %vm1086_vm5 }
 0x1a2   : > { %14922 = vst [vmem:[#allocation160_spill] sm:$0xff] %v9986_v50  ;;  %v1084_v9 = vmul.f32 %v9882_v1, %v1083_v25  ;;  %v9989_v4 = vpop.eup %7952  ;;  %v1924_v5 = vmul.f32 %v9977_v43, %v9167_v58  ;;  %7958 = vpow2.f32 %v2161_v7  ;;  %v2461_v13 = vmul.f32 1.442695, %v2440_v6 }
 0x1a3   : > { %14923 = vst [vmem:[#allocation161_spill] sm:$0xff] %v9989_v4  ;;  %v2858_v56 = vsub.f32 %v9827_v38, %v9177_v41  ;;  %v1790_v62 = vadd.f32 %v1774_v10, %v1640_v31  ;;  %v3008_v17 = vsub.f32 %v9827_v38, %v9182_v8  ;;  %v3158_v44 = vsub.f32 %v9827_v38, %v9204_v16 }
 0x1a4   : > { %v10004_v51 = vpack.c.bf16 %v3691_v26, %v9943_v36  ;;  %v10006_v49 = vpop.eup %7954  ;;  %v2523_v25 = vmul.f32 %v9945_v12, %v9232_v24  ;;  %7960 = vpow2.f32 %v3359_v22  ;;  %v3509_v7 = vmul.f32 1.442695, %v3489_v55 }
 0x1a5   : > { %14924 = vst [vmem:[#allocation162_spill] sm:$0xff] %v10006_v49  ;;  %v2740_v6 = vmul.f32 -10.0, %v2724_v18  ;;  %v2389_v4 = vadd.f32 %v2373_v53, %v2239_v30  ;;  %v10012_v10 = vmul.f32 %v9957_v63, %v9240_v59  ;;  %7962 = vpow2.f32 %v2311_v27  ;;  %v670_v18 = vpop.permute.xlu0 %669 }
 0x1a6   : > { %v10015_v31 = vsel %vm1087_vm6, %v9882_v1, %v1084_v9  ;;  %3904 = vrot.lane.b32.xlu0 %v10004_v51, %s14821_s16  ;;  %v14927_v36 = vmov 0   ;;  %7964 = vpow2.f32 %v2461_v13  ;;  %v2611_v22 = vmul.f32 1.442695, %v2590_v46 }
 0x1a7   : > { %14925 = vst [vmem:[#allocation163_spill] sm:$0xff] %v10012_v10  ;;  %7679 = vset.pattern.permute.xlu1 %v14927_v36  ;;  %v10020_v26 = vpop.eup %7956  ;;  %v2874_v55 = vmul.f32 %v2858_v56, %v2858_v56  ;;  %v3308_v53 = vsub.f32 %v9827_v38, %v9246_v21  ;;  %v1940_v30 = vadd.f32 %v1924_v5, %v1790_v62  ;;  %v2761_v63 = vmul.f32 1.442695, %v2740_v6 }
 0x1a8   : > { %14926 = vst [vmem:[#allocation164_spill] sm:$0xff] %v10015_v31  ;;  %v2074_v27 = vmul.f32 %v10006_v49, %v9201_v15  ;;  %v3024_v1 = vmul.f32 %v3008_v17, %v3008_v17  ;;  %v3174_v9 = vmul.f32 %v3158_v44, %v3158_v44  ;;  %v10026_v10 = vpop.eup %7958  ;;  %v10030_v50 = vmul.f32 %v9970_v57, %v9243_v29 }
 0x1a9   : > { %14928 = vst [vmem:[#allocation165_spill] sm:$0xff] %v10026_v10  ;;  %v3458_v13 = vsub.f32 %v9827_v38, %v9273_v40  ;;  %v10036_v46 = vmul.f32 %v10015_v31, %v9845_v45  ;;  %7966 = vpow2.f32 %v3509_v7  ;;  %v1070_v5 = vmul.f32 %v10020_v26, %v9975_v52 }
 0x1aa   : > { %14929 = vst [vmem:[#allocation166_spill] sm:$0xff] %v10030_v50  ;;  %v10041_v56 = vsub.f32 %v757_v48, %v9729_v19  ;;  %v10044_v62 = vsub.f32 %v670_v18, %v9722_v61  ;;  %v10046_v17 = vpop.eup %7960  ;;  %v10048_v44 = vadd.f32 %v2523_v25, %v2389_v4  ;;  %7968 = vpow2.f32 %v2611_v22  ;;  %v838_v50 = vpop.permute.xlu2 %837 }
 0x1ab   : > { %14932 = vst [vmem:[#allocation169_spill] sm:$0xff] %v10046_v17  ;;  %v2890_v38 = vmul.f32 -10.0, %v2874_v55  ;;  %v3324_v6 = vmul.f32 %v3308_v53, %v3308_v53  ;;  %v10050_v45 = vpop.eup %7962  ;;  %v2090_v7 = vadd.f32 %v2074_v27, %v1940_v30  ;;  %v2224_v31 = vmul.f32 %v10026_v10, %v9217_v32 }
 0x1ac   : > { %14930 = vst [vmem:[#allocation167_spill] sm:$0xff] %v10041_v56  ;;  %v3040_v29 = vmul.f32 -10.0, %v3024_v1  ;;  %v3190_v48 = vmul.f32 -10.0, %v3174_v9  ;;  %v10054_v57 = vpop.eup %7964  ;;  %7970 = vpow2.f32 %v2761_v63  ;;  %v3474_v18 = vmul.f32 %v3458_v13, %v3458_v13  ;;  %v14937_v63 = vld [vmem:[#allocation16_spill] sm:$0xff] }
 0x1ad   : > { %14931 = vst [vmem:[#allocation168_spill] sm:$0xff] %v10044_v62  ;;  %v1210_v4 = vsub.f32 %v10036_v46, %v14868_v37  ;;  %v1360_v25 = vsub.f32 %v10036_v46, %v14870_v14  ;;  %v1071_v22 = vmul.f32 %v10020_v26, %v1070_v5  ;;  %v906_v55 = vmul.f32 %v10041_v56, %v10041_v56 }
 0x1ae   : > { %14933 = vst [vmem:[#allocation170_spill] sm:$0xff] %v10048_v44  ;;  %v890_v53 = vmul.f32 %v10044_v62, %v10044_v62  ;;  %v10066_v30 = vsub.f32 %v838_v50, %v9565_v54  ;;  %3894 = vrot.lane.b32.xlu0 %v14937_v63, %s14821_s16  ;;  %v2374_v27 = vmul.f32 %v10050_v45, %v9220_v34  ;;  %v2911_v1 = vmul.f32 1.442695, %v2890_v38  ;;  %v14941_v34 = vld [vmem:[#allocation27_spill] sm:$0xff] }
 0x1af   : > { %14934 = vst [vmem:[#allocation171_spill] sm:$0xff] %v10050_v45  ;;  %v3340_v9 = vmul.f32 -10.0, %v3324_v6  ;;  %v1510_v13 = vsub.f32 %v10036_v46, %v14880_v60  ;;  %v10074_v5 = vpop.eup %7966  ;;  %v2240_v56 = vadd.f32 %v2224_v31, %v2090_v7  ;;  %v10078_v62 = vmul.f32 %v10054_v57, %v9232_v24  ;;  %v14942_v6 = vld [vmem:[#allocation28_spill] sm:$0xff] }
 0x1b0   : > { %14935 = vst [vmem:[#allocation172_spill] sm:$0xff] %v10054_v57  ;;  %v3061_v54 = vmul.f32 1.442695, %v3040_v29  ;;  %v3211_v50 = vmul.f32 1.442695, %v3190_v48  ;;  %v10080_v44 = vpop.eup %7968  ;;  %v3490_v17 = vmul.f32 -10.0, %v3474_v18  ;;  %v1226_v12 = vmul.f32 %v1210_v4, %v1210_v4  ;;  %v753_v4 = vpop.permute.xlu1 %752 }
 0x1b1   : > { %14936 = vst [vmem:[#allocation173_spill] sm:$0xff] %v10066_v30  ;;  %v1660_v38 = vsub.f32 %v10036_v46, %v14941_v34  ;;  %v1810_v45 = vsub.f32 %v10036_v46, %v14942_v6  ;;  %v1376_v10 = vmul.f32 %v1360_v25, %v1360_v25  ;;  %v922_v31 = vadd.f32 %v906_v55, %v890_v53 }
 0x1b2   : > { %14938 = vst [vmem:[#allocation174_spill] sm:$0xff] %v10074_v5  ;;  %v1072_v5 = vmul.f32 0.5, %v1071_v22  ;;  %v938_v7 = vmul.f32 %v10066_v30, %v10066_v30  ;;  %v10088_v24 = vpop.eup %7970  ;;  %7972 = vpow2.f32 %v2911_v1  ;;  %v3361_v29 = vmul.f32 1.442695, %v3340_v9 }
 0x1b3   : > { %14939 = vst [vmem:[#allocation175_spill] sm:$0xff] %v10078_v62  ;;  %v1526_v48 = vmul.f32 %v1510_v13, %v1510_v13  ;;  %v1960_v18 = vsub.f32 %v10036_v46, %v14890_v0  ;;  %v595_v62 = vld [vmem:[%s8854_s27 + $0x48] sm:$0xff]  ;;  %v10093_v57 = vadd.f32 %v2374_v27, %v2240_v56  ;;  %v10097_v25 = vmul.f32 %v10080_v44, %v9240_v59 }
 0x1b4   : > { %14940 = vst [vmem:[#allocation176_spill] sm:$0xff] %v10080_v44  ;;  %7974 = vpow2.f32 %v3061_v54  ;;  %v2110_v22 = vsub.f32 %v10036_v46, %v9039_v11  ;;  %v3511_v55 = vmul.f32 1.442695, %v3490_v17  ;;  %v1242_v53 = vmul.f32 -10.0, %v1226_v12 }
 0x1b5   : > { %14943 = vst [vmem:[#allocation177_spill] sm:$0xff] %v10088_v24  ;;  %v1676_v1 = vmul.f32 %v1660_v38, %v1660_v38  ;;  %v1826_v9 = vmul.f32 %v1810_v45, %v1810_v45  ;;  %v1392_v13 = vmul.f32 -10.0, %v1376_v10  ;;  %v1073_v30 = vsub.f32 1.5, %v1072_v5  ;;  %v14949_v5 = vld [vmem:[#allocation41_spill] sm:$0xff] }
 0x1b6   : > { %14944 = vst [vmem:[#allocation178_spill] sm:$0xff] %v10093_v57  ;;  %v970_v24 = vsub.f32 1.0, %v595_v62  ;;  %v954_v49 = vadd.f32 %v938_v7, %v922_v31  ;;  %760 = vperm.xlu0 %7674, %v9889_v42   ;;  %7976 = vpow2.f32 %v3211_v50  ;;  %v1542_v56 = vmul.f32 -10.0, %v1526_v48  ;;  %v14946_v57 = vld [vmem:[#allocation33_spill] sm:$0xff] }
 0x1b7   : > { %14945 = vst [vmem:[#allocation179_spill] sm:$0xff] %v10097_v25  ;;  %v1976_v27 = vmul.f32 %v1960_v18, %v1960_v18  ;;  %v2260_v59 = vsub.f32 %v10036_v46, %v14946_v57  ;;  %7978 = vpow2.f32 %v3361_v29  ;;  %v2126_v54 = vmul.f32 %v2110_v22, %v2110_v22 }
 0x1b8   : > { %vm1075_vm7 = vweird.f32 %v9975_v52  ;;  %vm1076_vm8 = vweird.f32 %v10020_v26  ;;  %v10106_v12 = vpop.eup %7972  ;;  %7980 = vpow2.f32 %v3511_v55  ;;  %v1265_v10 = vmul.f32 1.442695, %v1242_v53  ;;  %v14950_v53 = vld [vmem:[#allocation152_spill] sm:$0xff] }
 0x1b9   : > { %14947 = vst [vmem:[#allocation180_spill] sm:$0xff] %v10106_v12  ;;  %v1692_v62 = vmul.f32 -10.0, %v1676_v1  ;;  %v1842_v17 = vmul.f32 -10.0, %v1826_v9  ;;  %v1415_v42 = vmul.f32 1.442695, %v1392_v13  ;;  %v2410_v50 = vsub.f32 %v10036_v46, %v14949_v5  ;;  %vm1077_vm9 = vmor %vm1075_vm7, %vm1076_vm8  ;;  %v834_v13 = vpop.permute.xlu1 %833 }
 0x1ba   : > { %v10108_v45 = vpop.eup %7974  ;;  %v1074_v38 = vmul.f32 %v10020_v26, %v1073_v30  ;;  %v986_v31 = vadd.f32 %v970_v24, %v954_v49  ;;  %v1565_v7 = vmul.f32 1.442695, %v1542_v56  ;;  %v1992_v29 = vmul.f32 -10.0, %v1976_v27 }
 0x1bb   : > { %14948 = vst [vmem:[#allocation181_spill] sm:$0xff] %v10108_v45  ;;  %v2276_v48 = vmul.f32 %v2260_v59, %v2260_v59  ;;  %v2560_v18 = vsub.f32 %v10036_v46, %v14834_v23  ;;  %v2142_v22 = vmul.f32 -10.0, %v2126_v54  ;;  %v2710_v55 = vsub.f32 %v10036_v46, %v9160_v35  ;;  %v594_v45 = vld [vmem:[%s8854_s27 + $0x40] sm:$0xff] }
 0x1bc   : > { %v10123_v1 = vsub.f32 %v14950_v53, %v9722_v61  ;;  %v10126_v24 = vsub.f32 %v753_v4, %v9729_v19  ;;  %v10128_v59 = vpop.eup %7976  ;;  %7982 = vpow2.f32 %v1265_v10  ;;  %v1715_v49 = vmul.f32 1.442695, %v1692_v62 }
 0x1bd   : > { %14953 = vst [vmem:[#allocation183_spill] sm:$0xff] %v10128_v59  ;;  %v1865_v30 = vmul.f32 1.442695, %v1842_v17  ;;  %v2860_v9 = vsub.f32 %v10036_v46, %v9177_v41  ;;  %v10132_v56 = vpop.eup %7978  ;;  %7984 = vpow2.f32 %v1415_v42  ;;  %v2426_v27 = vmul.f32 %v2410_v50, %v2410_v50 }
 0x1be   : > { %14951 = vst [vmem:[#allocation152_spill] sm:$0xff] %v10123_v1  ;;  %v10135_v61 = vsel %vm1077_vm9, %v10020_v26, %v1074_v38  ;;  %v10137_v54 = vadd.f32 1e-12, %v986_v31  ;;  %7678 = vset.pattern.permute.xlu0 %v14927_v36  ;;  %v10140_v19 = vpop.eup %7980  ;;  %7986 = vpow2.f32 %v1565_v7  ;;  %v2015_v4 = vmul.f32 1.442695, %v1992_v29 }
 0x1bf   : > { %14952 = vst [vmem:[#allocation182_spill] sm:$0xff] %v10126_v24  ;;  %v2292_v10 = vmul.f32 -10.0, %v2276_v48  ;;  %v2576_v62 = vmul.f32 %v2560_v18, %v2560_v18  ;;  %v2726_v17 = vmul.f32 %v2710_v55, %v2710_v55  ;;  %v889_v53 = vmul.f32 %v10123_v1, %v10123_v1  ;;  %v8581_v26 = vld [vmem:[%s8900_s22 + $0x2] ss:$0 sm:$0xff]  ;;  %v10159_v55 = vld [vmem:[%s8874_s20 + $0x68] sm:$0xff] }
 0x1c0   : > { %14954 = vst [vmem:[#allocation184_spill] sm:$0xff] %v10132_v56  ;;  %v905_v42 = vmul.f32 %v10126_v24, %v10126_v24  ;;  %v10147_v50 = vsub.f32 %v834_v13, %v8581_v26  ;;  %7988 = vpow2.f32 %v1715_v49  ;;  %v2876_v38 = vmul.f32 %v2860_v9, %v2860_v9  ;;  %v10165_v26 = vpop.f32.mrf.mxu2  ;;  %689 = vperm.xlu1 %7679, %v10159_v55  }
 0x1c1   : > { %14955 = vst [vmem:[#allocation185_spill] sm:$0xff] %v10135_v61  ;;  %v3010_v31 = vsub.f32 %v10036_v46, %v9182_v8  ;;  %v10153_v7 = vmul.f32 %v10135_v61, %v9975_v52  ;;  %v2165_v29 = vmul.f32 1.442695, %v2142_v22  ;;  %v2442_v48 = vmul.f32 -10.0, %v2426_v27  ;;  %v14959_v52 = vld [vmem:[#allocation14_spill] sm:$0xff]  ;;  %v14960_v22 = vld [vmem:[#allocation15_spill] sm:$0xff] }
 0x1c2   : > { %14956 = vst [vmem:[#allocation186_spill] sm:$0xff] %v10140_v19  ;;  %v3160_v18 = vsub.f32 %v10036_v46, %v9204_v16  ;;  %7990 = vrsqrt.f32 %v10137_v54  ;;  %v10161_v13 = vpop.eup %7982  ;;  %v2315_v49 = vmul.f32 1.442695, %v2292_v10  ;;  %v3310_v9 = vsub.f32 %v10036_v46, %v9246_v21 }
 0x1c3   : > { %14957 = vst [vmem:[#allocation187_spill] sm:$0xff] %v10147_v50  ;;  %7992 = vpow2.f32 %v1865_v30  ;;  %v10170_v27 = vpack.c.bf16 %v14960_v22, %v14959_v52  ;;  %v10172_v24 = vpop.eup %7984  ;;  %v2592_v1 = vmul.f32 -10.0, %v2576_v62  ;;  %v2742_v61 = vmul.f32 -10.0, %v2726_v17 }
 0x1c4   : > { %14958 = vst [vmem:[#allocation188_spill] sm:$0xff] %v10161_v13  ;;  %v921_v25 = vadd.f32 %v905_v42, %v889_v53  ;;  %v937_v30 = vmul.f32 %v10147_v50, %v10147_v50  ;;  %v10176_v10 = vpop.eup %7986  ;;  %7994 = vpow2.f32 %v2015_v4  ;;  %v2892_v19 = vmul.f32 -10.0, %v2876_v38  ;;  %v14965_v53 = vld [vmem:[#allocation37_spill] sm:$0xff]  ;;  %v14966_v50 = vld [vmem:[#allocation40_spill] sm:$0xff] }
 0x1c5   : > { %14961 = vst [vmem:[#allocation14_spill] sm:$0xff] %v10170_v27  ;;  %v3026_v56 = vmul.f32 %v3010_v31, %v3010_v31  ;;  %v1209_v59 = vsub.f32 %v10153_v7, %v14868_v37  ;;  %7996 = vpow2.f32 %v2165_v29  ;;  %v2465_v52 = vmul.f32 1.442695, %v2442_v48 }
 0x1c6   : > { %14962 = vst [vmem:[#allocation15_spill] sm:$0xff] %v10172_v24  ;;  %v3176_v22 = vmul.f32 %v3160_v18, %v3160_v18  ;;  %v1359_v62 = vsub.f32 %v10153_v7, %v14870_v14  ;;  %v10183_v17 = vpop.eup %7988  ;;  %v1326_v42 = vmul.f32 %v10161_v13, %v14965_v53  ;;  %v1476_v4 = vmul.f32 %v10172_v24, %v14966_v50  ;;  %v10192_v18 = vld [vmem:[%s8874_s20 + $0x60] sm:$0xff] }
 0x1c7   : > { %14963 = vst [vmem:[#allocation189_spill] sm:$0xff] %v10176_v10  ;;  %7998 = vpow2.f32 %v2315_v49  ;;  %v3326_v38 = vmul.f32 %v3310_v9, %v3310_v9  ;;  %v2615_v12 = vmul.f32 1.442695, %v2592_v1  ;;  %v2765_v44 = vmul.f32 1.442695, %v2742_v61  ;;  %684 = vperm.xlu0 %7678, %v10192_v18  }
 0x1c8   : > { %14964 = vst [vmem:[#allocation190_spill] sm:$0xff] %v10183_v17  ;;  %v10189_v31 = vpop.eup %7990  ;;  %v969_v29 = vsub.f32 1.0, %v594_v45  ;;  %v953_v48 = vadd.f32 %v937_v30, %v921_v25  ;;  %v10198_v43 = vmul.f32 %v10176_v10, %v14902_v28  ;;  %v2915_v13 = vmul.f32 1.442695, %v2892_v19  ;;  %v3696_v10 = vpop.f32.mrf.mxu2 }
 0x1c9   : > { %14967 = vst [vmem:[#allocation191_spill] sm:$0xff] %v10192_v18  ;;  %v10194_v47 = vpop.eup %7992  ;;  %v3042_v33 = vmul.f32 -10.0, %v3026_v56  ;;  %v1225_v20 = vmul.f32 %v1209_v59, %v1209_v59  ;;  %8000 = vpow2.f32 %v2465_v52  ;;  %v3192_v49 = vmul.f32 -10.0, %v3176_v22 }
 0x1ca   : > { %14968 = vst [vmem:[#allocation192_spill] sm:$0xff] %v10194_v47  ;;  %v1375_v9 = vmul.f32 %v1359_v62, %v1359_v62  ;;  %v1509_v45 = vsub.f32 %v10153_v7, %v14880_v60  ;;  %v10203_v25 = vpop.eup %7994  ;;  %v1492_v1 = vadd.f32 %v1476_v4, %v1326_v42  ;;  %v3342_v61 = vmul.f32 -10.0, %v3326_v38 }
 0x1cb   : > { %v3460_v30 = vsub.f32 %v10036_v46, %v9273_v40  ;;  %v1100_v19 = vmul.f32 %v10189_v31, %v10137_v54  ;;  %v14969_v56 = vmov 1   ;;  %v10210_v59 = vpop.eup %7996  ;;  %v10214_v52 = vmul.f32 %v10183_v17, %v14906_v2 }
 0x1cc   : > { %7681 = vset.pattern.permute.xlu1 %v14969_v56  ;;  %14970 = vst [vmem:[#allocation193_spill] sm:$0xff] %v10210_v59  ;;  %8002 = vpow2.f32 %v2615_v12  ;;  %v1659_v22 = vsub.f32 %v10153_v7, %v14941_v34  ;;  %v985_v62 = vadd.f32 %v969_v29, %v953_v48  ;;  %v3065_v46 = vmul.f32 1.442695, %v3042_v33 }
 0x1cd   : > { %772 = vperm.xlu1 %7681, %v10159_v55   ;;  %v10219_v42 = vpop.eup %7998  ;;  %8004 = vpow2.f32 %v2765_v44  ;;  %v1241_v4 = vmul.f32 -10.0, %v1225_v20  ;;  %v1809_v38 = vsub.f32 %v10153_v7, %v14942_v6  ;;  %v3215_v24 = vmul.f32 1.442695, %v3192_v49 }
 0x1ce   : > { %14971 = vst [vmem:[#allocation194_spill] sm:$0xff] %v10219_v42  ;;  %8006 = vpow2.f32 %v2915_v13  ;;  %v1391_v17 = vmul.f32 -10.0, %v1375_v9  ;;  %v1525_v18 = vmul.f32 %v1509_v45, %v1509_v45  ;;  %v3365_v12 = vmul.f32 1.442695, %v3342_v61 }
 0x1cf   : > { %v3476_v27 = vmul.f32 %v3460_v30, %v3460_v30  ;;  %v1959_v29 = vsub.f32 %v10153_v7, %v14890_v0  ;;  %v1101_v48 = vmul.f32 %v10189_v31, %v1100_v19  ;;  %v10226_v63 = vpop.eup %8000  ;;  %v1675_v44 = vmul.f32 %v1659_v22, %v1659_v22  ;;  %7683 = vset.pattern.permute.xlu0 %v14918_v39 }
 0x1d0   : > { %14972 = vst [vmem:[#allocation195_spill] sm:$0xff] %v10226_v63  ;;  %v2109_v33 = vsub.f32 %v10153_v7, %v9039_v11  ;;  %v10230_v20 = vadd.f32 1e-12, %v985_v62  ;;  %v3730_v13 = vpack.c.bf16 %v3696_v10, %v10165_v26  ;;  %v10235_v49 = vmul.f32 %v10194_v47, %v9167_v58  ;;  %853 = vperm.xlu0 %7683, %v10159_v55  }
 0x1d1   : > { %8008 = vpow2.f32 %v3065_v46  ;;  %v1263_v9 = vmul.f32 1.442695, %v1241_v4  ;;  %v1825_v45 = vmul.f32 %v1809_v38, %v1809_v38  ;;  %v1413_v30 = vmul.f32 1.442695, %v1391_v17  ;;  %v617_v38 = vld [vmem:[%s8874_s20 + $0x70] sm:$0xff] }
 0x1d2   : > { %v10238_v61 = vpop.eup %8002  ;;  %8010 = vpow2.f32 %v3215_v24  ;;  %v1541_v19 = vmul.f32 -10.0, %v1525_v18  ;;  %v2259_v22 = vsub.f32 %v10153_v7, %v14946_v57  ;;  %3906 = vrot.lane.b32.xlu2 %v3730_v13, %s14821_s16  ;;  %3731 = vmatpush.bf16.msra.mxu1 %v3730_v13  ;;  %v3492_v10 = vmul.f32 -10.0, %v3476_v27 }
 0x1d3   : > { %14973 = vst [vmem:[#allocation196_spill] sm:$0xff] %v10238_v61  ;;  %v10243_v26 = vpop.eup %8004  ;;  %8012 = vpow2.f32 %v3365_v12  ;;  %v1975_v62 = vmul.f32 %v1959_v29, %v1959_v29  ;;  %v1102_v46 = vmul.f32 0.5, %v1101_v48  ;;  %v1691_v24 = vmul.f32 -10.0, %v1675_v44 }
 0x1d4   : > { %14974 = vst [vmem:[#allocation197_spill] sm:$0xff] %v10243_v26  ;;  %v10246_v4 = vpop.eup %8006  ;;  %v2125_v17 = vmul.f32 %v2109_v33, %v2109_v33  ;;  %v2409_v18 = vsub.f32 %v10153_v7, %v14949_v5  ;;  %8014 = vrsqrt.f32 %v10230_v20  ;;  %v1642_v13 = vadd.f32 %v10198_v43, %v1492_v1 }
 0x1d5   : > { %14975 = vst [vmem:[#allocation198_spill] sm:$0xff] %v10246_v4  ;;  %7684 = vset.pattern.permute.xlu1 %v14927_v36  ;;  %8016 = vpow2.f32 %v1263_v9  ;;  %v1841_v27 = vmul.f32 -10.0, %v1825_v45  ;;  %v2559_v12 = vsub.f32 %v10153_v7, %v14834_v23  ;;  %v1563_v55 = vmul.f32 1.442695, %v1541_v19 }
 0x1d6   : > { %694 = vperm.xlu1 %7684, %v617_v38   ;;  %8018 = vpow2.f32 %v1413_v30  ;;  %v2275_v29 = vmul.f32 %v2259_v22, %v2259_v22  ;;  %v2709_v48 = vsub.f32 %v10153_v7, %v9160_v35  ;;  %3732 = vmatpush.bf16.msra.mxu1 %v10004_v51  ;;  %v3515_v33 = vmul.f32 1.442695, %v3492_v10 }
 0x1d7   : > { %v10259_v44 = vpop.eup %8008  ;;  %v1991_v4 = vmul.f32 -10.0, %v1975_v62  ;;  %v1103_v26 = vsub.f32 1.5, %v1102_v46  ;;  %vm1105_vm10 = vweird.f32 %v10137_v54  ;;  %v1713_v1 = vmul.f32 1.442695, %v1691_v24 }
 0x1d8   : > { %14976 = vst [vmem:[#allocation199_spill] sm:$0xff] %v10259_v44  ;;  %v10262_v43 = vpop.eup %8010  ;;  %v2141_v9 = vmul.f32 -10.0, %v2125_v17  ;;  %v2425_v45 = vmul.f32 %v2409_v18, %v2409_v18  ;;  %v2859_v30 = vsub.f32 %v10153_v7, %v9177_v41  ;;  %v1863_v22 = vmul.f32 1.442695, %v1841_v27  ;;  %v14979_v17 = vld [vmem:[#allocation19_spill] sm:$0xff]  ;;  %857 = vperm.xlu0 %7683, %v617_v38  }
 0x1d9   : > { %14977 = vst [vmem:[#allocation200_spill] sm:$0xff] %v10262_v43  ;;  %v10266_v19 = vpop.eup %8012  ;;  %v2575_v61 = vmul.f32 %v2559_v12, %v2559_v12  ;;  %v3009_v51 = vsub.f32 %v10153_v7, %v9182_v8  ;;  %vm1106_vm11 = vweird.f32 %v10189_v31  ;;  %8020 = vpow2.f32 %v1563_v55  ;;  %v14980_v43 = vld [vmem:[#allocation138_spill] sm:$0xff] }
 0x1da   : > { %14978 = vst [vmem:[#allocation201_spill] sm:$0xff] %v10266_v19  ;;  %v10271_v10 = vpop.eup %8014  ;;  %v2291_v62 = vmul.f32 -10.0, %v2275_v29  ;;  %v2725_v46 = vmul.f32 %v2709_v48, %v2709_v48  ;;  %v3159_v24 = vsub.f32 %v10153_v7, %v9204_v16  ;;  %3896 = vrot.lane.b32.xlu2 %v14979_v17, %s14821_s16  ;;  %8022 = vpow2.f32 %v3515_v33  ;;  %3733 = vmatpush.bf16.msra.mxu1 %v14980_v43  ;;  %vm1107_vm12 = vmor %vm1105_vm10, %vm1106_vm11 }
 0x1db   : > { %v10277_v18 = vpop.eup %8016  ;;  %v2013_v27 = vmul.f32 1.442695, %v1991_v4  ;;  %v3309_v12 = vsub.f32 %v10153_v7, %v9246_v21  ;;  %v1104_v19 = vmul.f32 %v10189_v31, %v1103_v26  ;;  %8024 = vpow2.f32 %v1713_v1 }
 0x1dc   : > { %v10283_v55 = vpop.eup %8018  ;;  %v2163_v29 = vmul.f32 1.442695, %v2141_v9  ;;  %v2441_v48 = vmul.f32 -10.0, %v2425_v45  ;;  %v2875_v44 = vmul.f32 %v2859_v30, %v2859_v30  ;;  %8026 = vpow2.f32 %v1863_v22 }
 0x1dd   : > { %v2591_v4 = vmul.f32 -10.0, %v2575_v61  ;;  %v3025_v33 = vmul.f32 %v3009_v51, %v3009_v51  ;;  %v3459_v26 = vsub.f32 %v10153_v7, %v9273_v40  ;;  %v2313_v43 = vmul.f32 1.442695, %v2291_v62  ;;  %v14982_v7 = vld [vmem:[#allocation98_spill] sm:$0xff] }
 0x1de   : > { %7686 = vset.pattern.permute.xlu1 %v14969_v56  ;;  %v2741_v63 = vmul.f32 -10.0, %v2725_v46  ;;  %v3175_v42 = vmul.f32 %v3159_v24, %v3159_v24  ;;  %v1090_v1 = vmul.f32 %v10271_v10, %v10230_v20  ;;  %v1325_v9 = vmul.f32 %v10277_v18, %v14965_v53  ;;  %3734 = vmatpush.bf16.msra.mxu1 %v14982_v7 }
 0x1df   : > { %776 = vperm.xlu1 %7686, %v617_v38   ;;  %v1475_v45 = vmul.f32 %v10283_v55, %v14966_v50  ;;  %v3325_v61 = vmul.f32 %v3309_v12, %v3309_v12  ;;  %v10299_v30 = vsel %vm1107_vm12, %v10189_v31, %v1104_v19  ;;  %v10302_v22 = vpop.eup %8020  ;;  %v1792_v51 = vadd.f32 %v10214_v52, %v1642_v13 }
 0x1e0   : > { %14981 = vst [vmem:[#allocation19_spill] sm:$0xff] %v10299_v30  ;;  %8028 = vpow2.f32 %v2013_v27  ;;  %v2463_v62 = vmul.f32 1.442695, %v2441_v48  ;;  %v2891_v46 = vmul.f32 -10.0, %v2875_v44  ;;  %v10305_v38 = vpop.eup %8022  ;;  %v2613_v24 = vmul.f32 1.442695, %v2591_v4 }
 0x1e1   : > { %14983 = vst [vmem:[#allocation138_spill] sm:$0xff] %v10305_v38  ;;  %8030 = vpow2.f32 %v2163_v29  ;;  %v3041_v53 = vmul.f32 -10.0, %v3025_v33  ;;  %v3475_v47 = vmul.f32 %v3459_v26, %v3459_v26  ;;  %v10307_v50 = vpop.eup %8024  ;;  %v3191_v31 = vmul.f32 -10.0, %v3175_v42  ;;  %v14984_v48 = vld [vmem:[#allocation46_spill] sm:$0xff] }
 0x1e2   : > { %8032 = vpow2.f32 %v2313_v43  ;;  %v10311_v19 = vmul.f32 %v10299_v30, %v10137_v54  ;;  %v1091_v12 = vmul.f32 %v10271_v10, %v1090_v1  ;;  %679 = vperm.xlu2 %7673, %v9916_v3   ;;  %v10315_v52 = vpop.eup %8026  ;;  %v1491_v13 = vadd.f32 %v1475_v45, %v1325_v9  ;;  %3735 = vmatpush.bf16.msra.mxu1 %v14984_v48 }
 0x1e3   : > { %v1625_v44 = vmul.f32 %v10302_v22, %v14902_v28  ;;  %v2763_v27 = vmul.f32 1.442695, %v2741_v63  ;;  %v3341_v29 = vmul.f32 -10.0, %v3325_v61  ;;  %v1942_v42 = vadd.f32 %v10235_v49, %v1792_v51  ;;  %v15003_v28 = vld [vmem:[#allocation76_spill] sm:$0xff] }
 0x1e4   : > { %v2076_v54 = vmul.f32 %v10203_v25, %v9201_v15  ;;  %8034 = vpow2.f32 %v2463_v62  ;;  %v2913_v4 = vmul.f32 1.442695, %v2891_v46  ;;  %v10327_v3 = vmul.f32 %v10210_v59, %v9217_v32  ;;  %v15004_v32 = vld [vmem:[#allocation39_spill] sm:$0xff] }
 0x1e5   : > { %8036 = vpow2.f32 %v2613_v24  ;;  %v3063_v33 = vmul.f32 1.442695, %v3041_v53  ;;  %v3491_v26 = vmul.f32 -10.0, %v3475_v47  ;;  %v1775_v49 = vmul.f32 %v10307_v50, %v14906_v2 }
 0x1e6   : > { %14985 = vst [vmem:[#allocation98_spill] sm:$0xff] %v10327_v3  ;;  %v10331_v63 = vpop.eup %8028  ;;  %v3213_v43 = vmul.f32 1.442695, %v3191_v31  ;;  %v1212_v1 = vsub.f32 %v10311_v19, %v14868_v37  ;;  %v1092_v9 = vmul.f32 0.5, %v1091_v12  ;;  %v1641_v53 = vadd.f32 %v1625_v44, %v1491_v13  ;;  %3736 = vmatpush.bf16.msra.mxu1 %v14979_v17 }
 0x1e7   : > { %7688 = vset.pattern.permute.xlu1 %v14918_v39  ;;  %v10340_v45 = vpop.eup %8030  ;;  %8038 = vpow2.f32 %v2763_v27  ;;  %v3363_v47 = vmul.f32 1.442695, %v3341_v29  ;;  %v1362_v61 = vsub.f32 %v10311_v19, %v14870_v14  ;;  %v10347_v51 = vadd.f32 %v2076_v54, %v1942_v42 }
 0x1e8   : > { %v10345_v7 = vpop.eup %8032  ;;  %v10351_v62 = vmul.f32 %v10315_v52, %v9167_v58  ;;  %8040 = vpow2.f32 %v2913_v4  ;;  %v1512_v46 = vsub.f32 %v10311_v19, %v14880_v60  ;;  %v10357_v24 = vmul.f32 %v10331_v63, %v9201_v15  ;;  %v14991_v4 = vld [vmem:[#allocation16_spill] sm:$0xff] }
 0x1e9   : > { %14986 = vst [vmem:[#allocation46_spill] sm:$0xff] %v10345_v7  ;;  %8042 = vpow2.f32 %v3063_v33  ;;  %v3513_v31 = vmul.f32 1.442695, %v3491_v26  ;;  %v1662_v17 = vsub.f32 %v10311_v19, %v14941_v34  ;;  %v1228_v13 = vmul.f32 %v1212_v1, %v1212_v1  ;;  %v8582_v26 = vld [vmem:[%s8874_s20 + $0x50] sm:$0xff] }
 0x1ea   : > { %14987 = vst [vmem:[#allocation202_spill] sm:$0xff] %v10347_v51  ;;  %v10361_v12 = vpop.eup %8034  ;;  %8044 = vpow2.f32 %v3213_v43  ;;  %v1812_v44 = vsub.f32 %v10311_v19, %v14942_v6  ;;  %v1093_v27 = vsub.f32 1.5, %v1092_v9  ;;  %7676 = vset.pattern.permute.xlu2 %v14918_v39  ;;  %v10368_v48 = vadd.f32 %v1775_v49, %v1641_v53  ;;  %3737 = vmatpush.bf16.msra.mxu1 %v14991_v4 }
 0x1eb   : > { %14988 = vst [vmem:[#allocation203_spill] sm:$0xff] %v10357_v24  ;;  %v10366_v29 = vpop.eup %8036  ;;  %8046 = vpow2.f32 %v3363_v47  ;;  %v1378_v42 = vmul.f32 %v1362_v61, %v1362_v61  ;;  %v1962_v54 = vsub.f32 %v10311_v19, %v14890_v0  ;;  %v1528_v33 = vmul.f32 %v1512_v46, %v1512_v46  ;;  %841 = vperm.xlu2 %7676, %v8582_v26  }
 0x1ec   : > { %14989 = vst [vmem:[#allocation204_spill] sm:$0xff] %v10361_v12  ;;  %vm1095_vm13 = vweird.f32 %v10230_v20  ;;  %vm1096_vm14 = vweird.f32 %v10271_v10  ;;  %v10377_v43 = vstv %s10323_s21  ;;  %8048 = vpow2.f32 %v3513_v31  ;;  %s10590_s21 = sld [smem:[#allocation2 + $0x8c]] }
 0x1ed   : > { %14990 = vst [vmem:[#allocation205_spill] sm:$0xff] %v10366_v29  ;;  %v10379_v1 = vpop.eup %8038  ;;  %v1678_v49 = vmul.f32 %v1662_v17, %v1662_v17  ;;  %v2112_v9 = vsub.f32 %v10311_v19, %v9039_v11  ;;  %v10384_v53 = vstv %s10329_s23  ;;  %v1244_v61 = vmul.f32 -10.0, %v1228_v13  ;;  %vm10400_vm15 = vmor %vm1095_vm13, %vm1096_vm14  ;;  %v15000_v13 = vld [vmem:[#allocation14_spill] sm:$0xff]  ;;  %s10600_s23 = sld [smem:[#allocation2 + $0x8d]] }
 0x1ee   : > { %14992 = vst [vmem:[#allocation16_spill] sm:$0xff] %v10377_v43  ;;  %v10386_v47 = vpop.eup %8040  ;;  %v1828_v46 = vmul.f32 %v1812_v44, %v1812_v44  ;;  %v1094_v4 = vmul.f32 %v10271_v10, %v1093_v27  ;;  %v10390_v30 = vstv %s10337_s24  ;;  %v1394_v15 = vmul.f32 -10.0, %v1378_v42  ;;  %3738 = vmatpush.bf16.msra.mxu1 %v15000_v13  ;;  %v15001_v44 = vld [vmem:[#allocation36_spill] sm:$0xff]  ;;  %s10613_s24 = sld [smem:[#allocation2 + $0x8e]] }
 0x1ef   : > { %14993 = vst [vmem:[#allocation206_spill] sm:$0xff] %v10379_v1  ;;  %v10392_v26 = vpop.eup %8042  ;;  %v1978_v58 = vmul.f32 %v1962_v54, %v1962_v54  ;;  %v2262_v31 = vsub.f32 %v10311_v19, %v14946_v57  ;;  %v10407_v27 = vmul.f32 %v15001_v44, %v10377_v43  ;;  %v1544_v42 = vmul.f32 -10.0, %v1528_v33  ;;  %v15006_v44 = vld [vmem:[#allocation77_spill] sm:$0xff]  ;;  %v15007_v33 = vld [vmem:[#allocation44_spill] sm:$0xff] }
 0x1f0   : > { %14994 = vst [vmem:[#allocation207_spill] sm:$0xff] %v10384_v53  ;;  %v10409_v2 = vpop.eup %8044  ;;  %v2412_v54 = vsub.f32 %v10311_v19, %v14949_v5  ;;  %v10415_v24 = vmul.f32 %v15003_v28, %v10377_v43  ;;  %v10419_v3 = vmul.f32 %v15004_v32, %v10384_v53  ;;  %v1694_v38 = vmul.f32 -10.0, %v1678_v49 }
 0x1f1   : > { %14995 = vst [vmem:[#allocation208_spill] sm:$0xff] %v10386_v47  ;;  %v10421_v51 = vpop.eup %8046  ;;  %v10425_v47 = vmul.f32 %v15006_v44, %v10384_v53  ;;  %v1269_v1 = vmul.f32 1.442695, %v1244_v61  ;;  %v1844_v29 = vmul.f32 -10.0, %v1828_v46  ;;  %v2562_v28 = vsub.f32 %v10311_v19, %v14834_v23  ;;  %v15010_v46 = vld [vmem:[#allocation79_spill] sm:$0xff] }
 0x1f2   : > { %14996 = vst [vmem:[#allocation209_spill] sm:$0xff] %v10390_v30  ;;  %v10436_v32 = vsel %vm10400_vm15, %v10271_v10, %v1094_v4  ;;  %v10438_v49 = vpop.eup %8048  ;;  %v2278_v44 = vmul.f32 %v2262_v31, %v2262_v31  ;;  %v2712_v12 = vsub.f32 %v10311_v19, %v9160_v35  ;;  %v2428_v7 = vmul.f32 %v2412_v54, %v2412_v54 }
 0x1f3   : > { %14997 = vst [vmem:[#allocation210_spill] sm:$0xff] %v10392_v26  ;;  %v2128_v26 = vmul.f32 %v2112_v9, %v2112_v9  ;;  %v1419_v9 = vmul.f32 1.442695, %v1394_v15  ;;  %v2862_v61 = vsub.f32 %v10311_v19, %v9177_v41  ;;  %v10446_v59 = vmul.f32 %v15010_v46, %v10390_v30  ;;  %3892 = vrot.lane.b32.xlu2 %v15000_v13, %s14821_s16 }
 0x1f4   : > { %15002 = vst [vmem:[#allocation14_spill] sm:$0xff] %v10409_v2  ;;  %v10429_v2 = vmul.f32 %v15007_v33, %v10390_v30  ;;  %v1569_v33 = vmul.f32 1.442695, %v1544_v42  ;;  %v1719_v10 = vmul.f32 1.442695, %v1694_v38  ;;  %v10454_v15 = vmul.f32 %v10436_v32, %v10230_v20  ;;  %7680 = vset.pattern.permute.xlu2 %v14969_v56 }
 0x1f5   : > { %15005 = vst [vmem:[#allocation36_spill] sm:$0xff] %v10421_v51  ;;  %v1994_v51 = vmul.f32 -10.0, %v1978_v58  ;;  %v2144_v4 = vmul.f32 -10.0, %v2128_v26  ;;  %v3012_v58 = vsub.f32 %v10311_v19, %v9182_v8  ;;  %8050 = vpow2.f32 %v1269_v1 }
 0x1f6   : > { %15008 = vst [vmem:[#allocation76_spill] sm:$0xff] %v10436_v32  ;;  %v1869_v31 = vmul.f32 1.442695, %v1844_v29  ;;  %v2578_v17 = vmul.f32 %v2562_v28, %v2562_v28  ;;  %v3162_v42 = vsub.f32 %v10311_v19, %v9204_v16  ;;  %8052 = vpow2.f32 %v1419_v9 }
 0x1f7   : > { %15009 = vst [vmem:[#allocation39_spill] sm:$0xff] %v10438_v49  ;;  %v2019_v54 = vmul.f32 1.442695, %v1994_v51  ;;  %v2294_v13 = vmul.f32 -10.0, %v2278_v44  ;;  %v2728_v38 = vmul.f32 %v2712_v12, %v2712_v12  ;;  %8054 = vpow2.f32 %v1569_v33 }
 0x1f8   : > { %v2444_v26 = vmul.f32 -10.0, %v2428_v7  ;;  %v2878_v46 = vmul.f32 %v2862_v61, %v2862_v61  ;;  %v3312_v49 = vsub.f32 %v10311_v19, %v9246_v21  ;;  %8056 = vpow2.f32 %v1719_v10 }
 0x1f9   : > { %v2169_v20 = vmul.f32 1.442695, %v2144_v4  ;;  %v3028_v32 = vmul.f32 %v3012_v58, %v3012_v58  ;;  %v1211_v29 = vsub.f32 %v10454_v15, %v14868_v37  ;;  %8058 = vpow2.f32 %v1869_v31  ;;  %v15011_v58 = vld [vmem:[#allocation191_spill] sm:$0xff] }
 0x1fa   : > { %v2594_v1 = vmul.f32 -10.0, %v2578_v17  ;;  %v3178_v28 = vmul.f32 %v3162_v42, %v3162_v42  ;;  %v1361_v51 = vsub.f32 %v10454_v15, %v14870_v14  ;;  %8060 = vpow2.f32 %v2019_v54 }
 0x1fb   : > { %v2319_v12 = vmul.f32 1.442695, %v2294_v13  ;;  %v2744_v9 = vmul.f32 -10.0, %v2728_v38  ;;  %v1511_v7 = vsub.f32 %v10454_v15, %v14880_v60  ;;  %v10467_v44 = vpop.eup %8050  ;;  %v2469_v33 = vmul.f32 1.442695, %v2444_v26  ;;  %768 = vperm.xlu2 %7680, %v15011_v58  }
 0x1fc   : > { %v2894_v61 = vmul.f32 -10.0, %v2878_v46  ;;  %v3328_v10 = vmul.f32 %v3312_v49, %v3312_v49  ;;  %v1661_v4 = vsub.f32 %v10454_v15, %v14941_v34  ;;  %v10472_v31 = vpop.eup %8052  ;;  %8062 = vpow2.f32 %v2169_v20 }
 0x1fd   : > { %v3044_v17 = vmul.f32 -10.0, %v3028_v32  ;;  %v1227_v42 = vmul.f32 %v1211_v29, %v1211_v29  ;;  %v1811_v54 = vsub.f32 %v10454_v15, %v14942_v6  ;;  %v10476_v13 = vpop.eup %8054  ;;  %v2619_v38 = vmul.f32 1.442695, %v2594_v1 }
 0x1fe   : > { %15012 = vst [vmem:[#allocation77_spill] sm:$0xff] %v10476_v13  ;;  %v3194_v60 = vmul.f32 -10.0, %v3178_v28  ;;  %v1377_v26 = vmul.f32 %v1361_v51, %v1361_v51  ;;  %v1961_v49 = vsub.f32 %v10454_v15, %v14890_v0  ;;  %v10480_v46 = vpop.eup %8056  ;;  %8064 = vpow2.f32 %v2319_v12 }
 0x1ff   : > { %15013 = vst [vmem:[#allocation44_spill] sm:$0xff] %v10480_v46  ;;  %v2769_v34 = vmul.f32 1.442695, %v2744_v9  ;;  %v1527_v14 = vmul.f32 %v1511_v7, %v1511_v7  ;;  %v2111_v32 = vsub.f32 %v10454_v15, %v9039_v11  ;;  %v10484_v20 = vpop.eup %8058  ;;  %8066 = vpow2.f32 %v2469_v33 }
 0x200   : > { %15014 = vst [vmem:[#allocation79_spill] sm:$0xff] %v10484_v20  ;;  %v2919_v29 = vmul.f32 1.442695, %v2894_v61  ;;  %v3344_v6 = vmul.f32 -10.0, %v3328_v10  ;;  %v1677_v37 = vmul.f32 %v1661_v4, %v1661_v4  ;;  %v10486_v1 = vpop.eup %8060  ;;  %v3069_v28 = vmul.f32 1.442695, %v3044_v17 }
 0x201   : > { %15015 = vst [vmem:[#allocation191_spill] sm:$0xff] %v10486_v1  ;;  %v1243_v51 = vmul.f32 -10.0, %v1227_v42  ;;  %v1827_v13 = vmul.f32 %v1811_v54, %v1811_v54  ;;  %v2261_v0 = vsub.f32 %v10454_v15, %v14946_v57  ;;  %8068 = vpow2.f32 %v2619_v38  ;;  %v15084_v1 = vld [vmem:[#allocation89_spill] sm:$0xff] }
 0x202   : > { %v3219_v12 = vmul.f32 1.442695, %v3194_v60  ;;  %v1393_v9 = vmul.f32 -10.0, %v1377_v26  ;;  %v1977_v7 = vmul.f32 %v1961_v49, %v1961_v49  ;;  %v10490_v46 = vpop.eup %8062  ;;  %8070 = vpow2.f32 %v2769_v34 }
 0x203   : > { %15016 = vst [vmem:[#allocation211_spill] sm:$0xff] %v10490_v46  ;;  %v1543_v11 = vmul.f32 -10.0, %v1527_v14  ;;  %v2127_v33 = vmul.f32 %v2111_v32, %v2111_v32  ;;  %v2411_v61 = vsub.f32 %v10454_v15, %v14949_v5  ;;  %8072 = vpow2.f32 %v2919_v29  ;;  %7682 = vset.pattern.permute.xlu2 %v14918_v39 }
 0x204   : > { %v3369_v10 = vmul.f32 1.442695, %v3344_v6  ;;  %v1693_v4 = vmul.f32 -10.0, %v1677_v37  ;;  %v2561_v17 = vsub.f32 %v10454_v15, %v14834_v23  ;;  %v10497_v42 = vpop.eup %8064  ;;  %8074 = vpow2.f32 %v3069_v28  ;;  %849 = vperm.xlu2 %7682, %v15011_v58  }
 0x205   : > { %15017 = vst [vmem:[#allocation212_spill] sm:$0xff] %v10497_v42  ;;  %v1267_v60 = vmul.f32 1.442695, %v1243_v51  ;;  %v1843_v54 = vmul.f32 -10.0, %v1827_v13  ;;  %v2277_v38 = vmul.f32 %v2261_v0, %v2261_v0  ;;  %v10502_v14 = vpop.eup %8066  ;;  %8076 = vpow2.f32 %v3219_v12  ;;  %v15081_v42 = vld [vmem:[#allocation107_spill] sm:$0xff] }
 0x206   : > { %15018 = vst [vmem:[#allocation213_spill] sm:$0xff] %v10502_v14  ;;  %v1417_v34 = vmul.f32 1.442695, %v1393_v9  ;;  %v1993_v37 = vmul.f32 -10.0, %v1977_v7  ;;  %v1451_v6 = vadd.f32 %v10419_v3, %v10407_v27  ;;  %v1567_v26 = vmul.f32 1.442695, %v1543_v11 }
 0x207   : > { %v2143_v39 = vmul.f32 -10.0, %v2127_v33  ;;  %v2427_v49 = vmul.f32 %v2411_v61, %v2411_v61  ;;  %v2711_v32 = vsub.f32 %v10454_v15, %v9160_v35  ;;  %v10510_v0 = vpop.eup %8068  ;;  %8078 = vpow2.f32 %v3369_v10 }
 0x208   : > { %15019 = vst [vmem:[#allocation214_spill] sm:$0xff] %v10510_v0  ;;  %v1717_v58 = vmul.f32 1.442695, %v1693_v4  ;;  %v2577_v13 = vmul.f32 %v2561_v17, %v2561_v17  ;;  %v1452_v29 = vadd.f32 %v10425_v47, %v10415_v24  ;;  %v10514_v28 = vpop.eup %8070  ;;  %8080 = vpow2.f32 %v1267_v60 }
 0x209   : > { %15020 = vst [vmem:[#allocation215_spill] sm:$0xff] %v10514_v28  ;;  %v1867_v3 = vmul.f32 1.442695, %v1843_v54  ;;  %v2293_v11 = vmul.f32 -10.0, %v2277_v38  ;;  %v2861_v27 = vsub.f32 %v10454_v15, %v9177_v41  ;;  %v10520_v51 = vpop.eup %8072  ;;  %v10524_v12 = vadd.f32 %v10351_v62, %v10368_v48  ;;  %v15042_v41 = vld [vmem:[#allocation86_spill] sm:$0xff]  ;;  %v15067_v28 = vld [vmem:[#allocation75_spill] sm:$0xff] }
 0x20a   : > { %15021 = vst [vmem:[#allocation216_spill] sm:$0xff] %v10520_v51  ;;  %v3462_v9 = vsub.f32 %v10311_v19, %v9273_v40  ;;  %8082 = vpow2.f32 %v1417_v34  ;;  %v2017_v24 = vmul.f32 1.442695, %v1993_v37  ;;  %v10530_v47 = vpop.eup %8074  ;;  %v2167_v7 = vmul.f32 1.442695, %v2143_v39  ;;  %v15028_v34 = vld [vmem:[#allocation81_spill] sm:$0xff] }
 0x20b   : > { %15022 = vst [vmem:[#allocation217_spill] sm:$0xff] %v10524_v12  ;;  %8084 = vpow2.f32 %v1567_v26  ;;  %v2443_v33 = vmul.f32 -10.0, %v2427_v49  ;;  %v2727_v61 = vmul.f32 %v2711_v32, %v2711_v32  ;;  %v10534_v10 = vpop.eup %8076  ;;  %v2593_v62 = vmul.f32 -10.0, %v2577_v13 }
 0x20c   : > { %15023 = vst [vmem:[#allocation218_spill] sm:$0xff] %v10530_v47  ;;  %8086 = vpow2.f32 %v1717_v58  ;;  %v1601_v48 = vadd.f32 %v10429_v2, %v1451_v6  ;;  %v1602_v19 = vadd.f32 %v10446_v59, %v1452_v29  ;;  %v2317_v4 = vmul.f32 1.442695, %v2293_v11  ;;  %7685 = vset.pattern.permute.xlu2 %v14927_v36  ;;  %v15027_v2 = vld [vmem:[#allocation47_spill] sm:$0xff]  ;;  %v618_v36 = vld [vmem:[%s8874_s20 + $0x78] sm:$0xff]  ;;  %s10573_s20 = sld [smem:[#allocation2 + $0x8b]] }
 0x20d   : > { %15024 = vst [vmem:[#allocation219_spill] sm:$0xff] %v10534_v10  ;;  %8088 = vpow2.f32 %v1867_v3  ;;  %v2877_v17 = vmul.f32 %v2861_v27, %v2861_v27  ;;  %v10541_v60 = vstv %s10499_s26  ;;  %v10546_v54 = vpop.eup %8078  ;;  %v10548_v38 = vmul.f32 %v3462_v9, %v3462_v9  ;;  %v15032_v3 = vld [vmem:[#allocation50_spill] sm:$0xff]  ;;  %861 = vperm.xlu1 %7688, %v618_v36   ;;  %699 = vperm.xlu2 %7685, %v618_v36   ;;  %s10621_s26 = sld [smem:[#allocation2 + $0x8f]] }
 0x20e   : > { %15025 = vst [vmem:[#allocation220_spill] sm:$0xff] %v10541_v60  ;;  %8090 = vpow2.f32 %v2017_v24  ;;  %v1735_v59 = vmul.f32 %v15027_v2, %v10541_v60  ;;  %v1736_v37 = vmul.f32 %v15028_v34, %v10541_v60  ;;  %v10554_v6 = vpop.eup %8080  ;;  %v2467_v26 = vmul.f32 1.442695, %v2443_v33  ;;  %v15034_v24 = vld [vmem:[#allocation84_spill] sm:$0xff]  ;;  %v15038_v2 = vld [vmem:[#allocation85_spill] sm:$0xff] }
 0x20f   : > { %15026 = vst [vmem:[#allocation221_spill] sm:$0xff] %v10546_v54  ;;  %8092 = vpow2.f32 %v2167_v7  ;;  %v2743_v39 = vmul.f32 -10.0, %v2727_v61  ;;  %v10557_v49 = vstv %s10508_s11  ;;  %v2617_v58 = vmul.f32 1.442695, %v2593_v62  ;;  %s14075_s11 = scalar_lea.vmem %s14173_s9, %s8862_s30  ;;  %s7375_s30 = sshll.u32 %s15760_s12, 3 }
 0x210   : > { %15029 = vst [vmem:[#allocation47_spill] sm:$0xff] %v10554_v6  ;;  %v10560_v32 = vpop.eup %8082  ;;  %v1751_v13 = vadd.f32 %v1735_v59, %v1601_v48  ;;  %v1752_v29 = vadd.f32 %v1736_v37, %v1602_v19  ;;  %v1885_v11 = vmul.f32 %v15032_v3, %v10557_v49  ;;  %8094 = vpow2.f32 %v2317_v4  ;;  %v15037_v48 = vld [vmem:[#allocation55_spill] sm:$0xff]  ;;  %v15041_v3 = vld [vmem:[#allocation60_spill] sm:$0xff] }
 0x211   : > { %15030 = vst [vmem:[#allocation81_spill] sm:$0xff] %v10557_v49  ;;  %v10566_v27 = vpop.eup %8084  ;;  %v2893_v9 = vmul.f32 -10.0, %v2877_v17  ;;  %v1886_v7 = vmul.f32 %v15034_v24, %v10557_v49  ;;  %v10571_v33 = vstv %s10518_s25  ;;  %v10582_v4 = vstv %s10528_s18  ;;  %s8715_s25 = smov 64  }
 0x212   : > { %15031 = vst [vmem:[#allocation222_spill] sm:$0xff] %v10560_v32  ;;  %v10575_v61 = vpop.eup %8086  ;;  %v1901_v62 = vadd.f32 %v1885_v11, %v1751_v13  ;;  %v2035_v19 = vmul.f32 %v15037_v48, %v10571_v33  ;;  %v2036_v59 = vmul.f32 %v15038_v2, %v10571_v33  ;;  %v2767_v34 = vmul.f32 1.442695, %v2743_v39 }
 0x213   : > { %15033 = vst [vmem:[#allocation50_spill] sm:$0xff] %v10566_v27  ;;  %v10584_v17 = vpop.eup %8088  ;;  %v1902_v37 = vadd.f32 %v1886_v7, %v1752_v29  ;;  %v2185_v24 = vmul.f32 %v15041_v3, %v10582_v4  ;;  %v2186_v35 = vmul.f32 %v15042_v41, %v10582_v4  ;;  %8096 = vpow2.f32 %v2467_v26  ;;  %v15047_v7 = vld [vmem:[#allocation66_spill] sm:$0xff]  ;;  %v15049_v26 = vld [vmem:[#allocation88_spill] sm:$0xff] }
 0x214   : > { %15035 = vst [vmem:[#allocation84_spill] sm:$0xff] %v10571_v33  ;;  %v10592_v13 = vpop.eup %8090  ;;  %v2051_v11 = vadd.f32 %v2035_v19, %v1901_v62  ;;  %v10595_v48 = vstv %s10532_s28  ;;  %v10598_v2 = vstv %s10538_s29  ;;  %8098 = vpow2.f32 %v2617_v58  ;;  %v15050_v19 = vld [vmem:[#allocation68_spill] sm:$0xff]  ;;  %s8716_s28 = smov 31   ;;  %s8717_s29 = smov 98  }
 0x215   : > { %15036 = vst [vmem:[#allocation223_spill] sm:$0xff] %v10575_v61  ;;  %v10602_v39 = vpop.eup %8092  ;;  %v2052_v29 = vadd.f32 %v2036_v59, %v1902_v37  ;;  %v2335_v3 = vmul.f32 %v15047_v7, %v10595_v48  ;;  %v10607_v41 = vstv %s10543_s19  ;;  %v2917_v23 = vmul.f32 1.442695, %v2893_v9  ;;  %v15052_v9 = vld [vmem:[#allocation90_spill] sm:$0xff]  ;;  %7687 = vset.pattern.permute.xlu2 %v14969_v56  ;;  %s8718_s19 = smov 97  }
 0x216   : > { %15039 = vst [vmem:[#allocation55_spill] sm:$0xff] %v10582_v4  ;;  %v2201_v5 = vadd.f32 %v2185_v24, %v2051_v11  ;;  %v2336_v62 = vmul.f32 %v15049_v26, %v10595_v48  ;;  %v2485_v57 = vmul.f32 %v15050_v19, %v10598_v2  ;;  %v10615_v54 = vpop.eup %8094  ;;  %8100 = vpow2.f32 %v2767_v34  ;;  %v15053_v26 = vld [vmem:[#allocation72_spill] sm:$0xff]  ;;  %780 = vperm.xlu2 %7687, %v618_v36  }
 0x217   : > { %15040 = vst [vmem:[#allocation85_spill] sm:$0xff] %v10584_v17  ;;  %v3011_v58 = vsub.f32 %v10454_v15, %v9182_v8  ;;  %v2202_v59 = vadd.f32 %v2186_v35, %v2052_v29  ;;  %v2486_v37 = vmul.f32 %v15052_v9, %v10598_v2  ;;  %v3161_v24 = vsub.f32 %v10454_v15, %v9204_v16  ;;  %v15054_v35 = vld [vmem:[#allocation91_spill] sm:$0xff] }
 0x218   : > { %15043 = vst [vmem:[#allocation60_spill] sm:$0xff] %v10592_v13  ;;  %v3311_v11 = vsub.f32 %v10454_v15, %v9246_v21  ;;  %v2351_v7 = vadd.f32 %v2335_v3, %v2201_v5  ;;  %v2635_v19 = vmul.f32 %v15053_v26, %v10607_v41  ;;  %v2636_v29 = vmul.f32 %v15054_v35, %v10607_v41  ;;  %v15059_v26 = vld [vmem:[#allocation73_spill] sm:$0xff]  ;;  %v15061_v21 = vld [vmem:[#allocation92_spill] sm:$0xff] }
 0x219   : > { %15044 = vst [vmem:[#allocation86_spill] sm:$0xff] %v10595_v48  ;;  %v2352_v34 = vadd.f32 %v2336_v62, %v2202_v59  ;;  %v10633_v9 = vstv %s10564_s15  ;;  %v10636_v8 = vstv %s10573_s20  ;;  %v10638_v16 = vpop.eup %8096  ;;  %v10641_v5 = vmul.f32 -10.0, %v10548_v38  ;;  %v15063_v38 = vld [vmem:[#allocation74_spill] sm:$0xff]  ;;  %s7373_s15 = sshll.u32 %s15760_s12, 1 }
 0x21a   : > { %15045 = vst [vmem:[#allocation224_spill] sm:$0xff] %v10598_v2  ;;  %8102 = vpow2.f32 %v2917_v23  ;;  %v2501_v3 = vadd.f32 %v2485_v57, %v2351_v7  ;;  %v2785_v56 = vmul.f32 %v15059_v26, %v10633_v9  ;;  %v10645_v62 = vpop.eup %8098  ;;  %v3027_v59 = vmul.f32 %v3011_v58, %v3011_v58  ;;  %s556_s20 = sadd.s32 %s7373_s15, %s15760_s12 }
 0x21b   : > { %15046 = vst [vmem:[#allocation225_spill] sm:$0xff] %v10602_v39  ;;  %v2502_v35 = vadd.f32 %v2486_v37, %v2352_v34  ;;  %v2786_v10 = vmul.f32 %v15061_v21, %v10633_v9  ;;  %v10650_v12 = vstv %s10590_s21  ;;  %v3177_v36 = vmul.f32 %v3161_v24, %v3161_v24  ;;  %v15066_v34 = vld [vmem:[#allocation95_spill] sm:$0xff]  ;;  %s7374_s21 = sshll.u32 %s556_s20, 3 }
 0x21c   : > { %15048 = vst [vmem:[#allocation66_spill] sm:$0xff] %v10607_v41  ;;  %v2651_v47 = vadd.f32 %v2635_v19, %v2501_v3  ;;  %v2935_v23 = vmul.f32 %v15063_v38, %v10636_v8  ;;  %v10655_v57 = vstv %s10600_s23  ;;  %v10657_v7 = vpop.eup %8100  ;;  %v3327_v26 = vmul.f32 %v3311_v11, %v3311_v11  ;;  %v15068_v19 = vld [vmem:[#allocation97_spill] sm:$0xff] }
 0x21d   : > { %15051 = vst [vmem:[#allocation88_spill] sm:$0xff] %v10615_v54  ;;  %v3461_v58 = vsub.f32 %v10454_v15, %v9273_v40  ;;  %v2652_v37 = vadd.f32 %v2636_v29, %v2502_v35  ;;  %v2936_v21 = vmul.f32 %v15066_v34, %v10636_v8  ;;  %v3085_v24 = vmul.f32 %v15067_v28, %v10650_v12  ;;  %v15072_v15 = vld [vmem:[#allocation103_spill] sm:$0xff]  ;;  %v15076_v40 = vld [vmem:[#allocation105_spill] sm:$0xff]  ;;  %v15082_v54 = vld [vmem:[#allocation108_spill] sm:$0xff] }
 0x21e   : > { %15055 = vst [vmem:[#allocation68_spill] sm:$0xff] %v10633_v9  ;;  %v2801_v51 = vadd.f32 %v2785_v56, %v2651_v47  ;;  %v3086_v3 = vmul.f32 %v15068_v19, %v10650_v12  ;;  %v10668_v38 = vstv %s10613_s24  ;;  %v1287_v29 = vmul.f32 %v15072_v15, %v10377_v43  ;;  %v15074_v56 = vld [vmem:[#allocation99_spill] sm:$0xff]  ;;  %v15079_v15 = vld [vmem:[#allocation106_spill] sm:$0xff] }
 0x21f   : > { %15056 = vst [vmem:[#allocation90_spill] sm:$0xff] %v10636_v8  ;;  %v2802_v0 = vadd.f32 %v2786_v10, %v2652_v37  ;;  %v3236_v28 = vmul.f32 %v15074_v56, %v10655_v57  ;;  %v15075_v34 = vld [vmem:[#allocation83_spill] sm:$0xff]  ;;  %v1288_v10 = vmul.f32 %v15076_v40, %v10377_v43  ;;  %v1588_v40 = vmul.f32 %v15082_v54, %v10390_v30  ;;  %v15087_v54 = vld [vmem:[#allocation113_spill] sm:$0xff] }
 0x220   : > { %15057 = vst [vmem:[#allocation72_spill] sm:$0xff] %v10638_v16  ;;  %v10677_v35 = vpop.eup %8102  ;;  %v2951_v47 = vadd.f32 %v2935_v23, %v2801_v51  ;;  %v3385_v19 = vmul.f32 %v15075_v34, %v10668_v38  ;;  %v15080_v23 = vld [vmem:[#allocation93_spill] sm:$0xff]  ;;  %v1587_v34 = vmul.f32 %v15081_v42, %v10390_v30 }
 0x221   : > { %15058 = vst [vmem:[#allocation91_spill] sm:$0xff] %v10641_v5  ;;  %v2952_v37 = vadd.f32 %v2936_v21, %v2802_v0  ;;  %v15078_v5 = vld [vmem:[#allocation104_spill] sm:$0xff] }
 0x222   : > { %15060 = vst [vmem:[#allocation73_spill] sm:$0xff] %v10645_v62  ;;  %v10673_v62 = vstv %s10621_s26  ;;  %v1437_v16 = vmul.f32 %v15078_v5, %v10384_v53  ;;  %v3101_v51 = vadd.f32 %v3085_v24, %v2951_v47  ;;  %v15085_v24 = vld [vmem:[#allocation111_spill] sm:$0xff]  ;;  %s558_s26 = scalar_lea.vmem %s14169_s5, %s7374_s21 }
 0x223   : > { %15062 = vst [vmem:[#allocation92_spill] sm:$0xff] %v10650_v12  ;;  %v3535_v56 = vmul.f32 %v15080_v23, %v10673_v62  ;;  %v3102_v0 = vadd.f32 %v3086_v3, %v2952_v37  ;;  %v1738_v47 = vmul.f32 %v15085_v24, %v10541_v60  ;;  %v15086_v23 = vld [vmem:[#allocation112_spill] sm:$0xff]  ;;  %v3043_v3 = vmul.f32 -10.0, %v3027_v59 }
 0x224   : > { %15064 = vst [vmem:[#allocation74_spill] sm:$0xff] %v10655_v57  ;;  %v1453_v21 = vadd.f32 %v1437_v16, %v1287_v29  ;;  %v1887_v13 = vmul.f32 %v15086_v23, %v10557_v49  ;;  %v1888_v16 = vmul.f32 %v15087_v54, %v10557_v49  ;;  %v3193_v29 = vmul.f32 -10.0, %v3177_v36  ;;  %v15091_v59 = vld [vmem:[#allocation116_spill] sm:$0xff] }
 0x225   : > { %15065 = vst [vmem:[#allocation226_spill] sm:$0xff] %v10657_v7  ;;  %v15070_v7 = vld [vmem:[#allocation78_spill] sm:$0xff]  ;;  %v3252_v42 = vadd.f32 %v3236_v28, %v3102_v0  ;;  %v10711_v28 = vmul.f32 -10.0, %v3327_v26  ;;  %v2187_v36 = vmul.f32 %v15091_v59, %v10582_v4  ;;  %v15096_v54 = vld [vmem:[#allocation120_spill] sm:$0xff]  ;;  %v15101_v59 = vld [vmem:[#allocation125_spill] sm:$0xff] }
 0x226   : > { %15069 = vst [vmem:[#allocation95_spill] sm:$0xff] %v10668_v38  ;;  %v3235_v11 = vmul.f32 %v15070_v7, %v10655_v57  ;;  %v15077_v7 = vld [vmem:[#allocation102_spill] sm:$0xff]  ;;  %v1603_v20 = vadd.f32 %v1587_v34, %v1453_v21  ;;  %v15092_v21 = vld [vmem:[#allocation117_spill] sm:$0xff] }
 0x227   : > { %15071 = vst [vmem:[#allocation75_spill] sm:$0xff] %v10673_v62  ;;  %v3386_v14 = vmul.f32 %v15077_v7, %v10668_v38  ;;  %v15083_v7 = vld [vmem:[#allocation109_spill] sm:$0xff]  ;;  %v15094_v26 = vld [vmem:[#allocation118_spill] sm:$0xff] }
 0x228   : > { %15073 = vst [vmem:[#allocation97_spill] sm:$0xff] %v10677_v35  ;;  %v1438_v35 = vmul.f32 %v15079_v15, %v10384_v53  ;;  %v1737_v39 = vmul.f32 %v15083_v7, %v10541_v60  ;;  %v3251_v5 = vadd.f32 %v3235_v11, %v3101_v51  ;;  %v3536_v15 = vmul.f32 %v15084_v1, %v10673_v62  ;;  %v15088_v11 = vld [vmem:[#allocation114_spill] sm:$0xff]  ;;  %v15089_v7 = vld [vmem:[#allocation115_spill] sm:$0xff] }
 0x229   : > { %v3402_v1 = vadd.f32 %v3386_v14, %v3252_v42  ;;  %v2038_v24 = vmul.f32 %v15089_v7, %v10571_v33  ;;  %15090 = vst [vmem:[#allocation78_spill] sm:$0xff] %v10711_v28  ;;  %v2188_v14 = vmul.f32 %v15092_v21, %v10582_v4  ;;  %v15103_v21 = vld [vmem:[#allocation127_spill] sm:$0xff] }
 0x22a   : > { %v1454_v46 = vadd.f32 %v1438_v35, %v1288_v10  ;;  %v3401_v35 = vadd.f32 %v3385_v19, %v3251_v5  ;;  %v2037_v10 = vmul.f32 %v15088_v11, %v10571_v33  ;;  %v1753_v37 = vadd.f32 %v1737_v39, %v1603_v20  ;;  %v8583_v39 = vld [vmem:[%s8854_s27] sm:$0xff] }
 0x22b   : > { %v3552_v19 = vadd.f32 %v3536_v15, %v3402_v1  ;;  %v10719_v20 = vmul.f32 1.442695, %v3043_v3  ;;  %v15095_v15 = vld [vmem:[#allocation119_spill] sm:$0xff]  ;;  %v15097_v3 = vld [vmem:[#allocation121_spill] sm:$0xff] }
 0x22c   : > { %v1604_v17 = vadd.f32 %v1588_v40, %v1454_v46  ;;  %v10713_v46 = vmul.f32 %v3461_v58, %v3461_v58  ;;  %v3551_v34 = vadd.f32 %v3535_v56, %v3401_v35  ;;  %v1903_v40 = vadd.f32 %v1887_v13, %v1753_v37  ;;  %v15099_v1 = vld [vmem:[#allocation123_spill] sm:$0xff] }
 0x22d   : > { %v2337_v58 = vmul.f32 %v15094_v26, %v10595_v48  ;;  %v2338_v13 = vmul.f32 %v15095_v15, %v10595_v48  ;;  %v2488_v35 = vmul.f32 %v15097_v3, %v10598_v2  ;;  %v2638_v37 = vmul.f32 %v15099_v1, %v10607_v41  ;;  %v15104_v26 = vld [vmem:[#allocation94_spill] sm:$0xff]  ;;  %v15108_v3 = vld [vmem:[#allocation149_spill] sm:$0xff]  ;;  %v15109_v1 = vld [vmem:[#allocation143_spill] sm:$0xff] }
 0x22e   : > { %v1754_v51 = vadd.f32 %v1738_v47, %v1604_v17  ;;  %v10721_v17 = vmul.f32 1.442695, %v3193_v29  ;;  %v3699_v5 = vmul.f32 %v8583_v39, %v3551_v34  ;;  %v8584_v47 = vld [vmem:[%s8854_s27 + $0x8] sm:$0xff]  ;;  %v2053_v23 = vadd.f32 %v2037_v10, %v1903_v40  ;;  %v15098_v29 = vld [vmem:[#allocation122_spill] sm:$0xff] }
 0x22f   : > { %v3700_v56 = vmul.f32 %v8584_v47, %v3552_v19  ;;  %v2637_v11 = vmul.f32 %v15098_v29, %v10607_v41  ;;  %v15100_v10 = vld [vmem:[#allocation124_spill] sm:$0xff]  ;;  %v2788_v19 = vmul.f32 %v15101_v59, %v10633_v9  ;;  %v15102_v40 = vld [vmem:[#allocation126_spill] sm:$0xff]  ;;  %v2938_v39 = vmul.f32 %v15103_v21, %v10636_v8 }
 0x230   : > { %v1904_v0 = vadd.f32 %v1888_v16, %v1754_v51  ;;  %15093 = vst [vmem:[#allocation103_spill] sm:$0xff] %v10721_v17  ;;  %v2487_v16 = vmul.f32 %v15096_v54, %v10598_v2  ;;  %v2203_v7 = vadd.f32 %v2187_v36, %v2053_v23  ;;  %v3087_v47 = vmul.f32 %v15104_v26, %v10650_v12  ;;  %v15105_v36 = vld [vmem:[#allocation140_spill] sm:$0xff]  ;;  %v15110_v59 = vld [vmem:[#allocation154_spill] sm:$0xff] }
 0x231   : > { %v3715_v51 = vpack.c.bf16 %v3700_v56, %v3699_v5  ;;  %v15106_v56 = vld [vmem:[#allocation148_spill] sm:$0xff]  ;;  %v1440_v29 = vmul.f32 %v15108_v3, %v10384_v53  ;;  %8104 = vpow2.f32 %v10719_v20 }
 0x232   : > { %v2054_v42 = vadd.f32 %v2038_v24, %v1904_v0  ;;  %v2787_v24 = vmul.f32 %v15100_v10, %v10633_v9  ;;  %v2937_v0 = vmul.f32 %v15102_v40, %v10636_v8  ;;  %v2353_v15 = vadd.f32 %v2337_v58, %v2203_v7  ;;  %v15111_v7 = vld [vmem:[#allocation128_spill] sm:$0xff]  ;;  %v15112_v40 = vld [vmem:[#allocation131_spill] sm:$0xff] }
 0x233   : > { %3739 = vmatmul.bf16.vlgmr.msra.gmra.mxu1 %v3715_v51  ;;  %v1290_v23 = vmul.f32 %v15106_v56, %v10377_v43  ;;  %v1589_v10 = vmul.f32 %v15109_v1, %v10390_v30  ;;  %v1590_v51 = vmul.f32 %v15110_v59, %v10390_v30  ;;  %v3237_v21 = vmul.f32 %v15112_v40, %v10655_v57  ;;  %v15113_v56 = vld [vmem:[#allocation144_spill] sm:$0xff]  ;;  %v15115_v59 = vld [vmem:[#allocation133_spill] sm:$0xff]  ;;  %v15117_v40 = vld [vmem:[#allocation146_spill] sm:$0xff] }
 0x234   : > { %v2204_v34 = vadd.f32 %v2188_v14, %v2054_v42  ;;  %v1289_v14 = vmul.f32 %v15105_v36, %v10377_v43  ;;  %v15107_v42 = vld [vmem:[#allocation142_spill] sm:$0xff]  ;;  %v2503_v58 = vadd.f32 %v2487_v16, %v2353_v15  ;;  %v15114_v3 = vld [vmem:[#allocation156_spill] sm:$0xff]  ;;  %v3238_v16 = vmul.f32 %v15115_v59, %v10655_v57 }
 0x235   : > { %v1439_v54 = vmul.f32 %v15107_v42, %v10384_v53  ;;  %v1456_v36 = vadd.f32 %v1440_v29, %v1290_v23  ;;  %v1739_v42 = vmul.f32 %v15113_v56, %v10541_v60  ;;  %v1740_v17 = vmul.f32 %v15114_v3, %v10541_v60  ;;  %v15118_v23 = vld [vmem:[#allocation159_spill] sm:$0xff]  ;;  %v15119_v3 = vld [vmem:[#allocation134_spill] sm:$0xff] }
 0x236   : > { %v2354_v5 = vadd.f32 %v2338_v13, %v2204_v34  ;;  %v3088_v34 = vmul.f32 %v15111_v7, %v10650_v12  ;;  %v2653_v1 = vadd.f32 %v2637_v11, %v2503_v58  ;;  %v3388_v11 = vmul.f32 %v15119_v3, %v10668_v38 }
 0x237   : > { %v1455_v26 = vadd.f32 %v1439_v54, %v1289_v14  ;;  %v1606_v7 = vadd.f32 %v1590_v51, %v1456_v36  ;;  %v1889_v14 = vmul.f32 %v15117_v40, %v10557_v49  ;;  %v1890_v54 = vmul.f32 %v15118_v23, %v10557_v49  ;;  %v15122_v51 = vld [vmem:[#allocation162_spill] sm:$0xff] }
 0x238   : > { %v2504_v13 = vadd.f32 %v2488_v35, %v2354_v5  ;;  %v15116_v35 = vld [vmem:[#allocation21_spill] sm:$0xff]  ;;  %v2803_v29 = vadd.f32 %v2787_v24, %v2653_v1  ;;  %v15123_v23 = vld [vmem:[#allocation26_spill] sm:$0xff] }
 0x239   : > { %v3387_v15 = vmul.f32 %v15116_v35, %v10668_v38  ;;  %v1605_v5 = vadd.f32 %v1589_v10, %v1455_v26  ;;  %v1756_v59 = vadd.f32 %v1740_v17, %v1606_v7  ;;  %v15121_v35 = vld [vmem:[#allocation147_spill] sm:$0xff]  ;;  %v2040_v26 = vmul.f32 %v15122_v51, %v10571_v33 }
 0x23a   : > { %v2654_v28 = vadd.f32 %v2638_v37, %v2504_v13  ;;  %v15120_v37 = vld [vmem:[#allocation135_spill] sm:$0xff]  ;;  %v2039_v10 = vmul.f32 %v15121_v35, %v10571_v33  ;;  %v2953_v36 = vadd.f32 %v2937_v0, %v2803_v29  ;;  %v3538_v24 = vmul.f32 %v15123_v23, %v10673_v62 }
 0x23b   : > { %v3537_v58 = vmul.f32 %v15120_v37, %v10673_v62  ;;  %v1755_v13 = vadd.f32 %v1739_v42, %v1605_v5  ;;  %v1906_v3 = vadd.f32 %v1890_v54, %v1756_v59  ;;  %v15125_v37 = vld [vmem:[#allocation165_spill] sm:$0xff]  ;;  %v15126_v17 = vld [vmem:[#allocation151_spill] sm:$0xff] }
 0x23c   : > { %v2804_v56 = vadd.f32 %v2788_v19, %v2654_v28  ;;  %v15124_v28 = vld [vmem:[#allocation150_spill] sm:$0xff]  ;;  %v2190_v42 = vmul.f32 %v15125_v37, %v10582_v4  ;;  %v2339_v5 = vmul.f32 %v15126_v17, %v10595_v48  ;;  %v3103_v7 = vadd.f32 %v3087_v47, %v2953_v36  ;;  %v15127_v51 = vld [vmem:[#allocation171_spill] sm:$0xff]  ;;  %v15131_v17 = vld [vmem:[#allocation176_spill] sm:$0xff] }
 0x23d   : > { %v2189_v19 = vmul.f32 %v15124_v28, %v10582_v4  ;;  %v1905_v1 = vadd.f32 %v1889_v14, %v1755_v13  ;;  %v2340_v0 = vmul.f32 %v15127_v51, %v10595_v48  ;;  %v2056_v23 = vadd.f32 %v2040_v26, %v1906_v3  ;;  %v15129_v28 = vld [vmem:[#allocation172_spill] sm:$0xff]  ;;  %v15130_v54 = vld [vmem:[#allocation155_spill] sm:$0xff]  ;;  %v15134_v26 = vld [vmem:[#allocation158_spill] sm:$0xff] }
 0x23e   : > { %v2954_v40 = vadd.f32 %v2938_v39, %v2804_v56  ;;  %v15128_v39 = vld [vmem:[#allocation153_spill] sm:$0xff]  ;;  %v2490_v14 = vmul.f32 %v15129_v28, %v10598_v2  ;;  %v2639_v13 = vmul.f32 %v15130_v54, %v10607_v41  ;;  %v3253_v59 = vadd.f32 %v3237_v21, %v3103_v7  ;;  %v10807_v54 = vpop.permute.xlu1 %3898  ;;  %v15135_v21 = vld [vmem:[#allocation180_spill] sm:$0xff] }
 0x23f   : > { %v2489_v29 = vmul.f32 %v15128_v39, %v10598_v2  ;;  %v2055_v56 = vadd.f32 %v2039_v10, %v1905_v1  ;;  %v2640_v47 = vmul.f32 %v15131_v17, %v10607_v41  ;;  %v2206_v51 = vadd.f32 %v2190_v42, %v2056_v23  ;;  %v15133_v39 = vld [vmem:[#allocation177_spill] sm:$0xff]  ;;  %v15136_v7 = vld [vmem:[#allocation160_spill] sm:$0xff] }
 0x240   : > { %v3104_v35 = vadd.f32 %v3088_v34, %v2954_v40  ;;  %v15132_v34 = vld [vmem:[#allocation157_spill] sm:$0xff]  ;;  %v2790_v10 = vmul.f32 %v15133_v39, %v10633_v9  ;;  %v2939_v1 = vmul.f32 %v15134_v26, %v10636_v8  ;;  %v3403_v3 = vadd.f32 %v3387_v15, %v3253_v59  ;;  %v15137_v23 = vld [vmem:[#allocation188_spill] sm:$0xff] }
 0x241   : > { %v2789_v36 = vmul.f32 %v15132_v34, %v10633_v9  ;;  %v2205_v40 = vadd.f32 %v2189_v19, %v2055_v56  ;;  %v2356_v42 = vadd.f32 %v2340_v0, %v2206_v51  ;;  %v1291_v56 = vmul.f32 %v10277_v18, %v10377_v43  ;;  %v15139_v0 = vld [vmem:[#allocation189_spill] sm:$0xff] }
 0x242   : > { %v3254_v37 = vadd.f32 %v3238_v16, %v3104_v35  ;;  %v2940_v16 = vmul.f32 %v15135_v21, %v10636_v8  ;;  %v3089_v35 = vmul.f32 %v15136_v7, %v10650_v12  ;;  %v1292_v17 = vmul.f32 %v15137_v23, %v10377_v43  ;;  %v8585_v18 = vld [vmem:[%s8854_s27 + $0x10] sm:$0xff]  ;;  %v8586_v7 = vld [vmem:[%s8854_s27 + $0x18] sm:$0xff] }
 0x243   : > { %v2355_v19 = vadd.f32 %v2339_v5, %v2205_v40  ;;  %v3553_v15 = vadd.f32 %v3537_v58, %v3403_v3  ;;  %v1441_v59 = vmul.f32 %v10283_v55, %v10384_v53  ;;  %v2506_v26 = vadd.f32 %v2490_v14, %v2356_v42 }
 0x244   : > { %v3404_v28 = vadd.f32 %v3388_v11, %v3254_v37  ;;  %v15138_v37 = vld [vmem:[#allocation15_spill] sm:$0xff]  ;;  %v1591_v5 = vmul.f32 %v10302_v22, %v10390_v30  ;;  %v1592_v40 = vmul.f32 %v15139_v0, %v10390_v30  ;;  %v1741_v55 = vmul.f32 %v10307_v50, %v10541_v60 }
 0x245   : > { %v1442_v34 = vmul.f32 %v15138_v37, %v10384_v53  ;;  %v2505_v21 = vadd.f32 %v2489_v29, %v2355_v19  ;;  %v3701_v51 = vmul.f32 %v8585_v18, %v3553_v15  ;;  %v1457_v58 = vadd.f32 %v1441_v59, %v1291_v56  ;;  %v15140_v29 = vld [vmem:[#allocation190_spill] sm:$0xff]  ;;  %v15143_v59 = vld [vmem:[#allocation161_spill] sm:$0xff] }
 0x246   : > { %v3554_v11 = vadd.f32 %v3538_v24, %v3404_v28  ;;  %v2656_v28 = vadd.f32 %v2640_v47, %v2506_v26  ;;  %v1742_v14 = vmul.f32 %v15140_v29, %v10541_v60  ;;  %v1891_v37 = vmul.f32 %v10315_v52, %v10557_v49  ;;  %v3907_v52 = vpop.permute.xlu2 %3906 }
 0x247   : > { %v1458_v24 = vadd.f32 %v1442_v34, %v1292_v17  ;;  %v2655_v3 = vadd.f32 %v2639_v13, %v2505_v21  ;;  %v1607_v42 = vadd.f32 %v1591_v5, %v1457_v58  ;;  %v15142_v13 = vld [vmem:[#allocation192_spill] sm:$0xff]  ;;  %v2041_v21 = vmul.f32 %v10331_v63, %v10571_v33  ;;  %v15144_v5 = vld [vmem:[#allocation183_spill] sm:$0xff]  ;;  %3916 = vmatpush.bf16.msrb.mxu2 %v3907_v52 }
 0x248   : > { %v3702_v23 = vmul.f32 %v8586_v7, %v3554_v11  ;;  %v2806_v15 = vadd.f32 %v2790_v10, %v2656_v28  ;;  %v15141_v7 = vld [vmem:[#allocation181_spill] sm:$0xff]  ;;  %v1892_v47 = vmul.f32 %v15142_v13, %v10557_v49  ;;  %v2042_v17 = vmul.f32 %v10203_v25, %v10571_v33  ;;  %v10841_v11 = vpop.permute.xlu1 %3902 }
 0x249   : > { %v1608_v22 = vadd.f32 %v1592_v40, %v1458_v24  ;;  %v2805_v0 = vadd.f32 %v2789_v36, %v2655_v3  ;;  %v3090_v56 = vmul.f32 %v15141_v7, %v10650_v12  ;;  %v1757_v26 = vadd.f32 %v1741_v55, %v1607_v42  ;;  %v15147_v3 = vld [vmem:[#allocation184_spill] sm:$0xff]  ;;  %v15149_v42 = vld [vmem:[#allocation194_spill] sm:$0xff] }
 0x24a   : > { %v3716_v19 = vpack.c.bf16 %v3702_v23, %v3701_v51  ;;  %v2956_v10 = vadd.f32 %v2940_v16, %v2806_v15  ;;  %v3239_v34 = vmul.f32 %v15143_v59, %v10655_v57  ;;  %v3240_v40 = vmul.f32 %v15144_v5, %v10655_v57  ;;  %v15145_v23 = vld [vmem:[#allocation193_spill] sm:$0xff]  ;;  %v15150_v15 = vld [vmem:[#allocation174_spill] sm:$0xff] }
 0x24b   : > { %v1758_v50 = vadd.f32 %v1742_v14, %v1608_v22  ;;  %v2955_v36 = vadd.f32 %v2939_v1, %v2805_v0  ;;  %v1907_v18 = vadd.f32 %v1891_v37, %v1757_v26  ;;  %v2191_v63 = vmul.f32 %v10340_v45, %v10582_v4  ;;  %v15146_v1 = vld [vmem:[#allocation169_spill] sm:$0xff]  ;;  %v15148_v14 = vld [vmem:[#allocation46_spill] sm:$0xff] }
 0x24c   : > { %3744 = vmatmul.bf16.gmra.mxu1 %v3716_v19  ;;  %v2192_v25 = vmul.f32 %v15145_v23, %v10582_v4  ;;  %v3106_v24 = vadd.f32 %v3090_v56, %v2956_v10  ;;  %v3389_v16 = vmul.f32 %v15146_v1, %v10668_v38  ;;  %v3390_v28 = vmul.f32 %v15147_v3, %v10668_v38  ;;  %v15151_v56 = vld [vmem:[#allocation186_spill] sm:$0xff]  ;;  %v8587_v1 = vld [vmem:[%s8854_s27 + $0x20] sm:$0xff] }
 0x24d   : > { %v1908_v51 = vadd.f32 %v1892_v47, %v1758_v50  ;;  %v3105_v58 = vadd.f32 %v3089_v35, %v2955_v36  ;;  %v2057_v55 = vadd.f32 %v2041_v21, %v1907_v18  ;;  %v2341_v19 = vmul.f32 %v15148_v14, %v10595_v48  ;;  %v15152_v50 = vld [vmem:[#allocation204_spill] sm:$0xff]  ;;  %v15160_v3 = vld [vmem:[#allocation210_spill] sm:$0xff] }
 0x24e   : > { %v2342_v22 = vmul.f32 %v15149_v42, %v10595_v48  ;;  %v3256_v0 = vadd.f32 %v3240_v40, %v3106_v24  ;;  %v3539_v35 = vmul.f32 %v15150_v15, %v10673_v62  ;;  %v3540_v13 = vmul.f32 %v15151_v56, %v10673_v62  ;;  %v15154_v40 = vld [vmem:[#allocation205_spill] sm:$0xff]  ;;  %v10878_v56 = vpop.permute.xlu0 %3900 }
 0x24f   : > { %v2058_v29 = vadd.f32 %v2042_v17, %v1908_v51  ;;  %v3255_v37 = vadd.f32 %v3239_v34, %v3105_v58  ;;  %v2207_v47 = vadd.f32 %v2191_v63, %v2057_v55  ;;  %v2491_v21 = vmul.f32 %v15152_v50, %v10598_v2  ;;  %v15153_v17 = vld [vmem:[#allocation195_spill] sm:$0xff]  ;;  %v15155_v63 = vld [vmem:[#allocation196_spill] sm:$0xff]  ;;  %v15156_v58 = vld [vmem:[#allocation206_spill] sm:$0xff] }
 0x250   : > { %v2492_v52 = vmul.f32 %v15153_v17, %v10598_v2  ;;  %v10868_v36 = vmul.f32 -10.0, %v10713_v46  ;;  %v3406_v34 = vadd.f32 %v3390_v28, %v3256_v0  ;;  %v2641_v18 = vmul.f32 %v15154_v40, %v10607_v41  ;;  %v10876_v55 = vpop.permute.xlu1 %674 }
 0x251   : > { %v2208_v26 = vadd.f32 %v2192_v25, %v2058_v29  ;;  %v3405_v10 = vadd.f32 %v3389_v16, %v3255_v37  ;;  %v2357_v51 = vadd.f32 %v2341_v19, %v2207_v47  ;;  %v2642_v25 = vmul.f32 %v15155_v63, %v10607_v41  ;;  %v15157_v16 = vld [vmem:[#allocation197_spill] sm:$0xff]  ;;  %v15158_v37 = vld [vmem:[#allocation208_spill] sm:$0xff]  ;;  %v15159_v47 = vld [vmem:[#allocation198_spill] sm:$0xff] }
 0x252   : > { %v2791_v24 = vmul.f32 %v15156_v58, %v10633_v9  ;;  %v3556_v46 = vadd.f32 %v3540_v13, %v3406_v34  ;;  %v2792_v28 = vmul.f32 %v15157_v16, %v10633_v9  ;;  %v2941_v19 = vmul.f32 %v15158_v37, %v10636_v8 }
 0x253   : > { %v2358_v23 = vadd.f32 %v2342_v22, %v2208_v26  ;;  %v3555_v29 = vadd.f32 %v3539_v35, %v3405_v10  ;;  %v2507_v0 = vadd.f32 %v2491_v21, %v2357_v51  ;;  %v2942_v26 = vmul.f32 %v15159_v47, %v10636_v8  ;;  %v10890_v35 = vld [vmem:[%s8854_s27 + $0x28] sm:$0xff]  ;;  %v15161_v51 = vld [vmem:[#allocation199_spill] sm:$0xff] }
 0x254   : > { %v3091_v15 = vmul.f32 %v15160_v3, %v10650_v12  ;;  %v3704_v13 = vmul.f32 %v10890_v35, %v3556_v46  ;;  %v1293_v10 = vmul.f32 %v10554_v6, %v10377_v43  ;;  %v1294_v34 = vmul.f32 %v10467_v44, %v10377_v43  ;;  %v15162_v46 = vld [vmem:[#allocation77_spill] sm:$0xff] }
 0x255   : > { %v2508_v22 = vadd.f32 %v2492_v52, %v2358_v23  ;;  %v3703_v5 = vmul.f32 %v8587_v1, %v3555_v29  ;;  %v2657_v21 = vadd.f32 %v2641_v18, %v2507_v0  ;;  %v3092_v23 = vmul.f32 %v15161_v51, %v10650_v12  ;;  %v15163_v0 = vld [vmem:[#allocation14_spill] sm:$0xff] }
 0x256   : > { %v1443_v3 = vmul.f32 %v10560_v32, %v10384_v53  ;;  %v1444_v1 = vmul.f32 %v10472_v31, %v10384_v53  ;;  %v1593_v29 = vmul.f32 %v10566_v27, %v10390_v30  ;;  %v1594_v58 = vmul.f32 %v15162_v46, %v10390_v30  ;;  %v15165_v53 = vld [vmem:[#allocation44_spill] sm:$0xff] }
 0x257   : > { %v2658_v52 = vadd.f32 %v2642_v25, %v2508_v22  ;;  %v3717_v37 = vpack.c.bf16 %v3704_v13, %v3703_v5  ;;  %v2807_v47 = vadd.f32 %v2791_v24, %v2657_v21  ;;  %v1743_v25 = vmul.f32 %v10575_v61, %v10541_v60  ;;  %v15164_v5 = vld [vmem:[#allocation200_spill] sm:$0xff]  ;;  %v15166_v24 = vld [vmem:[#allocation85_spill] sm:$0xff]  ;;  %v10923_v61 = vpop.permute.xlu2 %3896 }
 0x258   : > { %v1459_v18 = vadd.f32 %v1443_v3, %v1293_v10  ;;  %v3241_v22 = vmul.f32 %v15163_v0, %v10655_v57  ;;  %v3242_v13 = vmul.f32 %v15164_v5, %v10655_v57  ;;  %v1460_v51 = vadd.f32 %v1444_v1, %v1294_v34  ;;  %v15168_v21 = vld [vmem:[#allocation201_spill] sm:$0xff]  ;;  %v15169_v5 = vld [vmem:[#allocation79_spill] sm:$0xff]  ;;  %v3905_v1 = vpop.permute.xlu0 %3904 }
 0x259   : > { %v2808_v43 = vadd.f32 %v2792_v28, %v2658_v52  ;;  %v1744_v32 = vmul.f32 %v15165_v53, %v10541_v60  ;;  %v2957_v27 = vadd.f32 %v2941_v19, %v2807_v47  ;;  %v1893_v3 = vmul.f32 %v15166_v24, %v10557_v49  ;;  %v15167_v28 = vld [vmem:[#allocation36_spill] sm:$0xff]  ;;  %3917 = vmatpush.bf16.msrb.mxu2 %v3905_v1  ;;  %v15176_v1 = vld [vmem:[#allocation211_spill] sm:$0xff] }
 0x25a   : > { %v1609_v30 = vadd.f32 %v1593_v29, %v1459_v18  ;;  %v3391_v10 = vmul.f32 %v15167_v28, %v10668_v38  ;;  %v3392_v52 = vmul.f32 %v15168_v21, %v10668_v38  ;;  %v1610_v0 = vadd.f32 %v1594_v58, %v1460_v51  ;;  %v15170_v47 = vld [vmem:[#allocation60_spill] sm:$0xff]  ;;  %v765_v29 = vpop.permute.xlu1 %764  ;;  %v15171_v18 = vld [vmem:[#allocation39_spill] sm:$0xff]  ;;  %v15172_v28 = vld [vmem:[#allocation138_spill] sm:$0xff] }
 0x25b   : > { %v2958_v6 = vadd.f32 %v2942_v26, %v2808_v43  ;;  %v1894_v34 = vmul.f32 %v15169_v5, %v10557_v49  ;;  %v2043_v26 = vmul.f32 %v15170_v47, %v10571_v33  ;;  %v3541_v60 = vmul.f32 %v15171_v18, %v10673_v62  ;;  %v15173_v49 = vld [vmem:[#allocation191_spill] sm:$0xff] }
 0x25c   : > { %3749 = vmatmul.bf16.gmra.mxu1 %v3717_v37  ;;  %v3107_v37 = vadd.f32 %v3091_v15, %v2957_v27  ;;  %v1759_v43 = vadd.f32 %v1743_v25, %v1609_v30  ;;  %v3542_v58 = vmul.f32 %v15172_v28, %v10673_v62  ;;  %v1760_v51 = vadd.f32 %v1744_v32, %v1610_v0  ;;  %v15174_v30 = vld [vmem:[#allocation225_spill] sm:$0xff]  ;;  %v15175_v15 = vld [vmem:[#allocation78_spill] sm:$0xff]  ;;  %v15177_v0 = vld [vmem:[#allocation88_spill] sm:$0xff] }
 0x25d   : > { %v3108_v19 = vadd.f32 %v3092_v23, %v2958_v6  ;;  %v2044_v21 = vmul.f32 %v15173_v49, %v10571_v33  ;;  %v2193_v6 = vmul.f32 %v15174_v30, %v10582_v4  ;;  %v3367_v23 = vmul.f32 1.442695, %v15175_v15  ;;  %3918 = vmatpush.bf16.msrb.mxu2 %v10841_v11  ;;  %v15196_v33 = vld [vmem:[#allocation97_spill] sm:$0xff] }
 0x25e   : > { %v3257_v24 = vadd.f32 %v3241_v22, %v3107_v37  ;;  %v1909_v27 = vadd.f32 %v1893_v3, %v1759_v43  ;;  %v1910_v25 = vadd.f32 %v1894_v34, %v1760_v51  ;;  %v2194_v18 = vmul.f32 %v15176_v1, %v10582_v4  ;;  %v15179_v34 = vld [vmem:[#allocation212_spill] sm:$0xff]  ;;  %v15182_v51 = vld [vmem:[#allocation213_spill] sm:$0xff] }
 0x25f   : > { %v3258_v5 = vadd.f32 %v3242_v13, %v3108_v19  ;;  %v2343_v22 = vmul.f32 %v15177_v0, %v10595_v48  ;;  %v15178_v13 = vld [vmem:[#allocation103_spill] sm:$0xff]  ;;  %v3517_v20 = vmul.f32 1.442695, %v10868_v36  ;;  %v2344_v37 = vmul.f32 %v15179_v34, %v10595_v48  ;;  %v680_v36 = vpop.permute.xlu2 %679 }
 0x260   : > { %v3407_v47 = vadd.f32 %v3391_v10, %v3257_v24  ;;  %v2059_v32 = vadd.f32 %v2043_v26, %v1909_v27  ;;  %8106 = vpow2.f32 %v15178_v13  ;;  %v2060_v3 = vadd.f32 %v2044_v21, %v1910_v25  ;;  %v10952_v21 = vld [vmem:[%s8854_s27 + $0x30] sm:$0xff]  ;;  %v15195_v48 = vld [vmem:[#allocation215_spill] sm:$0xff] }
 0x261   : > { %v3408_v28 = vadd.f32 %v3392_v52, %v3258_v5  ;;  %v15180_v5 = vld [vmem:[#allocation72_spill] sm:$0xff]  ;;  %v15181_v52 = vld [vmem:[#allocation91_spill] sm:$0xff]  ;;  %8108 = vpow2.f32 %v3367_v23  ;;  %v2494_v27 = vmul.f32 %v15182_v51, %v10598_v2  ;;  %3919 = vmatpush.bf16.msrb.mxu2 %v10878_v56  ;;  %v10962_v23 = vpop.eup %8104  ;;  %v15190_v56 = vld [vmem:[#allocation226_spill] sm:$0xff]  ;;  %v2794_v4 = vmul.f32 %v15195_v48, %v10633_v9 }
 0x262   : > { %v3557_v19 = vadd.f32 %v3541_v60, %v3407_v47  ;;  %v2209_v24 = vadd.f32 %v2193_v6, %v2059_v32  ;;  %v2493_v10 = vmul.f32 %v15180_v5, %v10598_v2  ;;  %v3519_v26 = vmul.f32 1.442695, %v15181_v52  ;;  %v10956_v60 = vld [vmem:[%s8854_s27 + $0x38] sm:$0xff]  ;;  %15184 = vst [vmem:[#allocation99_spill] sm:$0xff] %v10962_v23 }
 0x263   : > { %v3558_v43 = vadd.f32 %v3542_v58, %v3408_v28  ;;  %v2210_v11 = vadd.f32 %v2194_v18, %v2060_v3  ;;  %v15183_v58 = vld [vmem:[#allocation73_spill] sm:$0xff]  ;;  %v846_v18 = vpop.permute.xlu1 %845  ;;  %v15185_v32 = vld [vmem:[#allocation214_spill] sm:$0xff]  ;;  %v10967_v3 = vld [vmem:[%s8900_s22 + $0x1] ss:$0 sm:$0xff]  ;;  %8110 = vpow2.f32 %v3517_v20  ;;  %v2793_v52 = vmul.f32 %v15190_v56, %v10633_v9 }
 0x264   : > { %v3705_v15 = vmul.f32 %v10952_v21, %v3557_v19  ;;  %v2359_v47 = vadd.f32 %v2343_v22, %v2209_v24  ;;  %v2643_v6 = vmul.f32 %v15183_v58, %v10607_v41  ;;  %v2644_v13 = vmul.f32 %v15185_v32, %v10607_v41  ;;  %15186 = vst [vmem:[#allocation83_spill] sm:$0xff] %v10967_v3  ;;  %v10981_v2 = vld [vmem:[%s8854_s27 + $0x58] sm:$0xff]  ;;  %v15198_v9 = vld [vmem:[#allocation216_spill] sm:$0xff] }
 0x265   : > { %v3706_v28 = vmul.f32 %v10956_v60, %v3558_v43  ;;  %v2360_v25 = vadd.f32 %v2344_v37, %v2210_v11  ;;  %v10970_v19 = vsub.f32 %v765_v29, %v10967_v3  ;;  %v10973_v43 = vld [vmem:[%s8900_s22] ss:$0 sm:$0xff]  ;;  %15191 = vst [vmem:[#allocation106_spill] sm:$0xff] %v10981_v2  ;;  %v10984_v37 = vld [vmem:[%s8900_s22 + $0x2] ss:$0 sm:$0xff]  ;;  %v2943_v56 = vmul.f32 %v15196_v33, %v10636_v8 }
 0x266   : > { %15188 = vst [vmem:[#allocation102_spill] sm:$0xff] %v10973_v43  ;;  %v10976_v22 = vsub.f32 %v680_v36, %v10973_v43  ;;  %v2509_v24 = vadd.f32 %v2493_v10, %v2359_v47  ;;  %v10987_v11 = vsub.f32 %v846_v18, %v10984_v37  ;;  %v10989_v41 = vpop.eup %8106  ;;  %3920 = vmatpush.bf16.msrb.mxu2 %v10807_v54  ;;  %v972_v5 = vsub.f32 1.0, %v10981_v2  ;;  %v15204_v2 = vld [vmem:[#allocation202_spill] sm:$0xff] }
 0x267   : > { %15187 = vst [vmem:[#allocation105_spill] sm:$0xff] %v10970_v19  ;;  %v2510_v29 = vadd.f32 %v2494_v27, %v2360_v25  ;;  %v908_v20 = vmul.f32 %v10970_v19, %v10970_v19  ;;  %v3718_v36 = vpack.c.bf16 %v3706_v28, %v3705_v15  ;;  %v11002_v27 = vpop.eup %8108  ;;  %v2944_v58 = vmul.f32 %v15198_v9, %v10636_v8  ;;  %v15200_v15 = vld [vmem:[#allocation175_spill] sm:$0xff]  ;;  %v3895_v8 = vpop.permute.xlu0 %3894  ;;  %v15205_v9 = vld [vmem:[#allocation98_spill] sm:$0xff] }
 0x268   : > { %15189 = vst [vmem:[#allocation104_spill] sm:$0xff] %v10976_v22  ;;  %v892_v10 = vmul.f32 %v10976_v22, %v10976_v22  ;;  %v2659_v47 = vadd.f32 %v2643_v6, %v2509_v24  ;;  %v940_v18 = vmul.f32 %v10987_v11, %v10987_v11  ;;  %v15199_v22 = vld [vmem:[#allocation178_spill] sm:$0xff]  ;;  %8112 = vpow2.f32 %v3519_v26 }
 0x269   : > { %15192 = vst [vmem:[#allocation93_spill] sm:$0xff] %v10984_v37  ;;  %v2660_v25 = vadd.f32 %v2644_v13, %v2510_v29  ;;  %v2540_v28 = vadd.f32 %v15200_v15, %v15199_v22  ;;  %v3093_v24 = vmul.f32 %v10962_v23, %v10650_v12  ;;  %v15202_v13 = vld [vmem:[#allocation218_spill] sm:$0xff]  ;;  %v2242_v22 = vadd.f32 %v15205_v9, %v15204_v2  ;;  %v15210_v23 = vld [vmem:[#allocation61_spill] sm:$0xff] }
 0x26a   : > { %15193 = vst [vmem:[#allocation107_spill] sm:$0xff] %v10987_v11  ;;  %v924_v19 = vadd.f32 %v908_v20, %v892_v10  ;;  %v2809_v6 = vadd.f32 %v2793_v52, %v2659_v47  ;;  %v15201_v11 = vld [vmem:[#allocation59_spill] sm:$0xff]  ;;  %v3094_v29 = vmul.f32 %v15202_v13, %v10650_v12  ;;  %v11015_v10 = vpop.eup %8110  ;;  %v15206_v26 = vld [vmem:[#allocation58_spill] sm:$0xff]  ;;  %v3243_v47 = vmul.f32 %v10989_v41, %v10655_v57  ;;  %v15211_v9 = vld [vmem:[#allocation37_spill] sm:$0xff] }
 0x26b   : > { %15194 = vst [vmem:[#allocation108_spill] sm:$0xff] %v10989_v41  ;;  %v2376_v54 = vmul.f32 %v15149_v42, %v15201_v11  ;;  %v2810_v33 = vadd.f32 %v2794_v4, %v2660_v25  ;;  %v2225_v52 = vmul.f32 %v10340_v45, %v15206_v26  ;;  %3921 = vmatpush.bf16.msrb.mxu2 %v10923_v61  ;;  %v15207_v4 = vld [vmem:[#allocation217_spill] sm:$0xff]  ;;  %v15208_v42 = vld [vmem:[#allocation203_spill] sm:$0xff]  ;;  %v15212_v41 = vld [vmem:[#allocation40_spill] sm:$0xff] }
 0x26c   : > { %15197 = vst [vmem:[#allocation109_spill] sm:$0xff] %v11002_v27  ;;  %3754 = vmatmul.bf16.gmra.mxu1 %v3718_v36  ;;  %v956_v20 = vadd.f32 %v940_v18, %v924_v19  ;;  %v2959_v36 = vadd.f32 %v2943_v56, %v2809_v6  ;;  %v2091_v25 = vadd.f32 %v15208_v42, %v15207_v4  ;;  %v15209_v19 = vld [vmem:[#allocation219_spill] sm:$0xff] }
 0x26d   : > { %15203 = vst [vmem:[#allocation89_spill] sm:$0xff] %v11015_v10  ;;  %v2960_v15 = vadd.f32 %v2944_v58, %v2810_v33  ;;  %v3244_v18 = vmul.f32 %v15209_v19, %v10655_v57  ;;  %v2526_v2 = vmul.f32 %v15153_v17, %v15210_v23  ;;  %v1328_v45 = vmul.f32 %v10467_v44, %v15211_v9  ;;  %v15213_v33 = vld [vmem:[#allocation221_spill] sm:$0xff]  ;;  %v15221_v57 = vld [vmem:[#allocation158_spill] sm:$0xff] }
 0x26e   : > { %v988_v12 = vadd.f32 %v972_v5, %v956_v20  ;;  %v3109_v56 = vadd.f32 %v3093_v24, %v2959_v36  ;;  %v3393_v6 = vmul.f32 %v11002_v27, %v10668_v38  ;;  %v1478_v61 = vmul.f32 %v10472_v31, %v15212_v41  ;;  %v11040_v5 = vpop.eup %8112 }
 0x26f   : > { %v3110_v13 = vadd.f32 %v3094_v29, %v2960_v15  ;;  %v3394_v58 = vmul.f32 %v15213_v33, %v10668_v38  ;;  %v2392_v20 = vadd.f32 %v2376_v54, %v2242_v22  ;;  %v2375_v17 = vmul.f32 %v15148_v14, %v15201_v11  ;;  %3922 = vmatpush.bf16.msrb.mxu2 %v3895_v8  ;;  %v15215_v29 = vld [vmem:[#allocation163_spill] sm:$0xff] }
 0x270   : > { %v11038_v4 = vadd.f32 1e-12, %v988_v12  ;;  %v3259_v44 = vadd.f32 %v3243_v47, %v3109_v56  ;;  %v3543_v24 = vmul.f32 %v11015_v10, %v10673_v62  ;;  %v2241_v36 = vadd.f32 %v2225_v52, %v2091_v25  ;;  %v15214_v12 = vld [vmem:[#allocation170_spill] sm:$0xff]  ;;  %v15216_v38 = vld [vmem:[#allocation179_spill] sm:$0xff]  ;;  %v15218_v56 = vld [vmem:[#allocation52_spill] sm:$0xff] }
 0x271   : > { %v3260_v42 = vadd.f32 %v3244_v18, %v3110_v13  ;;  %v3544_v31 = vmul.f32 %v11040_v5, %v10673_v62  ;;  %v2689_v15 = vadd.f32 %v15215_v29, %v15214_v12  ;;  %v2690_v54 = vadd.f32 %v15216_v38, %v2540_v28  ;;  %v15217_v22 = vld [vmem:[#allocation63_spill] sm:$0xff]  ;;  %v15220_v62 = vld [vmem:[#allocation65_spill] sm:$0xff]  ;;  %v15223_v29 = vld [vmem:[#allocation160_spill] sm:$0xff] }
 0x272   : > { %8114 = vrsqrt.f32 %v11038_v4  ;;  %v2824_v14 = vmul.f32 %v15133_v39, %v15217_v22  ;;  %v3409_v47 = vadd.f32 %v3393_v6, %v3259_v44  ;;  %v11056_v8 = vmul.f32 %v10890_v35, %v15218_v56  ;;  %v15219_v52 = vld [vmem:[#allocation43_spill] sm:$0xff]  ;;  %v15224_v28 = vld [vmem:[#allocation62_spill] sm:$0xff] }
 0x273   : > { %v1494_v13 = vadd.f32 %v1478_v61, %v1328_v45  ;;  %v1628_v25 = vmul.f32 %v15162_v46, %v15219_v52  ;;  %v3410_v18 = vadd.f32 %v3394_v58, %v3260_v42  ;;  %v2973_v10 = vmul.f32 %v15221_v57, %v15220_v62  ;;  %v15222_v12 = vld [vmem:[#allocation67_spill] sm:$0xff]  ;;  %v761_v61 = vpop.permute.xlu0 %760  ;;  %v15225_v46 = vld [vmem:[#allocation166_spill] sm:$0xff] }
 0x274   : > { %v3123_v38 = vmul.f32 %v15223_v29, %v15222_v12  ;;  %v2676_v39 = vmul.f32 %v15155_v63, %v15224_v28  ;;  %v3559_v6 = vadd.f32 %v3543_v24, %v3409_v47  ;;  %v2542_v44 = vadd.f32 %v2526_v2, %v2392_v20  ;;  %v11070_v56 = vld [vmem:[%s8854_s27 + $0x40] sm:$0xff]  ;;  %v15227_v24 = vld [vmem:[#allocation180_spill] sm:$0xff] }
 0x275   : > { %v2391_v27 = vadd.f32 %v2375_v17, %v2241_v36  ;;  %v2525_v35 = vmul.f32 %v15152_v50, %v15210_v23  ;;  %v3560_v45 = vadd.f32 %v3544_v31, %v3410_v18  ;;  %v2839_v58 = vadd.f32 %v15225_v46, %v2689_v15  ;;  %v15228_v17 = vld [vmem:[#allocation48_spill] sm:$0xff]  ;;  %v842_v15 = vpop.permute.xlu2 %841 }
 0x276   : > { %v2840_v42 = vadd.f32 %v2824_v14, %v2690_v54  ;;  %v3707_v57 = vmul.f32 %v11070_v56, %v3559_v6  ;;  %v11074_v29 = vsub.f32 %v761_v61, %v10967_v3  ;;  %v2974_v2 = vmul.f32 %v15227_v24, %v15220_v62  ;;  %v11081_v36 = vld [vmem:[%s8854_s27 + $0x48] sm:$0xff]  ;;  %v15229_v54 = vld [vmem:[#allocation69_spill] sm:$0xff]  ;;  %v15232_v3 = vld [vmem:[#allocation51_spill] sm:$0xff] }
 0x277   : > { %v1644_v20 = vadd.f32 %v1628_v25, %v1494_v13  ;;  %v1778_v50 = vmul.f32 %v15165_v53, %v15228_v17  ;;  %v3708_v31 = vmul.f32 %v11081_v36, %v3560_v45  ;;  %v3273_v14 = vmul.f32 %v15143_v59, %v15229_v54 }
 0x278   : > { %15226 = vst [vmem:[#allocation111_spill] sm:$0xff] %v11074_v29  ;;  %v8115_v63 = vpop.eup %8114  ;;  %v2826_v47 = vmul.f32 %v15157_v16, %v15217_v22  ;;  %v11090_v18 = vsub.f32 %v10876_v55, %v10973_v43  ;;  %v2692_v25 = vadd.f32 %v2676_v39, %v2542_v44  ;;  %v2541_v6 = vadd.f32 %v2525_v35, %v2391_v27  ;;  %v15233_v39 = vld [vmem:[#allocation79_spill] sm:$0xff]  ;;  %v15235_v44 = vld [vmem:[#allocation222_spill] sm:$0xff] }
 0x279   : > { %v1120_v13 = vmul.f32 %v8115_v63, %v11038_v4  ;;  %v2675_v53 = vmul.f32 %v15154_v40, %v15224_v28  ;;  %v3719_v61 = vpack.c.bf16 %v3708_v31, %v3707_v57  ;;  %v2989_v45 = vadd.f32 %v2973_v10, %v2839_v58  ;;  %v15234_v40 = vld [vmem:[#allocation47_spill] sm:$0xff] }
 0x27a   : > { %15230 = vst [vmem:[#allocation112_spill] sm:$0xff] %v11090_v18  ;;  %v907_v59 = vmul.f32 %v11074_v29, %v11074_v29  ;;  %v11098_v24 = vsub.f32 %v842_v15, %v10984_v37  ;;  %v2990_v16 = vadd.f32 %v2974_v2, %v2840_v42  ;;  %v3124_v55 = vmul.f32 %v15141_v7, %v15222_v12  ;;  %v15236_v2 = vld [vmem:[#allocation198_spill] sm:$0xff]  ;;  %v596_v29 = vld [vmem:[%s8854_s27 + $0x50] sm:$0xff] }
 0x27b   : > { %v1121_v46 = vmul.f32 %v8115_v63, %v1120_v13  ;;  %v1794_v43 = vadd.f32 %v1778_v50, %v1644_v20  ;;  %v1928_v27 = vmul.f32 %v15233_v39, %v15232_v3  ;;  %v1327_v10 = vmul.f32 %v15234_v40, %v15211_v9  ;;  %v15237_v50 = vld [vmem:[#allocation206_spill] sm:$0xff]  ;;  %v15238_v40 = vld [vmem:[#allocation56_spill] sm:$0xff] }
 0x27c   : > { %15231 = vst [vmem:[#allocation113_spill] sm:$0xff] %v11098_v24  ;;  %3759 = vmatmul.bf16.gmra.mxu1 %v3719_v61  ;;  %v1477_v35 = vmul.f32 %v15235_v44, %v15212_v41  ;;  %v891_v58 = vmul.f32 %v11090_v18, %v11090_v18  ;;  %v2842_v42 = vadd.f32 %v2826_v47, %v2692_v25  ;;  %vm1126_vm1 = vweird.f32 %v8115_v63  ;;  %v15240_v47 = vld [vmem:[#allocation22_spill] sm:$0xff] }
 0x27d   : > { %v1122_v57 = vmul.f32 0.5, %v1121_v46  ;;  %v2976_v7 = vmul.f32 %v15236_v2, %v15220_v62  ;;  %v2691_v20 = vadd.f32 %v2675_v53, %v2541_v6  ;;  %v2825_v31 = vmul.f32 %v15237_v50, %v15217_v22  ;;  %v15239_v46 = vld [vmem:[#allocation11_spill] sm:$0xff]  ;;  %v15241_v18 = vld [vmem:[#allocation18_spill] sm:$0xff]  ;;  %v15242_v2 = vld [vmem:[#allocation137_spill] sm:$0xff] }
 0x27e   : > { %v923_v13 = vadd.f32 %v907_v59, %v891_v58  ;;  %v939_v61 = vmul.f32 %v11098_v24, %v11098_v24  ;;  %v1944_v39 = vadd.f32 %v1928_v27, %v1794_v43  ;;  %v2078_v44 = vmul.f32 %v15173_v49, %v15238_v40  ;;  %v15243_v50 = vld [vmem:[#allocation50_spill] sm:$0xff]  ;;  %v15244_v43 = vld [vmem:[#allocation183_spill] sm:$0xff]  ;;  %v15245_v49 = vld [vmem:[#allocation208_spill] sm:$0xff] }
 0x27f   : > { %v1123_v15 = vsub.f32 1.5, %v1122_v57  ;;  %v3812_v25 = vmul.f32 %v15240_v47, %v15239_v46  ;;  %v3813_v6 = vmul.f32 %v15242_v2, %v15241_v18  ;;  %v1493_v53 = vadd.f32 %v1477_v35, %v1327_v10  ;;  %v3893_v46 = vpop.permute.xlu2 %3892 }
 0x280   : > { %v1627_v57 = vmul.f32 %v15243_v50, %v15219_v52  ;;  %vm1125_vm2 = vweird.f32 %v11038_v4  ;;  %v3139_v59 = vadd.f32 %v3123_v38, %v2989_v45  ;;  %v3274_v27 = vmul.f32 %v15244_v43, %v15229_v54  ;;  %3923 = vmatpush.bf16.msrb.mxu2 %v3893_v46  ;;  %v15247_v50 = vld [vmem:[#allocation199_spill] sm:$0xff] }
 0x281   : > { %v1124_v37 = vmul.f32 %v8115_v63, %v1123_v15  ;;  %v2841_v58 = vadd.f32 %v2825_v31, %v2691_v20  ;;  %v2975_v24 = vmul.f32 %v15245_v49, %v15220_v62  ;;  %vm1127_vm3 = vmor %vm1125_vm2, %vm1126_vm1  ;;  %v3140_v47 = vadd.f32 %v3124_v55, %v2990_v16  ;;  %v15249_v16 = vld [vmem:[#allocation210_spill] sm:$0xff] }
 0x282   : > { %v971_v10 = vsub.f32 1.0, %v596_v29  ;;  %v955_v35 = vadd.f32 %v939_v61, %v923_v13  ;;  %v2094_v15 = vadd.f32 %v2078_v44, %v1944_v39  ;;  %v2228_v38 = vmul.f32 %v15176_v1, %v15206_v26  ;;  %v15250_v13 = vld [vmem:[#allocation23_spill] sm:$0xff]  ;;  %v15251_v61 = vld [vmem:[#allocation24_spill] sm:$0xff] }
 0x283   : > { %v11131_v18 = vsel %vm1127_vm3, %v8115_v63, %v1124_v37  ;;  %v3860_v20 = vpack.c.bf16 %v3813_v6, %v3812_v25  ;;  %v2992_v31 = vadd.f32 %v2976_v7, %v2842_v42  ;;  %v3126_v43 = vmul.f32 %v15247_v50, %v15222_v12  ;;  %v15248_v37 = vld [vmem:[#allocation223_spill] sm:$0xff]  ;;  %v15252_v42 = vld [vmem:[#allocation70_spill] sm:$0xff]  ;;  %v15253_v7 = vld [vmem:[#allocation169_spill] sm:$0xff] }
 0x284   : > { %15246 = vst [vmem:[#allocation114_spill] sm:$0xff] %v11131_v18  ;;  %v11137_v45 = vmul.f32 %v11131_v18, %v11038_v4  ;;  %v1643_v49 = vadd.f32 %v1627_v57, %v1493_v53  ;;  %v1777_v63 = vmul.f32 %v15248_v37, %v15228_v17  ;;  %v2991_v29 = vadd.f32 %v2975_v24, %v2841_v58  ;;  %v15254_v25 = vld [vmem:[#allocation87_spill] sm:$0xff]  ;;  %v15255_v6 = vld [vmem:[#allocation174_spill] sm:$0xff]  ;;  %v15256_v24 = vld [vmem:[#allocation200_spill] sm:$0xff] }
 0x285   : > { %v3125_v55 = vmul.f32 %v15249_v16, %v15222_v12  ;;  %3924 = vmatmul.bf16.vlgmr.msrb.gmra.mxu2 %v3860_v20  ;;  %v3289_v39 = vadd.f32 %v3273_v14, %v3139_v59  ;;  %v3423_v44 = vmul.f32 %v15253_v7, %v15252_v42  ;;  %v3573_v53 = vmul.f32 %v15255_v6, %v15254_v25  ;;  %v15257_v20 = vld [vmem:[#allocation85_spill] sm:$0xff]  ;;  %v15258_v7 = vld [vmem:[#allocation184_spill] sm:$0xff] }
 0x286   : > { %v1214_v1 = vsub.f32 %v11137_v45, %v15250_v13  ;;  %v1364_v4 = vsub.f32 %v11137_v45, %v15251_v61  ;;  %v987_v57 = vadd.f32 %v971_v10, %v955_v35  ;;  %v3276_v58 = vmul.f32 %v15256_v24, %v15229_v54  ;;  %v15259_v10 = vld [vmem:[#allocation14_spill] sm:$0xff] }
 0x287   : > { %v2244_v46 = vadd.f32 %v2228_v38, %v2094_v15  ;;  %v2378_v50 = vmul.f32 %v15179_v34, %v15201_v11  ;;  %v3142_v16 = vadd.f32 %v3126_v43, %v2992_v31  ;;  %v1793_v2 = vadd.f32 %v1777_v63, %v1643_v49  ;;  %v15260_v15 = vld [vmem:[#allocation186_spill] sm:$0xff]  ;;  %v15261_v34 = vld [vmem:[#allocation25_spill] sm:$0xff] }
 0x288   : > { %v1230_v37 = vmul.f32 %v1214_v1, %v1214_v1  ;;  %v1927_v14 = vmul.f32 %v15257_v20, %v15232_v3  ;;  %v1380_v59 = vmul.f32 %v1364_v4, %v1364_v4  ;;  %v3290_v18 = vadd.f32 %v3274_v27, %v3140_v47  ;;  %v15262_v49 = vld [vmem:[#allocation201_spill] sm:$0xff]  ;;  %v15263_v4 = vld [vmem:[#allocation60_spill] sm:$0xff] }
 0x289   : > { %v3424_v17 = vmul.f32 %v15258_v7, %v15252_v42  ;;  %v3141_v6 = vadd.f32 %v3125_v55, %v2991_v29  ;;  %v3275_v35 = vmul.f32 %v15259_v10, %v15229_v54  ;;  %v3439_v24 = vadd.f32 %v3423_v44, %v3289_v39  ;;  %v15264_v7 = vld [vmem:[#allocation138_spill] sm:$0xff] }
 0x28a   : > { %v3574_v38 = vmul.f32 %v15260_v15, %v15254_v25  ;;  %v1514_v31 = vsub.f32 %v11137_v45, %v15261_v34  ;;  %v11167_v43 = vadd.f32 1e-12, %v987_v57  ;;  %v3426_v63 = vmul.f32 %v15262_v49, %v15252_v42  ;;  %v15265_v15 = vld [vmem:[#allocation36_spill] sm:$0xff] }
 0x28b   : > { %v2394_v47 = vadd.f32 %v2378_v50, %v2244_v46  ;;  %v2528_v27 = vmul.f32 %v15182_v51, %v15210_v23  ;;  %v1246_v29 = vmul.f32 -10.0, %v1230_v37  ;;  %v3292_v55 = vadd.f32 %v3276_v58, %v3142_v16  ;;  %v15266_v51 = vld [vmem:[#allocation27_spill] sm:$0xff] }
 0x28c   : > { %v1943_v1 = vadd.f32 %v1927_v14, %v1793_v2  ;;  %v2077_v39 = vmul.f32 %v15263_v4, %v15238_v40  ;;  %v1396_v44 = vmul.f32 -10.0, %v1380_v59  ;;  %v3440_v20 = vadd.f32 %v3424_v17, %v3290_v18  ;;  %v15267_v16 = vld [vmem:[#allocation31_spill] sm:$0xff]  ;;  %v15268_v17 = vld [vmem:[#allocation82_spill] sm:$0xff] }
 0x28d   : > { %v3576_v10 = vmul.f32 %v15264_v7, %v15254_v25  ;;  %v3291_v57 = vadd.f32 %v3275_v35, %v3141_v6  ;;  %v3425_v3 = vmul.f32 %v15265_v15, %v15252_v42  ;;  %v2678_v46 = vmul.f32 %v15185_v32, %v15224_v28  ;;  %v15269_v14 = vld [vmem:[#allocation34_spill] sm:$0xff]  ;;  %v15270_v59 = vld [vmem:[#allocation139_spill] sm:$0xff]  ;;  %v15271_v7 = vld [vmem:[#allocation164_spill] sm:$0xff] }
 0x28e   : > { %v1530_v50 = vmul.f32 %v1514_v31, %v1514_v31  ;;  %v1664_v58 = vsub.f32 %v11137_v45, %v15266_v51  ;;  %8116 = vrsqrt.f32 %v11167_v43  ;;  %v2544_v2 = vadd.f32 %v2528_v27, %v2394_v47  ;;  %v15272_v47 = vld [vmem:[#allocation39_spill] sm:$0xff] }
 0x28f   : > { %v1273_v37 = vmul.f32 1.442695, %v1246_v29  ;;  %v3814_v18 = vmul.f32 %v15268_v17, %v15267_v16  ;;  %v3815_v6 = vmul.f32 %v15270_v59, %v15269_v14  ;;  %v3442_v35 = vadd.f32 %v3426_v63, %v3292_v55  ;;  %v15273_v17 = vld [vmem:[#allocation28_spill] sm:$0xff] }
 0x290   : > { %v2093_v49 = vadd.f32 %v2077_v39, %v1943_v1  ;;  %v2227_v4 = vmul.f32 %v15174_v30, %v15206_v26  ;;  %v1423_v32 = vmul.f32 1.442695, %v1396_v44  ;;  %v3589_v31 = vadd.f32 %v3573_v53, %v3439_v24  ;;  %v15276_v39 = vld [vmem:[#allocation185_spill] sm:$0xff] }
 0x291   : > { %v1192_v15 = vmul.f32 %v10956_v60, %v15271_v7  ;;  %v3441_v40 = vadd.f32 %v3425_v3, %v3291_v57  ;;  %v3575_v27 = vmul.f32 %v15272_v47, %v15254_v25  ;;  %v3590_v29 = vadd.f32 %v3574_v38, %v3440_v20  ;;  %v15274_v3 = vld [vmem:[#allocation141_spill] sm:$0xff]  ;;  %v15286_v7 = vld [vmem:[#allocation76_spill] sm:$0xff] }
 0x292   : > { %v1546_v51 = vmul.f32 -10.0, %v1530_v50  ;;  %v1680_v16 = vmul.f32 %v1664_v58, %v1664_v58  ;;  %v1814_v14 = vsub.f32 %v11137_v45, %v15273_v17  ;;  %v2694_v63 = vadd.f32 %v2678_v46, %v2544_v2  ;;  %v15277_v50 = vld [vmem:[#allocation29_spill] sm:$0xff] }
 0x293   : > { %v2828_v55 = vmul.f32 %v15195_v48, %v15217_v22  ;;  %8118 = vpow2.f32 %v1273_v37  ;;  %v3861_v30 = vpack.c.bf16 %v3815_v6, %v3814_v18  ;;  %v3592_v24 = vadd.f32 %v3576_v10, %v3442_v35  ;;  %v15282_v35 = vld [vmem:[#allocation30_spill] sm:$0xff] }
 0x294   : > { %v8117_v53 = vpop.eup %8116  ;;  %v2243_v1 = vadd.f32 %v2227_v4, %v2093_v49  ;;  %v2377_v60 = vmul.f32 %v15177_v0, %v15201_v11  ;;  %8120 = vpow2.f32 %v1423_v32  ;;  %v11201_v38 = vmul.f32 %v3589_v31, %v15274_v3  ;;  %v15279_v0 = vld [vmem:[#allocation216_spill] sm:$0xff] }
 0x295   : > { %v1191_v44 = vmul.f32 %v10952_v21, %v15276_v39  ;;  %v3591_v20 = vadd.f32 %v3575_v27, %v3441_v40  ;;  %3929 = vmatmul.bf16.gmra.mxu2 %v3861_v30  ;;  %v1573_v57 = vmul.f32 1.442695, %v1546_v51  ;;  %v1696_v46 = vmul.f32 -10.0, %v1680_v16  ;;  %v15281_v40 = vld [vmem:[#allocation72_spill] sm:$0xff]  ;;  %v15290_v39 = vld [vmem:[#allocation33_spill] sm:$0xff] }
 0x296   : > { %15275 = vst [vmem:[#allocation115_spill] sm:$0xff] %v11201_v38  ;;  %v1830_v48 = vmul.f32 %v1814_v14, %v1814_v14  ;;  %v1964_v58 = vsub.f32 %v11137_v45, %v15277_v50  ;;  %v11208_v10 = vmul.f32 %v3590_v29, %v11056_v8  ;;  %v2844_v2 = vadd.f32 %v2828_v55, %v2694_v63  ;;  %v15285_v8 = vld [vmem:[#allocation19_spill] sm:$0xff]  ;;  %v15288_v55 = vld [vmem:[#allocation218_spill] sm:$0xff] }
 0x297   : > { %v2978_v37 = vmul.f32 %v15279_v0, %v15220_v62  ;;  %v1110_v18 = vmul.f32 %v8117_v53, %v11167_v43  ;;  %v11213_v6 = vmul.f32 %v3592_v24, %v1192_v15  ;;  %v2393_v21 = vadd.f32 %v2377_v60, %v2243_v1  ;;  %v15289_v60 = vld [vmem:[#allocation73_spill] sm:$0xff] }
 0x298   : > { %15278 = vst [vmem:[#allocation116_spill] sm:$0xff] %v11208_v10  ;;  %v2527_v51 = vmul.f32 %v15281_v40, %v15210_v23  ;;  %v2114_v49 = vsub.f32 %v11137_v45, %v15282_v35  ;;  %v11221_v32 = vmul.f32 %v3591_v20, %v1191_v44  ;;  %v11225_v31 = vmul.f32 %v11081_v36, %v15285_v8 }
 0x299   : > { %15280 = vst [vmem:[#allocation117_spill] sm:$0xff] %v11213_v6  ;;  %v11219_v4 = vpop.eup %8118  ;;  %v11229_v47 = vmul.f32 %v11070_v56, %v15286_v7  ;;  %v1111_v15 = vmul.f32 %v8117_v53, %v1110_v18  ;;  %8122 = vpow2.f32 %v1573_v57  ;;  %v1723_v29 = vmul.f32 1.442695, %v1696_v46  ;;  %v15295_v7 = vld [vmem:[#allocation226_spill] sm:$0xff] }
 0x29a   : > { %15283 = vst [vmem:[#allocation118_spill] sm:$0xff] %v11219_v4  ;;  %v11231_v27 = vpop.eup %8120  ;;  %v1846_v16 = vmul.f32 -10.0, %v1830_v48  ;;  %v1980_v14 = vmul.f32 %v1964_v58, %v1964_v58  ;;  %v2994_v63 = vadd.f32 %v2978_v37, %v2844_v2  ;;  %v3128_v30 = vmul.f32 %v15288_v55, %v15222_v12  ;;  %v15291_v58 = vld [vmem:[#allocation41_spill] sm:$0xff]  ;;  %v15292_v37 = vld [vmem:[#allocation96_spill] sm:$0xff] }
 0x29b   : > { %15284 = vst [vmem:[#allocation119_spill] sm:$0xff] %v11221_v32  ;;  %v3278_v24 = vmul.f32 %v15209_v19, %v15229_v54  ;;  %v1112_v36 = vmul.f32 0.5, %v1111_v15  ;;  %v2543_v1 = vadd.f32 %v2527_v51, %v2393_v21  ;;  %v2677_v56 = vmul.f32 %v15289_v60, %v15224_v28  ;;  %v15293_v21 = vld [vmem:[#allocation100_spill] sm:$0xff]  ;;  %v15296_v55 = vld [vmem:[#allocation45_spill] sm:$0xff] }
 0x29c   : > { %15287 = vst [vmem:[#allocation120_spill] sm:$0xff] %v11231_v27  ;;  %v2130_v3 = vmul.f32 %v2114_v49, %v2114_v49  ;;  %v2264_v44 = vsub.f32 %v11137_v45, %v15290_v39  ;;  %v1330_v20 = vmul.f32 %v11219_v4, %v15211_v9  ;;  %v1480_v57 = vmul.f32 %v11231_v27, %v15212_v41 }
 0x29d   : > { %v1113_v46 = vsub.f32 1.5, %v1112_v36  ;;  %vm1116_vm4 = vweird.f32 %v8117_v53  ;;  %8124 = vpow2.f32 %v1723_v29  ;;  %v1873_v48 = vmul.f32 1.442695, %v1846_v16 }
 0x29e   : > { %v1996_v19 = vmul.f32 -10.0, %v1980_v14  ;;  %v2414_v2 = vsub.f32 %v11137_v45, %v15291_v58  ;;  %vm1115_vm5 = vweird.f32 %v11167_v43  ;;  %v3816_v18 = vmul.f32 %v11201_v38, %v15292_v37  ;;  %v11284_v38 = vpop.permute.xlu1 %689 }
 0x29f   : > { %v1114_v0 = vmul.f32 %v8117_v53, %v1113_v46  ;;  %v3817_v40 = vmul.f32 %v11208_v10, %v15293_v21  ;;  %v11252_v51 = vpop.eup %8122  ;;  %v3428_v49 = vmul.f32 %v15213_v33, %v15252_v42  ;;  %v2693_v8 = vadd.f32 %v2677_v56, %v2543_v1  ;;  %vm1117_vm6 = vmor %vm1115_vm5, %vm1116_vm4  ;;  %v15298_v1 = vld [vmem:[#allocation97_spill] sm:$0xff] }
 0x2a0   : > { %15294 = vst [vmem:[#allocation121_spill] sm:$0xff] %v11252_v51  ;;  %v2827_v15 = vmul.f32 %v15295_v7, %v15217_v22  ;;  %v2280_v29 = vmul.f32 %v2264_v44, %v2264_v44  ;;  %v1496_v16 = vadd.f32 %v1480_v57, %v1330_v20  ;;  %v2146_v14 = vmul.f32 -10.0, %v2130_v3 }
 0x2a1   : > { %v2564_v36 = vsub.f32 %v11137_v45, %v15296_v55  ;;  %v11260_v60 = vsel %vm1117_vm6, %v8117_v53, %v1114_v0  ;;  %8126 = vpow2.f32 %v1873_v48  ;;  %v2023_v46 = vmul.f32 1.442695, %v1996_v19 }
 0x2a2   : > { %15297 = vst [vmem:[#allocation122_spill] sm:$0xff] %v11260_v60  ;;  %v2430_v37 = vmul.f32 %v2414_v2, %v2414_v2  ;;  %v11264_v21 = vmul.f32 %v11260_v60, %v11167_v43  ;;  %v3144_v33 = vadd.f32 %v3128_v30, %v2994_v63  ;;  %v2977_v56 = vmul.f32 %v15298_v1, %v15220_v62  ;;  %v15310_v60 = vld [vmem:[#allocation108_spill] sm:$0xff] }
 0x2a3   : > { %v1630_v44 = vmul.f32 %v11252_v51, %v15219_v52  ;;  %v3862_v3 = vpack.c.bf16 %v3817_v40, %v3816_v18  ;;  %v11270_v20 = vpop.eup %8124  ;;  %v2843_v57 = vadd.f32 %v2827_v15, %v2693_v8  ;;  %v2296_v53 = vmul.f32 -10.0, %v2280_v29  ;;  %v15300_v8 = vld [vmem:[#allocation99_spill] sm:$0xff]  ;;  %v15301_v29 = vld [vmem:[#allocation48_spill] sm:$0xff] }
 0x2a4   : > { %15299 = vst [vmem:[#allocation123_spill] sm:$0xff] %v11270_v20  ;;  %v1213_v48 = vsub.f32 %v11264_v21, %v15250_v13  ;;  %v1363_v19 = vsub.f32 %v11264_v21, %v15251_v61  ;;  %v3578_v43 = vmul.f32 %v11040_v5, %v15254_v25  ;;  %v2173_v30 = vmul.f32 1.442695, %v2146_v14 }
 0x2a5   : > { %v1646_v63 = vadd.f32 %v1630_v44, %v1496_v16  ;;  %v2580_v2 = vmul.f32 %v2564_v36, %v2564_v36  ;;  %3934 = vmatmul.bf16.gmra.mxu2 %v3862_v3  ;;  %8128 = vpow2.f32 %v2023_v46  ;;  %v2446_v0 = vmul.f32 -10.0, %v2430_v37  ;;  %v15303_v36 = vld [vmem:[#allocation49_spill] sm:$0xff]  ;;  %v15305_v3 = vld [vmem:[#allocation54_spill] sm:$0xff] }
 0x2a6   : > { %v1229_v18 = vmul.f32 %v1213_v48, %v1213_v48  ;;  %v1379_v40 = vmul.f32 %v1363_v19, %v1363_v19  ;;  %v3294_v7 = vadd.f32 %v3278_v24, %v3144_v33  ;;  %v3127_v15 = vmul.f32 %v15300_v8, %v15222_v12  ;;  %v15304_v33 = vld [vmem:[#allocation53_spill] sm:$0xff] }
 0x2a7   : > { %v1780_v1 = vmul.f32 %v11270_v20, %v15301_v29  ;;  %v1513_v10 = vsub.f32 %v11264_v21, %v15261_v34  ;;  %v11286_v5 = vpop.eup %8126  ;;  %v2993_v16 = vadd.f32 %v2977_v56, %v2843_v57  ;;  %v2323_v14 = vmul.f32 1.442695, %v2296_v53  ;;  %v15306_v20 = vld [vmem:[#allocation57_spill] sm:$0xff]  ;;  %v15307_v57 = vld [vmem:[#allocation51_spill] sm:$0xff] }
 0x2a8   : > { %15302 = vst [vmem:[#allocation124_spill] sm:$0xff] %v11286_v5  ;;  %v2714_v46 = vsub.f32 %v11137_v45, %v15303_v36  ;;  %v1245_v37 = vmul.f32 -10.0, %v1229_v18  ;;  %v2864_v44 = vsub.f32 %v11137_v45, %v15304_v33  ;;  %v3014_v48 = vsub.f32 %v11137_v45, %v15305_v3  ;;  %v15308_v18 = vld [vmem:[#allocation27_spill] sm:$0xff] }
 0x2a9   : > { %v1796_v24 = vadd.f32 %v1780_v1, %v1646_v63  ;;  %v1395_v19 = vmul.f32 -10.0, %v1379_v40  ;;  %8130 = vpow2.f32 %v2173_v30  ;;  %v2473_v8 = vmul.f32 1.442695, %v2446_v0 }
 0x2aa   : > { %v2596_v59 = vmul.f32 -10.0, %v2580_v2  ;;  %v3164_v51 = vsub.f32 %v11137_v45, %v15306_v20  ;;  %v3444_v56 = vadd.f32 %v3428_v49, %v3294_v7  ;;  %v1930_v53 = vmul.f32 %v11286_v5, %v15307_v57 }
 0x2ab   : > { %v1529_v27 = vmul.f32 %v1513_v10, %v1513_v10  ;;  %v1663_v63 = vsub.f32 %v11264_v21, %v15308_v18  ;;  %v11300_v1 = vpop.eup %8128  ;;  %v3143_v4 = vadd.f32 %v3127_v15, %v2993_v16  ;;  %v3277_v40 = vmul.f32 %v15310_v60, %v15229_v54  ;;  %v15311_v10 = vld [vmem:[#allocation56_spill] sm:$0xff] }
 0x2ac   : > { %15309 = vst [vmem:[#allocation125_spill] sm:$0xff] %v11300_v1  ;;  %v2730_v30 = vmul.f32 %v2714_v46, %v2714_v46  ;;  %v1271_v0 = vmul.f32 1.442695, %v1245_v37  ;;  %v1946_v2 = vadd.f32 %v1930_v53, %v1796_v24  ;;  %8132 = vpow2.f32 %v2323_v14  ;;  %v15313_v14 = vld [vmem:[#allocation109_spill] sm:$0xff] }
 0x2ad   : > { %v2880_v34 = vmul.f32 %v2864_v44, %v2864_v44  ;;  %v1421_v61 = vmul.f32 1.442695, %v1395_v19  ;;  %8134 = vpow2.f32 %v2473_v8  ;;  %v2623_v49 = vmul.f32 1.442695, %v2596_v59  ;;  %v773_v44 = vpop.permute.xlu1 %772 }
 0x2ae   : > { %v3030_v7 = vmul.f32 %v3014_v48, %v3014_v48  ;;  %v3180_v5 = vmul.f32 %v3164_v51, %v3164_v51  ;;  %v2080_v13 = vmul.f32 %v11300_v1, %v15311_v10  ;;  %v1545_v18 = vmul.f32 -10.0, %v1529_v27  ;;  %v11316_v27 = vpop.permute.xlu0 %684 }
 0x2af   : > { %v1679_v12 = vmul.f32 %v1663_v63, %v1663_v63  ;;  %v1813_v15 = vsub.f32 %v11264_v21, %v15273_v17  ;;  %v11308_v16 = vpop.eup %8130  ;;  %v11310_v60 = vadd.f32 %v3578_v43, %v3444_v56  ;;  %v3427_v46 = vmul.f32 %v15313_v14, %v15252_v42 }
 0x2b0   : > { %15312 = vst [vmem:[#allocation126_spill] sm:$0xff] %v11308_v16  ;;  %v2746_v37 = vmul.f32 -10.0, %v2730_v30  ;;  %8136 = vpow2.f32 %v1271_v0  ;;  %v2096_v59 = vadd.f32 %v2080_v13, %v1946_v2  ;;  %v2896_v24 = vmul.f32 -10.0, %v2880_v34  ;;  %v15317_v2 = vld [vmem:[#allocation64_spill] sm:$0xff] }
 0x2b1   : > { %8138 = vpow2.f32 %v1421_v61  ;;  %v1963_v51 = vsub.f32 %v11264_v21, %v15277_v50  ;;  %v3293_v48 = vadd.f32 %v3277_v40, %v3143_v4  ;;  %v3046_v19 = vmul.f32 -10.0, %v3030_v7  ;;  %v15316_v61 = vld [vmem:[#allocation89_spill] sm:$0xff]  ;;  %v15318_v40 = vld [vmem:[#allocation83_spill] sm:$0xff] }
 0x2b2   : > { %8140 = vpow2.f32 %v2623_v49  ;;  %v3196_v8 = vmul.f32 -10.0, %v3180_v5  ;;  %v11318_v43 = vpop.eup %8132  ;;  %v2230_v56 = vmul.f32 %v11308_v16, %v15206_v26  ;;  %v1571_v53 = vmul.f32 1.442695, %v1545_v18 }
 0x2b3   : > { %15314 = vst [vmem:[#allocation127_spill] sm:$0xff] %v11318_v43  ;;  %v1695_v63 = vmul.f32 -10.0, %v1679_v12  ;;  %v1829_v13 = vmul.f32 %v1813_v15, %v1813_v15  ;;  %v11322_v34 = vpop.eup %8134  ;;  %v11326_v30 = vmul.f32 %v15316_v61, %v15254_v25  ;;  %v2773_v0 = vmul.f32 1.442695, %v2746_v37  ;;  %v15321_v37 = vld [vmem:[#allocation102_spill] sm:$0xff] }
 0x2b4   : > { %15315 = vst [vmem:[#allocation94_spill] sm:$0xff] %v11322_v34  ;;  %v3314_v4 = vsub.f32 %v11137_v45, %v15317_v2  ;;  %v11331_v5 = vsub.f32 %v773_v44, %v15318_v40  ;;  %v2246_v49 = vadd.f32 %v2230_v56, %v2096_v59  ;;  %v2923_v7 = vmul.f32 1.442695, %v2896_v24 }
 0x2b5   : > { %v1979_v14 = vmul.f32 %v1963_v51, %v1963_v51  ;;  %v2113_v12 = vsub.f32 %v11264_v21, %v15282_v35  ;;  %v11337_v15 = vadd.f32 %v3427_v46, %v3293_v48  ;;  %v3073_v16 = vmul.f32 1.442695, %v3046_v19  ;;  %v15325_v48 = vld [vmem:[#allocation71_spill] sm:$0xff] }
 0x2b6   : > { %15319 = vst [vmem:[#allocation140_spill] sm:$0xff] %v11331_v5  ;;  %v11335_v18 = vpop.eup %8136  ;;  %v11339_v61 = vmul.f32 1.442695, %v3196_v8  ;;  %v11343_v1 = vsub.f32 %v11284_v38, %v15321_v37  ;;  %v2380_v59 = vmul.f32 %v11318_v43, %v15201_v11  ;;  %8142 = vpow2.f32 %v1571_v53 }
 0x2b7   : > { %15320 = vst [vmem:[#allocation148_spill] sm:$0xff] %v11335_v18  ;;  %v11345_v50 = vpop.eup %8138  ;;  %v1721_v24 = vmul.f32 1.442695, %v1695_v63  ;;  %v1845_v51 = vmul.f32 -10.0, %v1829_v13  ;;  %8144 = vpow2.f32 %v2773_v0  ;;  %v3330_v46 = vmul.f32 %v3314_v4, %v3314_v4 }
 0x2b8   : > { %15322 = vst [vmem:[#allocation142_spill] sm:$0xff] %v11343_v1  ;;  %v11349_v44 = vpop.eup %8140  ;;  %v3464_v19 = vsub.f32 %v11137_v45, %v15325_v48  ;;  %v910_v8 = vmul.f32 %v11331_v5, %v11331_v5  ;;  %v2396_v38 = vadd.f32 %v2380_v59, %v2246_v49  ;;  %8146 = vpow2.f32 %v2923_v7  ;;  %v854_v49 = vpop.permute.xlu0 %853 }
 0x2b9   : > { %15323 = vst [vmem:[#allocation149_spill] sm:$0xff] %v11345_v50  ;;  %v1995_v56 = vmul.f32 -10.0, %v1979_v14  ;;  %v2129_v35 = vmul.f32 %v2113_v12, %v2113_v12  ;;  %v1329_v43 = vmul.f32 %v11335_v18, %v15211_v9  ;;  %v1479_v53 = vmul.f32 %v11345_v50, %v15212_v41 }
 0x2ba   : > { %15324 = vst [vmem:[#allocation143_spill] sm:$0xff] %v11349_v44  ;;  %v2263_v63 = vsub.f32 %v11264_v21, %v15290_v39  ;;  %v894_v45 = vmul.f32 %v11343_v1, %v11343_v1  ;;  %v2530_v13 = vmul.f32 %v11322_v34, %v15210_v23  ;;  %8148 = vpow2.f32 %v1721_v24  ;;  %v11374_v24 = vld [vmem:[%s8854_s27 + $0x68] sm:$0xff] }
 0x2bb   : > { %v1871_v0 = vmul.f32 1.442695, %v1845_v51  ;;  %v2413_v4 = vsub.f32 %v11264_v21, %v15291_v58  ;;  %v2680_v7 = vmul.f32 %v11349_v44, %v15224_v28  ;;  %v3346_v14 = vmul.f32 -10.0, %v3330_v46  ;;  %15327 = vst [vmem:[#allocation128_spill] sm:$0xff] %v11374_v24  ;;  %v15329_v46 = vld [vmem:[#allocation93_spill] sm:$0xff] }
 0x2bc   : > { %v3480_v12 = vmul.f32 %v3464_v19, %v3464_v19  ;;  %v926_v59 = vadd.f32 %v910_v8, %v894_v45  ;;  %v11369_v5 = vpop.eup %8142  ;;  %v2546_v50 = vadd.f32 %v2530_v13, %v2396_v38  ;;  %v2021_v18 = vmul.f32 1.442695, %v1995_v56  ;;  %v15332_v56 = vld [vmem:[#allocation80_spill] sm:$0xff]  ;;  %v15333_v13 = vld [vmem:[#allocation129_spill] sm:$0xff] }
 0x2bd   : > { %15326 = vst [vmem:[#allocation154_spill] sm:$0xff] %v11369_v5  ;;  %v2145_v1 = vmul.f32 -10.0, %v2129_v35  ;;  %v2563_v34 = vsub.f32 %v11264_v21, %v15296_v55  ;;  %v11376_v51 = vpop.eup %8144  ;;  %v1495_v41 = vadd.f32 %v1479_v53, %v1329_v43  ;;  %v2279_v9 = vmul.f32 %v2263_v63, %v2263_v63 }
 0x2be   : > { %15328 = vst [vmem:[#allocation131_spill] sm:$0xff] %v11376_v51  ;;  %v2713_v44 = vsub.f32 %v11264_v21, %v15303_v36  ;;  %v11381_v19 = vsub.f32 %v854_v49, %v15329_v46  ;;  %v11383_v8 = vpop.eup %8146  ;;  %8150 = vpow2.f32 %v1871_v0  ;;  %v2429_v38 = vmul.f32 %v2413_v4, %v2413_v4 }
 0x2bf   : > { %15331 = vst [vmem:[#allocation156_spill] sm:$0xff] %v11383_v8  ;;  %v2863_v35 = vsub.f32 %v11264_v21, %v15304_v33  ;;  %v3818_v45 = vmul.f32 %v11221_v32, %v15332_v56  ;;  %v1629_v43 = vmul.f32 %v11369_v5, %v15219_v52  ;;  %v974_v53 = vsub.f32 1.0, %v11374_v24 }
 0x2c0   : > { %15330 = vst [vmem:[#allocation144_spill] sm:$0xff] %v11381_v19  ;;  %v942_v63 = vmul.f32 %v11381_v19, %v11381_v19  ;;  %v3819_v49 = vmul.f32 %v11213_v6, %v15333_v13  ;;  %v11396_v36 = vpop.eup %8148  ;;  %v2696_v0 = vadd.f32 %v2680_v7, %v2546_v50  ;;  %8152 = vpow2.f32 %v3073_v16 }
 0x2c1   : > { %15334 = vst [vmem:[#allocation133_spill] sm:$0xff] %v11396_v36  ;;  %v3496_v4 = vmul.f32 -10.0, %v3480_v12  ;;  %v2579_v33 = vmul.f32 %v2563_v34, %v2563_v34  ;;  %v1645_v55 = vadd.f32 %v1629_v43, %v1495_v41  ;;  %v2171_v58 = vmul.f32 1.442695, %v2145_v1  ;;  %v15343_v43 = vld [vmem:[#allocation67_spill] sm:$0xff] }
 0x2c2   : > { %v958_v56 = vadd.f32 %v942_v63, %v926_v59  ;;  %v3863_v32 = vpack.c.bf16 %v3819_v49, %v3818_v45  ;;  %8154 = vpow2.f32 %v2021_v18  ;;  %v2295_v5 = vmul.f32 -10.0, %v2279_v9 }
 0x2c3   : > { %v2445_v52 = vmul.f32 -10.0, %v2429_v38  ;;  %v2729_v24 = vmul.f32 %v2713_v44, %v2713_v44  ;;  %v2830_v19 = vmul.f32 %v11376_v51, %v15217_v22  ;;  %v1779_v13 = vmul.f32 %v11396_v36, %v15301_v29  ;;  %v769_v44 = vpop.permute.xlu2 %768 }
 0x2c4   : > { %v2879_v6 = vmul.f32 %v2863_v35, %v2863_v35  ;;  %v990_v39 = vadd.f32 %v974_v53, %v958_v56  ;;  %3939 = vmatmul.bf16.gmra.mxu2 %v3863_v32  ;;  %v11402_v50 = vpop.eup %8150  ;;  %v3593_v41 = vadd.f32 %v11326_v30, %v11337_v15  ;;  %8156 = vpow2.f32 %v11339_v61 }
 0x2c5   : > { %15335 = vst [vmem:[#allocation21_spill] sm:$0xff] %v11402_v50  ;;  %v3373_v1 = vmul.f32 1.442695, %v3346_v14  ;;  %v2595_v9 = vmul.f32 -10.0, %v2579_v33  ;;  %v2846_v16 = vadd.f32 %v2830_v19, %v2696_v0  ;;  %v3523_v34 = vmul.f32 1.442695, %v3496_v4 }
 0x2c6   : > { %v1795_v18 = vadd.f32 %v1779_v13, %v1645_v55  ;;  %v11407_v7 = vadd.f32 1e-12, %v990_v39  ;;  %v11409_v12 = vpop.eup %8152  ;;  %8158 = vpow2.f32 %v2171_v58  ;;  %v2321_v59 = vmul.f32 1.442695, %v2295_v5  ;;  %v15345_v4 = vld [vmem:[#allocation152_spill] sm:$0xff] }
 0x2c7   : > { %15336 = vst [vmem:[#allocation146_spill] sm:$0xff] %v11409_v12  ;;  %v2471_v32 = vmul.f32 1.442695, %v2445_v52  ;;  %v2745_v38 = vmul.f32 -10.0, %v2729_v24  ;;  %v1929_v35 = vmul.f32 %v11402_v50, %v15307_v57  ;;  %v2895_v30 = vmul.f32 -10.0, %v2879_v6  ;;  %v15346_v13 = vld [vmem:[#allocation168_spill] sm:$0xff] }
 0x2c8   : > { %v3013_v15 = vsub.f32 %v11264_v21, %v15305_v3  ;;  %8160 = vrsqrt.f32 %v11407_v7  ;;  %v11416_v33 = vpop.eup %8154  ;;  %v11420_v39 = vmul.f32 %v11310_v60, %v11225_v31  ;;  %v2980_v58 = vmul.f32 %v11383_v8, %v15220_v62 }
 0x2c9   : > { %15337 = vst [vmem:[#allocation159_spill] sm:$0xff] %v11416_v33  ;;  %8162 = vpow2.f32 %v3373_v1  ;;  %v2621_v52 = vmul.f32 1.442695, %v2595_v9  ;;  %v11425_v55 = vmul.f32 %v3593_v41, %v11229_v47  ;;  %v1945_v6 = vadd.f32 %v1929_v35, %v1795_v18 }
 0x2ca   : > { %15338 = vst [vmem:[#allocation134_spill] sm:$0xff] %v11420_v39  ;;  %8164 = vpow2.f32 %v3523_v34  ;;  %v3163_v5 = vsub.f32 %v11264_v21, %v15306_v20  ;;  %v11429_v61 = vpop.eup %8156  ;;  %v2996_v14 = vadd.f32 %v2980_v58, %v2846_v16  ;;  %v2771_v24 = vmul.f32 1.442695, %v2745_v38 }
 0x2cb   : > { %15339 = vst [vmem:[#allocation135_spill] sm:$0xff] %v11425_v55  ;;  %8166 = vpow2.f32 %v2321_v59  ;;  %v11433_v31 = vsub.f32 %v11316_v27, %v15321_v37  ;;  %v2079_v60 = vmul.f32 %v11416_v33, %v15311_v10  ;;  %v2921_v47 = vmul.f32 1.442695, %v2895_v30 }
 0x2cc   : > { %15340 = vst [vmem:[#allocation147_spill] sm:$0xff] %v11429_v61  ;;  %8168 = vpow2.f32 %v2471_v32  ;;  %v3029_v19 = vmul.f32 %v3013_v15, %v3013_v15  ;;  %v11437_v45 = vpop.eup %8158  ;;  %v3130_v53 = vmul.f32 %v11409_v12, %v15343_v43  ;;  %v3313_v63 = vsub.f32 %v11264_v21, %v15317_v2  ;;  %v850_v32 = vpop.permute.xlu2 %849 }
 0x2cd   : > { %15341 = vst [vmem:[#allocation162_spill] sm:$0xff] %v11433_v31  ;;  %8170 = vpow2.f32 %v2621_v52  ;;  %v11444_v49 = vsub.f32 %v769_v44, %v15318_v40  ;;  %v2095_v37 = vadd.f32 %v2079_v60, %v1945_v6  ;;  %v3179_v0 = vmul.f32 %v3163_v5, %v3163_v5 }
 0x2ce   : > { %15342 = vst [vmem:[#allocation26_spill] sm:$0xff] %v11437_v45  ;;  %v8161_v27 = vpop.eup %8160  ;;  %v3820_v56 = vmul.f32 %v11425_v55, %v15345_v4  ;;  %v3821_v41 = vmul.f32 %v11420_v39, %v15346_v13  ;;  %v3280_v9 = vmul.f32 %v11429_v61, %v15229_v54  ;;  %8172 = vpow2.f32 %v2771_v24  ;;  %v11481_v4 = vld [vmem:[%s8854_s27 + $0x60] sm:$0xff]  ;;  %v11531_v39 = vpop.permute.xlu1 %694 }
 0x2cf   : > { %15344 = vst [vmem:[#allocation150_spill] sm:$0xff] %v11444_v49  ;;  %v11450_v1 = vpop.eup %8162  ;;  %v893_v16 = vmul.f32 %v11433_v31, %v11433_v31  ;;  %v1140_v40 = vmul.f32 %v8161_v27, %v11407_v7  ;;  %v3146_v18 = vadd.f32 %v3130_v53, %v2996_v14  ;;  %v2229_v44 = vmul.f32 %v11437_v45, %v15206_v26 }
 0x2d0   : > { %15347 = vst [vmem:[#allocation165_spill] sm:$0xff] %v11450_v1  ;;  %v11457_v34 = vpop.eup %8164  ;;  %8174 = vpow2.f32 %v2921_v47  ;;  %v3045_v59 = vmul.f32 -10.0, %v3029_v19  ;;  %v3463_v35 = vsub.f32 %v11264_v21, %v15325_v48  ;;  %v909_v30 = vmul.f32 %v11444_v49, %v11444_v49 }
 0x2d1   : > { %15348 = vst [vmem:[#allocation151_spill] sm:$0xff] %v11457_v34  ;;  %v11461_v38 = vpop.eup %8166  ;;  %v1141_v15 = vmul.f32 %v8161_v27, %v1140_v40  ;;  %v11468_v58 = vsub.f32 %v850_v32, %v15329_v46  ;;  %v2245_v6 = vadd.f32 %v2229_v44, %v2095_v37  ;;  %v3195_v5 = vmul.f32 -10.0, %v3179_v0 }
 0x2d2   : > { %15349 = vst [vmem:[#allocation171_spill] sm:$0xff] %v11461_v38  ;;  %v11470_v52 = vpop.eup %8168  ;;  %v3329_v14 = vmul.f32 %v3313_v63, %v3313_v63  ;;  %v3864_v24 = vpack.c.bf16 %v3821_v41, %v3820_v56  ;;  %v3296_v21 = vadd.f32 %v3280_v9, %v3146_v18  ;;  %v3430_v53 = vmul.f32 %v11450_v1, %v15252_v42 }
 0x2d3   : > { %15350 = vst [vmem:[#allocation153_spill] sm:$0xff] %v11468_v58  ;;  %v11472_v60 = vpop.eup %8170  ;;  %v1142_v47 = vmul.f32 0.5, %v1141_v15  ;;  %v941_v19 = vmul.f32 %v11468_v58, %v11468_v58  ;;  %v2379_v46 = vmul.f32 %v11461_v38, %v15201_v11  ;;  %v3071_v63 = vmul.f32 1.442695, %v3045_v59  ;;  %v15356_v58 = vld [vmem:[#allocation106_spill] sm:$0xff] }
 0x2d4   : > { %15351 = vst [vmem:[#allocation172_spill] sm:$0xff] %v11470_v52  ;;  %3944 = vmatmul.bf16.gmra.mxu2 %v3864_v24  ;;  %v11483_v37 = vpop.eup %8172  ;;  %v925_v0 = vadd.f32 %v909_v30, %v893_v16  ;;  %vm1146_vm7 = vweird.f32 %v8161_v27  ;;  %v3221_v40 = vmul.f32 1.442695, %v3195_v5  ;;  %v3345_v9 = vmul.f32 -10.0, %v3329_v14  ;;  %v15357_v24 = vld [vmem:[#allocation114_spill] sm:$0xff] }
 0x2d5   : > { %15352 = vst [vmem:[#allocation155_spill] sm:$0xff] %v11472_v60  ;;  %v1143_v56 = vsub.f32 1.5, %v1142_v47  ;;  %v2395_v41 = vadd.f32 %v2379_v46, %v2245_v6  ;;  %v3479_v18 = vmul.f32 %v3463_v35, %v3463_v35  ;;  %vm1145_vm8 = vweird.f32 %v11407_v7  ;;  %v15361_v46 = vld [vmem:[#allocation23_spill] sm:$0xff] }
 0x2d6   : > { %15353 = vst [vmem:[#allocation176_spill] sm:$0xff] %v11481_v4  ;;  %v11485_v13 = vpop.eup %8174  ;;  %v973_v32 = vsub.f32 1.0, %v11481_v4  ;;  %v957_v15 = vadd.f32 %v941_v19, %v925_v0  ;;  %v11491_v49 = vmul.f32 %v15357_v24, %v15356_v58  ;;  %v11493_v59 = vadd.f32 %v3430_v53, %v3296_v21  ;;  %vm1147_vm9 = vmor %vm1145_vm8, %vm1146_vm7  ;;  %v15370_v4 = vld [vmem:[#allocation41_spill] sm:$0xff] }
 0x2d7   : > { %15354 = vst [vmem:[#allocation157_spill] sm:$0xff] %v11483_v37  ;;  %v1144_v44 = vmul.f32 %v8161_v27, %v1143_v56  ;;  %v11497_v16 = vmul.f32 %v11457_v34, %v15254_v25  ;;  %v2529_v35 = vmul.f32 %v11470_v52, %v15210_v23  ;;  %v2679_v30 = vmul.f32 %v11472_v60, %v15224_v28  ;;  %v15363_v56 = vld [vmem:[#allocation25_spill] sm:$0xff] }
 0x2d8   : > { %15355 = vst [vmem:[#allocation177_spill] sm:$0xff] %v11485_v13  ;;  %8176 = vpow2.f32 %v3071_v63  ;;  %v2829_v58 = vmul.f32 %v11483_v37, %v15217_v22  ;;  %v3371_v5 = vmul.f32 1.442695, %v3345_v9  ;;  %v3495_v14 = vmul.f32 -10.0, %v3479_v18  ;;  %v15362_v63 = vld [vmem:[#allocation24_spill] sm:$0xff]  ;;  %v15364_v18 = vld [vmem:[#allocation27_spill] sm:$0xff] }
 0x2d9   : > { %15358 = vst [vmem:[#allocation188_spill] sm:$0xff] %v11491_v49  ;;  %v11503_v6 = vsel %vm1147_vm9, %v8161_v27, %v1144_v44  ;;  %v2545_v19 = vadd.f32 %v2529_v35, %v2395_v41  ;;  %v11513_v21 = vmul.f32 %v11485_v13, %v15220_v62  ;;  %8178 = vpow2.f32 %v3221_v40  ;;  %v15365_v44 = vld [vmem:[#allocation29_spill] sm:$0xff]  ;;  %v15366_v40 = vld [vmem:[#allocation30_spill] sm:$0xff] }
 0x2da   : > { %15359 = vst [vmem:[#allocation15_spill] sm:$0xff] %v11497_v16  ;;  %v11509_v47 = vmul.f32 %v11503_v6, %v11407_v7  ;;  %v989_v53 = vadd.f32 %v973_v32, %v957_v15  ;;  %v15367_v15 = vld [vmem:[#allocation33_spill] sm:$0xff] }
 0x2db   : > { %15360 = vst [vmem:[#allocation189_spill] sm:$0xff] %v11503_v6  ;;  %v2695_v33 = vadd.f32 %v2679_v30, %v2545_v19  ;;  %v11580_v6 = vld [vmem:[%s8900_s22] ss:$0 sm:$0xff] }
 0x2dc   : > { %v1216_v27 = vsub.f32 %v11509_v47, %v15361_v46  ;;  %v1366_v0 = vsub.f32 %v11509_v47, %v15362_v63  ;;  %v1516_v9 = vsub.f32 %v11509_v47, %v15363_v56  ;;  %v1666_v7 = vsub.f32 %v11509_v47, %v15364_v18  ;;  %15381 = vst [vmem:[#allocation204_spill] sm:$0xff] %v11580_v6 }
 0x2dd   : > { %v1816_v41 = vsub.f32 %v11509_v47, %v15273_v17  ;;  %v1966_v24 = vsub.f32 %v11509_v47, %v15365_v44  ;;  %v2116_v32 = vsub.f32 %v11509_v47, %v15366_v40  ;;  %v2266_v35 = vsub.f32 %v11509_v47, %v15367_v15 }
 0x2de   : > { %v1232_v55 = vmul.f32 %v1216_v27, %v1216_v27  ;;  %v1382_v31 = vmul.f32 %v1366_v0, %v1366_v0  ;;  %v1532_v34 = vmul.f32 %v1516_v9, %v1516_v9  ;;  %v1682_v1 = vmul.f32 %v1666_v7, %v1666_v7  ;;  %v11533_v61 = vpop.eup %8176 }
 0x2df   : > { %15368 = vst [vmem:[#allocation190_spill] sm:$0xff] %v11533_v61  ;;  %v1832_v12 = vmul.f32 %v1816_v41, %v1816_v41  ;;  %v1982_v8 = vmul.f32 %v1966_v24, %v1966_v24  ;;  %v2132_v13 = vmul.f32 %v2116_v32, %v2116_v32  ;;  %v11535_v51 = vadd.f32 1e-12, %v989_v53  ;;  %v11537_v45 = vpop.eup %8178  ;;  %v15371_v32 = vld [vmem:[#allocation45_spill] sm:$0xff] }
 0x2e0   : > { %v1248_v37 = vmul.f32 -10.0, %v1232_v55  ;;  %v1398_v60 = vmul.f32 -10.0, %v1382_v31  ;;  %v1548_v52 = vmul.f32 -10.0, %v1532_v34  ;;  %v1698_v38 = vmul.f32 -10.0, %v1682_v1  ;;  %15369 = vst [vmem:[#allocation181_spill] sm:$0xff] %v11537_v45  ;;  %v15372_v34 = vld [vmem:[#allocation49_spill] sm:$0xff] }
 0x2e1   : > { %v1848_v50 = vmul.f32 -10.0, %v1832_v12  ;;  %v1998_v36 = vmul.f32 -10.0, %v1982_v8  ;;  %v2282_v27 = vmul.f32 %v2266_v35, %v2266_v35  ;;  %v2416_v41 = vsub.f32 %v11509_v47, %v15370_v4 }
 0x2e2   : > { %v1277_v0 = vmul.f32 1.442695, %v1248_v37  ;;  %v1427_v9 = vmul.f32 1.442695, %v1398_v60  ;;  %v1577_v7 = vmul.f32 1.442695, %v1548_v52  ;;  %v2566_v55 = vsub.f32 %v11509_v47, %v15371_v32 }
 0x2e3   : > { %v11541_v24 = vmul.f32 1.442695, %v3495_v14  ;;  %v1727_v53 = vmul.f32 1.442695, %v1698_v38  ;;  %8180 = vrsqrt.f32 %v11535_v51  ;;  %v1877_v31 = vmul.f32 1.442695, %v1848_v50 }
 0x2e4   : > { %8182 = vpow2.f32 %v1277_v0  ;;  %v2148_v1 = vmul.f32 -10.0, %v2132_v13  ;;  %v2432_v12 = vmul.f32 %v2416_v41, %v2416_v41  ;;  %v2582_v8 = vmul.f32 %v2566_v55, %v2566_v55  ;;  %v15373_v60 = vld [vmem:[#allocation53_spill] sm:$0xff]  ;;  %v777_v13 = vpop.permute.xlu1 %776 }
 0x2e5   : > { %8184 = vpow2.f32 %v1427_v9  ;;  %v2716_v52 = vsub.f32 %v11509_v47, %v15372_v34  ;;  %v2866_v37 = vsub.f32 %v11509_v47, %v15373_v60  ;;  %v2845_v30 = vadd.f32 %v2829_v58, %v2695_v33 }
 0x2e6   : > { %8186 = vpow2.f32 %v1577_v7  ;;  %v2027_v38 = vmul.f32 1.442695, %v1998_v36  ;;  %v2298_v14 = vmul.f32 -10.0, %v2282_v27  ;;  %v2448_v19 = vmul.f32 -10.0, %v2432_v12  ;;  %v11566_v12 = vld [vmem:[%s8900_s22 + $0x1] ss:$0 sm:$0xff] }
 0x2e7   : > { %8188 = vpow2.f32 %v1727_v53  ;;  %v2732_v35 = vmul.f32 %v2716_v52, %v2716_v52  ;;  %v3016_v50 = vsub.f32 %v11509_v47, %v15305_v3  ;;  %v3129_v0 = vmul.f32 %v11533_v61, %v15343_v43  ;;  %15375 = vst [vmem:[#allocation161_spill] sm:$0xff] %v11566_v12 }
 0x2e8   : > { %8190 = vpow2.f32 %v3371_v5  ;;  %v2598_v9 = vmul.f32 -10.0, %v2582_v8  ;;  %v3166_v41 = vsub.f32 %v11509_v47, %v15306_v20  ;;  %v2177_v36 = vmul.f32 1.442695, %v2148_v1 }
 0x2e9   : > { %v11556_v33 = vpop.eup %8180  ;;  %8192 = vpow2.f32 %v1877_v31  ;;  %v2748_v58 = vmul.f32 -10.0, %v2732_v35  ;;  %v2882_v27 = vmul.f32 %v2866_v37, %v2866_v37  ;;  %v2995_v53 = vadd.f32 %v11513_v21, %v2845_v30  ;;  %v15378_v31 = vld [vmem:[#allocation37_spill] sm:$0xff]  ;;  %v15380_v21 = vld [vmem:[#allocation40_spill] sm:$0xff] }
 0x2ea   : > { %v11558_v7 = vpop.eup %8182  ;;  %v11563_v55 = vmul.f32 %v11537_v45, %v15229_v54  ;;  %v2327_v5 = vmul.f32 1.442695, %v2298_v14  ;;  %v11569_v8 = vsub.f32 %v777_v13, %v11566_v12  ;;  %8194 = vpow2.f32 %v2027_v38  ;;  %v858_v12 = vpop.permute.xlu0 %857 }
 0x2eb   : > { %15374 = vst [vmem:[#allocation192_spill] sm:$0xff] %v11558_v7  ;;  %v11571_v52 = vpop.eup %8184  ;;  %v1332_v1 = vmul.f32 %v11558_v7, %v15378_v31  ;;  %v2477_v37 = vmul.f32 1.442695, %v2448_v19  ;;  %v3032_v35 = vmul.f32 %v3016_v50, %v3016_v50  ;;  %v2627_v45 = vmul.f32 1.442695, %v2598_v9 }
 0x2ec   : > { %15376 = vst [vmem:[#allocation193_spill] sm:$0xff] %v11569_v8  ;;  %v11575_v61 = vpop.eup %8186  ;;  %v1482_v30 = vmul.f32 %v11571_v52, %v15380_v21  ;;  %v3182_v14 = vmul.f32 %v3166_v41, %v3166_v41  ;;  %v11584_v13 = vsub.f32 %v11531_v39, %v11580_v6  ;;  %8196 = vpow2.f32 %v2177_v36  ;;  %v15385_v41 = vld [vmem:[#allocation43_spill] sm:$0xff] }
 0x2ed   : > { %15377 = vst [vmem:[#allocation46_spill] sm:$0xff] %v11571_v52  ;;  %v11586_v49 = vpop.eup %8188  ;;  %v2777_v38 = vmul.f32 1.442695, %v2748_v58  ;;  %v2898_v19 = vmul.f32 -10.0, %v2882_v27  ;;  %v3316_v50 = vsub.f32 %v11509_v47, %v15317_v2  ;;  %v1632_v52 = vmul.f32 %v11575_v61, %v15385_v41  ;;  %v11601_v58 = vld [vmem:[%s8900_s22 + $0x2] ss:$0 sm:$0xff] }
 0x2ee   : > { %15379 = vst [vmem:[#allocation194_spill] sm:$0xff] %v11575_v61  ;;  %v11590_v7 = vpop.eup %8190  ;;  %v1498_v9 = vadd.f32 %v1482_v30, %v1332_v1  ;;  %8198 = vpow2.f32 %v2327_v5  ;;  %v1130_v39 = vmul.f32 %v11556_v33, %v11535_v51  ;;  %v3048_v25 = vmul.f32 -10.0, %v3032_v35 }
 0x2ef   : > { %15382 = vst [vmem:[#allocation195_spill] sm:$0xff] %v11584_v13  ;;  %v11596_v6 = vpop.eup %8192  ;;  %8200 = vpow2.f32 %v2477_v37  ;;  %v911_v36 = vmul.f32 %v11569_v8, %v11569_v8  ;;  %v11604_v27 = vsub.f32 %v858_v12, %v11601_v58  ;;  %v1782_v30 = vmul.f32 %v11586_v49, %v15301_v29 }
 0x2f0   : > { %15383 = vst [vmem:[#allocation205_spill] sm:$0xff] %v11586_v49  ;;  %v1648_v1 = vadd.f32 %v1632_v52, %v1498_v9  ;;  %8202 = vpow2.f32 %v2627_v45  ;;  %v1131_v5 = vmul.f32 %v11556_v33, %v1130_v39  ;;  %v11609_v61 = vpop.eup %8194  ;;  %v3198_v37 = vmul.f32 -10.0, %v3182_v14 }
 0x2f1   : > { %15384 = vst [vmem:[#allocation196_spill] sm:$0xff] %v11590_v7  ;;  %8204 = vpow2.f32 %v2777_v38  ;;  %v3332_v35 = vmul.f32 %v3316_v50, %v3316_v50  ;;  %v895_v8 = vmul.f32 %v11584_v13, %v11584_v13  ;;  %v1932_v12 = vmul.f32 %v11596_v6, %v15307_v57 }
 0x2f2   : > { %15386 = vst [vmem:[#allocation197_spill] sm:$0xff] %v11596_v6  ;;  %v1798_v16 = vadd.f32 %v1782_v30, %v1648_v1  ;;  %v1132_v52 = vmul.f32 0.5, %v1131_v5  ;;  %v11615_v9 = vpop.eup %8196  ;;  %v3145_v45 = vadd.f32 %v3129_v0, %v2995_v53  ;;  %v3077_v49 = vmul.f32 1.442695, %v3048_v25  ;;  %v11630_v0 = vld [vmem:[%s8854_s27 + $0x70] sm:$0xff] }
 0x2f3   : > { %15387 = vst [vmem:[#allocation77_spill] sm:$0xff] %v11601_v58  ;;  %v2927_v58 = vmul.f32 1.442695, %v2898_v19  ;;  %v927_v39 = vadd.f32 %v911_v36, %v895_v8  ;;  %v943_v38 = vmul.f32 %v11604_v27, %v11604_v27  ;;  %v2082_v1 = vmul.f32 %v11609_v61, %v15311_v10 }
 0x2f4   : > { %15388 = vst [vmem:[#allocation44_spill] sm:$0xff] %v11604_v27  ;;  %v11619_v14 = vpop.eup %8198  ;;  %v1948_v50 = vadd.f32 %v1932_v12, %v1798_v16  ;;  %v1133_v30 = vsub.f32 1.5, %v1132_v52  ;;  %vm1136_vm10 = vweird.f32 %v11556_v33  ;;  %v3227_v5 = vmul.f32 1.442695, %v3198_v37 }
 0x2f5   : > { %15389 = vst [vmem:[#allocation191_spill] sm:$0xff] %v11609_v61  ;;  %v11624_v19 = vpop.eup %8200  ;;  %v3348_v13 = vmul.f32 -10.0, %v3332_v35  ;;  %v3466_v25 = vsub.f32 %v11509_v47, %v15325_v48  ;;  %vm1135_vm11 = vweird.f32 %v11535_v51  ;;  %v2232_v8 = vmul.f32 %v11615_v9, %v15206_v26 }
 0x2f6   : > { %15390 = vst [vmem:[#allocation225_spill] sm:$0xff] %v11615_v9  ;;  %v11632_v53 = vpop.eup %8202  ;;  %v2098_v16 = vadd.f32 %v2082_v1, %v1948_v50  ;;  %8206 = vpow2.f32 %v2927_v58  ;;  %v1134_v36 = vmul.f32 %v11556_v33, %v1133_v30  ;;  %v11640_v37 = vadd.f32 %v11563_v55, %v3145_v45  ;;  %vm1137_vm12 = vmor %vm1135_vm11, %vm1136_vm10 }
 0x2f7   : > { %15391 = vst [vmem:[#allocation78_spill] sm:$0xff] %v11619_v14  ;;  %v11637_v12 = vpop.eup %8204  ;;  %v11644_v47 = vmul.f32 %v11590_v7, %v15252_v42  ;;  %v2382_v35 = vmul.f32 %v11619_v14, %v15201_v11  ;;  %8208 = vpow2.f32 %v3077_v49  ;;  %v975_v50 = vsub.f32 1.0, %v11630_v0 }
 0x2f8   : > { %15392 = vst [vmem:[#allocation211_spill] sm:$0xff] %v11624_v19  ;;  %v2248_v52 = vadd.f32 %v2232_v8, %v2098_v16  ;;  %v11651_v58 = vsel %vm1137_vm12, %v11556_v33, %v1134_v36  ;;  %v959_v1 = vadd.f32 %v943_v38, %v927_v39  ;;  %8210 = vpow2.f32 %v3227_v5 }
 0x2f9   : > { %15393 = vst [vmem:[#allocation88_spill] sm:$0xff] %v11630_v0  ;;  %v3377_v55 = vmul.f32 1.442695, %v3348_v13  ;;  %v3482_v45 = vmul.f32 %v3466_v25, %v3466_v25  ;;  %v11656_v30 = vmul.f32 %v11651_v58, %v11535_v51  ;;  %v2532_v49 = vmul.f32 %v11624_v19, %v15210_v23 }
 0x2fa   : > { %15394 = vst [vmem:[#allocation103_spill] sm:$0xff] %v11632_v53  ;;  %v2398_v27 = vadd.f32 %v2382_v35, %v2248_v52  ;;  %v2682_v16 = vmul.f32 %v11632_v53, %v15224_v28  ;;  %v2832_v33 = vmul.f32 %v11637_v12, %v15217_v22  ;;  %v991_v35 = vadd.f32 %v975_v50, %v959_v1 }
 0x2fb   : > { %15395 = vst [vmem:[#allocation212_spill] sm:$0xff] %v11637_v12  ;;  %v1215_v39 = vsub.f32 %v11656_v30, %v15361_v46  ;;  %v1365_v13 = vsub.f32 %v11656_v30, %v15362_v63  ;;  %v1515_v51 = vsub.f32 %v11656_v30, %v15363_v56  ;;  %v1665_v38 = vsub.f32 %v11656_v30, %v15364_v18 }
 0x2fc   : > { %v11672_v5 = vpop.eup %8206  ;;  %v2548_v25 = vadd.f32 %v2532_v49, %v2398_v27  ;;  %v1815_v8 = vsub.f32 %v11656_v30, %v15273_v17  ;;  %v1965_v36 = vsub.f32 %v11656_v30, %v15365_v44  ;;  %v2115_v7 = vsub.f32 %v11656_v30, %v15366_v40 }
 0x2fd   : > { %15396 = vst [vmem:[#allocation91_spill] sm:$0xff] %v11672_v5  ;;  %v11678_v52 = vpop.eup %8208  ;;  %v1231_v12 = vmul.f32 %v1215_v39, %v1215_v39  ;;  %v1381_v53 = vmul.f32 %v1365_v13, %v1365_v13  ;;  %v1531_v19 = vmul.f32 %v1515_v51, %v1515_v51  ;;  %v1681_v14 = vmul.f32 %v1665_v38, %v1665_v38 }
 0x2fe   : > { %15397 = vst [vmem:[#allocation213_spill] sm:$0xff] %v11678_v52  ;;  %v2698_v9 = vadd.f32 %v2682_v16, %v2548_v25  ;;  %v1831_v61 = vmul.f32 %v1815_v8, %v1815_v8  ;;  %v1981_v6 = vmul.f32 %v1965_v36, %v1965_v36  ;;  %v11682_v27 = vpop.eup %8210  ;;  %v3498_v50 = vmul.f32 -10.0, %v3482_v45 }
 0x2ff   : > { %15398 = vst [vmem:[#allocation214_spill] sm:$0xff] %v11682_v27  ;;  %v1247_v49 = vmul.f32 -10.0, %v1231_v12  ;;  %v1397_v0 = vmul.f32 -10.0, %v1381_v53  ;;  %v1547_v17 = vmul.f32 -10.0, %v1531_v19  ;;  %v1697_v18 = vmul.f32 -10.0, %v1681_v14 }
 0x300   : > { %v2848_v44 = vadd.f32 %v2832_v33, %v2698_v9  ;;  %v1847_v1 = vmul.f32 -10.0, %v1831_v61  ;;  %v2131_v56 = vmul.f32 %v2115_v7, %v2115_v7  ;;  %v2265_v16 = vsub.f32 %v11656_v30, %v15367_v15 }
 0x301   : > { %v1275_v39 = vmul.f32 1.442695, %v1247_v49  ;;  %v1425_v13 = vmul.f32 1.442695, %v1397_v0  ;;  %v1575_v51 = vmul.f32 1.442695, %v1547_v17  ;;  %v2982_v38 = vmul.f32 %v11672_v5, %v15220_v62 }
 0x302   : > { %8212 = vpow2.f32 %v3377_v55  ;;  %v1725_v25 = vmul.f32 1.442695, %v1697_v18  ;;  %v11688_v8 = vadd.f32 1e-12, %v991_v35  ;;  %v1997_v19 = vmul.f32 -10.0, %v1981_v6 }
 0x303   : > { %8214 = vpow2.f32 %v1275_v39  ;;  %v2281_v14 = vmul.f32 %v2265_v16, %v2265_v16  ;;  %v2415_v61 = vsub.f32 %v11656_v30, %v15370_v4  ;;  %v2998_v7 = vadd.f32 %v2982_v38, %v2848_v44 }
 0x304   : > { %8216 = vpow2.f32 %v1425_v13  ;;  %v2565_v17 = vsub.f32 %v11656_v30, %v15371_v32  ;;  %v2715_v9 = vsub.f32 %v11656_v30, %v15372_v34  ;;  %v1875_v0 = vmul.f32 1.442695, %v1847_v1 }
 0x305   : > { %8218 = vpow2.f32 %v1575_v51  ;;  %v2147_v53 = vmul.f32 -10.0, %v2131_v56  ;;  %v2431_v18 = vmul.f32 %v2415_v61, %v2415_v61  ;;  %v2297_v12 = vmul.f32 -10.0, %v2281_v14 }
 0x306   : > { %8220 = vpow2.f32 %v1725_v25  ;;  %v2581_v55 = vmul.f32 %v2565_v17, %v2565_v17  ;;  %v2731_v6 = vmul.f32 %v2715_v9, %v2715_v9  ;;  %v3132_v44 = vmul.f32 %v11678_v52, %v15343_v43 }
 0x307   : > { %8222 = vpow2.f32 %v11541_v24  ;;  %v3527_v45 = vmul.f32 1.442695, %v3498_v50  ;;  %v2865_v33 = vsub.f32 %v11656_v30, %v15373_v60  ;;  %v3445_v35 = vadd.f32 %v11644_v47, %v11640_v37 }
 0x308   : > { %v11701_v36 = vpop.eup %8212  ;;  %v2025_v56 = vmul.f32 1.442695, %v1997_v19  ;;  %v2447_v49 = vmul.f32 -10.0, %v2431_v18  ;;  %8224 = vrsqrt.f32 %v11688_v8  ;;  %v3148_v39 = vadd.f32 %v3132_v44, %v2998_v7 }
 0x309   : > { %15399 = vst [vmem:[#allocation215_spill] sm:$0xff] %v11701_v36  ;;  %v11706_v1 = vpop.eup %8214  ;;  %v2175_v24 = vmul.f32 1.442695, %v2147_v53  ;;  %v2597_v13 = vmul.f32 -10.0, %v2581_v55  ;;  %v2881_v51 = vmul.f32 %v2865_v33, %v2865_v33  ;;  %8226 = vpow2.f32 %v1875_v0 }
 0x30a   : > { %15400 = vst [vmem:[#allocation178_spill] sm:$0xff] %v11706_v1  ;;  %v11708_v16 = vpop.eup %8216  ;;  %v1331_v50 = vmul.f32 %v11706_v1, %v15378_v31  ;;  %v2325_v38 = vmul.f32 1.442695, %v2297_v12  ;;  %v2747_v25 = vmul.f32 -10.0, %v2731_v6  ;;  %v3282_v37 = vmul.f32 %v11682_v27, %v15229_v54 }
 0x30b   : > { %15401 = vst [vmem:[#allocation175_spill] sm:$0xff] %v11708_v16  ;;  %v11712_v14 = vpop.eup %8218  ;;  %8228 = vpow2.f32 %v3527_v45  ;;  %v1481_v47 = vmul.f32 %v11708_v16, %v15380_v21  ;;  %v3015_v19 = vsub.f32 %v11656_v30, %v15305_v3  ;;  %v3432_v7 = vmul.f32 %v11701_v36, %v15252_v42 }
 0x30c   : > { %15402 = vst [vmem:[#allocation59_spill] sm:$0xff] %v11712_v14  ;;  %v11720_v61 = vpop.eup %8220  ;;  %8230 = vpow2.f32 %v2025_v56  ;;  %v2475_v17 = vmul.f32 1.442695, %v2447_v49  ;;  %v2897_v9 = vmul.f32 -10.0, %v2881_v51  ;;  %v1631_v18 = vmul.f32 %v11712_v14, %v15385_v41 }
 0x30d   : > { %15403 = vst [vmem:[#allocation202_spill] sm:$0xff] %v11720_v61  ;;  %v11724_v0 = vpop.eup %8222  ;;  %v1497_v53 = vadd.f32 %v1481_v47, %v1331_v50  ;;  %8232 = vpow2.f32 %v2175_v24  ;;  %v2625_v12 = vmul.f32 1.442695, %v2597_v13  ;;  %v3298_v6 = vadd.f32 %v3282_v37, %v3148_v39 }
 0x30e   : > { %15404 = vst [vmem:[#allocation98_spill] sm:$0xff] %v11724_v0  ;;  %v11728_v55 = vpop.eup %8224  ;;  %8234 = vpow2.f32 %v2325_v38  ;;  %v2775_v44 = vmul.f32 1.442695, %v2747_v25  ;;  %v3165_v45 = vsub.f32 %v11656_v30, %v15306_v20  ;;  %v1781_v56 = vmul.f32 %v11720_v61, %v15301_v29  ;;  %v15413_v61 = vld [vmem:[#allocation188_spill] sm:$0xff] }
 0x30f   : > { %v1647_v33 = vadd.f32 %v1631_v18, %v1497_v53  ;;  %v3031_v49 = vmul.f32 %v3015_v19, %v3015_v19  ;;  %v3315_v51 = vsub.f32 %v11656_v30, %v15317_v2  ;;  %v11736_v50 = vpop.eup %8226  ;;  %8236 = vpow2.f32 %v2475_v17  ;;  %v700_v19 = vpop.permute.xlu2 %699  ;;  %v15408_v18 = vld [vmem:[#allocation15_spill] sm:$0xff] }
 0x310   : > { %15405 = vst [vmem:[#allocation58_spill] sm:$0xff] %v11736_v50  ;;  %v2925_v24 = vmul.f32 1.442695, %v2897_v9  ;;  %v3181_v13 = vmul.f32 %v3165_v45, %v3165_v45  ;;  %v3465_v39 = vsub.f32 %v11656_v30, %v15325_v48  ;;  %8238 = vpow2.f32 %v2625_v12  ;;  %v15409_v17 = vld [vmem:[#allocation87_spill] sm:$0xff] }
 0x311   : > { %v11740_v38 = vpop.eup %8228  ;;  %v1797_v25 = vadd.f32 %v1781_v56, %v1647_v33  ;;  %v3331_v37 = vmul.f32 %v3315_v51, %v3315_v51  ;;  %v1150_v47 = vmul.f32 %v11728_v55, %v11688_v8  ;;  %v3596_v36 = vadd.f32 %v15408_v18, %v11493_v59 }
 0x312   : > { %15406 = vst [vmem:[#allocation217_spill] sm:$0xff] %v11740_v38  ;;  %v11744_v53 = vpop.eup %8230  ;;  %v3579_v9 = vmul.f32 %v11724_v0, %v15409_v17  ;;  %v3448_v45 = vadd.f32 %v3432_v7, %v3298_v6  ;;  %8240 = vpow2.f32 %v2775_v44  ;;  %v1931_v12 = vmul.f32 %v11736_v50, %v15307_v57 }
 0x313   : > { %15407 = vst [vmem:[#allocation203_spill] sm:$0xff] %v11744_v53  ;;  %v11750_v30 = vpop.eup %8232  ;;  %v3047_v33 = vmul.f32 -10.0, %v3031_v49  ;;  %v3481_v56 = vmul.f32 %v3465_v39, %v3465_v39  ;;  %v1151_v51 = vmul.f32 %v11728_v55, %v1150_v47  ;;  %v3582_v59 = vmul.f32 %v11740_v38, %v15409_v17  ;;  %v11765_v49 = vld [vmem:[%s8854_s27 + $0x50] sm:$0xff]  ;;  %v15416_v39 = vld [vmem:[#allocation122_spill] sm:$0xff] }
 0x314   : > { %15410 = vst [vmem:[#allocation219_spill] sm:$0xff] %v11750_v30  ;;  %v11755_v27 = vpop.eup %8234  ;;  %v3595_v52 = vadd.f32 %v3579_v9, %v3445_v35  ;;  %8242 = vpow2.f32 %v2925_v24  ;;  %v3197_v18 = vmul.f32 -10.0, %v3181_v13  ;;  %v1947_v7 = vadd.f32 %v1931_v12, %v1797_v25  ;;  %v15421_v12 = vld [vmem:[#allocation189_spill] sm:$0xff] }
 0x315   : > { %15411 = vst [vmem:[#allocation61_spill] sm:$0xff] %v11755_v27  ;;  %v3347_v6 = vmul.f32 -10.0, %v3331_v37  ;;  %v1152_v44 = vmul.f32 0.5, %v1151_v51  ;;  %v11759_v5 = vpop.eup %8236  ;;  %v11762_v14 = vmul.f32 %v3596_v36, %v15413_v61  ;;  %v1195_v47 = vmul.f32 %v11765_v49, %v15416_v39  ;;  %v15420_v61 = vld [vmem:[#allocation128_spill] sm:$0xff] }
 0x316   : > { %15412 = vst [vmem:[#allocation221_spill] sm:$0xff] %v11759_v5  ;;  %v3598_v50 = vadd.f32 %v3582_v59, %v3448_v45  ;;  %v2081_v35 = vmul.f32 %v11744_v53, %v15311_v10  ;;  %v11771_v9 = vpop.eup %8238  ;;  %v3075_v24 = vmul.f32 1.442695, %v3047_v33  ;;  %v3497_v13 = vmul.f32 -10.0, %v3481_v56  ;;  %v15422_v39 = vld [vmem:[#allocation204_spill] sm:$0xff] }
 0x317   : > { %15414 = vst [vmem:[#allocation170_spill] sm:$0xff] %v11762_v14  ;;  %v1153_v25 = vsub.f32 1.5, %v1152_v44  ;;  %vm1156_vm13 = vweird.f32 %v11728_v55  ;;  %v11776_v36 = vmul.f32 %v3595_v52, %v1195_v47  ;;  %v1198_v51 = vmul.f32 %v15421_v12, %v15420_v61  ;;  %v15426_v52 = vld [vmem:[#allocation176_spill] sm:$0xff]  ;;  %v781_v47 = vpop.permute.xlu2 %780  ;;  %v11815_v61 = vld [vmem:[%s8854_s27 + $0x78] sm:$0xff] }
 0x318   : > { %15415 = vst [vmem:[#allocation163_spill] sm:$0xff] %v11765_v49  ;;  %v11774_v37 = vpop.eup %8240  ;;  %v3225_v38 = vmul.f32 1.442695, %v3197_v18  ;;  %v11781_v45 = vsub.f32 %v700_v19, %v15422_v39  ;;  %v2097_v59 = vadd.f32 %v2081_v35, %v1947_v7  ;;  %v3375_v53 = vmul.f32 1.442695, %v3347_v6 }
 0x319   : > { %15417 = vst [vmem:[#allocation179_spill] sm:$0xff] %v11771_v9  ;;  %v1154_v49 = vmul.f32 %v11728_v55, %v1153_v25  ;;  %vm1155_vm14 = vweird.f32 %v11688_v8  ;;  %v11787_v56 = vmul.f32 %v3598_v50, %v1198_v51  ;;  %v11791_v44 = vmul.f32 %v11651_v58, %v15426_v52  ;;  %v15430_v51 = vld [vmem:[#allocation161_spill] sm:$0xff]  ;;  %v15433_v52 = vld [vmem:[#allocation28_spill] sm:$0xff] }
 0x31a   : > { %15418 = vst [vmem:[#allocation63_spill] sm:$0xff] %v11774_v37  ;;  %v11785_v33 = vpop.eup %8242  ;;  %v2231_v18 = vmul.f32 %v11750_v30, %v15206_v26  ;;  %v2381_v19 = vmul.f32 %v11755_v27, %v15201_v11  ;;  %vm1157_vm15 = vmor %vm1155_vm14, %vm1156_vm13  ;;  %v2531_v7 = vmul.f32 %v11759_v5, %v15210_v23  ;;  %8244 = vpow2.f32 %v3075_v24  ;;  %v862_v27 = vpop.permute.xlu1 %861 }
 0x31b   : > { %15419 = vst [vmem:[#allocation52_spill] sm:$0xff] %v11776_v36  ;;  %v3525_v6 = vmul.f32 1.442695, %v3497_v13  ;;  %v11802_v50 = vsel %vm1157_vm15, %v11728_v55, %v1154_v49  ;;  %v2681_v58 = vmul.f32 %v11771_v9, %v15224_v28  ;;  %v11808_v35 = vmul.f32 %v11774_v37, %v15217_v22  ;;  %v15434_v9 = vld [vmem:[#allocation29_spill] sm:$0xff] }
 0x31c   : > { %15423 = vst [vmem:[#allocation158_spill] sm:$0xff] %v11781_v45  ;;  %8246 = vpow2.f32 %v3225_v38  ;;  %v11812_v25 = vmul.f32 %v11802_v50, %v11688_v8  ;;  %v2247_v24 = vadd.f32 %v2231_v18, %v2097_v59  ;;  %v11819_v55 = vmul.f32 %v11785_v33, %v15220_v62  ;;  %v15429_v8 = vld [vmem:[#allocation25_spill] sm:$0xff]  ;;  %v15432_v59 = vld [vmem:[#allocation27_spill] sm:$0xff] }
 0x31d   : > { %15424 = vst [vmem:[#allocation160_spill] sm:$0xff] %v11785_v33  ;;  %8248 = vpow2.f32 %v3375_v53  ;;  %v11823_v49 = vmul.f32 %v11781_v45, %v11781_v45  ;;  %v11832_v39 = vsub.f32 %v781_v47, %v15430_v51 }
 0x31e   : > { %15425 = vst [vmem:[#allocation62_spill] sm:$0xff] %v11787_v56  ;;  %v1217_v13 = vsub.f32 %v11812_v25, %v15361_v46  ;;  %v1367_v38 = vsub.f32 %v11812_v25, %v15362_v63  ;;  %v1517_v12 = vsub.f32 %v11812_v25, %v15429_v8  ;;  %8250 = vpow2.f32 %v3525_v6 }
 0x31f   : > { %15427 = vst [vmem:[#allocation166_spill] sm:$0xff] %v11791_v44  ;;  %v1667_v53 = vsub.f32 %v11812_v25, %v15432_v59  ;;  %v1817_v18 = vsub.f32 %v11812_v25, %v15433_v52  ;;  %v1967_v5 = vsub.f32 %v11812_v25, %v15434_v9  ;;  %v2397_v47 = vadd.f32 %v2381_v19, %v2247_v24  ;;  %v15438_v9 = vld [vmem:[#allocation77_spill] sm:$0xff] }
 0x320   : > { %15428 = vst [vmem:[#allocation180_spill] sm:$0xff] %v11815_v61  ;;  %v1233_v56 = vmul.f32 %v1217_v13, %v1217_v13  ;;  %v1383_v33 = vmul.f32 %v1367_v38, %v1367_v38  ;;  %v1533_v37 = vmul.f32 %v1517_v12, %v1517_v12  ;;  %v11841_v30 = vpop.eup %8244  ;;  %v2117_v44 = vsub.f32 %v11812_v25, %v15366_v40 }
 0x321   : > { %15431 = vst [vmem:[#allocation79_spill] sm:$0xff] %v11832_v39  ;;  %v1683_v51 = vmul.f32 %v1667_v53, %v1667_v53  ;;  %v1833_v6 = vmul.f32 %v1817_v18, %v1817_v18  ;;  %v1983_v13 = vmul.f32 %v1967_v5, %v1967_v5  ;;  %v11850_v52 = vsub.f32 %v862_v27, %v15438_v9 }
 0x322   : > { %15435 = vst [vmem:[#allocation47_spill] sm:$0xff] %v11841_v30  ;;  %v11845_v16 = vpop.eup %8246  ;;  %v1249_v1 = vmul.f32 -10.0, %v1233_v56  ;;  %v1399_v14 = vmul.f32 -10.0, %v1383_v33  ;;  %v1549_v45 = vmul.f32 -10.0, %v1533_v37  ;;  %v2133_v0 = vmul.f32 %v2117_v44, %v2117_v44 }
 0x323   : > { %15436 = vst [vmem:[#allocation222_spill] sm:$0xff] %v11845_v16  ;;  %v11847_v38 = vpop.eup %8248  ;;  %v1699_v12 = vmul.f32 -10.0, %v1683_v51  ;;  %v1849_v36 = vmul.f32 -10.0, %v1833_v6  ;;  %v2267_v18 = vsub.f32 %v11812_v25, %v15367_v15  ;;  %v11858_v37 = vmul.f32 %v11841_v30, %v15343_v43 }
 0x324   : > { %15437 = vst [vmem:[#allocation198_spill] sm:$0xff] %v11847_v38  ;;  %v1279_v19 = vmul.f32 1.442695, %v1249_v1  ;;  %v1429_v24 = vmul.f32 1.442695, %v1399_v14  ;;  %v11854_v40 = vpop.eup %8250  ;;  %v1999_v33 = vmul.f32 -10.0, %v1983_v13  ;;  %v912_v56 = vmul.f32 %v11832_v39, %v11832_v39 }
 0x325   : > { %15439 = vst [vmem:[#allocation206_spill] sm:$0xff] %v11850_v52  ;;  %v1579_v53 = vmul.f32 1.442695, %v1549_v45  ;;  %v1729_v5 = vmul.f32 1.442695, %v1699_v12  ;;  %v2547_v44 = vadd.f32 %v2531_v7, %v2397_v47  ;;  %v2283_v27 = vmul.f32 %v2267_v18, %v2267_v18 }
 0x326   : > { %15440 = vst [vmem:[#allocation11_spill] sm:$0xff] %v11854_v40  ;;  %8252 = vpow2.f32 %v1279_v19  ;;  %v2417_v1 = vsub.f32 %v11812_v25, %v15370_v4  ;;  %v1879_v14 = vmul.f32 1.442695, %v1849_v36  ;;  %v2149_v9 = vmul.f32 -10.0, %v2133_v0  ;;  %v15441_v36 = vld [vmem:[#allocation16_spill] sm:$0xff] }
 0x327   : > { %8254 = vpow2.f32 %v1429_v24  ;;  %v2567_v45 = vsub.f32 %v11812_v25, %v15371_v32  ;;  %v2029_v51 = vmul.f32 1.442695, %v1999_v33  ;;  %v944_v13 = vmul.f32 %v11850_v52, %v11850_v52  ;;  %v15442_v24 = vld [vmem:[#allocation118_spill] sm:$0xff]  ;;  %v15445_v52 = vld [vmem:[#allocation120_spill] sm:$0xff] }
 0x328   : > { %8256 = vpow2.f32 %v1579_v53  ;;  %v2433_v6 = vmul.f32 %v2417_v1, %v2417_v1  ;;  %v2299_v12 = vmul.f32 -10.0, %v2283_v27  ;;  %v2717_v47 = vsub.f32 %v11812_v25, %v15372_v34 }
 0x329   : > { %8258 = vpow2.f32 %v1729_v5  ;;  %v2583_v7 = vmul.f32 %v2567_v45, %v2567_v45  ;;  %v2697_v19 = vadd.f32 %v2681_v58, %v2547_v44  ;;  %v2867_v0 = vsub.f32 %v11812_v25, %v15373_v60  ;;  %v15444_v45 = vld [vmem:[#allocation207_spill] sm:$0xff]  ;;  %v15446_v44 = vld [vmem:[#allocation209_spill] sm:$0xff] }
 0x32a   : > { %v2449_v18 = vmul.f32 -10.0, %v2433_v6  ;;  %v1296_v39 = vmul.f32 %v15442_v24, %v15441_v36  ;;  %8260 = vpow2.f32 %v1879_v14  ;;  %v2179_v53 = vmul.f32 1.442695, %v2149_v9  ;;  %v15447_v6 = vld [vmem:[#allocation121_spill] sm:$0xff] }
 0x32b   : > { %v2599_v33 = vmul.f32 -10.0, %v2583_v7  ;;  %v2733_v1 = vmul.f32 %v2717_v47, %v2717_v47  ;;  %v2883_v5 = vmul.f32 %v2867_v0, %v2867_v0  ;;  %v3017_v27 = vsub.f32 %v11812_v25, %v15305_v3 }
 0x32c   : > { %v11874_v30 = vpop.eup %8252  ;;  %v1446_v58 = vmul.f32 %v15445_v52, %v15444_v45  ;;  %v11882_v34 = vmul.f32 %v15447_v6, %v15446_v44  ;;  %8262 = vpow2.f32 %v2029_v51  ;;  %v2329_v9 = vmul.f32 1.442695, %v2299_v12 }
 0x32d   : > { %15443 = vst [vmem:[#allocation18_spill] sm:$0xff] %v11874_v30  ;;  %v11884_v60 = vpop.eup %8254  ;;  %v1333_v14 = vmul.f32 %v11874_v30, %v15378_v31  ;;  %v928_v7 = vadd.f32 %v912_v56, %v11823_v49  ;;  %v2847_v0 = vadd.f32 %v11808_v35, %v2697_v19  ;;  %v2479_v24 = vmul.f32 1.442695, %v2449_v18  ;;  %v15451_v30 = vld [vmem:[#allocation220_spill] sm:$0xff]  ;;  %v15452_v35 = vld [vmem:[#allocation123_spill] sm:$0xff] }
 0x32e   : > { %15448 = vst [vmem:[#allocation50_spill] sm:$0xff] %v11884_v60  ;;  %v11889_v47 = vpop.eup %8256  ;;  %v1483_v52 = vmul.f32 %v11884_v60, %v15380_v21  ;;  %v2749_v3 = vmul.f32 -10.0, %v2733_v1  ;;  %8264 = vpow2.f32 %v2179_v53  ;;  %v2629_v32 = vmul.f32 1.442695, %v2599_v33 }
 0x32f   : > { %15449 = vst [vmem:[#allocation183_spill] sm:$0xff] %v11889_v47  ;;  %v11894_v6 = vpop.eup %8258  ;;  %v2899_v4 = vmul.f32 -10.0, %v2883_v5  ;;  %v3167_v51 = vsub.f32 %v11812_v25, %v15306_v20  ;;  %v1633_v49 = vmul.f32 %v11889_v47, %v15385_v41  ;;  %v3033_v56 = vmul.f32 %v3017_v27, %v3017_v27 }
 0x330   : > { %15450 = vst [vmem:[#allocation208_spill] sm:$0xff] %v11894_v6  ;;  %v1499_v12 = vadd.f32 %v1483_v52, %v1333_v14  ;;  %v1746_v19 = vmul.f32 %v15452_v35, %v15451_v30  ;;  %v11902_v31 = vpop.eup %8260  ;;  %8266 = vpow2.f32 %v2329_v9  ;;  %v3317_v53 = vsub.f32 %v11812_v25, %v15317_v2 }
 0x331   : > { %15453 = vst [vmem:[#allocation199_spill] sm:$0xff] %v11902_v31  ;;  %v3183_v18 = vmul.f32 %v3167_v51, %v3167_v51  ;;  %v960_v33 = vadd.f32 %v944_v13, %v928_v7  ;;  %v1783_v5 = vmul.f32 %v11894_v6, %v15301_v29  ;;  %8268 = vpow2.f32 %v2479_v24 }
 0x332   : > { %v1649_v1 = vadd.f32 %v1633_v49, %v1499_v12  ;;  %v2779_v14 = vmul.f32 1.442695, %v2749_v3  ;;  %v11908_v52 = vpop.eup %8262  ;;  %v2997_v27 = vadd.f32 %v11819_v55, %v2847_v0  ;;  %8270 = vpow2.f32 %v2629_v32  ;;  %v15457_v49 = vld [vmem:[#allocation81_spill] sm:$0xff]  ;;  %v15458_v55 = vld [vmem:[#allocation124_spill] sm:$0xff] }
 0x333   : > { %15454 = vst [vmem:[#allocation223_spill] sm:$0xff] %v11908_v52  ;;  %v2929_v35 = vmul.f32 1.442695, %v2899_v4  ;;  %v1462_v47 = vadd.f32 %v1446_v58, %v1296_v39  ;;  %v1933_v9 = vmul.f32 %v11902_v31, %v15307_v57  ;;  %v3049_v51 = vmul.f32 -10.0, %v3033_v56  ;;  %v15493_v31 = vld [vmem:[#allocation177_spill] sm:$0xff] }
 0x334   : > { %v1799_v60 = vadd.f32 %v1783_v5, %v1649_v1  ;;  %v3333_v41 = vmul.f32 %v3317_v53, %v3317_v53  ;;  %v11913_v13 = vpop.eup %8264  ;;  %v3199_v7 = vmul.f32 -10.0, %v3183_v18  ;;  %v3467_v24 = vsub.f32 %v11812_v25, %v15325_v48  ;;  %v15460_v53 = vld [vmem:[#allocation84_spill] sm:$0xff] }
 0x335   : > { %15455 = vst [vmem:[#allocation210_spill] sm:$0xff] %v11913_v13  ;;  %v15456_v3 = vsub.f32 1.0, %v11815_v61  ;;  %v1896_v32 = vmul.f32 %v15458_v55, %v15457_v49  ;;  %v2083_v39 = vmul.f32 %v11908_v52, %v15311_v10  ;;  %8272 = vpow2.f32 %v2779_v14 }
 0x336   : > { %v1949_v4 = vadd.f32 %v1933_v9, %v1799_v60  ;;  %v3349_v58 = vmul.f32 -10.0, %v3333_v41  ;;  %v11923_v0 = vpop.eup %8266  ;;  %v3147_v56 = vadd.f32 %v11858_v37, %v2997_v27  ;;  %v3281_v18 = vmul.f32 %v11845_v16, %v15229_v54  ;;  %v15464_v27 = vld [vmem:[#allocation148_spill] sm:$0xff] }
 0x337   : > { %v992_v12 = vadd.f32 %v15456_v3, %v960_v33  ;;  %15459 = vst [vmem:[#allocation169_spill] sm:$0xff] %v11923_v0  ;;  %v15461_v33 = vld [vmem:[#allocation125_spill] sm:$0xff]  ;;  %v11932_v5 = vpop.eup %8268  ;;  %v2233_v9 = vmul.f32 %v11913_v13, %v15206_v26  ;;  %8274 = vpow2.f32 %v2929_v35  ;;  %v3079_v41 = vmul.f32 1.442695, %v3049_v51 }
 0x338   : > { %v2046_v1 = vmul.f32 %v15461_v33, %v15460_v53  ;;  %15462 = vst [vmem:[#allocation174_spill] sm:$0xff] %v11932_v5  ;;  %v2099_v60 = vadd.f32 %v2083_v39, %v1949_v4  ;;  %v11936_v14 = vpop.eup %8270  ;;  %v3229_v3 = vmul.f32 1.442695, %v3199_v7  ;;  %v3483_v37 = vmul.f32 %v3467_v24, %v3467_v24  ;;  %v15465_v4 = vld [vmem:[#allocation149_spill] sm:$0xff] }
 0x339   : > { %v11928_v25 = vadd.f32 1e-12, %v992_v12  ;;  %15463 = vst [vmem:[#allocation200_spill] sm:$0xff] %v11936_v14  ;;  %v1295_v12 = vmul.f32 %v15464_v27, %v15441_v36  ;;  %v2383_v33 = vmul.f32 %v11923_v0, %v15201_v11  ;;  %v3379_v52 = vmul.f32 1.442695, %v3349_v58 }
 0x33a   : > { %v2249_v55 = vadd.f32 %v2233_v9, %v2099_v60  ;;  %v1445_v39 = vmul.f32 %v15465_v4, %v15444_v45  ;;  %v3297_v13 = vadd.f32 %v3281_v18, %v3147_v56  ;;  %v3431_v35 = vmul.f32 %v11847_v38, %v15252_v42  ;;  %v15467_v9 = vld [vmem:[#allocation154_spill] sm:$0xff] }
 0x33b   : > { %8276 = vrsqrt.f32 %v11928_v25  ;;  %v2533_v51 = vmul.f32 %v11932_v5, %v15210_v23  ;;  %v1612_v7 = vadd.f32 %v11882_v34, %v1462_v47  ;;  %v11950_v24 = vpop.eup %8272  ;;  %v1595_v58 = vmul.f32 %v15467_v9, %v15446_v44  ;;  %v15469_v34 = vld [vmem:[#allocation133_spill] sm:$0xff] }
 0x33c   : > { %15466 = vst [vmem:[#allocation85_spill] sm:$0xff] %v11950_v24  ;;  %v2399_v27 = vadd.f32 %v2383_v33, %v2249_v55  ;;  %8278 = vpow2.f32 %v3079_v41  ;;  %v1461_v60 = vadd.f32 %v1445_v39, %v1295_v12  ;;  %v2683_v4 = vmul.f32 %v11936_v14, %v15224_v28  ;;  %v15490_v14 = vld [vmem:[#allocation157_spill] sm:$0xff] }
 0x33d   : > { %8280 = vpow2.f32 %v3229_v3  ;;  %v3499_v56 = vmul.f32 -10.0, %v3483_v37  ;;  %v1762_v18 = vadd.f32 %v1746_v19, %v1612_v7  ;;  %v11956_v0 = vpop.eup %8274  ;;  %v1745_v47 = vmul.f32 %v15469_v34, %v15451_v30 }
 0x33e   : > { %15468 = vst [vmem:[#allocation184_spill] sm:$0xff] %v11956_v0  ;;  %v2549_v38 = vadd.f32 %v2533_v51, %v2399_v27  ;;  %8282 = vpow2.f32 %v3379_v52  ;;  %v1611_v5 = vadd.f32 %v1595_v58, %v1461_v60  ;;  %v3447_v41 = vadd.f32 %v3431_v35, %v3297_v13  ;;  %v15470_v51 = vld [vmem:[#allocation21_spill] sm:$0xff]  ;;  %v15471_v13 = vld [vmem:[#allocation55_spill] sm:$0xff]  ;;  %v15472_v35 = vld [vmem:[#allocation126_spill] sm:$0xff] }
 0x33f   : > { %v3581_v12 = vmul.f32 %v11854_v40, %v15409_v17  ;;  %v2833_v33 = vmul.f32 %v11950_v24, %v15217_v22  ;;  %v1912_v39 = vadd.f32 %v1896_v32, %v1762_v18  ;;  %v1895_v52 = vmul.f32 %v15470_v51, %v15457_v49 }
 0x340   : > { %v2699_v3 = vadd.f32 %v2683_v4, %v2549_v38  ;;  %v1761_v37 = vadd.f32 %v1745_v47, %v1611_v5  ;;  %v2983_v7 = vmul.f32 %v11956_v0, %v15220_v62  ;;  %v3529_v27 = vmul.f32 1.442695, %v3499_v56  ;;  %v15474_v38 = vld [vmem:[#allocation159_spill] sm:$0xff]  ;;  %v15476_v47 = vld [vmem:[#allocation88_spill] sm:$0xff]  ;;  %v15478_v56 = vld [vmem:[#allocation86_spill] sm:$0xff] }
 0x341   : > { %v8277_v55 = vpop.eup %8276  ;;  %v2062_v60 = vadd.f32 %v2046_v1, %v1912_v39  ;;  %v2196_v9 = vmul.f32 %v15472_v35, %v15471_v13  ;;  %v2045_v4 = vmul.f32 %v15474_v38, %v15460_v53  ;;  %v11977_v18 = vadd.f32 %v3581_v12, %v3447_v41  ;;  %v15479_v39 = vld [vmem:[#allocation127_spill] sm:$0xff]  ;;  %v15481_v41 = vld [vmem:[#allocation26_spill] sm:$0xff]  ;;  %v15514_v53 = vld [vmem:[#allocation49_spill] sm:$0xff] }
 0x342   : > { %v1160_v19 = vmul.f32 %v8277_v55, %v11928_v25  ;;  %v11971_v58 = vpop.eup %8278  ;;  %v2849_v34 = vadd.f32 %v2833_v33, %v2699_v3  ;;  %v1911_v32 = vadd.f32 %v1895_v52, %v1761_v37  ;;  %v11981_v51 = vmul.f32 %v11802_v50, %v15476_v47  ;;  %v15483_v38 = vld [vmem:[#allocation94_spill] sm:$0xff] }
 0x343   : > { %15473 = vst [vmem:[#allocation14_spill] sm:$0xff] %v11971_v58  ;;  %v11975_v5 = vpop.eup %8280  ;;  %v2212_v1 = vadd.f32 %v2196_v9, %v2062_v60  ;;  %v2346_v35 = vmul.f32 %v15479_v39, %v15478_v56  ;;  %vm1165_vm1 = vweird.f32 %v11928_v25  ;;  %v3133_v37 = vmul.f32 %v11971_v58, %v15343_v43  ;;  %v15482_v9 = vld [vmem:[#allocation224_spill] sm:$0xff]  ;;  %v15486_v47 = vld [vmem:[#allocation66_spill] sm:$0xff] }
 0x344   : > { %v1161_v24 = vmul.f32 %v8277_v55, %v1160_v19  ;;  %15475 = vst [vmem:[#allocation186_spill] sm:$0xff] %v11975_v5  ;;  %v11985_v0 = vpop.eup %8282  ;;  %v2999_v33 = vadd.f32 %v2983_v7, %v2849_v34  ;;  %v2061_v19 = vadd.f32 %v2045_v4, %v1911_v32  ;;  %8284 = vpow2.f32 %v3529_v27  ;;  %v15484_v34 = vld [vmem:[#allocation171_spill] sm:$0xff]  ;;  %v15485_v27 = vld [vmem:[#allocation172_spill] sm:$0xff] }
 0x345   : > { %15477 = vst [vmem:[#allocation201_spill] sm:$0xff] %v11981_v51  ;;  %v2195_v12 = vmul.f32 %v15481_v41, %v15471_v13  ;;  %v2362_v50 = vadd.f32 %v2346_v35, %v2212_v1  ;;  %v3283_v52 = vmul.f32 %v11975_v5, %v15229_v54  ;;  %vm1166_vm2 = vweird.f32 %v8277_v55  ;;  %v15487_v1 = vld [vmem:[#allocation155_spill] sm:$0xff]  ;;  %v15489_v58 = vld [vmem:[#allocation68_spill] sm:$0xff] }
 0x346   : > { %15480 = vst [vmem:[#allocation60_spill] sm:$0xff] %v11985_v0  ;;  %v1162_v3 = vmul.f32 0.5, %v1161_v24  ;;  %v2496_v7 = vmul.f32 %v15483_v38, %v15482_v9  ;;  %v11998_v24 = vmul.f32 %v11985_v0, %v15252_v42  ;;  %v2345_v32 = vmul.f32 %v15484_v34, %v15478_v56  ;;  %vm1167_vm3 = vmor %vm1165_vm1, %vm1166_vm2  ;;  %v15488_v38 = vld [vmem:[#allocation143_spill] sm:$0xff] }
 0x347   : > { %v2495_v4 = vmul.f32 %v15485_v27, %v15482_v9  ;;  %v12006_v39 = vmul.f32 %v15487_v1, %v15486_v47  ;;  %v3149_v35 = vadd.f32 %v3133_v37, %v2999_v33  ;;  %v2211_v41 = vadd.f32 %v2195_v12, %v2061_v19  ;;  %v15491_v27 = vld [vmem:[#allocation131_spill] sm:$0xff]  ;;  %v15492_v1 = vld [vmem:[#allocation90_spill] sm:$0xff]  ;;  %v15495_v37 = vld [vmem:[#allocation156_spill] sm:$0xff] }
 0x348   : > { %v1163_v60 = vsub.f32 1.5, %v1162_v3  ;;  %v2512_v5 = vadd.f32 %v2496_v7, %v2362_v50  ;;  %v2646_v0 = vmul.f32 %v15488_v38, %v15486_v47  ;;  %v12014_v34 = vmul.f32 %v15490_v14, %v15489_v58  ;;  %v15496_v50 = vld [vmem:[#allocation92_spill] sm:$0xff]  ;;  %v15498_v14 = vld [vmem:[#allocation146_spill] sm:$0xff]  ;;  %v15504_v9 = vld [vmem:[#allocation165_spill] sm:$0xff] }
 0x349   : > { %v12018_v40 = vmul.f32 %v15491_v27, %v15489_v58  ;;  %v12022_v33 = vmul.f32 %v15493_v31, %v15492_v1  ;;  %v12028_v12 = vmul.f32 %v15495_v37, %v15492_v1  ;;  %v12036_v38 = vmul.f32 %v15498_v14, %v15496_v50  ;;  %v15501_v37 = vld [vmem:[#allocation147_spill] sm:$0xff]  ;;  %v15503_v1 = vld [vmem:[#allocation196_spill] sm:$0xff] }
 0x34a   : > { %v1164_v3 = vmul.f32 %v8277_v55, %v1163_v60  ;;  %v15497_v60 = vld [vmem:[#allocation190_spill] sm:$0xff]  ;;  %v12038_v27 = vpop.eup %8284  ;;  %v3299_v14 = vadd.f32 %v3283_v52, %v3149_v35  ;;  %v2662_v47 = vadd.f32 %v2646_v0, %v2512_v5  ;;  %v15506_v0 = vld [vmem:[#allocation29_spill] sm:$0xff]  ;;  %v15508_v35 = vld [vmem:[#allocation75_spill] sm:$0xff] }
 0x34b   : > { %v12032_v7 = vmul.f32 %v15497_v60, %v15496_v50  ;;  %v15502_v60 = vld [vmem:[#allocation95_spill] sm:$0xff]  ;;  %v2361_v50 = vadd.f32 %v2345_v32, %v2211_v41 }
 0x34c   : > { %v12024_v19 = vsel %vm1167_vm3, %v8277_v55, %v1164_v3  ;;  %v15499_v55 = vld [vmem:[#allocation74_spill] sm:$0xff]  ;;  %v15500_v3 = vld [vmem:[#allocation181_spill] sm:$0xff]  ;;  %v12054_v58 = vmul.f32 %v15503_v1, %v15502_v60  ;;  %v12058_v56 = vmul.f32 %v15504_v9, %v15502_v60  ;;  %v15510_v13 = vld [vmem:[#allocation151_spill] sm:$0xff] }
 0x34d   : > { %15494 = vst [vmem:[#allocation138_spill] sm:$0xff] %v12024_v19  ;;  %v12042_v31 = vmul.f32 %v12024_v19, %v11928_v25  ;;  %v12046_v16 = vmul.f32 %v15500_v3, %v15499_v55  ;;  %v12050_v6 = vmul.f32 %v15501_v37, %v15499_v55  ;;  %v15505_v55 = vld [vmem:[#allocation28_spill] sm:$0xff]  ;;  %v15507_v9 = vld [vmem:[#allocation30_spill] sm:$0xff] }
 0x34f   : > { %v1218_v25 = vsub.f32 %v12042_v31, %v15361_v46  ;;  %v1368_v3 = vsub.f32 %v12042_v31, %v15362_v63  ;;  %v1518_v37 = vsub.f32 %v12042_v31, %v15429_v8  ;;  %v1668_v1 = vsub.f32 %v12042_v31, %v15432_v59  ;;  %v15509_v46 = vld [vmem:[#allocation98_spill] sm:$0xff] }
 0x350   : > { %v1818_v52 = vsub.f32 %v12042_v31, %v15505_v55  ;;  %v1968_v5 = vsub.f32 %v12042_v31, %v15506_v0  ;;  %v2118_v32 = vsub.f32 %v12042_v31, %v15507_v9  ;;  %v12076_v41 = vmul.f32 %v15509_v46, %v15508_v35 }
 0x351   : > { %v1234_v63 = vmul.f32 %v1218_v25, %v1218_v25  ;;  %v1384_v60 = vmul.f32 %v1368_v3, %v1368_v3  ;;  %v1534_v42 = vmul.f32 %v1518_v37, %v1518_v37  ;;  %v1684_v8 = vmul.f32 %v1668_v1, %v1668_v1  ;;  %v15511_v25 = vld [vmem:[#allocation192_spill] sm:$0xff] }
 0x352   : > { %v1834_v54 = vmul.f32 %v1818_v52, %v1818_v52  ;;  %v1984_v43 = vmul.f32 %v1968_v5, %v1968_v5  ;;  %v2134_v59 = vmul.f32 %v2118_v32, %v2118_v32  ;;  %v12080_v55 = vmul.f32 %v15510_v13, %v15508_v35  ;;  %v15512_v5 = vld [vmem:[#allocation41_spill] sm:$0xff] }
 0x353   : > { %v1250_v19 = vmul.f32 -10.0, %v1234_v63  ;;  %v1400_v0 = vmul.f32 -10.0, %v1384_v60  ;;  %v1550_v61 = vmul.f32 -10.0, %v1534_v42  ;;  %v1700_v51 = vmul.f32 -10.0, %v1684_v8 }
 0x354   : > { %v1850_v9 = vmul.f32 -10.0, %v1834_v54  ;;  %v2000_v62 = vmul.f32 -10.0, %v1984_v43  ;;  %v2268_v46 = vsub.f32 %v12042_v31, %v15367_v15  ;;  %v1298_v3 = vmul.f32 %v15511_v25, %v15441_v36  ;;  %v15513_v43 = vld [vmem:[#allocation45_spill] sm:$0xff] }
 0x355   : > { %v1281_v37 = vmul.f32 1.442695, %v1250_v19  ;;  %v1431_v1 = vmul.f32 1.442695, %v1400_v0  ;;  %v1581_v52 = vmul.f32 1.442695, %v1550_v61  ;;  %v2418_v32 = vsub.f32 %v12042_v31, %v15512_v5 }
 0x356   : > { %v1731_v13 = vmul.f32 1.442695, %v1700_v51  ;;  %v2150_v35 = vmul.f32 -10.0, %v2134_v59  ;;  %v2284_v63 = vmul.f32 %v2268_v46, %v2268_v46  ;;  %v2511_v60 = vadd.f32 %v2495_v4, %v2361_v50  ;;  %v15515_v0 = vld [vmem:[#allocation53_spill] sm:$0xff]  ;;  %v15516_v59 = vld [vmem:[#allocation54_spill] sm:$0xff] }
 0x357   : > { %8286 = vpow2.f32 %v1281_v37  ;;  %v1881_v42 = vmul.f32 1.442695, %v1850_v9  ;;  %v2434_v54 = vmul.f32 %v2418_v32, %v2418_v32  ;;  %v2568_v8 = vsub.f32 %v12042_v31, %v15513_v43 }
 0x358   : > { %8288 = vpow2.f32 %v1431_v1  ;;  %v2300_v15 = vmul.f32 -10.0, %v2284_v63  ;;  %v2718_v19 = vsub.f32 %v12042_v31, %v15514_v53  ;;  %v2868_v61 = vsub.f32 %v12042_v31, %v15515_v0  ;;  %v15517_v53 = vld [vmem:[#allocation46_spill] sm:$0xff] }
 0x359   : > { %8290 = vpow2.f32 %v1581_v52  ;;  %v2031_v25 = vmul.f32 1.442695, %v2000_v62  ;;  %v2584_v51 = vmul.f32 %v2568_v8, %v2568_v8  ;;  %v3018_v4 = vsub.f32 %v12042_v31, %v15516_v59  ;;  %v15518_v8 = vld [vmem:[#allocation37_spill] sm:$0xff] }
 0x35a   : > { %8292 = vpow2.f32 %v1731_v13  ;;  %v2450_v50 = vmul.f32 -10.0, %v2434_v54  ;;  %v2734_v9 = vmul.f32 %v2718_v19, %v2718_v19  ;;  %v2884_v46 = vmul.f32 %v2868_v61, %v2868_v61 }
 0x35b   : > { %v12097_v37 = vadd.f32 %v11998_v24, %v3299_v14  ;;  %v2181_v1 = vmul.f32 1.442695, %v2150_v35  ;;  %v3034_v5 = vmul.f32 %v3018_v4, %v3018_v4  ;;  %v1448_v32 = vmul.f32 %v15517_v53, %v15444_v45 }
 0x35c   : > { %8294 = vpow2.f32 %v1881_v42  ;;  %v2331_v63 = vmul.f32 1.442695, %v2300_v15  ;;  %v2600_v52 = vmul.f32 -10.0, %v2584_v51  ;;  %v3168_v62 = vsub.f32 %v12042_v31, %v15306_v20 }
 0x35d   : > { %v12103_v43 = vpop.eup %8286  ;;  %v2750_v13 = vmul.f32 -10.0, %v2734_v9  ;;  %v3318_v54 = vsub.f32 %v12042_v31, %v15317_v2  ;;  %v2661_v24 = vadd.f32 %v12006_v39, %v2511_v60  ;;  %v2812_v14 = vadd.f32 %v12018_v40, %v2662_v47 }
 0x35e   : > { %v12109_v35 = vpop.eup %8288  ;;  %v1334_v42 = vmul.f32 %v12103_v43, %v15518_v8  ;;  %8296 = vpow2.f32 %v2031_v25  ;;  %v2481_v15 = vmul.f32 1.442695, %v2450_v50  ;;  %v2900_v19 = vmul.f32 -10.0, %v2884_v46  ;;  %v15519_v25 = vld [vmem:[#allocation43_spill] sm:$0xff]  ;;  %v15520_v50 = vld [vmem:[#allocation194_spill] sm:$0xff] }
 0x35f   : > { %v12113_v0 = vpop.eup %8290  ;;  %v1484_v20 = vmul.f32 %v12109_v35, %v15380_v21  ;;  %8298 = vpow2.f32 %v2181_v1  ;;  %v3050_v61 = vmul.f32 -10.0, %v3034_v5  ;;  %v3184_v2 = vmul.f32 %v3168_v62, %v3168_v62 }
 0x360   : > { %v12117_v51 = vpop.eup %8292  ;;  %8300 = vpow2.f32 %v2331_v63  ;;  %v2631_v40 = vmul.f32 1.442695, %v2600_v52  ;;  %v3334_v47 = vmul.f32 %v3318_v54, %v3318_v54  ;;  %v3468_v39 = vsub.f32 %v12042_v31, %v15325_v48  ;;  %v15521_v54 = vld [vmem:[#allocation205_spill] sm:$0xff] }
 0x361   : > { %v1500_v60 = vadd.f32 %v1484_v20, %v1334_v42  ;;  %v1634_v59 = vmul.f32 %v12113_v0, %v15519_v25  ;;  %v2781_v4 = vmul.f32 1.442695, %v2750_v13  ;;  %v1598_v9 = vmul.f32 %v15520_v50, %v15446_v44 }
 0x362   : > { %v12125_v21 = vpop.eup %8294  ;;  %v2931_v46 = vmul.f32 1.442695, %v2900_v19  ;;  %v3200_v1 = vmul.f32 -10.0, %v3184_v2  ;;  %v3484_v5 = vmul.f32 %v3468_v39, %v3468_v39  ;;  %v1464_v53 = vadd.f32 %v1448_v32, %v1298_v3 }
 0x363   : > { %v1650_v63 = vadd.f32 %v1634_v59, %v1500_v60  ;;  %v1784_v52 = vmul.f32 %v12117_v51, %v15301_v29  ;;  %8302 = vpow2.f32 %v2481_v15  ;;  %v3081_v48 = vmul.f32 1.442695, %v3050_v61  ;;  %v15524_v59 = vld [vmem:[#allocation104_spill] sm:$0xff] }
 0x364   : > { %v12129_v31 = vpop.eup %8296  ;;  %8304 = vpow2.f32 %v2631_v40  ;;  %v3350_v62 = vmul.f32 -10.0, %v3334_v47  ;;  %v2811_v13 = vadd.f32 %v12014_v34, %v2661_v24  ;;  %v1748_v8 = vmul.f32 %v15521_v54, %v15451_v30  ;;  %v15523_v47 = vld [vmem:[#allocation52_spill] sm:$0xff] }
 0x365   : > { %v12134_v42 = vpop.eup %8298  ;;  %v1800_v19 = vadd.f32 %v1784_v52, %v1650_v63  ;;  %v1934_v3 = vmul.f32 %v12125_v21, %v15307_v57  ;;  %8306 = vpow2.f32 %v2781_v4  ;;  %v2962_v29 = vadd.f32 %v12028_v12, %v2812_v14  ;;  %v15522_v14 = vld [vmem:[#allocation112_spill] sm:$0xff]  ;;  %v15525_v4 = vld [vmem:[#allocation170_spill] sm:$0xff] }
 0x366   : > { %v12139_v32 = vpop.eup %8300  ;;  %8308 = vpow2.f32 %v2931_v46  ;;  %v3231_v15 = vmul.f32 1.442695, %v3200_v1  ;;  %v3500_v20 = vmul.f32 -10.0, %v3484_v5  ;;  %v2961_v61 = vadd.f32 %v12022_v33, %v2811_v13  ;;  %v15526_v46 = vld [vmem:[#allocation178_spill] sm:$0xff] }
 0x367   : > { %v1950_v34 = vadd.f32 %v1934_v3, %v1800_v19  ;;  %v2084_v24 = vmul.f32 %v12129_v31, %v15311_v10  ;;  %8310 = vpow2.f32 %v3081_v48  ;;  %v3112_v2 = vadd.f32 %v12036_v38, %v2962_v29 }
 0x368   : > { %v2234_v57 = vmul.f32 %v12134_v42, %v15206_v26  ;;  %v3381_v40 = vmul.f32 1.442695, %v3350_v62  ;;  %v3111_v12 = vadd.f32 %v12032_v7, %v2961_v61  ;;  %v3822_v39 = vmul.f32 %v15523_v47, %v15522_v14  ;;  %v8600_v14 = vld [vmem:[%s8854_s27 + $0x58] sm:$0xff] }
 0x369   : > { %v12150_v60 = vpop.eup %8302  ;;  %v2100_v25 = vadd.f32 %v2084_v24, %v1950_v34  ;;  %v2384_v33 = vmul.f32 %v12139_v32, %v15201_v11  ;;  %v3262_v10 = vadd.f32 %v12050_v6, %v3112_v2  ;;  %v3823_v38 = vmul.f32 %v15525_v4, %v15524_v59  ;;  %v15527_v6 = vld [vmem:[#allocation175_spill] sm:$0xff]  ;;  %v15529_v24 = vld [vmem:[#allocation202_spill] sm:$0xff] }
 0x36a   : > { %v12157_v50 = vpop.eup %8304  ;;  %8312 = vpow2.f32 %v3231_v15  ;;  %v3531_v26 = vmul.f32 1.442695, %v3500_v20  ;;  %v3261_v7 = vadd.f32 %v12046_v16, %v3111_v12  ;;  %v1297_v1 = vmul.f32 %v15526_v46, %v15441_v36  ;;  %v15528_v15 = vld [vmem:[#allocation59_spill] sm:$0xff] }
 0x36b   : > { %v12162_v5 = vpop.eup %8306  ;;  %v2250_v63 = vadd.f32 %v2234_v57, %v2100_v25  ;;  %v3412_v52 = vadd.f32 %v12058_v56, %v3262_v10  ;;  %v3865_v11 = vpack.c.bf16 %v3823_v38, %v3822_v39  ;;  %v1447_v48 = vmul.f32 %v15527_v6, %v15444_v45  ;;  %v15531_v25 = vld [vmem:[#allocation197_spill] sm:$0xff]  ;;  %v15532_v10 = vld [vmem:[#allocation58_spill] sm:$0xff] }
 0x36c   : > { %v12167_v62 = vpop.eup %8308  ;;  %v2534_v13 = vmul.f32 %v12150_v60, %v15210_v23  ;;  %8314 = vpow2.f32 %v3381_v40  ;;  %v3411_v16 = vadd.f32 %v12054_v58, %v3261_v7  ;;  %v1614_v54 = vadd.f32 %v1598_v9, %v1464_v53  ;;  %v15530_v40 = vld [vmem:[#allocation163_spill] sm:$0xff]  ;;  %v15536_v6 = vld [vmem:[#allocation65_spill] sm:$0xff] }
 0x36d   : > { %v12172_v19 = vpop.eup %8310  ;;  %v2400_v3 = vadd.f32 %v2384_v33, %v2250_v63  ;;  %v3562_v29 = vadd.f32 %v12080_v55, %v3412_v52  ;;  %3949 = vmatmul.bf16.gmra.mxu2 %v3865_v11  ;;  %v1463_v56 = vadd.f32 %v1447_v48, %v1297_v1  ;;  %v1597_v20 = vmul.f32 %v15528_v15, %v15446_v44  ;;  %v15534_v1 = vld [vmem:[#allocation84_spill] sm:$0xff]  ;;  %v15535_v63 = vld [vmem:[#allocation191_spill] sm:$0xff] }
 0x36e   : > { %v3583_v61 = vmul.f32 %v12038_v27, %v15409_v17  ;;  %8316 = vpow2.f32 %v3531_v26  ;;  %v3561_v23 = vadd.f32 %v12076_v41, %v3411_v16  ;;  %v1764_v34 = vadd.f32 %v1748_v8, %v1614_v54  ;;  %v15533_v26 = vld [vmem:[#allocation166_spill] sm:$0xff] }
 0x36f   : > { %v2550_v58 = vadd.f32 %v2534_v13, %v2400_v3  ;;  %v2684_v9 = vmul.f32 %v12157_v50, %v15224_v28  ;;  %v1613_v53 = vadd.f32 %v1597_v20, %v1463_v56  ;;  %v1747_v55 = vmul.f32 %v15529_v24, %v15451_v30  ;;  %v15537_v13 = vld [vmem:[#allocation203_spill] sm:$0xff]  ;;  %v15538_v3 = vld [vmem:[#allocation201_spill] sm:$0xff]  ;;  %v15540_v56 = vld [vmem:[#allocation138_spill] sm:$0xff] }
 0x370   : > { %v12184_v2 = vpop.eup %8312  ;;  %v3599_v57 = vadd.f32 %v3583_v61, %v12097_v37  ;;  %v3709_v12 = vmul.f32 %v15530_v40, %v3561_v23  ;;  %v3710_v39 = vmul.f32 %v8600_v14, %v3562_v29  ;;  %v1898_v41 = vmul.f32 %v15531_v25, %v15457_v49  ;;  %v15541_v61 = vld [vmem:[#allocation55_spill] sm:$0xff]  ;;  %v15542_v23 = vld [vmem:[#allocation225_spill] sm:$0xff]  ;;  %v15546_v14 = vld [vmem:[#allocation70_spill] sm:$0xff] }
 0x371   : > { %v2700_v8 = vadd.f32 %v2684_v9, %v2550_v58  ;;  %v2834_v33 = vmul.f32 %v12162_v5, %v15217_v22  ;;  %v1763_v28 = vadd.f32 %v1747_v55, %v1613_v53  ;;  %v1897_v59 = vmul.f32 %v15532_v10, %v15457_v49  ;;  %v15543_v9 = vld [vmem:[#allocation67_spill] sm:$0xff] }
 0x372   : > { %v12195_v38 = vpop.eup %8314  ;;  %v12199_v37 = vmul.f32 %v11977_v18, %v15533_v26  ;;  %v3720_v7 = vpack.c.bf16 %v3710_v39, %v3709_v12  ;;  %v1914_v46 = vadd.f32 %v1898_v41, %v1764_v34  ;;  %v2048_v52 = vmul.f32 %v15535_v63, %v15534_v1  ;;  %v15539_v18 = vld [vmem:[#allocation180_spill] sm:$0xff]  ;;  %v15544_v55 = vld [vmem:[#allocation219_spill] sm:$0xff]  ;;  %v15545_v12 = vld [vmem:[#allocation69_spill] sm:$0xff] }
 0x373   : > { %v2850_v11 = vadd.f32 %v2834_v33, %v2700_v8  ;;  %v2984_v48 = vmul.f32 %v12167_v62, %v15536_v6  ;;  %v1913_v22 = vadd.f32 %v1897_v59, %v1763_v28  ;;  %v2047_v16 = vmul.f32 %v15537_v13, %v15534_v1  ;;  %v15547_v41 = vld [vmem:[#allocation86_spill] sm:$0xff]  ;;  %v15549_v26 = vld [vmem:[#allocation61_spill] sm:$0xff]  ;;  %v15550_v63 = vld [vmem:[#allocation224_spill] sm:$0xff] }
 0x374   : > { %v12207_v54 = vpop.eup %8316  ;;  %v12210_v29 = vmul.f32 %v3599_v57, %v15538_v3  ;;  %v12214_v15 = vmul.f32 %v15540_v56, %v15539_v18  ;;  %3764 = vmatmul.bf16.gmra.mxu1 %v3720_v7  ;;  %v2064_v20 = vadd.f32 %v2048_v52, %v1914_v46  ;;  %v2198_v34 = vmul.f32 %v15542_v23, %v15541_v61  ;;  %v15548_v8 = vld [vmem:[#allocation78_spill] sm:$0xff]  ;;  %v15551_v52 = vld [vmem:[#allocation221_spill] sm:$0xff]  ;;  %v15552_v6 = vld [vmem:[#allocation211_spill] sm:$0xff] }
 0x375   : > { %v3000_v58 = vadd.f32 %v2984_v48, %v2850_v11  ;;  %v3134_v53 = vmul.f32 %v12172_v19, %v15543_v9  ;;  %v2063_v24 = vadd.f32 %v2047_v16, %v1913_v22  ;;  %v2197_v40 = vmul.f32 %v15544_v55, %v15541_v61  ;;  %v15553_v22 = vld [vmem:[#allocation66_spill] sm:$0xff]  ;;  %v15554_v13 = vld [vmem:[#allocation179_spill] sm:$0xff] }
 0x376   : > { %v3284_v57 = vmul.f32 %v12184_v2, %v15545_v12  ;;  %v3434_v39 = vmul.f32 %v12195_v38, %v15546_v14  ;;  %v2214_v25 = vadd.f32 %v2198_v34, %v2064_v20  ;;  %v2348_v33 = vmul.f32 %v15548_v8, %v15547_v41  ;;  %v15555_v18 = vld [vmem:[#allocation103_spill] sm:$0xff]  ;;  %v15556_v20 = vld [vmem:[#allocation68_spill] sm:$0xff]  ;;  %v15562_v14 = vld [vmem:[#allocation142_spill] sm:$0xff] }
 0x377   : > { %v3150_v28 = vadd.f32 %v3134_v53, %v3000_v58  ;;  %v3584_v10 = vmul.f32 %v12207_v54, %v15409_v17  ;;  %v2213_v59 = vadd.f32 %v2197_v40, %v2063_v24  ;;  %v2347_v7 = vmul.f32 %v15549_v26, %v15547_v41  ;;  %v15557_v17 = vld [vmem:[#allocation63_spill] sm:$0xff]  ;;  %v15558_v34 = vld [vmem:[#allocation212_spill] sm:$0xff]  ;;  %v15559_v53 = vld [vmem:[#allocation90_spill] sm:$0xff] }
 0x378   : > { %v2364_v46 = vadd.f32 %v2348_v33, %v2214_v25  ;;  %v2497_v11 = vmul.f32 %v15551_v52, %v15550_v63  ;;  %v2498_v48 = vmul.f32 %v15552_v6, %v15550_v63  ;;  %v2647_v16 = vmul.f32 %v15554_v13, %v15553_v22  ;;  %v15560_v24 = vld [vmem:[#allocation160_spill] sm:$0xff]  ;;  %v15561_v40 = vld [vmem:[#allocation162_spill] sm:$0xff] }
 0x379   : > { %v2363_v3 = vadd.f32 %v2347_v7, %v2213_v59  ;;  %v2648_v56 = vmul.f32 %v15555_v18, %v15553_v22  ;;  %v2797_v23 = vmul.f32 %v15557_v17, %v15556_v20  ;;  %v2798_v58 = vmul.f32 %v15558_v34, %v15556_v20  ;;  %v15563_v25 = vld [vmem:[#allocation62_spill] sm:$0xff]  ;;  %v15566_v34 = vld [vmem:[#allocation91_spill] sm:$0xff] }
 0x37a   : > { %v2514_v9 = vadd.f32 %v2498_v48, %v2364_v46  ;;  %v2947_v55 = vmul.f32 %v15560_v24, %v15559_v53  ;;  %v3824_v12 = vmul.f32 %v12199_v37, %v15561_v40  ;;  %v3825_v8 = vmul.f32 %v15563_v25, %v15562_v14  ;;  %v15564_v26 = vld [vmem:[#allocation18_spill] sm:$0xff] }
 0x37b   : > { %v3300_v33 = vadd.f32 %v3284_v57, %v3150_v28  ;;  %v2513_v59 = vadd.f32 %v2497_v11, %v2363_v3  ;;  %v1299_v7 = vmul.f32 %v15564_v26, %v15441_v36  ;;  %v1300_v52 = vmul.f32 %v12103_v43, %v15441_v36  ;;  %v15565_v46 = vld [vmem:[#allocation50_spill] sm:$0xff]  ;;  %v15567_v57 = vld [vmem:[#allocation92_spill] sm:$0xff]  ;;  %v15568_v28 = vld [vmem:[#allocation47_spill] sm:$0xff] }
 0x37c   : > { %v2664_v6 = vadd.f32 %v2648_v56, %v2514_v9  ;;  %v3866_v13 = vpack.c.bf16 %v3825_v8, %v3824_v12  ;;  %v1449_v48 = vmul.f32 %v15565_v46, %v15444_v45  ;;  %v1450_v18 = vmul.f32 %v12109_v35, %v15444_v45  ;;  %v15569_v3 = vld [vmem:[#allocation183_spill] sm:$0xff]  ;;  %v15570_v45 = vld [vmem:[#allocation213_spill] sm:$0xff] }
 0x37d   : > { %v2663_v17 = vadd.f32 %v2647_v16, %v2513_v59  ;;  %v2948_v24 = vmul.f32 %v15566_v34, %v15559_v53  ;;  %v3097_v11 = vmul.f32 %v15568_v28, %v15567_v57  ;;  %v1599_v40 = vmul.f32 %v15569_v3, %v15446_v44  ;;  %v15571_v16 = vld [vmem:[#allocation208_spill] sm:$0xff]  ;;  %v15577_v3 = vld [vmem:[#allocation215_spill] sm:$0xff] }
 0x37e   : > { %v2814_v14 = vadd.f32 %v2798_v58, %v2664_v6  ;;  %3954 = vmatmul.bf16.gmra.mxu2 %v3866_v13  ;;  %v1465_v36 = vadd.f32 %v1449_v48, %v1299_v7  ;;  %v1466_v43 = vadd.f32 %v1450_v18, %v1300_v52  ;;  %v1600_v56 = vmul.f32 %v12113_v0, %v15446_v44  ;;  %v3925_v6 = vpop.f32.mrf.mxu2  ;;  %v7575_v7 = vld [vmem:[#allocation6 + $0x8] sm:$0xff]  ;;  %v15572_v13 = vld [vmem:[#allocation74_spill] sm:$0xff] }
 0x37f   : > { %v3450_v9 = vadd.f32 %v3434_v39, %v3300_v33  ;;  %v2813_v12 = vadd.f32 %v2797_v23, %v2663_v17  ;;  %v3098_v35 = vmul.f32 %v15570_v45, %v15567_v57  ;;  %v1749_v8 = vmul.f32 %v15571_v16, %v15451_v30  ;;  %v15573_v48 = vld [vmem:[#allocation222_spill] sm:$0xff]  ;;  %v15575_v23 = vld [vmem:[#allocation199_spill] sm:$0xff]  ;;  %4163 = vmatpush.bf16.msra.mxu3 %v7575_v7 }
 0x380   : > { %v2964_v59 = vadd.f32 %v2948_v24, %v2814_v14  ;;  %v1615_v26 = vadd.f32 %v1599_v40, %v1465_v36  ;;  %v1616_v46 = vadd.f32 %v1600_v56, %v1466_v43  ;;  %v1750_v58 = vmul.f32 %v12117_v51, %v15451_v30  ;;  %v15574_v0 = vld [vmem:[#allocation214_spill] sm:$0xff]  ;;  %v7574_v30 = vld [vmem:[#allocation6] sm:$0xff] }
 0x381   : > { %v2963_v52 = vadd.f32 %v2947_v55, %v2813_v12  ;;  %v3247_v44 = vmul.f32 %v15573_v48, %v15572_v13  ;;  %v3248_v39 = vmul.f32 %v15574_v0, %v15572_v13  ;;  %v1899_v33 = vmul.f32 %v15575_v23, %v15457_v49  ;;  %v15576_v55 = vld [vmem:[#allocation95_spill] sm:$0xff]  ;;  %v15579_v16 = vld [vmem:[#allocation198_spill] sm:$0xff]  ;;  %v15584_v48 = vld [vmem:[#allocation169_spill] sm:$0xff] }
 0x382   : > { %v3114_v18 = vadd.f32 %v3098_v35, %v2964_v59  ;;  %v1765_v17 = vadd.f32 %v1749_v8, %v1615_v26  ;;  %v1766_v34 = vadd.f32 %v1750_v58, %v1616_v46  ;;  %v1900_v24 = vmul.f32 %v12125_v21, %v15457_v49  ;;  %v15578_v14 = vld [vmem:[#allocation223_spill] sm:$0xff]  ;;  %v15581_v8 = vld [vmem:[#allocation217_spill] sm:$0xff] }
 0x383   : > { %v3600_v51 = vadd.f32 %v3584_v10, %v3450_v9  ;;  %v3113_v28 = vadd.f32 %v3097_v11, %v2963_v52  ;;  %v3398_v40 = vmul.f32 %v15577_v3, %v15576_v55  ;;  %v2049_v36 = vmul.f32 %v15578_v14, %v15534_v1  ;;  %v15580_v21 = vld [vmem:[#allocation75_spill] sm:$0xff]  ;;  %v15582_v11 = vld [vmem:[#allocation210_spill] sm:$0xff]  ;;  %4164 = vmatpush.bf16.msra.mxu3 %v7574_v30 }
 0x384   : > { %v3264_v43 = vadd.f32 %v3248_v39, %v3114_v18  ;;  %v1915_v56 = vadd.f32 %v1899_v33, %v1765_v17  ;;  %v1916_v12 = vadd.f32 %v1900_v24, %v1766_v34  ;;  %v2050_v45 = vmul.f32 %v12129_v31, %v15534_v1  ;;  %v15583_v7 = vld [vmem:[#allocation11_spill] sm:$0xff] }
 0x385   : > { %v3263_v35 = vadd.f32 %v3247_v44, %v3113_v28  ;;  %v3397_v49 = vmul.f32 %v15579_v16, %v15576_v55  ;;  %v3548_v10 = vmul.f32 %v15581_v8, %v15580_v21  ;;  %v2199_v9 = vmul.f32 %v15582_v11, %v15541_v61  ;;  %v8601_v30 = vld [vmem:[%s8854_s27 + $0x60] sm:$0xff]  ;;  %v8602_v28 = vld [vmem:[%s8854_s27 + $0x68] sm:$0xff] }
 0x386   : > { %v3414_v59 = vadd.f32 %v3398_v40, %v3264_v43  ;;  %v2065_v26 = vadd.f32 %v2049_v36, %v1915_v56  ;;  %v2066_v46 = vadd.f32 %v2050_v45, %v1916_v12  ;;  %v2200_v58 = vmul.f32 %v12134_v42, %v15541_v61  ;;  %v3927_v42 = vpop.f32.mrf.mxu2  ;;  %v15586_v40 = vld [vmem:[#allocation200_spill] sm:$0xff]  ;;  %v15587_v43 = vld [vmem:[#allocation195_spill] sm:$0xff]  ;;  %v15588_v12 = vld [vmem:[#allocation158_spill] sm:$0xff] }
 0x387   : > { %v12295_v31 = vmul.f32 %v3600_v51, %v12214_v15  ;;  %v3413_v1 = vadd.f32 %v3397_v49, %v3263_v35  ;;  %v3547_v52 = vmul.f32 %v15583_v7, %v15580_v21  ;;  %v2349_v44 = vmul.f32 %v15584_v48, %v15547_v41  ;;  %v15585_v15 = vld [vmem:[#allocation174_spill] sm:$0xff] }
 0x388   : > { %v3564_v0 = vadd.f32 %v3548_v10, %v3414_v59  ;;  %v2215_v39 = vadd.f32 %v2199_v9, %v2065_v26  ;;  %v2216_v23 = vadd.f32 %v2200_v58, %v2066_v46  ;;  %v2350_v33 = vmul.f32 %v12139_v32, %v15547_v41  ;;  %v15590_v9 = vld [vmem:[#allocation184_spill] sm:$0xff]  ;;  %v15592_v48 = vld [vmem:[#allocation186_spill] sm:$0xff] }
 0x389   : > { %v3563_v61 = vadd.f32 %v3547_v52, %v3413_v1  ;;  %v2499_v34 = vmul.f32 %v15585_v15, %v15550_v63  ;;  %v2500_v24 = vmul.f32 %v12150_v60, %v15550_v63  ;;  %v2649_v14 = vmul.f32 %v15586_v40, %v15553_v22  ;;  %v15589_v60 = vld [vmem:[#allocation85_spill] sm:$0xff]  ;;  %v15591_v1 = vld [vmem:[#allocation14_spill] sm:$0xff] }
 0x38a   : > { %v2365_v18 = vadd.f32 %v2349_v44, %v2215_v39  ;;  %v2366_v17 = vadd.f32 %v2350_v33, %v2216_v23  ;;  %v3712_v3 = vmul.f32 %v8602_v28, %v3564_v0  ;;  %v2650_v32 = vmul.f32 %v12157_v50, %v15553_v22  ;;  %v15593_v39 = vld [vmem:[#allocation60_spill] sm:$0xff]  ;;  %v15595_v15 = vld [vmem:[#allocation22_spill] sm:$0xff] }
 0x38b   : > { %v3711_v51 = vmul.f32 %v8601_v30, %v3563_v61  ;;  %v3826_v56 = vmul.f32 %v12210_v29, %v15587_v43  ;;  %v3827_v45 = vmul.f32 %v12295_v31, %v15588_v12  ;;  %v2799_v63 = vmul.f32 %v15589_v60, %v15556_v20  ;;  %v15597_v30 = vld [vmem:[#allocation137_spill] sm:$0xff]  ;;  %v15600_v43 = vld [vmem:[#allocation35_spill] sm:$0xff] }
 0x38c   : > { %v2515_v41 = vadd.f32 %v2499_v34, %v2365_v18  ;;  %v2516_v36 = vadd.f32 %v2500_v24, %v2366_v17  ;;  %v4049_v16 = vpack.c.bf16 %v3927_v42, %v3925_v6  ;;  %v2800_v10 = vmul.f32 %v12162_v5, %v15556_v20  ;;  %v15596_v24 = vld [vmem:[#allocation17_spill] sm:$0xff] }
 0x38d   : > { %v3721_v35 = vpack.c.bf16 %v3712_v3, %v3711_v51  ;;  %v3867_v11 = vpack.c.bf16 %v3827_v45, %v3826_v56  ;;  %v2949_v59 = vmul.f32 %v15590_v9, %v15559_v53  ;;  %v2950_v26 = vmul.f32 %v12167_v62, %v15559_v53  ;;  %v8603_v3 = vld [vmem:[%s8854_s27 + $0x70] sm:$0xff]  ;;  %v15601_v56 = vld [vmem:[#allocation139_spill] sm:$0xff] }
 0x38e   : > { %v2665_v49 = vadd.f32 %v2649_v14, %v2515_v41  ;;  %v2666_v8 = vadd.f32 %v2650_v32, %v2516_v36  ;;  %7449 = vmatmul.msk.bf16.vlgmr.msra.gmra.mxu3 %vm3625_vm0, %v4049_v16  ;;  %v3930_v46 = vpop.f32.mrf.mxu2  ;;  %v3099_v7 = vmul.f32 %v15591_v1, %v15567_v57  ;;  %v3100_v5 = vmul.f32 %v12172_v19, %v15567_v57  ;;  %v15599_v41 = vld [vmem:[#allocation82_spill] sm:$0xff]  ;;  %v15602_v16 = vld [vmem:[#allocation9_spill] sm:$0xff] }
 0x38f   : > { %3769 = vmatmul.bf16.gmra.mxu1 %v3721_v35  ;;  %3959 = vmatmul.bf16.gmra.mxu2 %v3867_v11  ;;  %v3249_v44 = vmul.f32 %v15592_v48, %v15572_v13  ;;  %v3250_v0 = vmul.f32 %v12184_v2, %v15572_v13  ;;  %v3399_v23 = vmul.f32 %v15593_v39, %v15576_v55  ;;  %v15594_v13 = vld [vmem:[#allocation10_spill] sm:$0xff]  ;;  %v15605_v11 = vld [vmem:[#allocation116_spill] sm:$0xff]  ;;  %v15609_v1 = vld [vmem:[#allocation117_spill] sm:$0xff] }
 0x390   : > { %v2815_v50 = vadd.f32 %v2799_v63, %v2665_v49  ;;  %v2816_v22 = vadd.f32 %v2800_v10, %v2666_v8  ;;  %v3400_v33 = vmul.f32 %v12195_v38, %v15576_v55  ;;  %v3549_v57 = vmul.f32 %v12038_v27, %v15580_v21  ;;  %v8604_v55 = vld [vmem:[%s8854_s27 + $0x78] sm:$0xff]  ;;  %v15603_v49 = vld [vmem:[#allocation115_spill] sm:$0xff]  ;;  %v15604_v10 = vld [vmem:[#allocation101_spill] sm:$0xff]  ;;  %s8714_s27 = smov 32  }
 0x391   : > { %v3550_v61 = vmul.f32 %v12207_v54, %v15580_v21  ;;  %v3828_v34 = vmul.f32 %v15595_v15, %v15594_v13  ;;  %v3829_v51 = vmul.f32 %v15597_v30, %v15596_v24  ;;  %v15598_v21 = vld [vmem:[#allocation32_spill] sm:$0xff]  ;;  %v3831_v12 = vmul.f32 %v15601_v56, %v15600_v43  ;;  %v15610_v48 = vld [vmem:[#allocation182_spill] sm:$0xff] }
 0x392   : > { %v2965_v6 = vadd.f32 %v2949_v59, %v2815_v50  ;;  %v2966_v58 = vadd.f32 %v2950_v26, %v2816_v22  ;;  %v3830_v36 = vmul.f32 %v15599_v41, %v15598_v21  ;;  %v3832_v8 = vmul.f32 %v15603_v49, %v15602_v16  ;;  %v15606_v26 = vld [vmem:[#allocation136_spill] sm:$0xff]  ;;  %v15616_v13 = vld [vmem:[#allocation150_spill] sm:$0xff] }
 0x393   : > { %v3868_v32 = vpack.c.bf16 %v3829_v51, %v3828_v34  ;;  %v3833_v50 = vmul.f32 %v15605_v11, %v15604_v10  ;;  %v3840_v34 = vmul.f32 %v12199_v37, %v15616_v13  ;;  %v15617_v24 = vld [vmem:[#allocation140_spill] sm:$0xff] }
 0x394   : > { %v3115_v20 = vadd.f32 %v3099_v7, %v2965_v6  ;;  %v3116_v52 = vadd.f32 %v3100_v5, %v2966_v58  ;;  %v3869_v35 = vpack.c.bf16 %v3831_v12, %v3830_v36  ;;  %v15608_v58 = vld [vmem:[#allocation130_spill] sm:$0xff]  ;;  %v3841_v51 = vmul.f32 %v15563_v25, %v15617_v24  ;;  %v15620_v36 = vld [vmem:[#allocation13_spill] sm:$0xff]  ;;  %v15621_v12 = vld [vmem:[#allocation20_spill] sm:$0xff] }
 0x395   : > { %v3870_v9 = vpack.c.bf16 %v3833_v50, %v3832_v8  ;;  %v3835_v7 = vmul.f32 %v15609_v1, %v15608_v58  ;;  %v3844_v43 = vmul.f32 %v15595_v15, %v15620_v36  ;;  %v15622_v50 = vld [vmem:[#allocation38_spill] sm:$0xff]  ;;  %v15632_v36 = vld [vmem:[#allocation153_spill] sm:$0xff] }
 0x396   : > { %v3265_v62 = vadd.f32 %v3249_v44, %v3115_v20  ;;  %v3266_v53 = vadd.f32 %v3250_v0, %v3116_v52  ;;  %v3932_v18 = vpop.f32.mrf.mxu2  ;;  %v15611_v44 = vld [vmem:[#allocation135_spill] sm:$0xff] }
 0x397   : > { %v4050_v28 = vpack.c.bf16 %v3932_v18, %v3930_v46  ;;  %v15607_v46 = vld [vmem:[#allocation119_spill] sm:$0xff]  ;;  %v3836_v0 = vmul.f32 %v15611_v44, %v15610_v48 }
 0x398   : > { %v3415_v42 = vadd.f32 %v3399_v23, %v3265_v62  ;;  %v3416_v19 = vadd.f32 %v3400_v33, %v3266_v53  ;;  %v3834_v6 = vmul.f32 %v15607_v46, %v15606_v26  ;;  %v15612_v62 = vld [vmem:[#allocation167_spill] sm:$0xff]  ;;  %v15613_v53 = vld [vmem:[#allocation134_spill] sm:$0xff] }
 0x399   : > { %v3837_v39 = vmul.f32 %v15613_v53, %v15612_v62  ;;  %v15614_v33 = vld [vmem:[#allocation111_spill] sm:$0xff] }
 0x39a   : > { %v3565_v17 = vadd.f32 %v3549_v57, %v3415_v42  ;;  %v3566_v2 = vadd.f32 %v3550_v61, %v3416_v19  ;;  %v3871_v5 = vpack.c.bf16 %v3835_v7, %v3834_v6  ;;  %v3838_v42 = vmul.f32 %v15523_v47, %v15614_v33  ;;  %v15615_v19 = vld [vmem:[#allocation105_spill] sm:$0xff] }
 0x39b   : > { %v3872_v23 = vpack.c.bf16 %v3837_v39, %v3836_v0  ;;  %v3839_v57 = vmul.f32 %v15525_v4, %v15615_v19 }
 0x39c   : > { %v3713_v38 = vmul.f32 %v8603_v3, %v3565_v17  ;;  %v3714_v40 = vmul.f32 %v8604_v55, %v3566_v2 }
 0x39d   : > { %v3873_v61 = vpack.c.bf16 %v3839_v57, %v3838_v42  ;;  %v15627_v42 = vld [vmem:[#allocation145_spill] sm:$0xff] }
 0x39e   : > { %v3722_v14 = vpack.c.bf16 %v3714_v40, %v3713_v38  ;;  %7450 = vmatmul.msk.bf16.gmra.mxu3 %vm3625_vm0, %v4050_v28  ;;  %v3935_v27 = vpop.f32.mrf.mxu2  ;;  %v3874_v28 = vpack.c.bf16 %v3841_v51, %v3840_v34  ;;  %v15618_v40 = vld [vmem:[#allocation79_spill] sm:$0xff]  ;;  %v3850_v19 = vmul.f32 %v15607_v46, %v15627_v42 }
 0x39f   : > { %3964 = vmatmul.bf16.gmra.mxu2 %v3868_v32  ;;  %v15619_v32 = vld [vmem:[#allocation193_spill] sm:$0xff]  ;;  %v15629_v34 = vld [vmem:[#allocation187_spill] sm:$0xff] }
 0x3a0   : > { %3774 = vmatmul.bf16.gmra.mxu1 %v3722_v14  ;;  %v3843_v14 = vmul.f32 %v12295_v31, %v15618_v40 }
 0x3a6   : > { %v3937_v54 = vpop.f32.mrf.mxu2 }
 0x3a7   : > { %v4051_v45 = vpack.c.bf16 %v3937_v54, %v3935_v27  ;;  %v3842_v27 = vmul.f32 %v12210_v29, %v15619_v32  ;;  %v15631_v32 = vld [vmem:[#allocation107_spill] sm:$0xff] }
 0x3a9   : > { %v3875_v54 = vpack.c.bf16 %v3843_v14, %v3842_v27 }
 0x3ae   : > { %7451 = vmatmul.msk.bf16.gmra.mxu3 %vm3625_vm0, %v4051_v45  ;;  %v3940_v60 = vpop.f32.mrf.mxu2  ;;  %v3845_v45 = vmul.f32 %v15597_v30, %v15621_v12 }
 0x3af   : > { %3969 = vmatmul.bf16.gmra.mxu2 %v3869_v35 }
 0x3b0   : > { %v3876_v16 = vpack.c.bf16 %v3845_v45, %v3844_v43  ;;  %v3856_v43 = vmul.f32 %v12199_v37, %v15632_v36  ;;  %v15633_v45 = vld [vmem:[#allocation144_spill] sm:$0xff] }
 0x3b6   : > { %v3942_v63 = vpop.f32.mrf.mxu2 }
 0x3b7   : > { %v4052_v22 = vpack.c.bf16 %v3942_v63, %v3940_v60 }
 0x3be   : > { %7452 = vmatmul.msk.bf16.gmra.mxu3 %vm3625_vm0, %v4052_v22  ;;  %v3945_v59 = vpop.f32.mrf.mxu2  ;;  %v3846_v22 = vmul.f32 %v15599_v41, %v15622_v50  ;;  %v15634_v50 = vld [vmem:[#allocation206_spill] sm:$0xff] }
 0x3bf   : > { %3974 = vmatmul.bf16.gmra.mxu2 %v3870_v9  ;;  %v15623_v9 = vld [vmem:[#allocation42_spill] sm:$0xff] }
 0x3c0   : > { %v3847_v15 = vmul.f32 %v15601_v56, %v15623_v9 }
 0x3c2   : > { %v3877_v30 = vpack.c.bf16 %v3847_v15, %v3846_v22  ;;  %v3859_v22 = vmul.f32 %v12295_v31, %v15634_v50  ;;  %v15635_v15 = vld [vmem:[#allocation44_spill] sm:$0xff] }
 0x3c3   : > { %v3858_v37 = vmul.f32 %v12210_v29, %v15635_v15 }
 0x3c6   : > { %v3947_v20 = vpop.f32.mrf.mxu2 }
 0x3c7   : > { %v4053_v52 = vpack.c.bf16 %v3947_v20, %v3945_v59 }
 0x3ce   : > { %7453 = vmatmul.msk.bf16.gmra.mxu3 %vm3625_vm0, %v4053_v52  ;;  %v15625_v52 = vld [vmem:[#allocation110_spill] sm:$0xff] }
 0x3cf   : > { %3979 = vmatmul.bf16.gmra.mxu2 %v3871_v5  ;;  %v15624_v5 = vld [vmem:[#allocation12_spill] sm:$0xff]  ;;  %v3849_v41 = vmul.f32 %v15605_v11, %v15625_v52 }
 0x3d0   : > { %v3848_v20 = vmul.f32 %v15603_v49, %v15624_v5 }
 0x3d2   : > { %v3878_v56 = vpack.c.bf16 %v3849_v41, %v3848_v20 }
 0x3df   : > { %3984 = vmatmul.bf16.gmra.mxu2 %v3872_v23  ;;  %v15626_v23 = vld [vmem:[#allocation132_spill] sm:$0xff] }
 0x3e0   : > { %v3851_v33 = vmul.f32 %v15609_v1, %v15626_v23  ;;  %v3852_v1 = vmul.f32 %v15611_v44, %v15629_v34 }
 0x3e2   : > { %v3879_v11 = vpack.c.bf16 %v3851_v33, %v3850_v19 }
 0x3ef   : > { %3989 = vmatmul.bf16.gmra.mxu2 %v3873_v61 }
 0x3f0   : > { %v3950_v18 = vpop.f32.mrf.mxu2 }
 0x3f8   : > { %v3952_v17 = vpop.f32.mrf.mxu2 }
 0x3f9   : > { %v4054_v2 = vpack.c.bf16 %v3952_v17, %v3950_v18 }
 0x3fb   : > { %7454 = vmatmul.msk.bf16.gmra.mxu3 %vm3625_vm0, %v4054_v2  ;;  %v15628_v2 = vld [vmem:[#allocation173_spill] sm:$0xff] }
 0x3fc   : > { %v3853_v13 = vmul.f32 %v15613_v53, %v15628_v2  ;;  %v3855_v53 = vmul.f32 %v15525_v4, %v15631_v32 }
 0x3fe   : > { %v3880_v46 = vpack.c.bf16 %v3853_v13, %v3852_v1 }
 0x3ff   : > { %3994 = vmatmul.bf16.gmra.mxu2 %v3874_v28 }
 0x401   : > { %v3955_v3 = vpop.f32.mrf.mxu2 }
 0x409   : > { %v3957_v38 = vpop.f32.mrf.mxu2 }
 0x40a   : > { %v4055_v55 = vpack.c.bf16 %v3957_v38, %v3955_v3  ;;  %v15630_v38 = vld [vmem:[#allocation113_spill] sm:$0xff] }
 0x40c   : > { %7455 = vmatmul.msk.bf16.gmra.mxu3 %vm3625_vm0, %v4055_v55  ;;  %v3854_v55 = vmul.f32 %v15523_v47, %v15630_v38  ;;  %v3857_v47 = vmul.f32 %v15563_v25, %v15633_v45  ;;  %v3883_v25 = vpack.c.bf16 %v3859_v22, %v3858_v37 }
 0x40e   : > { %v3881_v44 = vpack.c.bf16 %v3855_v53, %v3854_v55  ;;  %v3882_v4 = vpack.c.bf16 %v3857_v47, %v3856_v43 }
 0x40f   : > { %3999 = vmatmul.bf16.gmra.mxu2 %v3875_v54 }
 0x411   : > { %v12386_v35 = vpop.f32.mrf.mxu3 }
 0x412   : > { %v3960_v21 = vpop.f32.mrf.mxu2  ;;  %v4286_v15 = vmul.f32 %v12386_v35, %v12386_v35 }
 0x419   : > { %v12389_v10 = vpop.f32.mrf.mxu3 }
 0x41a   : > { %v3962_v60 = vpop.f32.mrf.mxu2 }
 0x41b   : > { %v4056_v63 = vpack.c.bf16 %v3962_v60, %v3960_v21 }
 0x41d   : > { %7456 = vmatmul.msk.bf16.gmra.mxu3 %vm3625_vm0, %v4056_v63 }
 0x41f   : > { %4004 = vmatmul.bf16.gmra.mxu2 %v3876_v16 }
 0x421   : > { %v12396_v6 = vpop.f32.mrf.mxu3 }
 0x422   : > { %v3965_v8 = vpop.f32.mrf.mxu2 }
 0x429   : > { %v12398_v7 = vpop.f32.mrf.mxu3 }
 0x42a   : > { %v3967_v59 = vpop.f32.mrf.mxu2 }
 0x42b   : > { %v4057_v26 = vpack.c.bf16 %v3967_v59, %v3965_v8 }
 0x42d   : > { %7457 = vmatmul.msk.bf16.gmra.mxu3 %vm3625_vm0, %v4057_v26 }
 0x42f   : > { %4009 = vmatmul.bf16.gmra.mxu2 %v3877_v30 }
 0x431   : > { %v12405_v62 = vpop.f32.mrf.mxu3 }
 0x432   : > { %v3970_v58 = vpop.f32.mrf.mxu2 }
 0x439   : > { %v12411_v61 = vpop.f32.mrf.mxu3 }
 0x43a   : > { %v3972_v48 = vpop.f32.mrf.mxu2 }
 0x43b   : > { %v4058_v0 = vpack.c.bf16 %v3972_v48, %v3970_v58 }
 0x43d   : > { %7458 = vmatmul.msk.bf16.gmra.mxu3 %vm3625_vm0, %v4058_v0 }
 0x43f   : > { %4014 = vmatmul.bf16.gmra.mxu2 %v3878_v56 }
 0x441   : > { %v12414_v17 = vpop.f32.mrf.mxu3 }
 0x442   : > { %v3975_v39 = vpop.f32.mrf.mxu2 }
 0x449   : > { %v12421_v28 = vpop.f32.mrf.mxu3 }
 0x44a   : > { %v3977_v57 = vpop.f32.mrf.mxu2 }
 0x44b   : > { %v4059_v49 = vpack.c.bf16 %v3977_v57, %v3975_v39 }
 0x44d   : > { %7459 = vmatmul.msk.bf16.gmra.mxu3 %vm3625_vm0, %v4059_v49 }
 0x44f   : > { %4019 = vmatmul.bf16.gmra.mxu2 %v3879_v11 }
 0x451   : > { %v12425_v40 = vpop.f32.mrf.mxu3 }
 0x452   : > { %v3980_v18 = vpop.f32.mrf.mxu2 }
 0x459   : > { %v12430_v21 = vpop.f32.mrf.mxu3 }
 0x45a   : > { %v3982_v24 = vpop.f32.mrf.mxu2 }
 0x45b   : > { %v4060_v51 = vpack.c.bf16 %v3982_v24, %v3980_v18 }
 0x45d   : > { %7460 = vmatmul.msk.bf16.gmra.mxu3 %vm3625_vm0, %v4060_v51 }
 0x45f   : > { %4024 = vmatmul.bf16.gmra.mxu2 %v3880_v46 }
 0x462   : > { %v3985_v3 = vpop.f32.mrf.mxu2 }
 0x46a   : > { %v3987_v14 = vpop.f32.mrf.mxu2 }
 0x46b   : > { %v4061_v27 = vpack.c.bf16 %v3987_v14, %v3985_v3 }
 0x46d   : > { %7461 = vmatmul.msk.bf16.gmra.mxu3 %vm3625_vm0, %v4061_v27 }
 0x46f   : > { %4029 = vmatmul.bf16.gmra.mxu2 %v3881_v44 }
 0x472   : > { %v3990_v54 = vpop.f32.mrf.mxu2 }
 0x47a   : > { %v3992_v12 = vpop.f32.mrf.mxu2 }
 0x47b   : > { %v4062_v60 = vpack.c.bf16 %v3992_v12, %v3990_v54 }
 0x47d   : > { %7462 = vmatmul.msk.bf16.gmra.mxu3 %vm3625_vm0, %v4062_v60 }
 0x47e   : > { %v12436_v63 = vpop.f32.mrf.mxu3 }
 0x47f   : > { %4034 = vmatmul.bf16.gmra.mxu2 %v3882_v4 }
 0x482   : > { %v3995_v16 = vpop.f32.mrf.mxu2 }
 0x486   : > { %v12439_v8 = vpop.f32.mrf.mxu3 }
 0x48a   : > { %v3997_v9 = vpop.f32.mrf.mxu2 }
 0x48b   : > { %v4063_v59 = vpack.c.bf16 %v3997_v9, %v3995_v16 }
 0x48d   : > { %7463 = vmatmul.msk.bf16.gmra.mxu3 %vm3625_vm0, %v4063_v59 }
 0x48f   : > { %v12446_v26 = vpop.f32.mrf.mxu3  ;;  %4039 = vmatmul.bf16.gmra.mxu2 %v3883_v25 }
 0x492   : > { %v4000_v30 = vpop.f32.mrf.mxu2 }
 0x497   : > { %v12448_v58 = vpop.f32.mrf.mxu3 }
 0x49a   : > { %v4002_v5 = vpop.f32.mrf.mxu2 }
 0x49b   : > { %v4064_v20 = vpack.c.bf16 %v4002_v5, %v4000_v30 }
 0x49d   : > { %7464 = vmatmul.msk.bf16.gmra.mxu3 %vm3625_vm0, %v4064_v20  ;;  %v4287_v20 = vmul.f32 %v12389_v10, %v12389_v10 }
 0x4a0   : > { %v12451_v52 = vpop.f32.mrf.mxu3 }
 0x4a2   : > { %v4005_v31 = vpop.f32.mrf.mxu2 }
 0x4a8   : > { %v12453_v41 = vpop.f32.mrf.mxu3 }
 0x4a9   : > { %15636 = vst [vmem:[#allocation36_spill] sm:$0xff] %v12453_v41 }
 0x4aa   : > { %v4007_v29 = vpop.f32.mrf.mxu2 }
 0x4ab   : > { %v4065_v48 = vpack.c.bf16 %v4007_v29, %v4005_v31 }
 0x4ad   : > { %7465 = vmatmul.msk.bf16.gmra.mxu3 %vm3625_vm0, %v4065_v48 }
 0x4b0   : > { %v12456_v0 = vpop.f32.mrf.mxu3 }
 0x4b1   : > { %v4302_v9 = vmul.f32 %v12456_v0, %v12456_v0 }
 0x4b2   : > { %v4010_v56 = vpop.f32.mrf.mxu2 }
 0x4b3   : > { %v4318_v59 = vadd.f32 %v4302_v9, %v4286_v15 }
 0x4b8   : > { %v12458_v39 = vpop.f32.mrf.mxu3 }
 0x4b9   : > { %v4303_v5 = vmul.f32 %v12458_v39, %v12458_v39 }
 0x4ba   : > { %v4012_v23 = vpop.f32.mrf.mxu2 }
 0x4bb   : > { %v4066_v33 = vpack.c.bf16 %v4012_v23, %v4010_v56  ;;  %v4319_v29 = vadd.f32 %v4303_v5, %v4287_v20 }
 0x4bd   : > { %7466 = vmatmul.msk.bf16.gmra.mxu3 %vm3625_vm0, %v4066_v33 }
 0x4c0   : > { %v12461_v42 = vpop.f32.mrf.mxu3 }
 0x4c2   : > { %v4015_v19 = vpop.f32.mrf.mxu2 }
 0x4c8   : > { %v12463_v57 = vpop.f32.mrf.mxu3 }
 0x4ca   : > { %v4017_v49 = vpop.f32.mrf.mxu2 }
 0x4cb   : > { %v4067_v11 = vpack.c.bf16 %v4017_v49, %v4015_v19  ;;  %v4304_v19 = vmul.f32 %v12461_v42, %v12461_v42 }
 0x4cd   : > { %7467 = vmatmul.msk.bf16.gmra.mxu3 %vm3625_vm0, %v4067_v11  ;;  %v4288_v11 = vmul.f32 %v12396_v6, %v12396_v6 }
 0x4d0   : > { %v12466_v18 = vpop.f32.mrf.mxu3 }
 0x4d1   : > { %15637 = vst [vmem:[#allocation31_spill] sm:$0xff] %v12466_v18 }
 0x4d2   : > { %v4020_v2 = vpop.f32.mrf.mxu2 }
 0x4d8   : > { %v12468_v13 = vpop.f32.mrf.mxu3 }
 0x4d9   : > { %15638 = vst [vmem:[#allocation34_spill] sm:$0xff] %v12468_v13 }
 0x4da   : > { %v4022_v34 = vpop.f32.mrf.mxu2 }
 0x4db   : > { %v4068_v1 = vpack.c.bf16 %v4022_v34, %v4020_v2 }
 0x4dd   : > { %7468 = vmatmul.msk.bf16.gmra.mxu3 %vm3625_vm0, %v4068_v1  ;;  %v4320_v1 = vadd.f32 %v4304_v19, %v4288_v11 }
 0x4e0   : > { %v12471_v24 = vpop.f32.mrf.mxu3 }
 0x4e2   : > { %v4025_v51 = vpop.f32.mrf.mxu2 }
 0x4e8   : > { %v12473_v46 = vpop.f32.mrf.mxu3 }
 0x4ea   : > { %v4027_v3 = vpop.f32.mrf.mxu2 }
 0x4eb   : > { %v4069_v38 = vpack.c.bf16 %v4027_v3, %v4025_v51 }
 0x4ed   : > { %7469 = vmatmul.msk.bf16.gmra.mxu3 %vm3625_vm0, %v4069_v38 }
 0x4f0   : > { %v12476_v55 = vpop.f32.mrf.mxu3 }
 0x4f2   : > { %v4030_v14 = vpop.f32.mrf.mxu2 }
 0x4f8   : > { %v12478_v32 = vpop.f32.mrf.mxu3 }
 0x4fa   : > { %v4032_v53 = vpop.f32.mrf.mxu2 }
 0x4fb   : > { %v4070_v27 = vpack.c.bf16 %v4032_v53, %v4030_v14 }
 0x4fd   : > { %7470 = vmatmul.msk.bf16.gmra.mxu3 %vm3625_vm0, %v4070_v27  ;;  %v4305_v27 = vmul.f32 %v12463_v57, %v12463_v57 }
 0x500   : > { %v12481_v44 = vpop.f32.mrf.mxu3 }
 0x501   : > { %15639 = vst [vmem:[#allocation164_spill] sm:$0xff] %v12481_v44 }
 0x502   : > { %v4035_v54 = vpop.f32.mrf.mxu2 }
 0x508   : > { %v12483_v36 = vpop.f32.mrf.mxu3 }
 0x509   : > { %15640 = vst [vmem:[#allocation39_spill] sm:$0xff] %v12483_v36 }
 0x50a   : > { %v4037_v43 = vpop.f32.mrf.mxu2 }
 0x50b   : > { %v4071_v12 = vpack.c.bf16 %v4037_v43, %v4035_v54 }
 0x50d   : > { %7471 = vmatmul.msk.bf16.gmra.mxu3 %vm3625_vm0, %v4071_v12  ;;  %v4289_v12 = vmul.f32 %v12398_v7, %v12398_v7 }
 0x510   : > { %v12486_v45 = vpop.f32.mrf.mxu3 }
 0x512   : > { %v4040_v47 = vpop.f32.mrf.mxu2 }
 0x518   : > { %v12488_v60 = vpop.f32.mrf.mxu3 }
 0x51a   : > { %v4042_v4 = vpop.f32.mrf.mxu2 }
 0x51b   : > { %v4072_v16 = vpack.c.bf16 %v4042_v4, %v4040_v47 }
 0x51d   : > { %7472 = vmatmul.msk.bf16.gmra.mxu3 %vm3625_vm0, %v4072_v16  ;;  %v4321_v16 = vadd.f32 %v4305_v27, %v4289_v12 }
 0x520   : > { %v12491_v50 = vpop.f32.mrf.mxu3 }
 0x521   : > { %15641 = vst [vmem:[#allocation141_spill] sm:$0xff] %v12491_v50 }
 0x528   : > { %v12493_v22 = vpop.f32.mrf.mxu3 }
 0x529   : > { %15642 = vst [vmem:[#allocation185_spill] sm:$0xff] %v12493_v22 }
 0x530   : > { %v12499_v37 = vpop.f32.mrf.mxu3 }
 0x531   : > { %v4334_v25 = vmul.f32 %v12499_v37, %v12499_v37 }
 0x533   : > { %v4350_v30 = vadd.f32 %v4334_v25, %v4318_v59 }
 0x535   : > { %8318 = vrsqrt.f32 %v4350_v30  ;;  %vm4373_vm4 = vcmp.eq.f32.partialorder %v4350_v30, inf  ;;  %v4376_v11 = vand.u32 2147483648, %v4350_v30  ;;  %vm4375_vm6 = vcmp.eq.f32.partialorder %v4350_v30, 0.0 }
 0x538   : > { %v12507_v31 = vpop.f32.mrf.mxu3 }
 0x539   : > { %v4335_v48 = vmul.f32 %v12507_v31, %v12507_v31 }
 0x53b   : > { %v8319_v56 = vpop.eup %8318  ;;  %v4351_v23 = vadd.f32 %v4335_v48, %v4319_v29  ;;  %v4306_v48 = vmul.f32 %v12466_v18, %v12466_v18 }
 0x53c   : > { %v4367_v33 = vmul.f32 %v8319_v56, %v4350_v30 }
 0x53d   : > { %8320 = vrsqrt.f32 %v4351_v23  ;;  %vm4385_vm5 = vcmp.eq.f32.partialorder %v4351_v23, inf  ;;  %vm4387_vm7 = vcmp.eq.f32.partialorder %v4351_v23, 0.0 }
 0x53e   : > { %v4368_v49 = vmul.f32 %v8319_v56, %v4367_v33 }
 0x540   : > { %v12515_v2 = vpop.f32.mrf.mxu3  ;;  %v4369_v34 = vmul.f32 0.5, %v4368_v49  ;;  %v4290_v49 = vmul.f32 %v12405_v62, %v12405_v62 }
 0x541   : > { %v4336_v51 = vmul.f32 %v12515_v2, %v12515_v2 }
 0x542   : > { %v4370_v3 = vsub.f32 1.5, %v4369_v34  ;;  %v4388_v34 = vand.u32 2147483648, %v4351_v23 }
 0x543   : > { %v8321_v38 = vpop.eup %8320  ;;  %v12519_v14 = vadd.f32 %v4336_v51, %v4320_v1 }
 0x544   : > { %v4379_v53 = vmul.f32 %v8321_v38, %v4351_v23  ;;  %v4371_v54 = vmul.f32 %v8319_v56, %v4370_v3 }
 0x545   : > { %8322 = vrsqrt.f32 %v12519_v14  ;;  %vm4397_vm8 = vcmp.eq.f32.partialorder %v12519_v14, inf  ;;  %vm4399_vm10 = vcmp.eq.f32.partialorder %v12519_v14, 0.0 }
 0x546   : > { %v4380_v43 = vmul.f32 %v8321_v38, %v4379_v53  ;;  %v4372_v15 = vmul.f32 %v4371_v54, %v4350_v30 }
 0x548   : > { %v12526_v47 = vpop.f32.mrf.mxu3  ;;  %v4381_v4 = vmul.f32 0.5, %v4380_v43  ;;  %v4374_v56 = vsel %vm4373_vm4, %v4350_v30, %v4372_v15  ;;  %v4307_v30 = vmul.f32 %v12468_v13, %v12468_v13 }
 0x549   : > { %v4337_v9 = vmul.f32 %v12526_v47, %v12526_v47  ;;  %v4377_v27 = vsel %vm4375_vm6, %v4376_v11, %v4374_v56 }
 0x54a   : > { %v4382_v59 = vsub.f32 1.5, %v4381_v4 }
 0x54b   : > { %v8323_v25 = vpop.eup %8322  ;;  %v12530_v5 = vadd.f32 %v4337_v9, %v4321_v16 }
 0x54c   : > { %v4383_v20 = vmul.f32 %v8321_v38, %v4382_v59  ;;  %v4391_v29 = vmul.f32 %v8323_v25, %v12519_v14  ;;  %v4322_v38 = vadd.f32 %v4306_v48, %v4290_v49  ;;  %v4291_v59 = vmul.f32 %v12411_v61, %v12411_v61 }
 0x54d   : > { %8324 = vrsqrt.f32 %v12530_v5  ;;  %vm4409_vm9 = vcmp.eq.f32.partialorder %v12530_v5, inf  ;;  %vm4411_vm11 = vcmp.eq.f32.partialorder %v12530_v5, 0.0 }
 0x54e   : > { %v4384_v33 = vmul.f32 %v4383_v20, %v4351_v23  ;;  %v4392_v19 = vmul.f32 %v8323_v25, %v4391_v29  ;;  %v4323_v48 = vadd.f32 %v4307_v30, %v4291_v59 }
 0x550   : > { %v12538_v1 = vpop.f32.mrf.mxu3  ;;  %v4386_v51 = vsel %vm4385_vm5, %v4351_v23, %v4384_v33  ;;  %v4393_v3 = vmul.f32 0.5, %v4392_v19 }
 0x551   : > { %15643 = vst [vmem:[#allocation216_spill] sm:$0xff] %v12538_v1  ;;  %v4338_v53 = vmul.f32 %v12538_v1, %v12538_v1  ;;  %v4389_v54 = vsel %vm4387_vm7, %v4388_v34, %v4386_v51  ;;  %v4308_v51 = vmul.f32 %v12471_v24, %v12471_v24 }
 0x552   : > { %v7689_v43 = vpack.i.bf16 %v4389_v54, %v4377_v27  ;;  %v4394_v12 = vsub.f32 1.5, %v4393_v3  ;;  %v4292_v27 = vmul.f32 %v12414_v17, %v12414_v17  ;;  %v4400_v54 = vand.u32 2147483648, %v12519_v14 }
 0x553   : > { %v8325_v4 = vpop.eup %8324  ;;  %v12542_v16 = vadd.f32 %v4338_v53, %v4322_v38 }
 0x554   : > { %7690 = vrot.lane.b32.xlu2 %v7689_v43, %s8714_s27  ;;  %v4403_v9 = vmul.f32 %v8325_v4, %v12530_v5  ;;  %v4395_v23 = vmul.f32 %v8323_v25, %v4394_v12  ;;  %v4412_v43 = vand.u32 2147483648, %v12530_v5  ;;  %v4324_v30 = vadd.f32 %v4308_v51, %v4292_v27 }
 0x555   : > { %8326 = vrsqrt.f32 %v12542_v16  ;;  %vm4421_vm12 = vcmp.eq.f32.partialorder %v12542_v16, inf  ;;  %vm4423_vm14 = vcmp.eq.f32.partialorder %v12542_v16, 0.0 }
 0x556   : > { %v4404_v15 = vmul.f32 %v8325_v4, %v4403_v9  ;;  %v4396_v33 = vmul.f32 %v4395_v23, %v12519_v14 }
 0x558   : > { %v12551_v20 = vpop.f32.mrf.mxu3  ;;  %v4405_v29 = vmul.f32 0.5, %v4404_v15  ;;  %v4398_v3 = vsel %vm4397_vm8, %v12519_v14, %v4396_v33 }
 0x559   : > { %15644 = vst [vmem:[#allocation72_spill] sm:$0xff] %v12551_v20  ;;  %v4339_v56 = vmul.f32 %v12551_v20, %v12551_v20  ;;  %v4401_v15 = vsel %vm4399_vm10, %v4400_v54, %v4398_v3 }
 0x55a   : > { %v4406_v19 = vsub.f32 1.5, %v4405_v29 }
 0x55b   : > { %v8327_v49 = vpop.eup %8326  ;;  %v12556_v11 = vadd.f32 %v4339_v56, %v4323_v48 }
 0x55c   : > { %v4407_v34 = vmul.f32 %v8325_v4, %v4406_v19  ;;  %v4415_v25 = vmul.f32 %v8327_v49, %v12542_v16  ;;  %v4309_v19 = vmul.f32 %v12473_v46, %v12473_v46 }
 0x55d   : > { %8328 = vrsqrt.f32 %v12556_v11  ;;  %vm4433_vm13 = vcmp.eq.f32.partialorder %v12556_v11, inf  ;;  %vm4435_vm15 = vcmp.eq.f32.partialorder %v12556_v11, 0.0 }
 0x55e   : > { %v4408_v38 = vmul.f32 %v4407_v34, %v12530_v5  ;;  %v4416_v53 = vmul.f32 %v8327_v49, %v4415_v25  ;;  %v4293_v25 = vmul.f32 %v12421_v28, %v12421_v28 }
 0x560   : > { %v12570_v12 = vpop.f32.mrf.mxu3  ;;  %v4410_v4 = vsel %vm4409_vm9, %v12530_v5, %v4408_v38  ;;  %v4417_v9 = vmul.f32 0.5, %v4416_v53  ;;  %v4325_v38 = vadd.f32 %v4309_v19, %v4293_v25 }
 0x561   : > { %v4340_v23 = vmul.f32 %v12570_v12, %v12570_v12  ;;  %v4413_v59 = vsel %vm4411_vm11, %v4412_v43, %v4410_v4 }
 0x562   : > { %v7694_v29 = vpack.i.bf16 %v4413_v59, %v4401_v15  ;;  %v4418_v48 = vsub.f32 1.5, %v4417_v9 }
 0x563   : > { %v8329_v56 = vpop.eup %8328  ;;  %v12577_v33 = vadd.f32 %v4340_v23, %v4324_v30  ;;  %v4310_v30 = vmul.f32 %v12476_v55, %v12476_v55 }
 0x564   : > { %7695 = vrot.lane.b32.xlu0 %v7694_v29, %s8714_s27  ;;  %v4427_v14 = vmul.f32 %v8329_v56, %v12556_v11  ;;  %v4419_v5 = vmul.f32 %v8327_v49, %v4418_v48  ;;  %v4294_v29 = vmul.f32 %v12425_v40, %v12425_v40  ;;  %v4424_v48 = vand.u32 2147483648, %v12542_v16 }
 0x565   : > { %8330 = vrsqrt.f32 %v12577_v33  ;;  %vm4445_vm1 = vcmp.eq.f32.partialorder %v12577_v33, inf  ;;  %vm4447_vm3 = vcmp.eq.f32.partialorder %v12577_v33, 0.0 }
 0x566   : > { %v4428_v34 = vmul.f32 %v8329_v56, %v4427_v14  ;;  %v4420_v27 = vmul.f32 %v4419_v5, %v12542_v16 }
 0x568   : > { %v12586_v51 = vpop.f32.mrf.mxu3  ;;  %v4429_v3 = vmul.f32 0.5, %v4428_v34  ;;  %v4422_v23 = vsel %vm4421_vm12, %v12542_v16, %v4420_v27  ;;  %v4326_v34 = vadd.f32 %v4310_v30, %v4294_v29 }
 0x569   : > { %v4341_v53 = vmul.f32 %v12586_v51, %v12586_v51 }
 0x56a   : > { %v4430_v54 = vsub.f32 1.5, %v4429_v3  ;;  %v4425_v3 = vsel %vm4423_vm14, %v4424_v48, %v4422_v23  ;;  %v4295_v23 = vmul.f32 %v12430_v21, %v12430_v21  ;;  %vm4696_vm14 = vcmask 785408  }
 0x56b   : > { %v8331_v43 = vpop.eup %8330  ;;  %v12591_v4 = vadd.f32 %v4341_v53, %v4325_v38 }
 0x56c   : > { %v4431_v9 = vmul.f32 %v8329_v56, %v4430_v54  ;;  %v4439_v49 = vmul.f32 %v8331_v43, %v12577_v33  ;;  %v4436_v56 = vand.u32 2147483648, %v12556_v11 }
 0x56d   : > { %8332 = vrsqrt.f32 %v12591_v4  ;;  %vm4457_vm2 = vcmp.eq.f32.partialorder %v12591_v4, inf  ;;  %vm4459_vm4 = vcmp.eq.f32.partialorder %v12591_v4, 0.0 }
 0x56e   : > { %v4432_v15 = vmul.f32 %v4431_v9, %v12556_v11  ;;  %v4440_v59 = vmul.f32 %v8331_v43, %v4439_v49  ;;  %v4311_v49 = vmul.f32 %v12478_v32, %v12478_v32 }
 0x570   : > { %v12605_v14 = vpop.f32.mrf.mxu3  ;;  %v4434_v19 = vsel %vm4433_vm13, %v12556_v11, %v4432_v15  ;;  %v4441_v5 = vmul.f32 0.5, %v4440_v59  ;;  %v4327_v29 = vadd.f32 %v4311_v49, %v4295_v23  ;;  %v4296_v49 = vmul.f32 %v12436_v63, %v12436_v63 }
 0x571   : > { %15645 = vst [vmem:[#allocation19_spill] sm:$0xff] %v12605_v14  ;;  %v4342_v25 = vmul.f32 %v12605_v14, %v12605_v14  ;;  %v4437_v38 = vsel %vm4435_vm15, %v4436_v56, %v4434_v19 }
 0x572   : > { %v7699_v53 = vpack.i.bf16 %v4437_v38, %v4425_v3  ;;  %v4442_v27 = vsub.f32 1.5, %v4441_v5  ;;  %v4312_v3 = vmul.f32 %v12481_v44, %v12481_v44  ;;  %v7581_v38 = vld [vmem:[#allocation6 + $0x68] sm:$0xff] }
 0x573   : > { %v8333_v54 = vpop.eup %8332  ;;  %v12612_v9 = vadd.f32 %v4342_v25, %v4326_v34  ;;  %4723 = vmatpush.bf16.msra.mxu0 %v7581_v38  ;;  %7586 = vmatpush.bf16.msrb.mxu1 %v7581_v38  ;;  %v4313_v38 = vmul.f32 %v12483_v36, %v12483_v36 }
 0x574   : > { %7700 = vrot.lane.b32.xlu1 %v7699_v53, %s8714_s27  ;;  %v4451_v16 = vmul.f32 %v8333_v54, %v12591_v4  ;;  %v4443_v11 = vmul.f32 %v8331_v43, %v4442_v27 }
 0x575   : > { %8334 = vrsqrt.f32 %v12612_v9  ;;  %vm4469_vm5 = vcmp.eq.f32.partialorder %v12612_v9, inf  ;;  %vm4471_vm7 = vcmp.eq.f32.partialorder %v12612_v9, 0.0 }
 0x576   : > { %v4452_v30 = vmul.f32 %v8333_v54, %v4451_v16  ;;  %v4444_v56 = vmul.f32 %v4443_v11, %v12577_v33  ;;  %v4460_v11 = vand.u32 2147483648, %v12591_v4 }
 0x578   : > { %v12621_v15 = vpop.f32.mrf.mxu3  ;;  %v4453_v59 = vmul.f32 0.5, %v4452_v30  ;;  %v4446_v53 = vsel %vm4445_vm1, %v12577_v33, %v4444_v56 }
 0x579   : > { %15646 = vst [vmem:[#allocation76_spill] sm:$0xff] %v12621_v15  ;;  %v4343_v48 = vmul.f32 %v12621_v15, %v12621_v15 }
 0x57a   : > { %v4454_v19 = vsub.f32 1.5, %v4453_v59 }
 0x57b   : > { %v8335_v5 = vpop.eup %8334  ;;  %v12626_v34 = vadd.f32 %v4343_v48, %v4327_v29  ;;  %v4328_v29 = vadd.f32 %v4312_v3, %v4296_v49 }
 0x57c   : > { %v4455_v25 = vmul.f32 %v8333_v54, %v4454_v19  ;;  %v4463_v43 = vmul.f32 %v8335_v5, %v12612_v9  ;;  %v4448_v54 = vand.u32 2147483648, %v12577_v33 }
 0x57d   : > { %8336 = vrsqrt.f32 %v12626_v34  ;;  %vm4481_vm6 = vcmp.eq.f32.partialorder %v12626_v34, inf  ;;  %vm4483_vm8 = vcmp.eq.f32.partialorder %v12626_v34, 0.0 }
 0x57e   : > { %v4456_v27 = vmul.f32 %v4455_v25, %v12591_v4  ;;  %v4464_v16 = vmul.f32 %v8335_v5, %v4463_v43  ;;  %v4449_v56 = vsel %vm4447_vm3, %v4448_v54, %v4446_v53  ;;  %v4297_v53 = vmul.f32 %v12439_v8, %v12439_v8 }
 0x580   : > { %v12640_v30 = vpop.f32.mrf.mxu3  ;;  %v4458_v23 = vsel %vm4457_vm2, %v12591_v4, %v4456_v27  ;;  %v4465_v59 = vmul.f32 0.5, %v4464_v16  ;;  %v7580_v4 = vld [vmem:[#allocation6 + $0x60] sm:$0xff]  ;;  %v7579_v16 = vld [vmem:[#allocation6 + $0x58] sm:$0xff] }
 0x581   : > { %15647 = vst [vmem:[#allocation218_spill] sm:$0xff] %v12640_v30  ;;  %v4344_v48 = vmul.f32 %v12640_v30, %v12640_v30  ;;  %v4461_v19 = vsel %vm4459_vm4, %v4460_v11, %v4458_v23  ;;  %4724 = vmatpush.bf16.msra.mxu0 %v7580_v4  ;;  %7587 = vmatpush.bf16.msrb.mxu1 %v7580_v4 }
 0x582   : > { %v7704_v25 = vpack.i.bf16 %v4461_v19, %v4449_v56  ;;  %v4466_v43 = vsub.f32 1.5, %v4465_v59  ;;  %v4329_v11 = vadd.f32 %v4313_v38, %v4297_v53  ;;  %v4484_v53 = vand.u32 2147483648, %v12626_v34 }
 0x583   : > { %v8337_v44 = vpop.eup %8336  ;;  %v12647_v1 = vadd.f32 %v4344_v48, %v4328_v29 }
 0x584   : > { %7705 = vrot.lane.b32.xlu2 %v7704_v25, %s8714_s27  ;;  %v4475_v33 = vmul.f32 %v8337_v44, %v12626_v34  ;;  %v4467_v3 = vmul.f32 %v8335_v5, %v4466_v43  ;;  %v4314_v25 = vmul.f32 %v12486_v45, %v12486_v45  ;;  %v7578_v43 = vld [vmem:[#allocation6 + $0x50] sm:$0xff] }
 0x585   : > { %8338 = vrsqrt.f32 %v12647_v1  ;;  %4725 = vmatpush.bf16.msra.mxu0 %v7579_v16  ;;  %7588 = vmatpush.bf16.msrb.mxu1 %v7579_v16  ;;  %v7577_v16 = vld [vmem:[#allocation6 + $0x48] sm:$0xff]  ;;  %vm4493_vm9 = vcmp.eq.f32.partialorder %v12647_v1, inf  ;;  %vm4495_vm11 = vcmp.eq.f32.partialorder %v12647_v1, 0.0 }
 0x586   : > { %v4476_v27 = vmul.f32 %v8337_v44, %v4475_v33  ;;  %v4468_v59 = vmul.f32 %v4467_v3, %v12612_v9  ;;  %v12668_v33 = vpop.f32.mrf.mxu1 }
 0x588   : > { %v12656_v49 = vpop.f32.mrf.mxu3  ;;  %v4477_v54 = vmul.f32 0.5, %v4476_v27  ;;  %v4470_v38 = vsel %vm4469_vm5, %v12612_v9, %v4468_v59  ;;  %v4472_v27 = vand.u32 2147483648, %v12612_v9 }
 0x589   : > { %15648 = vst [vmem:[#allocation73_spill] sm:$0xff] %v12656_v49  ;;  %v4345_v23 = vmul.f32 %v12656_v49, %v12656_v49  ;;  %4726 = vmatpush.bf16.msra.mxu0 %v7578_v43  ;;  %7589 = vmatpush.bf16.msrb.mxu1 %v7578_v43  ;;  %v7576_v43 = vld [vmem:[#allocation6 + $0x40] sm:$0xff] }
 0x58a   : > { %v4478_v29 = vsub.f32 1.5, %v4477_v54 }
 0x58b   : > { %v8339_v48 = vpop.eup %8338  ;;  %v12661_v56 = vadd.f32 %v4345_v23, %v4329_v11 }
 0x58c   : > { %v4479_v5 = vmul.f32 %v8337_v44, %v4478_v29  ;;  %v4487_v19 = vmul.f32 %v8339_v48, %v12647_v1  ;;  %v4298_v44 = vmul.f32 %v12446_v26, %v12446_v26 }
 0x58d   : > { %8340 = vrsqrt.f32 %v12661_v56  ;;  %4727 = vmatpush.bf16.msra.mxu0 %v7577_v16  ;;  %7590 = vmatpush.bf16.msrb.mxu1 %v7577_v16  ;;  %vm4505_vm10 = vcmp.eq.f32.partialorder %v12661_v56, inf  ;;  %vm4507_vm12 = vcmp.eq.f32.partialorder %v12661_v56, 0.0 }
 0x58e   : > { %v4480_v4 = vmul.f32 %v4479_v5, %v12626_v34  ;;  %v4488_v3 = vmul.f32 %v8339_v48, %v4487_v19  ;;  %v4330_v59 = vadd.f32 %v4314_v25, %v4298_v44  ;;  %v4473_v5 = vsel %vm4471_vm7, %v4472_v27, %v4470_v38 }
 0x590   : > { %v12677_v54 = vpop.f32.mrf.mxu3  ;;  %v4482_v11 = vsel %vm4481_vm6, %v12626_v34, %v4480_v4  ;;  %v4489_v23 = vmul.f32 0.5, %v4488_v3  ;;  %v4315_v34 = vmul.f32 %v12488_v60, %v12488_v60  ;;  %v4299_v4 = vmul.f32 %v12448_v58, %v12448_v58  ;;  %v3742_v3 = vpop.f32.mrf.mxu1 }
 0x591   : > { %15649 = vst [vmem:[#allocation96_spill] sm:$0xff] %v12677_v54  ;;  %v4346_v29 = vmul.f32 %v12677_v54, %v12677_v54  ;;  %v4485_v19 = vsel %vm4483_vm8, %v4484_v53, %v4482_v11  ;;  %4728 = vmatpush.bf16.msra.mxu0 %v7576_v43  ;;  %7591 = vmatpush.bf16.msrb.mxu1 %v7576_v43 }
 0x592   : > { %v7709_v30 = vpack.i.bf16 %v4485_v19, %v4473_v5  ;;  %v4490_v49 = vsub.f32 1.5, %v4489_v23  ;;  %v4331_v53 = vadd.f32 %v4315_v34, %v4299_v4  ;;  %v4496_v34 = vand.u32 2147483648, %v12647_v1 }
 0x593   : > { %v8341_v36 = vpop.eup %8340  ;;  %v12684_v20 = vadd.f32 %v4346_v29, %v4330_v59  ;;  %v4316_v29 = vmul.f32 %v12491_v50, %v12491_v50 }
 0x594   : > { %7710 = vrot.lane.b32.xlu0 %v7709_v30, %s8714_s27  ;;  %v4499_v9 = vmul.f32 %v8341_v36, %v12661_v56  ;;  %v4491_v25 = vmul.f32 %v8339_v48, %v4490_v49 }
 0x595   : > { %8342 = vrsqrt.f32 %v12684_v20  ;;  %vm4517_vm13 = vcmp.eq.f32.partialorder %v12684_v20, inf  ;;  %vm4519_vm1 = vcmp.eq.f32.partialorder %v12684_v20, 0.0 }
 0x596   : > { %v4500_v38 = vmul.f32 %v8341_v36, %v4499_v9  ;;  %v4492_v16 = vmul.f32 %v4491_v25, %v12647_v1  ;;  %v4300_v9 = vmul.f32 %v12451_v52, %v12451_v52 }
 0x598   : > { %v12693_v44 = vpop.f32.mrf.mxu3  ;;  %v4501_v27 = vmul.f32 0.5, %v4500_v38  ;;  %v4494_v5 = vsel %vm4493_vm9, %v12647_v1, %v4492_v16 }
 0x599   : > { %15650 = vst [vmem:[#allocation100_spill] sm:$0xff] %v12693_v44  ;;  %v4347_v30 = vmul.f32 %v12693_v44, %v12693_v44 }
 0x59a   : > { %v4502_v11 = vsub.f32 1.5, %v4501_v27  ;;  %v4332_v27 = vadd.f32 %v4316_v29, %v4300_v9 }
 0x59b   : > { %v8343_v23 = vpop.eup %8342  ;;  %v12698_v59 = vadd.f32 %v4347_v30, %v4331_v53  ;;  %v4497_v30 = vsel %vm4495_vm11, %v4496_v34, %v4494_v5 }
 0x59c   : > { %v4503_v49 = vmul.f32 %v8341_v36, %v4502_v11  ;;  %v4511_v48 = vmul.f32 %v8343_v23, %v12684_v20  ;;  %v4508_v36 = vand.u32 2147483648, %v12661_v56  ;;  %v12719_v11 = vpop.f32.mrf.mxu1 }
 0x59d   : > { %8344 = vrsqrt.f32 %v12698_v59  ;;  %vm4529_vm15 = vcmp.eq.f32.partialorder %v12698_v59, inf  ;;  %vm4531_vm2 = vcmp.eq.f32.partialorder %v12698_v59, 0.0 }
 0x59e   : > { %v4504_v19 = vmul.f32 %v4503_v49, %v12661_v56  ;;  %v4512_v43 = vmul.f32 %v8343_v23, %v4511_v48 }
 0x5a0   : > { %v12712_v25 = vpop.f32.mrf.mxu3  ;;  %v4506_v38 = vsel %vm4505_vm10, %v12661_v56, %v4504_v19  ;;  %v4513_v4 = vmul.f32 0.5, %v4512_v43  ;;  %v4317_v56 = vmul.f32 %v12493_v22, %v12493_v22  ;;  %v4301_v19 = vmul.f32 %v12453_v41, %v12453_v41 }
 0x5a1   : > { %15651 = vst [vmem:[#allocation226_spill] sm:$0xff] %v12712_v25  ;;  %v4348_v53 = vmul.f32 %v12712_v25, %v12712_v25  ;;  %v4509_v16 = vsel %vm4507_vm12, %v4508_v36, %v4506_v38 }
 0x5a2   : > { %v7714_v49 = vpack.i.bf16 %v4509_v16, %v4497_v30  ;;  %v4514_v48 = vsub.f32 1.5, %v4513_v4  ;;  %v4333_v34 = vadd.f32 %v4317_v56, %v4301_v19  ;;  %v8605_v30 = vld [vmem:[%s8868_s14] sm:$0xff] }
 0x5a3   : > { %v8345_v54 = vpop.eup %8344  ;;  %v12721_v44 = vadd.f32 %v4348_v53, %v4332_v27 }
 0x5a4   : > { %7715 = vrot.lane.b32.xlu1 %v7714_v49, %s8714_s27  ;;  %v4523_v1 = vmul.f32 %v8345_v54, %v12698_v59  ;;  %v4515_v29 = vmul.f32 %v8343_v23, %v4514_v48  ;;  %v3780_v23 = vadd.f32 %v8605_v30, %v12668_v33  ;;  %v3747_v16 = vpop.f32.mrf.mxu1 }
 0x5a5   : > { %8346 = vrsqrt.f32 %v12721_v44  ;;  %vm4541_vm3 = vcmp.eq.f32.partialorder %v12721_v44, inf  ;;  %vm4543_vm5 = vcmp.eq.f32.partialorder %v12721_v44, 0.0 }
 0x5a6   : > { %v4524_v5 = vmul.f32 %v8345_v54, %v4523_v1  ;;  %v4516_v38 = vmul.f32 %v4515_v29, %v12684_v20  ;;  %v8606_v1 = vld [vmem:[%s8868_s14 + $0x8] sm:$0xff]  ;;  %v4520_v29 = vand.u32 2147483648, %v12684_v20 }
 0x5a7   : > { %v3781_v25 = vadd.f32 %v8606_v1, %v3742_v3 }
 0x5a8   : > { %v12730_v43 = vpop.f32.mrf.mxu3  ;;  %v4525_v9 = vmul.f32 0.5, %v4524_v5  ;;  %v4518_v5 = vsel %vm4517_vm13, %v12684_v20, %v4516_v38 }
 0x5a9   : > { %15652 = vst [vmem:[#allocation97_spill] sm:$0xff] %v12730_v43  ;;  %v4349_v36 = vmul.f32 %v12730_v43, %v12730_v43 }
 0x5aa   : > { %v4526_v4 = vsub.f32 1.5, %v4525_v9 }
 0x5ab   : > { %v8347_v27 = vpop.eup %8346  ;;  %v4365_v53 = vadd.f32 %v4349_v36, %v4333_v34 }
 0x5ac   : > { %v4527_v49 = vmul.f32 %v8345_v54, %v4526_v4  ;;  %v4535_v48 = vmul.f32 %v8347_v27, %v12721_v44  ;;  %v4532_v54 = vand.u32 2147483648, %v12698_v59  ;;  %v4521_v4 = vsel %vm4519_vm1, %v4520_v29, %v4518_v5  ;;  %v3750_v18 = vpop.f32.mrf.mxu1 }
 0x5ad   : > { %8348 = vrsqrt.f32 %v4365_v53  ;;  %vm4553_vm4 = vcmp.eq.f32.partialorder %v4365_v53, inf  ;;  %vm4555_vm6 = vcmp.eq.f32.partialorder %v4365_v53, 0.0 }
 0x5ae   : > { %v7691_v56 = vpop.permute.xlu2 %7690  ;;  %v4528_v19 = vmul.f32 %v4527_v49, %v12698_v59  ;;  %v4536_v9 = vmul.f32 %v8347_v27, %v4535_v48 }
 0x5af   : > { %v7693_v34 = vunpack.i.h.bf16 %v7691_v56  ;;  %v7692_v33 = vunpack.i.l.bf16 %v7691_v56 }
 0x5b0   : > { %v4530_v3 = vsel %vm4529_vm15, %v12698_v59, %v4528_v19  ;;  %v4537_v36 = vmul.f32 0.5, %v4536_v9  ;;  %vm5134_vm15 = vcmask 523264  }
 0x5b1   : > { %v4533_v38 = vsel %vm4531_vm2, %v4532_v54, %v4530_v3  ;;  %v4622_v30 = vsel %vm3625_vm0, %v3780_v23, %v7692_v33  ;;  %v4623_v49 = vsel %vm3625_vm0, %v3781_v25, %v7693_v34  ;;  %v4544_v34 = vand.u32 2147483648, %v12721_v44 }
 0x5b2   : > { %v7719_v48 = vpack.i.bf16 %v4533_v38, %v4521_v4  ;;  %v4650_v1 = vpack.c.bf16 %v4623_v49, %v4622_v30  ;;  %v4538_v56 = vsub.f32 1.5, %v4537_v36  ;;  %v4556_v33 = vand.u32 2147483648, %v4365_v53  ;;  %v8607_v30 = vld [vmem:[%s8868_s14 + $0x10] sm:$0xff] }
 0x5b3   : > { %v8349_v43 = vpop.eup %8348  ;;  %v3782_v49 = vadd.f32 %v8607_v30, %v12719_v11 }
 0x5b4   : > { %7720 = vrot.lane.b32.xlu2 %v7719_v48, %s8714_s27  ;;  %7497 = vmatmul.msk.bf16.vlgmr.msra.gmra.mxu0 %vm4696_vm14, %v4650_v1  ;;  %v4547_v20 = vmul.f32 %v8349_v43, %v4365_v53  ;;  %v4539_v19 = vmul.f32 %v8347_v27, %v4538_v56  ;;  %v3752_v54 = vpop.f32.mrf.mxu1  ;;  %v8608_v48 = vld [vmem:[%s8868_s14 + $0x18] sm:$0xff] }
 0x5b5   : > { %v3783_v1 = vadd.f32 %v8608_v48, %v3747_v16  ;;  %v8612_v48 = vld [vmem:[%s8868_s14 + $0x38] sm:$0xff] }
 0x5b6   : > { %v4548_v50 = vmul.f32 %v8349_v43, %v4547_v20  ;;  %v4540_v5 = vmul.f32 %v4539_v19, %v12721_v44 }
 0x5b8   : > { %v4549_v59 = vmul.f32 0.5, %v4548_v50  ;;  %v4542_v25 = vsel %vm4541_vm3, %v12721_v44, %v4540_v5 }
 0x5b9   : > { %v4545_v50 = vsel %vm4543_vm5, %v4544_v34, %v4542_v25  ;;  %v8610_v25 = vld [vmem:[%s8868_s14 + $0x28] sm:$0xff] }
 0x5ba   : > { %v4550_v29 = vsub.f32 1.5, %v4549_v59 }
 0x5bc   : > { %v4551_v9 = vmul.f32 %v8349_v43, %v4550_v29  ;;  %v3755_v43 = vpop.f32.mrf.mxu1  ;;  %v8609_v29 = vld [vmem:[%s8868_s14 + $0x20] sm:$0xff] }
 0x5be   : > { %v4552_v23 = vmul.f32 %v4551_v9, %v4365_v53  ;;  %v3784_v9 = vadd.f32 %v8609_v29, %v3750_v18  ;;  %v8614_v29 = vld [vmem:[%s8868_s14 + $0x48] sm:$0xff] }
 0x5c0   : > { %v4554_v27 = vsel %vm4553_vm4, %v4365_v53, %v4552_v23  ;;  %v3785_v23 = vadd.f32 %v8610_v25, %v3752_v54 }
 0x5c1   : > { %v4557_v3 = vsel %vm4555_vm6, %v4556_v33, %v4554_v27 }
 0x5c2   : > { %v7724_v36 = vpack.i.bf16 %v4557_v3, %v4545_v50 }
 0x5c4   : > { %7725 = vrot.lane.b32.xlu0 %v7724_v36, %s8714_s27  ;;  %v3757_v4 = vpop.f32.mrf.mxu1 }
 0x5c5   : > { %v3787_v54 = vadd.f32 %v8612_v48, %v3757_v4  ;;  %v8613_v4 = vld [vmem:[%s8868_s14 + $0x40] sm:$0xff] }
 0x5cc   : > { %v3760_v59 = vpop.f32.mrf.mxu1 }
 0x5d4   : > { %v3762_v16 = vpop.f32.mrf.mxu1 }
 0x5d6   : > { %v7696_v38 = vpop.permute.xlu0 %7695 }
 0x5d7   : > { %v7698_v56 = vunpack.i.h.bf16 %v7696_v38  ;;  %v7697_v20 = vunpack.i.l.bf16 %v7696_v38 }
 0x5d9   : > { %v4624_v44 = vsel %vm3625_vm0, %v3782_v49, %v7697_v20  ;;  %v4625_v53 = vsel %vm3625_vm0, %v3783_v1, %v7698_v56  ;;  %v8611_v49 = vld [vmem:[%s8868_s14 + $0x30] sm:$0xff] }
 0x5da   : > { %v4651_v19 = vpack.c.bf16 %v4625_v53, %v4624_v44  ;;  %v3786_v18 = vadd.f32 %v8611_v49, %v3755_v43  ;;  %v12777_v53 = vld [vmem:[%s14171_s7] ss:$0 sm:$0xff] }
 0x5db   : > { %5131 = vrot.lane.b32.xlu1 %v12777_v53, %s8715_s25 }
 0x5dc   : > { %7498 = vmatmul.msk.bf16.gmra.mxu0 %vm4696_vm14, %v4651_v19  ;;  %v3765_v3 = vpop.f32.mrf.mxu1 }
 0x5de   : > { %v7706_v36 = vpop.permute.xlu2 %7705 }
 0x5df   : > { %v7708_v38 = vunpack.i.h.bf16 %v7706_v36  ;;  %v7707_v30 = vunpack.i.l.bf16 %v7706_v36  ;;  %v8615_v36 = vld [vmem:[%s8868_s14 + $0x60] sm:$0xff] }
 0x5e1   : > { %v4628_v1 = vsel %vm3625_vm0, %v3786_v18, %v7707_v30  ;;  %v4629_v56 = vsel %vm3625_vm0, %v3787_v54, %v7708_v38  ;;  %v8616_v30 = vld [vmem:[%s8868_s14 + $0x68] sm:$0xff] }
 0x5e2   : > { %v4653_v44 = vpack.c.bf16 %v4629_v56, %v4628_v1  ;;  %v8617_v56 = vld [vmem:[%s8868_s14 + $0x50] sm:$0xff] }
 0x5e4   : > { %v3767_v20 = vpop.f32.mrf.mxu1 }
 0x5e6   : > { %v7701_v5 = vpop.permute.xlu1 %7700 }
 0x5e7   : > { %v7703_v11 = vunpack.i.h.bf16 %v7701_v5  ;;  %v7702_v34 = vunpack.i.l.bf16 %v7701_v5  ;;  %v3788_v5 = vadd.f32 %v8613_v4, %v3760_v59 }
 0x5e9   : > { %v4626_v33 = vsel %vm3625_vm0, %v3784_v9, %v7702_v34  ;;  %v4627_v27 = vsel %vm3625_vm0, %v3785_v23, %v7703_v11  ;;  %v3789_v9 = vadd.f32 %v8614_v29, %v3762_v16 }
 0x5ea   : > { %v4652_v50 = vpack.c.bf16 %v4627_v27, %v4626_v33 }
 0x5ec   : > { %7499 = vmatmul.msk.bf16.gmra.mxu0 %vm4696_vm14, %v4652_v50  ;;  %v3770_v19 = vpop.f32.mrf.mxu1 }
 0x5ed   : > { %v3792_v38 = vadd.f32 %v8615_v36, %v3770_v19 }
 0x5f4   : > { %v3772_v27 = vpop.f32.mrf.mxu1 }
 0x5f5   : > { %v3793_v49 = vadd.f32 %v8616_v30, %v3772_v27  ;;  %v8619_v30 = vld [vmem:[%s8868_s14 + $0x70] sm:$0xff] }
 0x5fc   : > { %7500 = vmatmul.msk.bf16.gmra.mxu0 %vm4696_vm14, %v4653_v44  ;;  %v3790_v44 = vadd.f32 %v8617_v56, %v3765_v3  ;;  %v7585_v56 = vld [vmem:[#allocation6 + $0x38] sm:$0xff] }
 0x5fd   : > { %5163 = vmatpush.bf16.msra.mxu1 %v7585_v56 }
 0x606   : > { %v7711_v43 = vpop.permute.xlu0 %7710 }
 0x607   : > { %v7713_v25 = vunpack.i.h.bf16 %v7711_v43  ;;  %v7712_v23 = vunpack.i.l.bf16 %v7711_v43  ;;  %v8618_v43 = vld [vmem:[%s8868_s14 + $0x58] sm:$0xff] }
 0x608   : > { %v3791_v4 = vadd.f32 %v8618_v43, %v3767_v20 }
 0x609   : > { %v4630_v11 = vsel %vm3625_vm0, %v3788_v5, %v7712_v23  ;;  %v4631_v34 = vsel %vm3625_vm0, %v3789_v9, %v7713_v25  ;;  %v3775_v23 = vpop.f32.mrf.mxu1 }
 0x60a   : > { %v4654_v33 = vpack.c.bf16 %v4631_v34, %v4630_v11 }
 0x60c   : > { %7501 = vmatmul.msk.bf16.gmra.mxu0 %vm4696_vm14, %v4654_v33 }
 0x60e   : > { %v7721_v50 = vpop.permute.xlu2 %7720 }
 0x60f   : > { %v7723_v59 = vunpack.i.h.bf16 %v7721_v50  ;;  %v7722_v18 = vunpack.i.l.bf16 %v7721_v50 }
 0x611   : > { %v4634_v16 = vsel %vm3625_vm0, %v3792_v38, %v7722_v18  ;;  %v4635_v48 = vsel %vm3625_vm0, %v3793_v49, %v7723_v59  ;;  %v3777_v50 = vpop.f32.mrf.mxu1  ;;  %v3794_v49 = vadd.f32 %v8619_v30, %v3775_v23  ;;  %v8620_v59 = vld [vmem:[%s8868_s14 + $0x78] sm:$0xff]  ;;  %s562_s14 = scalar_lea.vmem %s14172_s8, %s7375_s30 }
 0x612   : > { %v4656_v54 = vpack.c.bf16 %v4635_v48, %v4634_v16  ;;  %v3795_v18 = vadd.f32 %v8620_v59, %v3777_v50 }
 0x614   : > { %7503 = vmatmul.msk.bf16.vlgmr.msrb.gmra.mxu1 %vm4696_vm14, %v4656_v54 }
 0x616   : > { %v7716_v1 = vpop.permute.xlu1 %7715 }
 0x617   : > { %v7718_v5 = vunpack.i.h.bf16 %v7716_v1  ;;  %v7717_v29 = vunpack.i.l.bf16 %v7716_v1 }
 0x619   : > { %v4632_v19 = vsel %vm3625_vm0, %v3790_v44, %v7717_v29  ;;  %v4633_v9 = vsel %vm3625_vm0, %v3791_v4, %v7718_v5  ;;  %v7584_v5 = vld [vmem:[#allocation6 + $0x30] sm:$0xff] }
 0x61a   : > { %v4655_v25 = vpack.c.bf16 %v4633_v9, %v4632_v19  ;;  %5164 = vmatpush.bf16.msra.mxu1 %v7584_v5  ;;  %v7583_v19 = vld [vmem:[#allocation6 + $0x28] sm:$0xff] }
 0x61c   : > { %7502 = vmatmul.msk.bf16.gmra.mxu0 %vm4696_vm14, %v4655_v25 }
 0x61e   : > { %5165 = vmatpush.bf16.msra.mxu1 %v7583_v19 }
 0x631   : > { %v4730_v11 = vpop.f32.mrf.mxu0 }
 0x632   : > { %v4731_v34 = vadd.f32 %v12777_v53, %v4730_v11 }
 0x634   : > { %v4770_v33 = vsub.f32 0.0, %v4731_v34 }
 0x636   : > { %v4786_v27 = vmul.f32 1.442695, %v4770_v33  ;;  %v7726_v3 = vpop.permute.xlu0 %7725 }
 0x637   : > { %v7728_v20 = vunpack.i.h.bf16 %v7726_v3  ;;  %v7727_v36 = vunpack.i.l.bf16 %v7726_v3 }
 0x638   : > { %8350 = vpow2.f32 %v4786_v27 }
 0x639   : > { %v4732_v38 = vpop.f32.mrf.mxu0  ;;  %v4636_v54 = vsel %vm3625_vm0, %v3794_v49, %v7727_v36  ;;  %v4637_v1 = vsel %vm3625_vm0, %v3795_v18, %v7728_v20 }
 0x63a   : > { %v4733_v16 = vadd.f32 %v12777_v53, %v4732_v38  ;;  %v4657_v44 = vpack.c.bf16 %v4637_v1, %v4636_v54 }
 0x63c   : > { %v4771_v48 = vsub.f32 0.0, %v4733_v16  ;;  %7504 = vmatmul.msk.bf16.gmra.mxu1 %vm4696_vm14, %v4657_v44 }
 0x63e   : > { %v8351_v43 = vpop.eup %8350  ;;  %v4788_v4 = vmul.f32 1.442695, %v4771_v48 }
 0x63f   : > { %v4818_v29 = vadd.f32 1.0, %v8351_v43 }
 0x640   : > { %8352 = vpow2.f32 %v4788_v4 }
 0x641   : > { %8354 = vrcp.f32 %v4818_v29  ;;  %v4845_v36 = vand.u32 2147483648, %v4818_v29  ;;  %vm4839_vm8 = vweird.f32 %v4818_v29  ;;  %v4843_v38 = vand.u32 2147483647, %v4818_v29 }
 0x643   : > { %v4846_v54 = vor.u32 1.1754944e-38, %v4845_v36  ;;  %vm4844_vm11 = vcmp.eq.f32.partialorder %v4843_v38, 8.507059e+37 }
 0x646   : > { %v8353_v9 = vpop.eup %8352 }
 0x647   : > { %v8355_v25 = vpop.eup %8354  ;;  %v4819_v23 = vadd.f32 1.0, %v8353_v9 }
 0x648   : > { %v4835_v11 = vmul.f32 %v8355_v25, %v4818_v29  ;;  %vm4840_vm7 = vweird.f32 %v8355_v25 }
 0x649   : > { %8356 = vrcp.f32 %v4819_v23  ;;  %vm4841_vm9 = vmor %vm4839_vm8, %vm4840_vm7  ;;  %v4860_v49 = vand.u32 2147483648, %v4819_v23  ;;  %v4858_v48 = vand.u32 2147483647, %v4819_v23  ;;  %vm4854_vm12 = vweird.f32 %v4819_v23 }
 0x64a   : > { %v4836_v33 = vsub.f32 1.0, %v4835_v11 }
 0x64b   : > { %v4861_v44 = vor.u32 1.1754944e-38, %v4860_v49  ;;  %vm4859_vm14 = vcmp.eq.f32.partialorder %v4858_v48, 8.507059e+37 }
 0x64c   : > { %v4837_v27 = vmul.f32 %v8355_v25, %v4836_v33 }
 0x64e   : > { %v4838_v50 = vadd.f32 %v8355_v25, %v4837_v27 }
 0x64f   : > { %v8357_v3 = vpop.eup %8356 }
 0x650   : > { %v4850_v20 = vmul.f32 %v8357_v3, %v4819_v23  ;;  %v4842_v59 = vsel %vm4841_vm9, %v8355_v25, %v4838_v50  ;;  %vm4855_vm10 = vweird.f32 %v8357_v3  ;;  %v7582_v25 = vld [vmem:[#allocation6 + $0x20] sm:$0xff] }
 0x651   : > { %v4847_v56 = vsel %vm4844_vm11, %v4846_v54, %v4842_v59  ;;  %vm4856_vm13 = vmor %vm4854_vm12, %vm4855_vm10  ;;  %5166 = vmatpush.bf16.msra.mxu1 %v7582_v25 }
 0x652   : > { %v4851_v30 = vsub.f32 1.0, %v4850_v20  ;;  %v5074_v19 = vmul.f32 %v4847_v56, %v4731_v34 }
 0x654   : > { %v4852_v18 = vmul.f32 %v8357_v3, %v4851_v30 }
 0x656   : > { %v4853_v1 = vadd.f32 %v8357_v3, %v4852_v18 }
 0x658   : > { %v4857_v43 = vsel %vm4856_vm13, %v8357_v3, %v4853_v1 }
 0x659   : > { %v4862_v4 = vsel %vm4859_vm14, %v4861_v44, %v4857_v43  ;;  %v4735_v5 = vpop.f32.mrf.mxu0 }
 0x65a   : > { %v5075_v29 = vmul.f32 %v4862_v4, %v4733_v16  ;;  %v12804_v9 = vadd.f32 %v12777_v53, %v4735_v5 }
 0x65c   : > { %v5098_v11 = vpack.c.bf16 %v5075_v29, %v5074_v19  ;;  %v4772_v33 = vsub.f32 0.0, %v12804_v9 }
 0x65e   : > { %v4790_v27 = vmul.f32 1.442695, %v4772_v33  ;;  %7521 = vmatmul.msk.bf16.vlgmr.msra.gmra.mxu1 %vm5134_vm15, %v5098_v11 }
 0x660   : > { %8358 = vpow2.f32 %v4790_v27 }
 0x661   : > { %v4737_v23 = vpop.f32.mrf.mxu0 }
 0x662   : > { %v12809_v3 = vadd.f32 %v12777_v53, %v4737_v23 }
 0x664   : > { %v4773_v34 = vsub.f32 0.0, %v12809_v3 }
 0x666   : > { %v8359_v16 = vpop.eup %8358  ;;  %v4792_v50 = vmul.f32 1.442695, %v4773_v34 }
 0x667   : > { %v4820_v20 = vadd.f32 1.0, %v8359_v16 }
 0x668   : > { %8360 = vpow2.f32 %v4792_v50 }
 0x669   : > { %8362 = vrcp.f32 %v4820_v20  ;;  %v4740_v36 = vpop.f32.mrf.mxu0  ;;  %v4875_v27 = vand.u32 2147483648, %v4820_v20  ;;  %vm4869_vm2 = vweird.f32 %v4820_v20  ;;  %v4873_v34 = vand.u32 2147483647, %v4820_v20 }
 0x66a   : > { %v12813_v38 = vadd.f32 %v12777_v53, %v4740_v36 }
 0x66b   : > { %vm4874_vm5 = vcmp.eq.f32.partialorder %v4873_v34, 8.507059e+37 }
 0x66c   : > { %v4774_v30 = vsub.f32 0.0, %v12813_v38 }
 0x66e   : > { %v8361_v49 = vpop.eup %8360  ;;  %v4794_v59 = vmul.f32 1.442695, %v4774_v30 }
 0x66f   : > { %v8363_v18 = vpop.eup %8362  ;;  %v4821_v48 = vadd.f32 1.0, %v8361_v49 }
 0x670   : > { %v4865_v54 = vmul.f32 %v8363_v18, %v4820_v20  ;;  %8364 = vpow2.f32 %v4794_v59  ;;  %vm4870_vm1 = vweird.f32 %v8363_v18 }
 0x671   : > { %8366 = vrcp.f32 %v4821_v48  ;;  %v4742_v1 = vpop.f32.mrf.mxu0  ;;  %vm4871_vm3 = vmor %vm4869_vm2, %vm4870_vm1  ;;  %v4888_v36 = vand.u32 2147483647, %v4821_v48  ;;  %v4890_v30 = vand.u32 2147483648, %v4821_v48  ;;  %vm4884_vm6 = vweird.f32 %v4821_v48 }
 0x672   : > { %v4866_v56 = vsub.f32 1.0, %v4865_v54  ;;  %v12817_v44 = vadd.f32 %v12777_v53, %v4742_v1  ;;  %v4876_v1 = vor.u32 1.1754944e-38, %v4875_v27 }
 0x673   : > { %vm4889_vm8 = vcmp.eq.f32.partialorder %v4888_v36, 8.507059e+37 }
 0x674   : > { %v4867_v43 = vmul.f32 %v8363_v18, %v4866_v56  ;;  %v4775_v4 = vsub.f32 0.0, %v12817_v44 }
 0x676   : > { %v8365_v5 = vpop.eup %8364  ;;  %v4796_v19 = vmul.f32 1.442695, %v4775_v4  ;;  %v4868_v11 = vadd.f32 %v8363_v18, %v4867_v43 }
 0x677   : > { %v8367_v29 = vpop.eup %8366  ;;  %v12820_v25 = vadd.f32 1.0, %v8365_v5 }
 0x678   : > { %v4880_v33 = vmul.f32 %v8367_v29, %v4821_v48  ;;  %8368 = vpow2.f32 %v4796_v19  ;;  %v4872_v49 = vsel %vm4871_vm3, %v8363_v18, %v4868_v11  ;;  %vm4885_vm4 = vweird.f32 %v8367_v29 }
 0x679   : > { %8370 = vrcp.f32 %v12820_v25  ;;  %v4745_v23 = vpop.f32.mrf.mxu0  ;;  %v4877_v20 = vsel %vm4874_vm5, %v4876_v1, %v4872_v49  ;;  %vm4886_vm7 = vmor %vm4884_vm6, %vm4885_vm4  ;;  %v4891_v19 = vor.u32 1.1754944e-38, %v4890_v30  ;;  %vm4899_vm10 = vweird.f32 %v12820_v25 }
 0x67a   : > { %v4881_v16 = vsub.f32 1.0, %v4880_v33  ;;  %v12824_v50 = vadd.f32 %v12777_v53, %v4745_v23  ;;  %v5076_v27 = vmul.f32 %v4877_v20, %v12804_v9 }
 0x67c   : > { %v4882_v59 = vmul.f32 %v8367_v29, %v4881_v16  ;;  %v4776_v54 = vsub.f32 0.0, %v12824_v50 }
 0x67e   : > { %v8369_v56 = vpop.eup %8368  ;;  %v4883_v43 = vadd.f32 %v8367_v29, %v4882_v59  ;;  %v4798_v4 = vmul.f32 1.442695, %v4776_v54 }
 0x67f   : > { %v8371_v5 = vpop.eup %8370  ;;  %v4823_v33 = vadd.f32 1.0, %v8369_v56 }
 0x680   : > { %v4887_v23 = vsel %vm4886_vm7, %v8367_v29, %v4883_v43  ;;  %v4895_v14 = vmul.f32 %v8371_v5, %v12820_v25  ;;  %8372 = vpow2.f32 %v4798_v4  ;;  %vm4900_vm9 = vweird.f32 %v8371_v5 }
 0x681   : > { %v4892_v18 = vsel %vm4889_vm8, %v4891_v19, %v4887_v23  ;;  %8374 = vrcp.f32 %v4823_v33  ;;  %v4747_v11 = vpop.f32.mrf.mxu0  ;;  %v4903_v43 = vand.u32 2147483647, %v12820_v25  ;;  %vm4901_vm11 = vmor %vm4899_vm10, %vm4900_vm9  ;;  %v4918_v19 = vand.u32 2147483647, %v4823_v33 }
 0x682   : > { %v5077_v34 = vmul.f32 %v4892_v18, %v12809_v3  ;;  %v4896_v16 = vsub.f32 1.0, %v4895_v14  ;;  %v12831_v48 = vadd.f32 %v12777_v53, %v4747_v11  ;;  %v4905_v14 = vand.u32 2147483648, %v12820_v25 }
 0x683   : > { %v4920_v23 = vand.u32 2147483648, %v4823_v33  ;;  %vm4904_vm13 = vcmp.eq.f32.partialorder %v4903_v43, 8.507059e+37  ;;  %vm4914_vm14 = vweird.f32 %v4823_v33  ;;  %vm4919_vm2 = vcmp.eq.f32.partialorder %v4918_v19, 8.507059e+37 }
 0x684   : > { %v4897_v49 = vmul.f32 %v8371_v5, %v4896_v16  ;;  %v4777_v30 = vsub.f32 0.0, %v12831_v48  ;;  %v5099_v59 = vpack.c.bf16 %v5077_v34, %v5076_v27  ;;  %v4906_v34 = vor.u32 1.1754944e-38, %v4905_v14 }
 0x686   : > { %v8373_v29 = vpop.eup %8372  ;;  %v4800_v36 = vmul.f32 1.442695, %v4777_v30  ;;  %7522 = vmatmul.msk.bf16.gmra.mxu1 %vm5134_vm15, %v5099_v59  ;;  %v4898_v56 = vadd.f32 %v8371_v5, %v4897_v49 }
 0x687   : > { %v8375_v54 = vpop.eup %8374  ;;  %v12835_v1 = vadd.f32 1.0, %v8373_v29  ;;  %v4921_v29 = vor.u32 1.1754944e-38, %v4920_v23 }
 0x688   : > { %v4910_v9 = vmul.f32 %v8375_v54, %v4823_v33  ;;  %8376 = vpow2.f32 %v4800_v36  ;;  %v4902_v18 = vsel %vm4901_vm11, %v8371_v5, %v4898_v56  ;;  %vm4915_vm12 = vweird.f32 %v8375_v54 }
 0x689   : > { %8378 = vrcp.f32 %v12835_v1  ;;  %v4750_v3 = vpop.f32.mrf.mxu0  ;;  %v4907_v25 = vsel %vm4904_vm13, %v4906_v34, %v4902_v18  ;;  %vm4916_vm1 = vmor %vm4914_vm14, %vm4915_vm12  ;;  %vm4929_vm4 = vweird.f32 %v12835_v1 }
 0x68a   : > { %v4911_v4 = vsub.f32 1.0, %v4910_v9  ;;  %v12842_v20 = vadd.f32 %v12777_v53, %v4750_v3  ;;  %v5078_v14 = vmul.f32 %v4907_v25, %v12813_v38 }
 0x68c   : > { %v4912_v11 = vmul.f32 %v8375_v54, %v4911_v4  ;;  %v4778_v27 = vsub.f32 0.0, %v12842_v20 }
 0x68e   : > { %v8377_v16 = vpop.eup %8376  ;;  %v4913_v49 = vadd.f32 %v8375_v54, %v4912_v11  ;;  %v4802_v30 = vmul.f32 1.442695, %v4778_v27 }
 0x68f   : > { %v8379_v59 = vpop.eup %8378  ;;  %v4825_v36 = vadd.f32 1.0, %v8377_v16 }
 0x690   : > { %v4917_v9 = vsel %vm4916_vm1, %v8375_v54, %v4913_v49  ;;  %v4925_v3 = vmul.f32 %v8379_v59, %v12835_v1  ;;  %8380 = vpow2.f32 %v4802_v30  ;;  %vm4930_vm3 = vweird.f32 %v8379_v59 }
 0x691   : > { %v4922_v5 = vsel %vm4919_vm2, %v4921_v29, %v4917_v9  ;;  %8382 = vrcp.f32 %v4825_v36  ;;  %v4752_v56 = vpop.f32.mrf.mxu0  ;;  %v4760_v54 = vpop.f32.mrf.mxu1  ;;  %v4935_v30 = vand.u32 2147483648, %v12835_v1  ;;  %v4950_v9 = vand.u32 2147483648, %v4825_v36  ;;  %vm12862_vm5 = vmor %vm4929_vm4, %vm4930_vm3 }
 0x692   : > { %v5079_v43 = vmul.f32 %v4922_v5, %v12817_v44  ;;  %v4926_v4 = vsub.f32 1.0, %v4925_v3  ;;  %v12849_v33 = vadd.f32 %v12777_v53, %v4752_v56  ;;  %v4933_v44 = vand.u32 2147483647, %v12835_v1 }
 0x693   : > { %v12860_v3 = vadd.f32 %v12777_v53, %v4760_v54  ;;  %v4936_v1 = vor.u32 1.1754944e-38, %v4935_v30  ;;  %vm4944_vm8 = vweird.f32 %v4825_v36 }
 0x694   : > { %v5100_v18 = vpack.c.bf16 %v5079_v43, %v5078_v14  ;;  %v4927_v11 = vmul.f32 %v8379_v59, %v4926_v4  ;;  %v4779_v23 = vsub.f32 0.0, %v12849_v33  ;;  %v4948_v4 = vand.u32 2147483647, %v4825_v36 }
 0x695   : > { %vm4934_vm7 = vcmp.eq.f32.partialorder %v4933_v44, 8.507059e+37 }
 0x696   : > { %v8381_v19 = vpop.eup %8380  ;;  %v4804_v27 = vmul.f32 1.442695, %v4779_v23  ;;  %7523 = vmatmul.msk.bf16.gmra.mxu1 %vm5134_vm15, %v5100_v18  ;;  %v4928_v49 = vadd.f32 %v8379_v59, %v4927_v11  ;;  %vm4949_vm10 = vcmp.eq.f32.partialorder %v4948_v4, 8.507059e+37 }
 0x697   : > { %v8383_v34 = vpop.eup %8382  ;;  %v12853_v16 = vadd.f32 1.0, %v8381_v19 }
 0x698   : > { %v4940_v38 = vmul.f32 %v8383_v34, %v4825_v36  ;;  %8384 = vpow2.f32 %v4804_v27  ;;  %v4932_v14 = vsel %vm12862_vm5, %v8379_v59, %v4928_v49  ;;  %vm4945_vm6 = vweird.f32 %v8383_v34 }
 0x699   : > { %8386 = vrcp.f32 %v12853_v16  ;;  %v4755_v25 = vpop.f32.mrf.mxu0  ;;  %v4762_v18 = vpop.f32.mrf.mxu1  ;;  %v4951_v27 = vor.u32 1.1754944e-38, %v4950_v9  ;;  %v4937_v5 = vsel %vm4934_vm7, %v4936_v1, %v4932_v14  ;;  %vm4946_vm9 = vmor %vm4944_vm8, %vm4945_vm6  ;;  %vm4959_vm12 = vweird.f32 %v12853_v16 }
 0x69a   : > { %v4941_v29 = vsub.f32 1.0, %v4940_v38  ;;  %v12867_v56 = vadd.f32 %v12777_v53, %v4755_v25  ;;  %v12873_v23 = vadd.f32 %v12777_v53, %v4762_v18  ;;  %v4782_v38 = vsub.f32 0.0, %v12860_v3 }
 0x69b   : > { %v5080_v18 = vmul.f32 %v4937_v5, %v12824_v50  ;;  %v4963_v5 = vand.u32 2147483647, %v12853_v16 }
 0x69c   : > { %v4942_v43 = vmul.f32 %v8383_v34, %v4941_v29  ;;  %v4780_v11 = vsub.f32 0.0, %v12867_v56  ;;  %v4783_v29 = vsub.f32 0.0, %v12873_v23  ;;  %v4810_v22 = vmul.f32 1.442695, %v4782_v38 }
 0x69d   : > { %vm4964_vm1 = vcmp.eq.f32.partialorder %v4963_v5, 8.507059e+37 }
 0x69e   : > { %v8385_v54 = vpop.eup %8384  ;;  %v4943_v19 = vadd.f32 %v8383_v34, %v4942_v43  ;;  %v4806_v49 = vmul.f32 1.442695, %v4780_v11  ;;  %v4812_v14 = vmul.f32 1.442695, %v4783_v29 }
 0x69f   : > { %v8387_v25 = vpop.eup %8386  ;;  %v4827_v59 = vadd.f32 1.0, %v8385_v54 }
 0x6a0   : > { %v4947_v44 = vsel %vm4946_vm9, %v8383_v34, %v4943_v19  ;;  %v4955_v30 = vmul.f32 %v8387_v25, %v12853_v16  ;;  %vm4960_vm11 = vweird.f32 %v8387_v25 }
 0x6a1   : > { %v4952_v13 = vsel %vm4949_vm10, %v4951_v27, %v4947_v44  ;;  %8388 = vrcp.f32 %v4827_v59  ;;  %v4757_v43 = vpop.f32.mrf.mxu0  ;;  %v4965_v27 = vand.u32 2147483648, %v12853_v16  ;;  %vm4961_vm13 = vmor %vm4959_vm12, %vm4960_vm11  ;;  %v4980_v29 = vand.u32 2147483648, %v4827_v59 }
 0x6a2   : > { %v5081_v36 = vmul.f32 %v4952_v13, %v12831_v48  ;;  %v4956_v9 = vsub.f32 1.0, %v4955_v30  ;;  %8390 = vpow2.f32 %v4806_v49  ;;  %v12881_v1 = vadd.f32 %v12777_v53, %v4757_v43 }
 0x6a3   : > { %8392 = vpow2.f32 %v4812_v14  ;;  %vm4974_vm2 = vweird.f32 %v4827_v59  ;;  %v4981_v16 = vor.u32 1.1754944e-38, %v4980_v29 }
 0x6a4   : > { %v5101_v11 = vpack.c.bf16 %v5081_v36, %v5080_v18  ;;  %v4957_v54 = vmul.f32 %v8387_v25, %v4956_v9  ;;  %v4781_v34 = vsub.f32 0.0, %v12881_v1  ;;  %8394 = vpow2.f32 %v4810_v22 }
 0x6a5   : > { %v4978_v18 = vand.u32 2147483647, %v4827_v59  ;;  %v4966_v9 = vor.u32 1.1754944e-38, %v4965_v27 }
 0x6a6   : > { %7524 = vmatmul.msk.bf16.gmra.mxu1 %vm5134_vm15, %v5101_v11  ;;  %v4958_v19 = vadd.f32 %v8387_v25, %v4957_v54  ;;  %v4808_v48 = vmul.f32 1.442695, %v4781_v34 }
 0x6a7   : > { %v8389_v4 = vpop.eup %8388  ;;  %vm4979_vm4 = vcmp.eq.f32.partialorder %v4978_v18, 8.507059e+37 }
 0x6a8   : > { %v8391_v50 = vpop.eup %8390  ;;  %v4970_v13 = vmul.f32 %v8389_v4, %v4827_v59  ;;  %8396 = vpow2.f32 %v4808_v48  ;;  %v4962_v30 = vsel %vm4961_vm13, %v8387_v25, %v4958_v19  ;;  %vm4975_vm14 = vweird.f32 %v8389_v4 }
 0x6a9   : > { %v4828_v38 = vadd.f32 1.0, %v8391_v50  ;;  %v8393_v44 = vpop.eup %8392  ;;  %v4967_v11 = vsel %vm4964_vm1, %v4966_v9, %v4962_v30  ;;  %vm4976_vm3 = vmor %vm4974_vm2, %vm4975_vm14 }
 0x6aa   : > { %v4971_v49 = vsub.f32 1.0, %v4970_v13  ;;  %v8395_v36 = vpop.eup %8394  ;;  %v12888_v14 = vadd.f32 1.0, %v8393_v44  ;;  %v5082_v48 = vmul.f32 %v4967_v11, %v12842_v20 }
 0x6ab   : > { %8398 = vrcp.f32 %v4828_v38  ;;  %v12890_v50 = vadd.f32 1.0, %v8395_v36  ;;  %vm4989_vm6 = vweird.f32 %v4828_v38  ;;  %v4993_v18 = vand.u32 2147483647, %v4828_v38 }
 0x6ac   : > { %v4972_v22 = vmul.f32 %v8389_v4, %v4971_v49  ;;  %8400 = vrcp.f32 %v12888_v14  ;;  %vm5034_vm1 = vweird.f32 %v12888_v14 }
 0x6ad   : > { %vm4994_vm9 = vcmp.eq.f32.partialorder %v4993_v18, 8.507059e+37 }
 0x6ae   : > { %v4973_v43 = vadd.f32 %v8389_v4, %v4972_v22  ;;  %v8397_v54 = vpop.eup %8396 }
 0x6af   : > { %v4829_v19 = vadd.f32 1.0, %v8397_v54 }
 0x6b0   : > { %v4977_v34 = vsel %vm4976_vm3, %v8389_v4, %v4973_v43  ;;  %vm5019_vm3 = vweird.f32 %v12890_v50 }
 0x6b1   : > { %v8399_v13 = vpop.eup %8398  ;;  %v4982_v25 = vsel %vm4979_vm4, %v4981_v16, %v4977_v34  ;;  %8402 = vrcp.f32 %v4829_v19  ;;  %v5010_v16 = vand.u32 2147483648, %v4829_v19  ;;  %vm5004_vm10 = vweird.f32 %v4829_v19 }
 0x6b2   : > { %v5083_v27 = vmul.f32 %v4982_v25, %v12849_v33  ;;  %v4985_v5 = vmul.f32 %v8399_v13, %v4828_v38  ;;  %8404 = vrcp.f32 %v12890_v50  ;;  %v12897_v4 = vpop.eup %8400  ;;  %vm4990_vm5 = vweird.f32 %v8399_v13 }
 0x6b3   : > { %v4995_v33 = vand.u32 2147483648, %v4828_v38  ;;  %v5030_v36 = vmul.f32 %v12897_v4, %v12888_v14  ;;  %vm4991_vm7 = vmor %vm4989_vm6, %vm4990_vm5  ;;  %vm5035_vm13 = vweird.f32 %v12897_v4 }
 0x6b4   : > { %v5102_v59 = vpack.c.bf16 %v5083_v27, %v5082_v48  ;;  %v4986_v49 = vsub.f32 1.0, %v4985_v5  ;;  %v5008_v48 = vand.u32 2147483647, %v4829_v19  ;;  %vm5036_vm2 = vmor %vm5034_vm1, %vm5035_vm13 }
 0x6b5   : > { %v4996_v27 = vor.u32 1.1754944e-38, %v4995_v33  ;;  %v5031_v5 = vsub.f32 1.0, %v5030_v36 }
 0x6b6   : > { %v4987_v29 = vmul.f32 %v8399_v13, %v4986_v49  ;;  %7525 = vmatmul.msk.bf16.gmra.mxu1 %vm5134_vm15, %v5102_v59  ;;  %vm5009_vm12 = vcmp.eq.f32.partialorder %v5008_v48, 8.507059e+37 }
 0x6b7   : > { %v8403_v44 = vpop.eup %8402 }
 0x6b8   : > { %v12899_v30 = vpop.eup %8404  ;;  %v4988_v22 = vadd.f32 %v8399_v13, %v4987_v29  ;;  %v5000_v20 = vmul.f32 %v8403_v44, %v4829_v19  ;;  %vm5005_vm8 = vweird.f32 %v8403_v44  ;;  %v5011_v29 = vor.u32 1.1754944e-38, %v5010_v16 }
 0x6b9   : > { %v4765_v43 = vpop.f32.mrf.mxu1  ;;  %v5015_v11 = vmul.f32 %v12899_v30, %v12890_v50  ;;  %vm5006_vm11 = vmor %vm5004_vm10, %vm5005_vm8  ;;  %vm5020_vm14 = vweird.f32 %v12899_v30 }
 0x6ba   : > { %v5001_v9 = vsub.f32 1.0, %v5000_v20  ;;  %v12906_v54 = vadd.f32 %v12777_v53, %v4765_v43  ;;  %v4992_v34 = vsel %vm4991_vm7, %v8399_v13, %v4988_v22  ;;  %v5032_v22 = vmul.f32 %v12897_v4, %v5031_v5  ;;  %vm5021_vm4 = vmor %vm5019_vm3, %vm5020_vm14 }
 0x6bb   : > { %v4997_v49 = vsel %vm4994_vm9, %v4996_v27, %v4992_v34  ;;  %v5016_v15 = vsub.f32 1.0, %v5015_v11  ;;  %v5025_v34 = vand.u32 2147483648, %v12890_v50 }
 0x6bc   : > { %v5002_v25 = vmul.f32 %v8403_v44, %v5001_v9  ;;  %v4784_v38 = vsub.f32 0.0, %v12906_v54  ;;  %v5084_v13 = vmul.f32 %v4997_v49, %v12867_v56  ;;  %v5040_v56 = vand.u32 2147483648, %v12888_v14 }
 0x6bd   : > { %v5017_v19 = vmul.f32 %v12899_v30, %v5016_v15  ;;  %v5038_v15 = vand.u32 2147483647, %v12888_v14  ;;  %v5026_v5 = vor.u32 1.1754944e-38, %v5025_v34 }
 0x6be   : > { %v5003_v59 = vadd.f32 %v8403_v44, %v5002_v25  ;;  %v4814_v20 = vmul.f32 1.442695, %v4784_v38  ;;  %v5023_v25 = vand.u32 2147483647, %v12890_v50  ;;  %v5041_v27 = vor.u32 1.1754944e-38, %v5040_v56 }
 0x6bf   : > { %vm5039_vm5 = vcmp.eq.f32.partialorder %v5038_v15, 8.507059e+37 }
 0x6c0   : > { %v5007_v41 = vsel %vm5006_vm11, %v8403_v44, %v5003_v59  ;;  %8406 = vpow2.f32 %v4814_v20  ;;  %v5033_v44 = vadd.f32 %v12897_v4, %v5032_v22  ;;  %vm5024_vm6 = vcmp.eq.f32.partialorder %v5023_v25, 8.507059e+37 }
 0x6c1   : > { %v5012_v43 = vsel %vm5009_vm12, %v5011_v29, %v5007_v41  ;;  %v4767_v9 = vpop.f32.mrf.mxu1 }
 0x6c2   : > { %v5085_v33 = vmul.f32 %v5012_v43, %v12881_v1  ;;  %v12913_v18 = vadd.f32 %v12777_v53, %v4767_v9  ;;  %v5018_v53 = vadd.f32 %v12899_v30, %v5017_v19  ;;  %v5037_v48 = vsel %vm5036_vm2, %v12897_v4, %v5033_v44  ;;  %v12933_v9 = vpop.permute.xlu1 %5131 }
 0x6c3   : > { %v5042_v59 = vsel %vm5039_vm5, %v5041_v27, %v5037_v48 }
 0x6c4   : > { %v5103_v36 = vpack.c.bf16 %v5085_v33, %v5084_v13  ;;  %v4785_v16 = vsub.f32 0.0, %v12913_v18  ;;  %v5022_v38 = vsel %vm5021_vm4, %v12899_v30, %v5018_v53  ;;  %v5087_v20 = vmul.f32 %v5042_v59, %v12873_v23 }
 0x6c5   : > { %v5027_v49 = vsel %vm5024_vm6, %v5026_v5, %v5022_v38 }
 0x6c6   : > { %7526 = vmatmul.msk.bf16.gmra.mxu1 %vm5134_vm15, %v5103_v36  ;;  %v8407_v41 = vpop.eup %8406  ;;  %v4816_v1 = vmul.f32 1.442695, %v4785_v16  ;;  %v5086_v50 = vmul.f32 %v5027_v49, %v12860_v3 }
 0x6c7   : > { %v4832_v11 = vadd.f32 1.0, %v8407_v41 }
 0x6c8   : > { %8408 = vpow2.f32 %v4816_v1  ;;  %v5104_v22 = vpack.c.bf16 %v5087_v20, %v5086_v50 }
 0x6c9   : > { %8410 = vrcp.f32 %v4832_v11  ;;  %v5055_v16 = vand.u32 2147483648, %v4832_v11  ;;  %vm5049_vm8 = vweird.f32 %v4832_v11  ;;  %v5053_v23 = vand.u32 2147483647, %v4832_v11 }
 0x6cb   : > { %v5056_v34 = vor.u32 1.1754944e-38, %v5055_v16  ;;  %vm5054_vm11 = vcmp.eq.f32.partialorder %v5053_v23, 8.507059e+37 }
 0x6ce   : > { %v8409_v14 = vpop.eup %8408 }
 0x6cf   : > { %v8411_v29 = vpop.eup %8410  ;;  %v4833_v43 = vadd.f32 1.0, %v8409_v14 }
 0x6d0   : > { %v5045_v13 = vmul.f32 %v8411_v29, %v4832_v11  ;;  %vm5050_vm7 = vweird.f32 %v8411_v29 }
 0x6d1   : > { %8412 = vrcp.f32 %v4833_v43  ;;  %vm5051_vm9 = vmor %vm5049_vm8, %vm5050_vm7  ;;  %v5070_v3 = vand.u32 2147483648, %v4833_v43  ;;  %v5068_v15 = vand.u32 2147483647, %v4833_v43  ;;  %vm5064_vm12 = vweird.f32 %v4833_v43 }
 0x6d2   : > { %v5046_v4 = vsub.f32 1.0, %v5045_v13 }
 0x6d3   : > { %v5071_v11 = vor.u32 1.1754944e-38, %v5070_v3  ;;  %vm5069_vm14 = vcmp.eq.f32.partialorder %v5068_v15, 8.507059e+37 }
 0x6d4   : > { %v5047_v33 = vmul.f32 %v8411_v29, %v5046_v4  ;;  %v8621_v4 = vld [vmem:[#allocation6 + $0x18] sm:$0xff] }
 0x6d6   : > { %7527 = vmatmul.msk.bf16.gmra.mxu1 %vm5134_vm15, %v5104_v22  ;;  %v5048_v19 = vadd.f32 %v8411_v29, %v5047_v33 }
 0x6d7   : > { %v8413_v30 = vpop.eup %8412 }
 0x6d8   : > { %v5060_v36 = vmul.f32 %v8413_v30, %v4833_v43  ;;  %v5052_v1 = vsel %vm5051_vm9, %v8411_v29, %v5048_v19  ;;  %vm5065_vm10 = vweird.f32 %v8413_v30 }
 0x6d9   : > { %v5057_v48 = vsel %vm5054_vm11, %v5056_v34, %v5052_v1  ;;  %vm5066_vm13 = vmor %vm5064_vm12, %vm5065_vm10 }
 0x6da   : > { %v5061_v41 = vsub.f32 1.0, %v5060_v36  ;;  %v5088_v59 = vmul.f32 %v5057_v48, %v12906_v54 }
 0x6db   : > { %v5168_v44 = vpop.f32.mrf.mxu1 }
 0x6dc   : > { %v12936_v56 = vadd.f32 %v5168_v44, %v12933_v9  ;;  %v5062_v53 = vmul.f32 %v8413_v30, %v5061_v41 }
 0x6de   : > { %5544 = vrot.lane.b32.xlu2 %v12936_v56, %s8714_s27  ;;  %v5063_v25 = vadd.f32 %v8413_v30, %v5062_v53 }
 0x6e0   : > { %v5067_v27 = vsel %vm5066_vm13, %v8413_v30, %v5063_v25  ;;  %v8622_v30 = vld [vmem:[#allocation6 + $0x10] sm:$0xff] }
 0x6e1   : > { %v5072_v38 = vsel %vm5069_vm14, %v5071_v11, %v5067_v27 }
 0x6e2   : > { %v5089_v14 = vmul.f32 %v5072_v38, %v12913_v18 }
 0x6e3   : > { %v5170_v5 = vpop.f32.mrf.mxu1 }
 0x6e4   : > { %v12943_v49 = vadd.f32 %v5170_v5, %v12933_v9  ;;  %v5105_v29 = vpack.c.bf16 %v5089_v14, %v5088_v59 }
 0x6e6   : > { %5546 = vrot.lane.b32.xlu0 %v12943_v49, %s8714_s27  ;;  %7528 = vmatmul.msk.bf16.gmra.mxu1 %vm5134_vm15, %v5105_v29 }
 0x703   : > { %v5173_v20 = vpop.f32.mrf.mxu1 }
 0x704   : > { %v12949_v43 = vadd.f32 %v5173_v20, %v12933_v9 }
 0x706   : > { %5548 = vrot.lane.b32.xlu1 %v12949_v43, %s8714_s27 }
 0x70b   : > { %v5175_v13 = vpop.f32.mrf.mxu1 }
 0x70c   : > { %v12954_v54 = vadd.f32 %v5175_v13, %v12933_v9 }
 0x70e   : > { %5550 = vrot.lane.b32.xlu2 %v12954_v54, %s8714_s27 }
 0x713   : > { %v5178_v18 = vpop.f32.mrf.mxu1 }
 0x714   : > { %v12959_v50 = vadd.f32 %v5178_v18, %v12933_v9 }
 0x716   : > { %5552 = vrot.lane.b32.xlu0 %v12959_v50, %s8714_s27  ;;  %5738 = vrot.lane.b32.xlu2 %v8621_v4, %s8715_s25 }
 0x71b   : > { %v5180_v22 = vpop.f32.mrf.mxu1 }
 0x71c   : > { %v12965_v33 = vadd.f32 %v5180_v22, %v12933_v9 }
 0x71e   : > { %5554 = vrot.lane.b32.xlu1 %v12965_v33, %s8714_s27  ;;  %5736 = vrot.lane.b32.xlu0 %v8622_v30, %s8715_s25 }
 0x723   : > { %v5183_v19 = vpop.f32.mrf.mxu1 }
 0x724   : > { %v12971_v36 = vadd.f32 %v5183_v19, %v12933_v9 }
 0x726   : > { %5556 = vrot.lane.b32.xlu2 %v12971_v36, %s8714_s27 }
 0x72b   : > { %v5185_v16 = vpop.f32.mrf.mxu1 }
 0x72c   : > { %v12976_v44 = vadd.f32 %v5185_v16, %v12933_v9 }
 0x72e   : > { %5558 = vrot.lane.b32.xlu0 %v12976_v44, %s8714_s27 }
 0x733   : > { %v5188_v23 = vpop.f32.mrf.mxu1 }
 0x734   : > { %v12981_v41 = vadd.f32 %v5188_v23, %v12933_v9 }
 0x736   : > { %5560 = vrot.lane.b32.xlu2 %v12981_v41, %s8714_s27 }
 0x738   : > { %v5545_v38 = vpop.permute.xlu2 %5544 }
 0x739   : > { %v5592_v59 = vmul.f32 %v5545_v38, %v12386_v35  ;;  %v5608_v22 = vmul.f32 %v5545_v38, %v12456_v0  ;;  %v13024_v30 = vmul.f32 %v5545_v38, %v12499_v37 }
 0x73b   : > { %v5190_v3 = vpop.f32.mrf.mxu1 }
 0x73c   : > { %v12986_v1 = vadd.f32 %v5190_v3, %v12933_v9 }
 0x73e   : > { %5562 = vrot.lane.b32.xlu0 %v12986_v1, %s8714_s27 }
 0x743   : > { %v5193_v53 = vpop.f32.mrf.mxu1 }
 0x744   : > { %v12991_v15 = vadd.f32 %v5193_v53, %v12933_v9 }
 0x746   : > { %5564 = vrot.lane.b32.xlu2 %v12991_v15, %s8714_s27 }
 0x74b   : > { %v5195_v34 = vpop.f32.mrf.mxu1 }
 0x74c   : > { %v12996_v25 = vadd.f32 %v5195_v34, %v12933_v9 }
 0x74e   : > { %5566 = vrot.lane.b32.xlu0 %v12996_v25, %s8714_s27 }
 0x753   : > { %v5198_v48 = vpop.f32.mrf.mxu1 }
 0x754   : > { %v13001_v11 = vadd.f32 %v5198_v48, %v12933_v9 }
 0x756   : > { %5568 = vrot.lane.b32.xlu2 %v13001_v11, %s8714_s27 }
 0x758   : > { %v5547_v27 = vpop.permute.xlu0 %5546 }
 0x759   : > { %v5593_v5 = vmul.f32 %v5547_v27, %v12389_v10  ;;  %v5609_v35 = vmul.f32 %v5547_v27, %v12458_v39  ;;  %v13020_v10 = vmul.f32 %v5547_v27, %v12507_v31 }
 0x75b   : > { %v5200_v14 = vpop.f32.mrf.mxu1  ;;  %v5640_v20 = vpack.c.bf16 %v5593_v5, %v5592_v59  ;;  %v5648_v3 = vpack.c.bf16 %v5609_v35, %v5608_v22  ;;  %v5656_v53 = vpack.c.bf16 %v13020_v10, %v13024_v30  ;;  %v8625_v30 = vld [vmem:[#allocation6 + $0x30] sm:$0xff] }
 0x75c   : > { %v13008_v29 = vadd.f32 %v5200_v14, %v12933_v9 }
 0x75d   : > { %5688 = vrot.lane.b32.xlu1 %v5640_v20, %s8715_s25 }
 0x75e   : > { %5570 = vrot.lane.b32.xlu0 %v13008_v29, %s8714_s27 }
 0x763   : > { %v5203_v13 = vpop.f32.mrf.mxu1 }
 0x764   : > { %v13014_v18 = vadd.f32 %v5203_v13, %v12933_v9 }
 0x766   : > { %5572 = vrot.lane.b32.xlu2 %v13014_v18, %s8714_s27 }
 0x768   : > { %v5551_v4 = vpop.permute.xlu2 %5550 }
 0x769   : > { %v5595_v31 = vmul.f32 %v5551_v4, %v12398_v7  ;;  %v5611_v27 = vmul.f32 %v5551_v4, %v12463_v57  ;;  %v5627_v38 = vmul.f32 %v5551_v4, %v12526_v47 }
 0x76b   : > { %v5205_v19 = vpop.f32.mrf.mxu1 }
 0x76c   : > { %v13027_v16 = vadd.f32 %v5205_v19, %v12933_v9 }
 0x76e   : > { %5574 = vrot.lane.b32.xlu0 %v13027_v16, %s8714_s27 }
 0x770   : > { %v5739_v23 = vpop.permute.xlu2 %5738 }
 0x771   : > { %5820 = vmatpush.bf16.msrb.mxu0 %v5739_v23 }
 0x778   : > { %v5549_v39 = vpop.permute.xlu1 %5548 }
 0x779   : > { %v5594_v0 = vmul.f32 %v5549_v39, %v12396_v6  ;;  %v5610_v9 = vmul.f32 %v5549_v39, %v12461_v42  ;;  %v5626_v48 = vmul.f32 %v5549_v39, %v12515_v2 }
 0x77b   : > { %v5641_v37 = vpack.c.bf16 %v5595_v31, %v5594_v0  ;;  %v5649_v59 = vpack.c.bf16 %v5611_v27, %v5610_v9  ;;  %v5657_v14 = vpack.c.bf16 %v5627_v38, %v5626_v48 }
 0x77d   : > { %5690 = vrot.lane.b32.xlu1 %v5641_v37, %s8715_s25 }
 0x780   : > { %v5557_v42 = vpop.permute.xlu2 %5556 }
 0x781   : > { %v5598_v57 = vmul.f32 %v5557_v42, %v12414_v17  ;;  %v13058_v39 = vmul.f32 %v5557_v42, %v12570_v12  ;;  %v5614_v9 = vmul.f32 %v5557_v42, %v12471_v24 }
 0x788   : > { %v13036_v34 = vpop.permute.xlu0 %5552 }
 0x789   : > { %v5596_v6 = vmul.f32 %v13036_v34, %v12405_v62 }
 0x790   : > { %v13042_v5 = vpop.permute.xlu1 %5554  ;;  %v5737_v20 = vpop.permute.xlu0 %5736 }
 0x791   : > { %v5597_v7 = vmul.f32 %v13042_v5, %v12411_v61  ;;  %5821 = vmatpush.bf16.msrb.mxu0 %v5737_v20  ;;  %v5561_v35 = vpop.permute.xlu2 %5560 }
 0x792   : > { %v5600_v62 = vmul.f32 %v5561_v35, %v12425_v40 }
 0x793   : > { %v5642_v13 = vpack.c.bf16 %v5597_v7, %v5596_v6  ;;  %v5616_v6 = vmul.f32 %v5561_v35, %v12476_v55 }
 0x795   : > { %5692 = vrot.lane.b32.xlu1 %v5642_v13, %s8715_s25  ;;  %v15655_v13 = vld [vmem:[#allocation36_spill] sm:$0xff] }
 0x7a0   : > { %v5559_v2 = vpop.permute.xlu0 %5558 }
 0x7a1   : > { %v5599_v47 = vmul.f32 %v5559_v2, %v12421_v28  ;;  %v13055_v19 = vmul.f32 %v5559_v2, %v12586_v51  ;;  %v5565_v28 = vpop.permute.xlu2 %5564  ;;  %v5615_v12 = vmul.f32 %v5559_v2, %v12473_v46 }
 0x7a2   : > { %v5602_v0 = vmul.f32 %v5565_v28, %v12436_v63 }
 0x7a3   : > { %v5643_v4 = vpack.c.bf16 %v5599_v47, %v5598_v57  ;;  %v5659_v17 = vpack.c.bf16 %v13055_v19, %v13058_v39  ;;  %v15657_v57 = vld [vmem:[#allocation185_spill] sm:$0xff]  ;;  %v15658_v47 = vld [vmem:[#allocation34_spill] sm:$0xff] }
 0x7a4   : > { %v5613_v55 = vmul.f32 %v13042_v5, %v15658_v47 }
 0x7a5   : > { %5694 = vrot.lane.b32.xlu1 %v5643_v4, %s8715_s25  ;;  %v15659_v4 = vld [vmem:[#allocation19_spill] sm:$0xff] }
 0x7b0   : > { %v5563_v22 = vpop.permute.xlu0 %5562 }
 0x7b1   : > { %v5601_v61 = vmul.f32 %v5563_v22, %v12430_v21  ;;  %v13067_v21 = vpop.permute.xlu2 %5568 }
 0x7b2   : > { %v5604_v48 = vmul.f32 %v13067_v21, %v12446_v26  ;;  %v5620_v24 = vmul.f32 %v13067_v21, %v12486_v45  ;;  %v5617_v26 = vmul.f32 %v5563_v22, %v12478_v32  ;;  %v15656_v45 = vld [vmem:[#allocation76_spill] sm:$0xff] }
 0x7b3   : > { %v5644_v23 = vpack.c.bf16 %v5601_v61, %v5600_v62  ;;  %v5632_v62 = vmul.f32 %v5561_v35, %v15659_v4 }
 0x7b4   : > { %v5652_v2 = vpack.c.bf16 %v5617_v26, %v5616_v6 }
 0x7b5   : > { %5696 = vrot.lane.b32.xlu1 %v5644_v23, %s8715_s25  ;;  %v15661_v23 = vld [vmem:[#allocation31_spill] sm:$0xff] }
 0x7c0   : > { %v5567_v31 = vpop.permute.xlu0 %5566 }
 0x7c1   : > { %v5603_v40 = vmul.f32 %v5567_v31, %v12439_v8  ;;  %v5651_v8 = vpack.c.bf16 %v5615_v12, %v5614_v9  ;;  %v15662_v12 = vld [vmem:[#allocation72_spill] sm:$0xff]  ;;  %v15663_v9 = vld [vmem:[#allocation97_spill] sm:$0xff] }
 0x7c2   : > { %v5629_v35 = vmul.f32 %v13042_v5, %v15662_v12  ;;  %v15668_v5 = vld [vmem:[#allocation73_spill] sm:$0xff] }
 0x7c3   : > { %v5645_v37 = vpack.c.bf16 %v5603_v40, %v5602_v0  ;;  %v5612_v0 = vmul.f32 %v13036_v34, %v15661_v23 }
 0x7c5   : > { %5698 = vrot.lane.b32.xlu1 %v5645_v37, %s8715_s25  ;;  %v5650_v37 = vpack.c.bf16 %v5613_v55, %v5612_v0 }
 0x7cd   : > { %5704 = vrot.lane.b32.xlu1 %v5648_v3, %s8715_s25 }
 0x7cf   : > { %v5689_v27 = vpop.permute.xlu1 %5688 }
 0x7d0   : > { %v13070_v51 = vpop.permute.xlu0 %5570  ;;  %7529 = vmatmul.msk.bf16.vlgmr.msrb.gmra.mxu0 %vm3625_vm0, %v5689_v27  ;;  %v15664_v27 = vld [vmem:[#allocation39_spill] sm:$0xff] }
 0x7d1   : > { %v5605_v63 = vmul.f32 %v13070_v51, %v12448_v58  ;;  %v5621_v46 = vmul.f32 %v13070_v51, %v12488_v60  ;;  %v5573_v58 = vpop.permute.xlu2 %5572 }
 0x7d2   : > { %v5606_v20 = vmul.f32 %v5573_v58, %v12451_v52  ;;  %v15660_v52 = vld [vmem:[#allocation141_spill] sm:$0xff] }
 0x7d3   : > { %v5646_v38 = vpack.c.bf16 %v5605_v63, %v5604_v48  ;;  %v5654_v3 = vpack.c.bf16 %v5621_v46, %v5620_v24  ;;  %v5622_v61 = vmul.f32 %v5573_v58, %v15660_v52  ;;  %v5619_v63 = vmul.f32 %v5567_v31, %v15664_v27  ;;  %v15666_v46 = vld [vmem:[#allocation226_spill] sm:$0xff] }
 0x7d4   : > { %v5638_v24 = vmul.f32 %v5573_v58, %v15666_v46 }
 0x7d5   : > { %5710 = vrot.lane.b32.xlu1 %v5651_v8, %s8715_s25  ;;  %5700 = vrot.lane.b32.xlu2 %v5646_v38, %s8715_s25  ;;  %v15665_v8 = vld [vmem:[#allocation216_spill] sm:$0xff] }
 0x7d6   : > { %v5628_v38 = vmul.f32 %v13036_v34, %v15665_v8  ;;  %v8623_v34 = vld [vmem:[#allocation6 + $0x28] sm:$0xff] }
 0x7dd   : > { %5716 = vrot.lane.b32.xlu1 %v5654_v3, %s8715_s25  ;;  %5706 = vrot.lane.b32.xlu2 %v5649_v59, %s8715_s25  ;;  %v5633_v59 = vmul.f32 %v5563_v22, %v15656_v45  ;;  %v15667_v3 = vld [vmem:[#allocation164_spill] sm:$0xff]  ;;  %v8624_v45 = vld [vmem:[#allocation6 + $0x38] sm:$0xff] }
 0x7de   : > { %v5618_v26 = vmul.f32 %v5565_v28, %v15667_v3 }
 0x7df   : > { %v5660_v40 = vpack.c.bf16 %v5633_v59, %v5632_v62  ;;  %v15671_v59 = vld [vmem:[#allocation96_spill] sm:$0xff] }
 0x7e0   : > { %v5575_v7 = vpop.permute.xlu0 %5574 }
 0x7e1   : > { %v5607_v42 = vmul.f32 %v5575_v7, %v15655_v13  ;;  %v5623_v32 = vmul.f32 %v5575_v7, %v15657_v57  ;;  %v5639_v48 = vmul.f32 %v5575_v7, %v15663_v9  ;;  %v5653_v13 = vpack.c.bf16 %v5619_v63, %v5618_v26 }
 0x7e2   : > { %v5635_v7 = vmul.f32 %v5567_v31, %v15668_v5  ;;  %v5636_v57 = vmul.f32 %v13067_v21, %v15671_v59 }
 0x7e3   : > { %v5647_v60 = vpack.c.bf16 %v5607_v42, %v5606_v20  ;;  %v5663_v6 = vpack.c.bf16 %v5639_v48, %v5638_v24  ;;  %v5658_v20 = vpack.c.bf16 %v5629_v35, %v5628_v38  ;;  %v15669_v42 = vld [vmem:[#allocation218_spill] sm:$0xff] }
 0x7e5   : > { %5722 = vrot.lane.b32.xlu1 %v5657_v14, %s8715_s25  ;;  %5712 = vrot.lane.b32.xlu2 %v5652_v2, %s8715_s25  ;;  %v5655_v14 = vpack.c.bf16 %v5623_v32, %v5622_v61  ;;  %v5634_v2 = vmul.f32 %v5565_v28, %v15669_v42  ;;  %v15670_v28 = vld [vmem:[#allocation100_spill] sm:$0xff] }
 0x7e6   : > { %5702 = vrot.lane.b32.xlu0 %v5647_v60, %s8715_s25  ;;  %v5637_v31 = vmul.f32 %v13070_v51, %v15670_v28 }
 0x7e7   : > { %v5661_v60 = vpack.c.bf16 %v5635_v7, %v5634_v2 }
 0x7e8   : > { %v5662_v32 = vpack.c.bf16 %v5637_v31, %v5636_v57 }
 0x7ed   : > { %5728 = vrot.lane.b32.xlu1 %v5660_v40, %s8715_s25  ;;  %5718 = vrot.lane.b32.xlu2 %v5655_v14, %s8715_s25 }
 0x7ee   : > { %5708 = vrot.lane.b32.xlu0 %v5650_v37, %s8715_s25 }
 0x7ef   : > { %v5691_v22 = vpop.permute.xlu1 %5690 }
 0x7f0   : > { %7530 = vmatmul.msk.bf16.gmra.mxu0 %vm3625_vm0, %v5691_v22 }
 0x7f5   : > { %5734 = vrot.lane.b32.xlu1 %v5663_v6, %s8715_s25  ;;  %5724 = vrot.lane.b32.xlu2 %v5658_v20, %s8715_s25 }
 0x7f6   : > { %5714 = vrot.lane.b32.xlu0 %v5653_v13, %s8715_s25 }
 0x7fd   : > { %5730 = vrot.lane.b32.xlu2 %v5661_v60, %s8715_s25  ;;  %6307 = vrot.lane.b32.xlu1 %v8623_v34, %s8715_s25 }
 0x7fe   : > { %5720 = vrot.lane.b32.xlu0 %v5656_v53, %s8715_s25  ;;  %v8626_v53 = vld [vmem:[#allocation6 + $0x20] sm:$0xff] }
 0x805   : > { %6311 = vrot.lane.b32.xlu2 %v8624_v45, %s8715_s25 }
 0x806   : > { %5726 = vrot.lane.b32.xlu0 %v5659_v17, %s8715_s25 }
 0x807   : > { %v5693_v58 = vpop.permute.xlu1 %5692 }
 0x808   : > { %7531 = vmatmul.msk.bf16.gmra.mxu0 %vm3625_vm0, %v5693_v58 }
 0x80e   : > { %5732 = vrot.lane.b32.xlu0 %v5662_v32, %s8715_s25 }
 0x816   : > { %6309 = vrot.lane.b32.xlu0 %v8625_v30, %s8715_s25 }
 0x817   : > { %v5695_v10 = vpop.permute.xlu1 %5694 }
 0x818   : > { %7532 = vmatmul.msk.bf16.gmra.mxu0 %vm3625_vm0, %v5695_v10 }
 0x81e   : > { %6305 = vrot.lane.b32.xlu0 %v8626_v53, %s8715_s25 }
 0x827   : > { %v5697_v19 = vpop.permute.xlu1 %5696 }
 0x828   : > { %7533 = vmatmul.msk.bf16.gmra.mxu0 %vm3625_vm0, %v5697_v19 }
 0x82f   : > { %v5701_v17 = vpop.permute.xlu2 %5700 }
 0x837   : > { %v5699_v39 = vpop.permute.xlu1 %5698  ;;  %v5707_v62 = vpop.permute.xlu2 %5706 }
 0x838   : > { %7534 = vmatmul.msk.bf16.gmra.mxu0 %vm3625_vm0, %v5699_v39 }
 0x83f   : > { %v5705_v47 = vpop.permute.xlu1 %5704  ;;  %v5713_v12 = vpop.permute.xlu2 %5712 }
 0x847   : > { %v5711_v14 = vpop.permute.xlu1 %5710  ;;  %v5719_v24 = vpop.permute.xlu2 %5718 }
 0x848   : > { %7535 = vmatmul.msk.bf16.gmra.mxu0 %vm3625_vm0, %v5701_v17 }
 0x84d   : > { %v13142_v51 = vpop.f32.mrf.mxu0 }
 0x84f   : > { %v5717_v8 = vpop.permute.xlu1 %5716  ;;  %v5725_v2 = vpop.permute.xlu2 %5724 }
 0x855   : > { %v13144_v55 = vpop.f32.mrf.mxu0 }
 0x856   : > { %15672 = vst [vmem:[#allocation99_spill] sm:$0xff] %v13144_v55 }
 0x857   : > { %v5723_v5 = vpop.permute.xlu1 %5722  ;;  %v5731_v32 = vpop.permute.xlu2 %5730 }
 0x858   : > { %v5703_v21 = vpop.permute.xlu0 %5702 }
 0x859   : > { %7536 = vmatmul.msk.bf16.gmra.mxu0 %vm3625_vm0, %v5703_v21 }
 0x85f   : > { %v5729_v31 = vpop.permute.xlu1 %5728 }
 0x860   : > { %v5709_v23 = vpop.permute.xlu0 %5708 }
 0x867   : > { %v5735_v17 = vpop.permute.xlu1 %5734 }
 0x868   : > { %v5715_v48 = vpop.permute.xlu0 %5714 }
 0x869   : > { %7537 = vmatmul.msk.bf16.gmra.mxu0 %vm3625_vm0, %v5705_v47 }
 0x86d   : > { %v13147_v4 = vpop.f32.mrf.mxu0 }
 0x86e   : > { %15673 = vst [vmem:[#allocation48_spill] sm:$0xff] %v13147_v4 }
 0x870   : > { %v5721_v6 = vpop.permute.xlu0 %5720 }
 0x875   : > { %v13150_v52 = vpop.f32.mrf.mxu0 }
 0x876   : > { %15674 = vst [vmem:[#allocation57_spill] sm:$0xff] %v13150_v52 }
 0x878   : > { %v5727_v58 = vpop.permute.xlu0 %5726 }
 0x879   : > { %7538 = vmatmul.msk.bf16.gmra.mxu0 %vm3625_vm0, %v5707_v62  ;;  %v5943_v62 = vmul.f32 %v13142_v51, %v13142_v51 }
 0x880   : > { %v5733_v53 = vpop.permute.xlu0 %5732 }
 0x885   : > { %v13152_v61 = vpop.f32.mrf.mxu0 }
 0x886   : > { %15675 = vst [vmem:[#allocation51_spill] sm:$0xff] %v13152_v61 }
 0x889   : > { %7539 = vmatmul.msk.bf16.gmra.mxu0 %vm3625_vm0, %v5709_v23 }
 0x88d   : > { %v13155_v0 = vpop.f32.mrf.mxu0 }
 0x895   : > { %v13157_v40 = vpop.f32.mrf.mxu0 }
 0x899   : > { %7540 = vmatmul.msk.bf16.gmra.mxu0 %vm3625_vm0, %v5711_v14 }
 0x89d   : > { %v13160_v37 = vpop.f32.mrf.mxu0 }
 0x89e   : > { %15676 = vst [vmem:[#allocation108_spill] sm:$0xff] %v13160_v37 }
 0x8a5   : > { %v13162_v22 = vpop.f32.mrf.mxu0 }
 0x8a6   : > { %15677 = vst [vmem:[#allocation56_spill] sm:$0xff] %v13162_v22 }
 0x8a9   : > { %7541 = vmatmul.msk.bf16.gmra.mxu0 %vm3625_vm0, %v5713_v12 }
 0x8ad   : > { %v13165_v35 = vpop.f32.mrf.mxu0 }
 0x8b5   : > { %v13167_v9 = vpop.f32.mrf.mxu0 }
 0x8b6   : > { %15678 = vst [vmem:[#allocation109_spill] sm:$0xff] %v13167_v9 }
 0x8b9   : > { %7542 = vmatmul.msk.bf16.gmra.mxu0 %vm3625_vm0, %v5715_v48 }
 0x8bd   : > { %v13170_v27 = vpop.f32.mrf.mxu0 }
 0x8be   : > { %15679 = vst [vmem:[#allocation89_spill] sm:$0xff] %v13170_v27 }
 0x8c5   : > { %v13172_v63 = vpop.f32.mrf.mxu0 }
 0x8c6   : > { %15680 = vst [vmem:[#allocation64_spill] sm:$0xff] %v13172_v63 }
 0x8c9   : > { %7543 = vmatmul.msk.bf16.gmra.mxu0 %vm3625_vm0, %v5717_v8 }
 0x8cd   : > { %v13175_v38 = vpop.f32.mrf.mxu0 }
 0x8ce   : > { %15681 = vst [vmem:[#allocation83_spill] sm:$0xff] %v13175_v38 }
 0x8d6   : > { %v13177_v46 = vpop.f32.mrf.mxu0 }
 0x8d7   : > { %15682 = vst [vmem:[#allocation102_spill] sm:$0xff] %v13177_v46 }
 0x8d9   : > { %7544 = vmatmul.msk.bf16.gmra.mxu0 %vm3625_vm0, %v5719_v24  ;;  %v5944_v24 = vmul.f32 %v13144_v55, %v13144_v55 }
 0x8de   : > { %v13180_v3 = vpop.f32.mrf.mxu0 }
 0x8e6   : > { %v13182_v26 = vpop.f32.mrf.mxu0 }
 0x8e7   : > { %15683 = vst [vmem:[#allocation71_spill] sm:$0xff] %v13182_v26  ;;  %v5959_v47 = vmul.f32 %v13182_v26, %v13182_v26 }
 0x8e9   : > { %7545 = vmatmul.msk.bf16.gmra.mxu0 %vm3625_vm0, %v5721_v6  ;;  %v5975_v14 = vadd.f32 %v5959_v47, %v5943_v62  ;;  %v5945_v47 = vmul.f32 %v13147_v4, %v13147_v4  ;;  %v5946_v4 = vmul.f32 %v13150_v52, %v13150_v52 }
 0x8ee   : > { %v13185_v20 = vpop.f32.mrf.mxu0 }
 0x8ef   : > { %15684 = vst [vmem:[#allocation93_spill] sm:$0xff] %v13185_v20  ;;  %v5960_v8 = vmul.f32 %v13185_v20, %v13185_v20 }
 0x8f6   : > { %v13187_v13 = vpop.f32.mrf.mxu0 }
 0x8f7   : > { %15685 = vst [vmem:[#allocation80_spill] sm:$0xff] %v13187_v13 }
 0x8f9   : > { %7546 = vmatmul.msk.bf16.gmra.mxu0 %vm3625_vm0, %v5723_v5  ;;  %v5976_v5 = vadd.f32 %v5960_v8, %v5944_v24 }
 0x8fe   : > { %v13190_v7 = vpop.f32.mrf.mxu0 }
 0x8ff   : > { %15686 = vst [vmem:[#allocation129_spill] sm:$0xff] %v13190_v7 }
 0x906   : > { %v13192_v42 = vpop.f32.mrf.mxu0 }
 0x907   : > { %15687 = vst [vmem:[#allocation152_spill] sm:$0xff] %v13192_v42 }
 0x909   : > { %7547 = vmatmul.msk.bf16.gmra.mxu0 %vm3625_vm0, %v5725_v2 }
 0x90e   : > { %v13195_v60 = vpop.f32.mrf.mxu0 }
 0x916   : > { %v13197_v34 = vpop.f32.mrf.mxu0 }
 0x917   : > { %15688 = vst [vmem:[#allocation168_spill] sm:$0xff] %v13197_v34 }
 0x919   : > { %7548 = vmatmul.msk.bf16.gmra.mxu0 %vm3625_vm0, %v5727_v58 }
 0x91e   : > { %v13200_v45 = vpop.f32.mrf.mxu0 }
 0x926   : > { %v13202_v28 = vpop.f32.mrf.mxu0 }
 0x927   : > { %15689 = vst [vmem:[#allocation106_spill] sm:$0xff] %v13202_v28 }
 0x929   : > { %7549 = vmatmul.msk.bf16.gmra.mxu0 %vm3625_vm0, %v5729_v31 }
 0x92e   : > { %v13205_v59 = vpop.f32.mrf.mxu0 }
 0x92f   : > { %15690 = vst [vmem:[#allocation114_spill] sm:$0xff] %v13205_v59 }
 0x936   : > { %v13207_v57 = vpop.f32.mrf.mxu0 }
 0x937   : > { %15691 = vst [vmem:[#allocation23_spill] sm:$0xff] %v13207_v57 }
 0x939   : > { %7550 = vmatmul.msk.bf16.gmra.mxu0 %vm3625_vm0, %v5731_v32 }
 0x93e   : > { %v13210_v10 = vpop.f32.mrf.mxu0 }
 0x93f   : > { %15692 = vst [vmem:[#allocation24_spill] sm:$0xff] %v13210_v10 }
 0x946   : > { %v13212_v30 = vpop.f32.mrf.mxu0 }
 0x947   : > { %15693 = vst [vmem:[#allocation33_spill] sm:$0xff] %v13212_v30 }
 0x949   : > { %7551 = vmatmul.msk.bf16.gmra.mxu0 %vm3625_vm0, %v5733_v53  ;;  %v5961_v53 = vmul.f32 %v13187_v13, %v13187_v13 }
 0x94e   : > { %v13215_v19 = vpop.f32.mrf.mxu0 }
 0x94f   : > { %15694 = vst [vmem:[#allocation40_spill] sm:$0xff] %v13215_v19 }
 0x956   : > { %v13217_v39 = vpop.f32.mrf.mxu0 }
 0x957   : > { %15695 = vst [vmem:[#allocation15_spill] sm:$0xff] %v13217_v39 }
 0x959   : > { %7552 = vmatmul.msk.bf16.gmra.mxu0 %vm3625_vm0, %v5735_v17 }
 0x95e   : > { %v13220_v21 = vpop.f32.mrf.mxu0 }
 0x966   : > { %v13226_v23 = vpop.f32.mrf.mxu0 }
 0x967   : > { %v5991_v12 = vmul.f32 %v13226_v23, %v13226_v23 }
 0x969   : > { %v6007_v48 = vadd.f32 %v5991_v12, %v5975_v14  ;;  %v5977_v12 = vadd.f32 %v5961_v53, %v5945_v47 }
 0x96b   : > { %8414 = vrsqrt.f32 %v6007_v48  ;;  %vm6030_vm1 = vcmp.eq.f32.partialorder %v6007_v48, inf  ;;  %vm6032_vm3 = vcmp.eq.f32.partialorder %v6007_v48, 0.0 }
 0x96e   : > { %v13234_v6 = vpop.f32.mrf.mxu0 }
 0x96f   : > { %15696 = vst [vmem:[#allocation87_spill] sm:$0xff] %v13234_v6  ;;  %v5992_v2 = vmul.f32 %v13234_v6, %v13234_v6 }
 0x971   : > { %v8415_v58 = vpop.eup %8414  ;;  %v6008_v31 = vadd.f32 %v5992_v2, %v5976_v5  ;;  %v5962_v2 = vmul.f32 %v13190_v7, %v13190_v7 }
 0x972   : > { %v6024_v32 = vmul.f32 %v8415_v58, %v6007_v48 }
 0x973   : > { %8416 = vrsqrt.f32 %v6008_v31  ;;  %v5978_v47 = vadd.f32 %v5962_v2, %v5946_v4  ;;  %v6033_v2 = vand.u32 2147483648, %v6007_v48  ;;  %vm6042_vm2 = vcmp.eq.f32.partialorder %v6008_v31, inf }
 0x974   : > { %v6025_v17 = vmul.f32 %v8415_v58, %v6024_v32  ;;  %vm6044_vm4 = vcmp.eq.f32.partialorder %v6008_v31, 0.0 }
 0x976   : > { %v13242_v62 = vpop.f32.mrf.mxu0  ;;  %v6026_v14 = vmul.f32 0.5, %v6025_v17 }
 0x977   : > { %15697 = vst [vmem:[#allocation188_spill] sm:$0xff] %v13242_v62  ;;  %v5993_v8 = vmul.f32 %v13242_v62, %v13242_v62 }
 0x978   : > { %v6027_v24 = vsub.f32 1.5, %v6026_v14 }
 0x979   : > { %v8417_v55 = vpop.eup %8416  ;;  %v13246_v20 = vadd.f32 %v5993_v8, %v5977_v12 }
 0x97a   : > { %v6036_v5 = vmul.f32 %v8417_v55, %v6008_v31  ;;  %v6028_v32 = vmul.f32 %v8415_v58, %v6027_v24  ;;  %v5963_v58 = vmul.f32 %v13192_v42, %v13192_v42 }
 0x97b   : > { %8418 = vrsqrt.f32 %v13246_v20  ;;  %vm6054_vm5 = vcmp.eq.f32.partialorder %v13246_v20, inf  ;;  %vm6056_vm7 = vcmp.eq.f32.partialorder %v13246_v20, 0.0 }
 0x97c   : > { %v6037_v13 = vmul.f32 %v8417_v55, %v6036_v5  ;;  %v6029_v12 = vmul.f32 %v6028_v32, %v6007_v48  ;;  %v5947_v5 = vmul.f32 %v13152_v61, %v13152_v61  ;;  %v6045_v32 = vand.u32 2147483648, %v6008_v31 }
 0x97e   : > { %v13253_v17 = vpop.f32.mrf.mxu0  ;;  %v6038_v53 = vmul.f32 0.5, %v6037_v13  ;;  %v6031_v24 = vsel %vm6030_vm1, %v6007_v48, %v6029_v12  ;;  %v5964_v48 = vmul.f32 %v13195_v60, %v13195_v60 }
 0x97f   : > { %15698 = vst [vmem:[#allocation122_spill] sm:$0xff] %v13253_v17  ;;  %v5994_v14 = vmul.f32 %v13253_v17, %v13253_v17  ;;  %v6034_v42 = vsel %vm6032_vm3, %v6033_v2, %v6031_v24  ;;  %v5948_v24 = vmul.f32 %v13155_v0, %v13155_v0 }
 0x980   : > { %v6039_v8 = vsub.f32 1.5, %v6038_v53 }
 0x981   : > { %v8419_v62 = vpop.eup %8418  ;;  %v13257_v26 = vadd.f32 %v5994_v14, %v5978_v47  ;;  %v5979_v14 = vadd.f32 %v5963_v58, %v5947_v5 }
 0x982   : > { %v6040_v7 = vmul.f32 %v8417_v55, %v6039_v8  ;;  %v6048_v6 = vmul.f32 %v8419_v62, %v13246_v20 }
 0x983   : > { %8420 = vrsqrt.f32 %v13257_v26  ;;  %vm6066_vm6 = vcmp.eq.f32.partialorder %v13257_v26, inf  ;;  %vm6068_vm8 = vcmp.eq.f32.partialorder %v13257_v26, 0.0 }
 0x984   : > { %v6041_v13 = vmul.f32 %v6040_v7, %v6008_v31  ;;  %v6049_v4 = vmul.f32 %v8419_v62, %v6048_v6 }
 0x986   : > { %v13265_v53 = vpop.f32.mrf.mxu0  ;;  %v6043_v55 = vsel %vm6042_vm2, %v6008_v31, %v6041_v13  ;;  %v6050_v47 = vmul.f32 0.5, %v6049_v4  ;;  %v5980_v4 = vadd.f32 %v5964_v48, %v5948_v24  ;;  %v6057_v48 = vand.u32 2147483648, %v13246_v20 }
 0x987   : > { %v5995_v8 = vmul.f32 %v13265_v53, %v13265_v53  ;;  %v6046_v12 = vsel %vm6044_vm4, %v6045_v32, %v6043_v55 }
 0x988   : > { %v7729_v7 = vpack.i.bf16 %v6046_v12, %v6034_v42  ;;  %v6051_v6 = vsub.f32 1.5, %v6050_v47 }
 0x989   : > { %v8421_v17 = vpop.eup %8420  ;;  %v13269_v52 = vadd.f32 %v5995_v8, %v5979_v14 }
 0x98a   : > { %7730 = vrot.lane.b32.xlu2 %v7729_v7, %s8714_s27  ;;  %v6060_v61 = vmul.f32 %v8421_v17, %v13257_v26  ;;  %v6052_v31 = vmul.f32 %v8419_v62, %v6051_v6  ;;  %v5949_v6 = vmul.f32 %v13157_v40, %v13157_v40 }
 0x98b   : > { %8422 = vrsqrt.f32 %v13269_v52  ;;  %vm6078_vm9 = vcmp.eq.f32.partialorder %v13269_v52, inf  ;;  %vm6080_vm11 = vcmp.eq.f32.partialorder %v13269_v52, 0.0 }
 0x98c   : > { %v6061_v58 = vmul.f32 %v8421_v17, %v6060_v61  ;;  %v6053_v2 = vmul.f32 %v6052_v31, %v13246_v20  ;;  %v5965_v61 = vmul.f32 %v13197_v34, %v13197_v34 }
 0x98e   : > { %v13278_v13 = vpop.f32.mrf.mxu0  ;;  %v6062_v42 = vmul.f32 0.5, %v6061_v58  ;;  %v6055_v8 = vsel %vm6054_vm5, %v13246_v20, %v6053_v2 }
 0x98f   : > { %v5996_v5 = vmul.f32 %v13278_v13, %v13278_v13 }
 0x990   : > { %v6063_v32 = vsub.f32 1.5, %v6062_v42  ;;  %v5981_v42 = vadd.f32 %v5965_v61, %v5949_v6 }
 0x991   : > { %v8423_v55 = vpop.eup %8422  ;;  %v13283_v47 = vadd.f32 %v5996_v5, %v5980_v4  ;;  %v6058_v5 = vsel %vm6056_vm7, %v6057_v48, %v6055_v8  ;;  %v5950_v8 = vmul.f32 %v13160_v37, %v13160_v37  ;;  %v5208_v37 = vsub.f32 0.0, %v12936_v56 }
 0x992   : > { %v6064_v14 = vmul.f32 %v8421_v17, %v6063_v32  ;;  %v6072_v62 = vmul.f32 %v8423_v55, %v13269_v52  ;;  %v6069_v17 = vand.u32 2147483648, %v13257_v26 }
 0x993   : > { %8424 = vrsqrt.f32 %v13283_v47  ;;  %vm6090_vm10 = vcmp.eq.f32.partialorder %v13283_v47, inf  ;;  %vm6092_vm12 = vcmp.eq.f32.partialorder %v13283_v47, 0.0 }
 0x994   : > { %v6065_v12 = vmul.f32 %v6064_v14, %v13257_v26  ;;  %v6073_v7 = vmul.f32 %v8423_v55, %v6072_v62 }
 0x996   : > { %v13297_v31 = vpop.f32.mrf.mxu0  ;;  %v6067_v58 = vsel %vm6066_vm6, %v13257_v26, %v6065_v12  ;;  %v6074_v24 = vmul.f32 0.5, %v6073_v7  ;;  %v5966_v12 = vmul.f32 %v13200_v45, %v13200_v45 }
 0x997   : > { %v5997_v4 = vmul.f32 %v13297_v31, %v13297_v31  ;;  %v6070_v2 = vsel %vm6068_vm8, %v6069_v17, %v6067_v58 }
 0x998   : > { %v7734_v32 = vpack.i.bf16 %v6070_v2, %v6058_v5  ;;  %v6075_v14 = vsub.f32 1.5, %v6074_v24  ;;  %v5982_v48 = vadd.f32 %v5966_v12, %v5950_v8  ;;  %v5967_v2 = vmul.f32 %v13202_v28, %v13202_v28 }
 0x999   : > { %v8425_v62 = vpop.eup %8424  ;;  %v13304_v34 = vadd.f32 %v5997_v4, %v5981_v42  ;;  %v5951_v12 = vmul.f32 %v13162_v22, %v13162_v22 }
 0x99a   : > { %7735 = vrot.lane.b32.xlu1 %v7734_v32, %s8714_s27  ;;  %v6084_v20 = vmul.f32 %v8425_v62, %v13283_v47  ;;  %v6076_v26 = vmul.f32 %v8423_v55, %v6075_v14 }
 0x99b   : > { %8426 = vrsqrt.f32 %v13304_v34  ;;  %vm6102_vm13 = vcmp.eq.f32.partialorder %v13304_v34, inf  ;;  %vm6104_vm1 = vcmp.eq.f32.partialorder %v13304_v34, 0.0 }
 0x99c   : > { %v6085_v61 = vmul.f32 %v8425_v62, %v6084_v20  ;;  %v6077_v58 = vmul.f32 %v6076_v26, %v13269_v52  ;;  %v6081_v26 = vand.u32 2147483648, %v13269_v52 }
 0x99e   : > { %v13313_v7 = vpop.f32.mrf.mxu0  ;;  %v6086_v6 = vmul.f32 0.5, %v6085_v61  ;;  %v6079_v32 = vsel %vm6078_vm9, %v13269_v52, %v6077_v58 }
 0x99f   : > { %v5998_v17 = vmul.f32 %v13313_v7, %v13313_v7  ;;  %v6082_v58 = vsel %vm6080_vm11, %v6081_v26, %v6079_v32 }
 0x9a0   : > { %v6087_v24 = vsub.f32 1.5, %v6086_v6 }
 0x9a1   : > { %v8427_v42 = vpop.eup %8426  ;;  %v13318_v4 = vadd.f32 %v5998_v17, %v5982_v48  ;;  %v5983_v48 = vadd.f32 %v5967_v2, %v5951_v12  ;;  %v5209_v2 = vsub.f32 0.0, %v12943_v49  ;;  %v5224_v12 = vmul.f32 1.442695, %v5208_v37 }
 0x9a2   : > { %v6088_v5 = vmul.f32 %v8425_v62, %v6087_v24  ;;  %v6096_v55 = vmul.f32 %v8427_v42, %v13304_v34  ;;  %v6093_v62 = vand.u32 2147483648, %v13283_v47  ;;  %v5969_v37 = vmul.f32 %v13207_v57, %v13207_v57 }
 0x9a3   : > { %8428 = vrsqrt.f32 %v13318_v4  ;;  %vm6114_vm14 = vcmp.eq.f32.partialorder %v13318_v4, inf  ;;  %vm6116_vm2 = vcmp.eq.f32.partialorder %v13318_v4, 0.0 }
 0x9a4   : > { %v6089_v14 = vmul.f32 %v6088_v5, %v13283_v47  ;;  %v6097_v20 = vmul.f32 %v8427_v42, %v6096_v55 }
 0x9a6   : > { %v13332_v61 = vpop.f32.mrf.mxu0  ;;  %v6091_v8 = vsel %vm6090_vm10, %v13283_v47, %v6089_v14  ;;  %v6098_v6 = vmul.f32 0.5, %v6097_v20  ;;  %v5968_v47 = vmul.f32 %v13205_v59, %v13205_v59  ;;  %v5952_v20 = vmul.f32 %v13165_v35, %v13165_v35 }
 0x9a7   : > { %v5999_v17 = vmul.f32 %v13332_v61, %v13332_v61  ;;  %v6094_v24 = vsel %vm6092_vm12, %v6093_v62, %v6091_v8 }
 0x9a8   : > { %v7739_v5 = vpack.i.bf16 %v6094_v24, %v6082_v58  ;;  %v6099_v55 = vsub.f32 1.5, %v6098_v6  ;;  %v5984_v8 = vadd.f32 %v5968_v47, %v5952_v20 }
 0x9a9   : > { %v8429_v22 = vpop.eup %8428  ;;  %v13339_v28 = vadd.f32 %v5999_v17, %v5983_v48  ;;  %v5226_v48 = vmul.f32 1.442695, %v5209_v2 }
 0x9aa   : > { %7740 = vrot.lane.b32.xlu2 %v7739_v5, %s8714_s27  ;;  %v6108_v52 = vmul.f32 %v8429_v22, %v13318_v4  ;;  %v6100_v32 = vmul.f32 %v8427_v42, %v6099_v55 }
 0x9ab   : > { %8430 = vrsqrt.f32 %v13339_v28  ;;  %vm6126_vm3 = vcmp.eq.f32.partialorder %v13339_v28, inf  ;;  %vm6128_vm5 = vcmp.eq.f32.partialorder %v13339_v28, 0.0 }
 0x9ac   : > { %v6109_v14 = vmul.f32 %v8429_v22, %v6108_v52  ;;  %v6101_v17 = vmul.f32 %v6100_v32, %v13304_v34  ;;  %8432 = vpow2.f32 %v5224_v12  ;;  %v5953_v32 = vmul.f32 %v13167_v9, %v13167_v9 }
 0x9ae   : > { %v13350_v26 = vpop.f32.mrf.mxu0  ;;  %v6110_v62 = vmul.f32 0.5, %v6109_v14  ;;  %v6103_v52 = vsel %vm6102_vm13, %v13304_v34, %v6101_v17  ;;  %v6117_v14 = vand.u32 2147483648, %v13318_v4 }
 0x9af   : > { %v6000_v6 = vmul.f32 %v13350_v26, %v13350_v26 }
 0x9b0   : > { %v6111_v58 = vsub.f32 1.5, %v6110_v62 }
 0x9b1   : > { %v8431_v24 = vpop.eup %8430  ;;  %v13355_v5 = vadd.f32 %v6000_v6, %v5984_v8  ;;  %v5985_v8 = vadd.f32 %v5969_v37, %v5953_v32  ;;  %v6312_v37 = vpop.permute.xlu2 %6311 }
 0x9b2   : > { %v6112_v42 = vmul.f32 %v8429_v22, %v6111_v58  ;;  %v6120_v55 = vmul.f32 %v8431_v24, %v13339_v28  ;;  %v6105_v22 = vand.u32 2147483648, %v13304_v34  ;;  %v8433_v58 = vpop.eup %8432  ;;  %6345 = vmatpush.bf16.msrb.mxu1 %v6312_v37 }
 0x9b3   : > { %8434 = vrsqrt.f32 %v13355_v5  ;;  %vm6138_vm4 = vcmp.eq.f32.partialorder %v13355_v5, inf  ;;  %vm6140_vm6 = vcmp.eq.f32.partialorder %v13355_v5, 0.0 }
 0x9b4   : > { %8436 = vpow2.f32 %v5226_v48  ;;  %v6113_v47 = vmul.f32 %v6112_v42, %v13318_v4  ;;  %v6121_v2 = vmul.f32 %v8431_v24, %v6120_v55  ;;  %v6106_v48 = vsel %vm6104_vm1, %v6105_v22, %v6103_v52 }
 0x9b5   : > { %v5954_v22 = vmul.f32 %v13170_v27, %v13170_v27 }
 0x9b6   : > { %v13369_v20 = vpop.f32.mrf.mxu0  ;;  %v6115_v12 = vsel %vm6114_vm14, %v13318_v4, %v6113_v47  ;;  %v6122_v62 = vmul.f32 0.5, %v6121_v2  ;;  %v5970_v4 = vmul.f32 %v13210_v10, %v13210_v10  ;;  %v13383_v47 = vadd.f32 1.0, %v8433_v58 }
 0x9b7   : > { %v6001_v6 = vmul.f32 %v13369_v20, %v13369_v20  ;;  %v6118_v17 = vsel %vm6116_vm2, %v6117_v14, %v6115_v12  ;;  %v6310_v14 = vpop.permute.xlu0 %6309 }
 0x9b8   : > { %v7744_v42 = vpack.i.bf16 %v6118_v17, %v6106_v48  ;;  %v6123_v55 = vsub.f32 1.5, %v6122_v62  ;;  %6346 = vmatpush.bf16.msrb.mxu1 %v6310_v14  ;;  %vm5277_vm8 = vweird.f32 %v13383_v47 }
 0x9b9   : > { %v8435_v9 = vpop.eup %8434  ;;  %v13376_v57 = vadd.f32 %v6001_v6, %v5985_v8  ;;  %v5986_v8 = vadd.f32 %v5970_v4, %v5954_v22  ;;  %v6141_v22 = vand.u32 2147483648, %v13355_v5 }
 0x9ba   : > { %v8437_v59 = vpop.eup %8436  ;;  %7745 = vrot.lane.b32.xlu0 %v7744_v42, %s8714_s27  ;;  %v6132_v34 = vmul.f32 %v8435_v9, %v13355_v5  ;;  %v6124_v52 = vmul.f32 %v8431_v24, %v6123_v55  ;;  %v5971_v55 = vmul.f32 %v13212_v30, %v13212_v30 }
 0x9bb   : > { %8438 = vrsqrt.f32 %v13376_v57  ;;  %v13385_v32 = vadd.f32 1.0, %v8437_v59  ;;  %vm6150_vm9 = vcmp.eq.f32.partialorder %v13376_v57, inf  ;;  %vm6152_vm11 = vcmp.eq.f32.partialorder %v13376_v57, 0.0 }
 0x9bc   : > { %v6133_v2 = vmul.f32 %v8435_v9, %v6132_v34  ;;  %8440 = vrcp.f32 %v13383_v47  ;;  %v6125_v48 = vmul.f32 %v6124_v52, %v13339_v28  ;;  %v6308_v34 = vpop.permute.xlu1 %6307 }
 0x9bd   : > { %8442 = vrcp.f32 %v13385_v32  ;;  %6347 = vmatpush.bf16.msrb.mxu1 %v6308_v34  ;;  %vm5292_vm1 = vweird.f32 %v13385_v32 }
 0x9be   : > { %v13389_v12 = vpop.f32.mrf.mxu0  ;;  %v6134_v62 = vmul.f32 0.5, %v6133_v2  ;;  %v6127_v4 = vsel %vm6126_vm3, %v13339_v28, %v6125_v48  ;;  %v5955_v2 = vmul.f32 %v13172_v63, %v13172_v63 }
 0x9bf   : > { %15699 = vst [vmem:[#allocation128_spill] sm:$0xff] %v13389_v12  ;;  %v6002_v6 = vmul.f32 %v13389_v12, %v13389_v12  ;;  %v6306_v12 = vpop.permute.xlu0 %6305 }
 0x9c0   : > { %v6135_v24 = vsub.f32 1.5, %v6134_v62 }
 0x9c1   : > { %v8439_v17 = vpop.eup %8438  ;;  %v13396_v59 = vadd.f32 %v6002_v6, %v5986_v8  ;;  %6348 = vmatpush.bf16.msrb.mxu1 %v6306_v12  ;;  %v5956_v12 = vmul.f32 %v13175_v38, %v13175_v38 }
 0x9c2   : > { %v6136_v58 = vmul.f32 %v8435_v9, %v6135_v24  ;;  %v6144_v42 = vmul.f32 %v8439_v17, %v13376_v57  ;;  %v6129_v9 = vand.u32 2147483648, %v13339_v28  ;;  %v13410_v14 = vpop.eup %8440  ;;  %v5987_v24 = vadd.f32 %v5971_v55, %v5955_v2 }
 0x9c3   : > { %8444 = vrsqrt.f32 %v13396_v59  ;;  %v13417_v48 = vpop.eup %8442  ;;  %v5273_v28 = vmul.f32 %v13410_v14, %v13383_v47  ;;  %v5212_v55 = vsub.f32 0.0, %v12959_v50  ;;  %vm5278_vm7 = vweird.f32 %v13410_v14 }
 0x9c4   : > { %v6137_v37 = vmul.f32 %v6136_v58, %v13355_v5  ;;  %v6145_v52 = vmul.f32 %v8439_v17, %v6144_v42  ;;  %v6130_v42 = vsel %vm6128_vm5, %v6129_v9, %v6127_v4  ;;  %vm6162_vm10 = vcmp.eq.f32.partialorder %v13396_v59, inf  ;;  %vm13482_vm14 = vmor %vm5277_vm8, %vm5278_vm7 }
 0x9c5   : > { %vm6164_vm12 = vcmp.eq.f32.partialorder %v13396_v59, 0.0  ;;  %vm5293_vm13 = vweird.f32 %v13417_v48 }
 0x9c6   : > { %v13412_v62 = vpop.f32.mrf.mxu0  ;;  %v6139_v8 = vsel %vm6138_vm4, %v13355_v5, %v6137_v37  ;;  %v6146_v6 = vmul.f32 0.5, %v6145_v52  ;;  %v5288_v5 = vmul.f32 %v13417_v48, %v13385_v32  ;;  %v5972_v37 = vmul.f32 %v13215_v19, %v13215_v19  ;;  %vm13494_vm2 = vmor %vm5292_vm1, %vm5293_vm13 }
 0x9c7   : > { %15700 = vst [vmem:[#allocation189_spill] sm:$0xff] %v13412_v62  ;;  %v6003_v58 = vmul.f32 %v13412_v62, %v13412_v62  ;;  %v6142_v34 = vsel %vm6140_vm6, %v6141_v22, %v6139_v8  ;;  %v5213_v52 = vsub.f32 0.0, %v12965_v33  ;;  %v5274_v22 = vsub.f32 1.0, %v5273_v28 }
 0x9c8   : > { %v7749_v30 = vpack.i.bf16 %v6142_v34, %v6130_v42  ;;  %v6147_v63 = vsub.f32 1.5, %v6146_v6  ;;  %v5289_v8 = vsub.f32 1.0, %v5288_v5  ;;  %v5232_v6 = vmul.f32 1.442695, %v5212_v55 }
 0x9c9   : > { %v8445_v27 = vpop.eup %8444  ;;  %v13423_v10 = vadd.f32 %v6003_v58, %v5987_v24  ;;  %v5210_v58 = vsub.f32 0.0, %v12949_v43  ;;  %v5988_v42 = vadd.f32 %v5972_v37, %v5956_v12  ;;  %v5234_v19 = vmul.f32 1.442695, %v5213_v52 }
 0x9ca   : > { %7750 = vrot.lane.b32.xlu1 %v7749_v30, %s8714_s27  ;;  %v6156_v4 = vmul.f32 %v8445_v27, %v13396_v59  ;;  %v6148_v2 = vmul.f32 %v8439_v17, %v6147_v63  ;;  %v5275_v28 = vmul.f32 %v13410_v14, %v5274_v22  ;;  %v5290_v55 = vmul.f32 %v13417_v48, %v5289_v8 }
 0x9cb   : > { %8446 = vrsqrt.f32 %v13423_v10  ;;  %v5973_v52 = vmul.f32 %v13217_v39, %v13217_v39  ;;  %v5957_v8 = vmul.f32 %v13177_v46, %v13177_v46  ;;  %vm6174_vm5 = vcmp.eq.f32.partialorder %v13423_v10, inf }
 0x9cc   : > { %v6157_v9 = vmul.f32 %v8445_v27, %v6156_v4  ;;  %v6149_v62 = vmul.f32 %v6148_v2, %v13376_v57  ;;  %8448 = vpow2.f32 %v5232_v6  ;;  %v6165_v6 = vand.u32 2147483648, %v13396_v59 }
 0x9cd   : > { %vm6176_vm7 = vcmp.eq.f32.partialorder %v13423_v10, 0.0 }
 0x9ce   : > { %v13436_v24 = vpop.f32.mrf.mxu0  ;;  %v6158_v30 = vmul.f32 0.5, %v6157_v9  ;;  %v5228_v9 = vmul.f32 1.442695, %v5210_v58  ;;  %v6151_v2 = vsel %vm6150_vm9, %v13376_v57, %v6149_v62  ;;  %v5989_v58 = vadd.f32 %v5973_v52, %v5957_v8 }
 0x9cf   : > { %15701 = vst [vmem:[#allocation204_spill] sm:$0xff] %v13436_v24  ;;  %v6004_v34 = vmul.f32 %v13436_v24, %v13436_v24  ;;  %v5211_v24 = vsub.f32 0.0, %v12954_v54  ;;  %v5296_v8 = vand.u32 2147483647, %v13385_v32 }
 0x9d0   : > { %v6159_v63 = vsub.f32 1.5, %v6158_v30 }
 0x9d1   : > { %v8447_v17 = vpop.eup %8446  ;;  %v13444_v5 = vadd.f32 %v6004_v34, %v5988_v42  ;;  %vm5297_vm4 = vcmp.eq.f32.partialorder %v5296_v8, 8.507059e+37 }
 0x9d2   : > { %v6160_v4 = vmul.f32 %v8445_v27, %v6159_v63  ;;  %v6168_v37 = vmul.f32 %v8447_v17, %v13423_v10  ;;  %v6153_v27 = vand.u32 2147483648, %v13376_v57  ;;  %v5283_v57 = vand.u32 2147483648, %v13383_v47 }
 0x9d3   : > { %8450 = vrsqrt.f32 %v13444_v5  ;;  %vm6186_vm6 = vcmp.eq.f32.partialorder %v13444_v5, inf  ;;  %vm6188_vm8 = vcmp.eq.f32.partialorder %v13444_v5, 0.0 }
 0x9d4   : > { %8452 = vpow2.f32 %v5234_v19  ;;  %v6161_v22 = vmul.f32 %v6160_v4, %v13396_v59  ;;  %v6169_v12 = vmul.f32 %v8447_v17, %v6168_v37  ;;  %v6154_v34 = vsel %vm6152_vm11, %v6153_v27, %v6151_v2  ;;  %v8449_v4 = vpop.eup %8448 }
 0x9d5   : > { %v5276_v37 = vadd.f32 %v13410_v14, %v5275_v28  ;;  %v5281_v2 = vand.u32 2147483647, %v13383_v47  ;;  %8454 = vpow2.f32 %v5228_v9  ;;  %v5974_v27 = vmul.f32 %v13220_v21, %v13220_v21 }
 0x9d6   : > { %v13460_v30 = vpop.f32.mrf.mxu0  ;;  %v6163_v19 = vsel %vm6162_vm10, %v13396_v59, %v6161_v22  ;;  %v6170_v62 = vmul.f32 0.5, %v6169_v12  ;;  %v5291_v22 = vadd.f32 %v13417_v48, %v5290_v55  ;;  %v5298_v12 = vand.u32 2147483648, %v13385_v32 }
 0x9d7   : > { %v6005_v42 = vmul.f32 %v13460_v30, %v13460_v30  ;;  %v6166_v63 = vsel %vm6164_vm12, %v6165_v6, %v6163_v19  ;;  %v5230_v47 = vmul.f32 1.442695, %v5211_v24  ;;  %vm5282_vm3 = vcmp.eq.f32.partialorder %v5281_v2, 8.507059e+37 }
 0x9d8   : > { %v7754_v46 = vpack.i.bf16 %v6166_v63, %v6154_v34  ;;  %v6171_v39 = vsub.f32 1.5, %v6170_v62  ;;  %v5284_v62 = vor.u32 1.1754944e-38, %v5283_v57  ;;  %v5295_v32 = vsel %vm13494_vm2, %v13417_v48, %v5291_v22 }
 0x9d9   : > { %v8451_v38 = vpop.eup %8450  ;;  %v13472_v59 = vadd.f32 %v6005_v42, %v5989_v58  ;;  %v13501_v58 = vadd.f32 1.0, %v8449_v4  ;;  %v5958_v42 = vmul.f32 %v13180_v3, %v13180_v3  ;;  %v5299_v34 = vor.u32 1.1754944e-38, %v5298_v12  ;;  %v8627_v12 = vld [vmem:[#allocation6 + $0x8] sm:$0xff] }
 0x9da   : > { %v8453_v52 = vpop.eup %8452  ;;  %7755 = vrot.lane.b32.xlu2 %v7754_v46, %s8714_s27  ;;  %v6180_v28 = vmul.f32 %v8451_v38, %v13444_v5  ;;  %v5280_v46 = vsel %vm13482_vm14, %v13410_v14, %v5276_v37  ;;  %v6172_v6 = vmul.f32 %v8447_v17, %v6171_v39 }
 0x9db   : > { %8456 = vrsqrt.f32 %v13472_v59  ;;  %v13505_v14 = vadd.f32 1.0, %v8453_v52  ;;  %v5285_v24 = vsel %vm5282_vm3, %v5284_v62, %v5280_v46  ;;  %v5990_v39 = vadd.f32 %v5974_v27, %v5958_v42  ;;  %v8455_v57 = vpop.eup %8454 }
 0x9dc   : > { %v6181_v19 = vmul.f32 %v8451_v38, %v6180_v28  ;;  %v5300_v48 = vsel %vm5297_vm4, %v5299_v34, %v5295_v32  ;;  %8458 = vpow2.f32 %v5230_v47  ;;  %v6173_v4 = vmul.f32 %v6172_v6, %v13423_v10 }
 0x9dd   : > { %8460 = vrcp.f32 %v13501_v58  ;;  %v5512_v2 = vmul.f32 %v5285_v24, %v12936_v56  ;;  %v5513_v27 = vmul.f32 %v5300_v48, %v12943_v49  ;;  %v13520_v46 = vadd.f32 1.0, %v8455_v57 }
 0x9de   : > { %v13507_v63 = vpop.f32.mrf.mxu0  ;;  %v6182_v37 = vmul.f32 0.5, %v6181_v19  ;;  %8462 = vrcp.f32 %v13505_v14  ;;  %v6175_v47 = vsel %vm6174_vm5, %v13423_v10, %v6173_v4  ;;  %v6177_v56 = vand.u32 2147483648, %v13423_v10 }
 0x9df   : > { %v6006_v17 = vmul.f32 %v13507_v63, %v13507_v63  ;;  %v6189_v49 = vand.u32 2147483648, %v13444_v5  ;;  %vm6198_vm9 = vcmp.eq.f32.partialorder %v13472_v59, inf  ;;  %vm6200_vm11 = vcmp.eq.f32.partialorder %v13472_v59, 0.0 }
 0x9e0   : > { %v6183_v22 = vsub.f32 1.5, %v6182_v37  ;;  %vm5337_vm1 = vweird.f32 %v13501_v58  ;;  %vm5352_vm3 = vweird.f32 %v13505_v14  ;;  %vm5307_vm5 = vweird.f32 %v13520_v46 }
 0x9e1   : > { %v8457_v28 = vpop.eup %8456  ;;  %v13513_v52 = vadd.f32 %v6006_v17, %v5990_v39  ;;  %v6178_v17 = vsel %vm6176_vm7, %v6177_v56, %v6175_v47  ;;  %v5214_v56 = vsub.f32 0.0, %v12971_v36 }
 0x9e2   : > { %6720 = vrot.lane.b32.xlu2 %v8627_v12, %s8714_s27  ;;  %v6184_v55 = vmul.f32 %v8451_v38, %v6183_v22  ;;  %v6192_v8 = vmul.f32 %v8457_v28, %v13472_v59  ;;  %v8459_v32 = vpop.eup %8458 }
 0x9e3   : > { %8464 = vrsqrt.f32 %v13513_v52  ;;  %v13532_v37 = vpop.eup %8460  ;;  %v13538_v10 = vadd.f32 1.0, %v8459_v32  ;;  %vm6210_vm10 = vcmp.eq.f32.partialorder %v13513_v52, inf  ;;  %vm6212_vm12 = vcmp.eq.f32.partialorder %v13513_v52, 0.0 }
 0x9e4   : > { %v7731_v9 = vpop.permute.xlu2 %7730  ;;  %v6185_v6 = vmul.f32 %v6184_v55, %v13444_v5  ;;  %v6193_v19 = vmul.f32 %v8457_v28, %v6192_v8  ;;  %v13536_v48 = vpop.eup %8462  ;;  %8466 = vrcp.f32 %v13520_v46  ;;  %vm5338_vm13 = vweird.f32 %v13532_v37 }
 0x9e5   : > { %v7733_v62 = vunpack.i.h.bf16 %v7731_v9  ;;  %v7732_v38 = vunpack.i.l.bf16 %v7731_v9  ;;  %8468 = vrcp.f32 %v13538_v10  ;;  %v5348_v47 = vmul.f32 %v13536_v48, %v13505_v14  ;;  %vm13581_vm2 = vmor %vm5337_vm1, %vm5338_vm13 }
 0x9e6   : > { %v6187_v42 = vsel %vm6186_vm6, %v13444_v5, %v6185_v6  ;;  %v6194_v34 = vmul.f32 0.5, %v6193_v19  ;;  %vm5353_vm14 = vweird.f32 %v13536_v48 }
 0x9e7   : > { %v6280_v24 = vsel %vm3625_vm0, %v5513_v27, %v7733_v62  ;;  %v6279_v39 = vsel %vm3625_vm0, %v5512_v2, %v7732_v38  ;;  %v6190_v57 = vsel %vm6188_vm8, %v6189_v49, %v6187_v42  ;;  %v5333_v27 = vmul.f32 %v13532_v37, %v13501_v58  ;;  %vm13591_vm4 = vmor %vm5352_vm3, %vm5353_vm14 }
 0x9e8   : > { %v6295_v4 = vpack.c.bf16 %v6280_v24, %v6279_v39  ;;  %v7759_v22 = vpack.i.bf16 %v6190_v57, %v6178_v17  ;;  %v6195_v12 = vsub.f32 1.5, %v6194_v34  ;;  %v5349_v32 = vsub.f32 1.0, %v5348_v47 }
 0x9e9   : > { %v8465_v55 = vpop.eup %8464  ;;  %v5334_v38 = vsub.f32 1.0, %v5333_v27  ;;  %v5236_v24 = vmul.f32 1.442695, %v5214_v56  ;;  %v5215_v57 = vsub.f32 0.0, %v12976_v44 }
 0x9ea   : > { %7760 = vrot.lane.b32.xlu0 %v7759_v22, %s8714_s27  ;;  %7553 = vmatmul.msk.bf16.vlgmr.msrb.gmra.mxu1 %vm5134_vm15, %v6295_v4  ;;  %v6204_v5 = vmul.f32 %v8465_v55, %v13513_v52  ;;  %v6196_v8 = vmul.f32 %v8457_v28, %v6195_v12  ;;  %v13551_v62 = vpop.eup %8466  ;;  %v8628_v28 = vld [vmem:[#allocation6] sm:$0xff]  ;;  %v6201_v4 = vand.u32 2147483648, %v13472_v59  ;;  %v6213_v22 = vand.u32 2147483648, %v13513_v52 }
 0x9eb   : > { %v13555_v42 = vpop.eup %8468  ;;  %v5303_v34 = vmul.f32 %v13551_v62, %v13520_v46  ;;  %v5335_v12 = vmul.f32 %v13532_v37, %v5334_v38  ;;  %v5238_v47 = vmul.f32 1.442695, %v5215_v57  ;;  %8470 = vpow2.f32 %v5236_v24 }
 0x9ec   : > { %v6205_v2 = vmul.f32 %v8465_v55, %v6204_v5  ;;  %v6197_v6 = vmul.f32 %v6196_v8, %v13472_v59  ;;  %v5318_v5 = vmul.f32 %v13555_v42, %v13538_v10  ;;  %v5350_v8 = vmul.f32 %v13536_v48, %v5349_v32 }
 0x9ed   : > { %v5304_v56 = vsub.f32 1.0, %v5303_v34  ;;  %v5341_v38 = vand.u32 2147483647, %v13501_v58  ;;  %v5356_v32 = vand.u32 2147483647, %v13505_v14  ;;  %8472 = vpow2.f32 %v5238_v47 }
 0x9ee   : > { %v6206_v9 = vmul.f32 0.5, %v6205_v2  ;;  %v6199_v39 = vsel %vm6198_vm9, %v13472_v59, %v6197_v6  ;;  %v5336_v6 = vadd.f32 %v13532_v37, %v5335_v12  ;;  %v5319_v59 = vsub.f32 1.0, %v5318_v5 }
 0x9ef   : > { %v6202_v2 = vsel %vm6200_vm11, %v6201_v4, %v6199_v39  ;;  %v5305_v34 = vmul.f32 %v13551_v62, %v5304_v56  ;;  %v5311_v4 = vand.u32 2147483647, %v13520_v46  ;;  %vm5342_vm6 = vcmp.eq.f32.partialorder %v5341_v38, 8.507059e+37 }
 0x9f0   : > { %v6207_v19 = vsub.f32 1.5, %v6206_v9  ;;  %v5340_v24 = vsel %vm13581_vm2, %v13532_v37, %v5336_v6  ;;  %v5218_v37 = vsub.f32 0.0, %v12991_v15  ;;  %v5313_v12 = vand.u32 2147483648, %v13520_v46 }
 0x9f1   : > { %v8471_v57 = vpop.eup %8470  ;;  %vm5357_vm7 = vcmp.eq.f32.partialorder %v5356_v32, 8.507059e+37  ;;  %v5219_v5 = vsub.f32 0.0, %v12996_v25  ;;  %vm5308_vm8 = vweird.f32 %v13551_v62  ;;  %vm5322_vm9 = vweird.f32 %v13538_v10 }
 0x9f2   : > { %v6208_v49 = vmul.f32 %v8465_v55, %v6207_v19  ;;  %6718 = vrot.lane.b32.xlu0 %v8628_v28, %s8714_s27  ;;  %v5351_v19 = vadd.f32 %v13536_v48, %v5350_v8  ;;  %v5306_v8 = vadd.f32 %v13551_v62, %v5305_v34  ;;  %v13610_v47 = vadd.f32 1.0, %v8471_v57  ;;  %vm13617_vm11 = vmor %vm5307_vm5, %vm5308_vm8 }
 0x9f3   : > { %v5326_v56 = vand.u32 2147483647, %v13538_v10  ;;  %v5246_v28 = vmul.f32 1.442695, %v5219_v5  ;;  %vm5312_vm13 = vcmp.eq.f32.partialorder %v5311_v4, 8.507059e+37 }
 0x9f4   : > { %v6209_v17 = vmul.f32 %v6208_v49, %v13513_v52  ;;  %v5358_v49 = vand.u32 2147483648, %v13505_v14  ;;  %v5355_v14 = vsel %vm13591_vm4, %v13536_v48, %v5351_v19  ;;  %8474 = vrcp.f32 %v13610_v47 }
 0x9f5   : > { %vm5327_vm14 = vcmp.eq.f32.partialorder %v5326_v56, 8.507059e+37  ;;  %vm5367_vm3 = vweird.f32 %v13610_v47 }
 0x9f6   : > { %v6211_v55 = vsel %vm6210_vm10, %v13513_v52, %v6209_v17  ;;  %v5343_v52 = vand.u32 2147483648, %v13501_v58  ;;  %v5320_v58 = vmul.f32 %v13555_v42, %v5319_v59  ;;  %vm5323_vm10 = vweird.f32 %v13555_v42 }
 0x9f7   : > { %v6214_v27 = vsel %vm6212_vm12, %v6213_v22, %v6211_v55  ;;  %v5359_v22 = vor.u32 1.1754944e-38, %v5358_v49  ;;  %v5216_v59 = vsub.f32 0.0, %v12981_v41  ;;  %vm13627_vm12 = vmor %vm5322_vm9, %vm5323_vm10 }
 0x9f8   : > { %v7764_v9 = vpack.i.bf16 %v6214_v27, %v6202_v2  ;;  %v5344_v17 = vor.u32 1.1754944e-38, %v5343_v52  ;;  %v5328_v2 = vand.u32 2147483648, %v13538_v10  ;;  %v8473_v27 = vpop.eup %8472  ;;  %v5244_v52 = vmul.f32 1.442695, %v5218_v37 }
 0x9f9   : > { %v5360_v48 = vsel %vm5357_vm7, %v5359_v22, %v5355_v14  ;;  %v5240_v14 = vmul.f32 1.442695, %v5216_v59  ;;  %v5217_v10 = vsub.f32 0.0, %v12986_v1 }
 0x9fa   : > { %7765 = vrot.lane.b32.xlu1 %v7764_v9, %s8714_s27  ;;  %v5345_v55 = vsel %vm5342_vm6, %v5344_v17, %v5340_v24  ;;  %v5321_v9 = vadd.f32 %v13555_v42, %v5320_v58  ;;  %v5517_v49 = vmul.f32 %v5360_v48, %v12965_v33  ;;  %v5310_v24 = vsel %vm13617_vm11, %v13551_v62, %v5306_v8 }
 0x9fb   : > { %v5516_v6 = vmul.f32 %v5345_v55, %v12959_v50  ;;  %v5314_v50 = vor.u32 1.1754944e-38, %v5313_v12  ;;  %v5329_v46 = vor.u32 1.1754944e-38, %v5328_v2  ;;  %v13631_v58 = vadd.f32 1.0, %v8473_v27  ;;  %v8475_v55 = vpop.eup %8474 }
 0x9fc   : > { %v5325_v33 = vsel %vm13627_vm12, %v13555_v42, %v5321_v9  ;;  %8476 = vpow2.f32 %v5244_v52  ;;  %v5242_v42 = vmul.f32 1.442695, %v5217_v10  ;;  %v5363_v38 = vmul.f32 %v8475_v55, %v13610_v47 }
 0x9fd   : > { %8478 = vpow2.f32 %v5246_v28  ;;  %v5315_v22 = vsel %vm5312_vm13, %v5314_v50, %v5310_v24  ;;  %v5330_v37 = vsel %vm5327_vm14, %v5329_v46, %v5325_v33  ;;  %vm5368_vm1 = vweird.f32 %v8475_v55 }
 0x9fe   : > { %8480 = vrcp.f32 %v13631_v58  ;;  %v5514_v5 = vmul.f32 %v5315_v22, %v12949_v43  ;;  %v5515_v8 = vmul.f32 %v5330_v37, %v12954_v54  ;;  %v5373_v37 = vand.u32 2147483648, %v13610_v47  ;;  %vm13676_vm4 = vmor %vm5367_vm3, %vm5368_vm1 }
 0x9ff   : > { %8482 = vpow2.f32 %v5240_v14  ;;  %vm5382_vm5 = vweird.f32 %v13631_v58 }
 0xa00   : > { %8484 = vpow2.f32 %v5242_v42  ;;  %v5388_v42 = vand.u32 2147483648, %v13631_v58 }
 0xa02   : > { %v8477_v27 = vpop.eup %8476 }
 0xa03   : > { %v8479_v9 = vpop.eup %8478  ;;  %v13648_v52 = vadd.f32 1.0, %v8477_v27 }
 0xa04   : > { %v7741_v19 = vpop.permute.xlu2 %7740 }
 0xa05   : > { %v7743_v32 = vunpack.i.h.bf16 %v7741_v19  ;;  %v7742_v34 = vunpack.i.l.bf16 %v7741_v19  ;;  %8486 = vrcp.f32 %v13648_v52  ;;  %vm5427_vm9 = vweird.f32 %v13648_v52 }
 0xa07   : > { %v13638_v17 = vsel %vm3625_vm0, %v5517_v49, %v7743_v32  ;;  %v6283_v62 = vsel %vm3625_vm0, %v5516_v6, %v7742_v34  ;;  %v8481_v6 = vpop.eup %8480  ;;  %v13651_v49 = vadd.f32 1.0, %v8479_v9  ;;  %v5364_v32 = vsub.f32 1.0, %v5363_v38 }
 0xa08   : > { %v6297_v57 = vpack.c.bf16 %v13638_v17, %v6283_v62  ;;  %v8483_v19 = vpop.eup %8482  ;;  %v5378_v43 = vmul.f32 %v8481_v6, %v13631_v58  ;;  %vm5383_vm2 = vweird.f32 %v8481_v6 }
 0xa09   : > { %v13655_v54 = vadd.f32 1.0, %v8483_v19  ;;  %v8485_v28 = vpop.eup %8484  ;;  %8488 = vrcp.f32 %v13651_v49  ;;  %v5365_v50 = vmul.f32 %v8475_v55, %v5364_v32  ;;  %vm5384_vm6 = vmor %vm5382_vm5, %vm5383_vm2  ;;  %v5220_v32 = vsub.f32 0.0, %v13001_v11 }
 0xa0a   : > { %v5379_v34 = vsub.f32 1.0, %v5378_v43  ;;  %v13660_v24 = vadd.f32 1.0, %v8485_v28  ;;  %vm5442_vm12 = vweird.f32 %v13651_v49 }
 0xa0b   : > { %8490 = vrcp.f32 %v13655_v54  ;;  %v13662_v39 = vpop.eup %8486  ;;  %v5366_v17 = vadd.f32 %v8475_v55, %v5365_v50  ;;  %vm5397_vm5 = vweird.f32 %v13655_v54 }
 0xa0c   : > { %v7736_v12 = vpop.permute.xlu1 %7735  ;;  %v5380_v46 = vmul.f32 %v8481_v6, %v5379_v34  ;;  %8492 = vrcp.f32 %v13660_v24  ;;  %v5423_v10 = vmul.f32 %v13662_v39, %v13648_v52  ;;  %v5221_v34 = vsub.f32 0.0, %v13008_v29 }
 0xa0d   : > { %v7738_v2 = vunpack.i.h.bf16 %v7736_v12  ;;  %v7737_v48 = vunpack.i.l.bf16 %v7736_v12  ;;  %v5370_v27 = vsel %vm13676_vm4, %v8475_v55, %v5366_v17  ;;  %vm5428_vm10 = vweird.f32 %v13662_v39 }
 0xa0e   : > { %v5381_v14 = vadd.f32 %v8481_v6, %v5380_v46  ;;  %vm13708_vm13 = vmor %vm5427_vm9, %vm5428_vm10  ;;  %v5446_v12 = vand.u32 2147483647, %v13651_v49 }
 0xa0f   : > { %v6282_v4 = vsel %vm3625_vm0, %v5515_v8, %v7738_v2  ;;  %v6281_v56 = vsel %vm3625_vm0, %v5514_v5, %v7737_v48  ;;  %v13664_v33 = vpop.eup %8488  ;;  %v5371_v5 = vand.u32 2147483647, %v13610_v47  ;;  %v5386_v8 = vand.u32 2147483647, %v13631_v58 }
 0xa10   : > { %v6296_v59 = vpack.c.bf16 %v6282_v4, %v6281_v56  ;;  %v5438_v22 = vmul.f32 %v13664_v33, %v13651_v49  ;;  %v5385_v9 = vsel %vm5384_vm6, %v8481_v6, %v5381_v14  ;;  %v5424_v4 = vsub.f32 1.0, %v5423_v10 }
 0xa11   : > { %v13667_v62 = vpop.eup %8490  ;;  %v5389_v47 = vor.u32 1.1754944e-38, %v5388_v42  ;;  %vm5372_vm7 = vcmp.eq.f32.partialorder %v5371_v5, 8.507059e+37  ;;  %vm5387_vm8 = vcmp.eq.f32.partialorder %v5386_v8, 8.507059e+37  ;;  %v5431_v14 = vand.u32 2147483647, %v13648_v52 }
 0xa12   : > { %7554 = vmatmul.msk.bf16.gmra.mxu1 %vm5134_vm15, %v6296_v59  ;;  %v5393_v2 = vmul.f32 %v13667_v62, %v13655_v54  ;;  %v13686_v48 = vpop.eup %8492  ;;  %v5439_v56 = vsub.f32 1.0, %v5438_v22  ;;  %v5374_v59 = vor.u32 1.1754944e-38, %v5373_v37  ;;  %vm5443_vm11 = vweird.f32 %v13664_v33 }
 0xa13   : > { %v5390_v58 = vsel %vm5387_vm8, %v5389_v47, %v5385_v9  ;;  %v5408_v43 = vmul.f32 %v13686_v48, %v13660_v24  ;;  %v5248_v22 = vmul.f32 1.442695, %v5220_v32  ;;  %v5250_v5 = vmul.f32 1.442695, %v5221_v34  ;;  %vm13715_vm1 = vmor %vm5442_vm12, %vm5443_vm11 }
 0xa14   : > { %v5375_v19 = vsel %vm5372_vm7, %v5374_v59, %v5370_v27  ;;  %v5394_v38 = vsub.f32 1.0, %v5393_v2  ;;  %v5440_v28 = vmul.f32 %v13664_v33, %v5439_v56  ;;  %v5519_v6 = vmul.f32 %v5390_v58, %v12976_v44 }
 0xa15   : > { %v5518_v55 = vmul.f32 %v5375_v19, %v12971_v36  ;;  %v5409_v46 = vsub.f32 1.0, %v5408_v43  ;;  %v5433_v36 = vand.u32 2147483648, %v13648_v52  ;;  %v5448_v44 = vand.u32 2147483648, %v13651_v49 }
 0xa16   : > { %v5395_v50 = vmul.f32 %v13667_v62, %v5394_v38  ;;  %v5441_v10 = vadd.f32 %v13664_v33, %v5440_v28  ;;  %vm5398_vm14 = vweird.f32 %v13667_v62  ;;  %8494 = vpow2.f32 %v5248_v22 }
 0xa17   : > { %v5410_v27 = vmul.f32 %v13686_v48, %v5409_v46  ;;  %v5434_v59 = vor.u32 1.1754944e-38, %v5433_v36  ;;  %v5449_v47 = vor.u32 1.1754944e-38, %v5448_v44  ;;  %vm5432_vm2 = vcmp.eq.f32.partialorder %v5431_v14, 8.507059e+37  ;;  %vm13736_vm6 = vmor %vm5397_vm5, %vm5398_vm14 }
 0xa18   : > { %v5396_v58 = vadd.f32 %v13667_v62, %v5395_v50  ;;  %vm5447_vm3 = vcmp.eq.f32.partialorder %v5446_v12, 8.507059e+37  ;;  %8496 = vpow2.f32 %v5250_v5  ;;  %vm5413_vm4 = vweird.f32 %v13686_v48 }
 0xa19   : > { %v5411_v38 = vadd.f32 %v13686_v48, %v5410_v27  ;;  %v5401_v32 = vand.u32 2147483647, %v13655_v54  ;;  %vm5412_vm7 = vweird.f32 %v13660_v24 }
 0xa1a   : > { %vm13743_vm8 = vmor %vm5412_vm7, %vm5413_vm4 }
 0xa1b   : > { %vm5402_vm9 = vcmp.eq.f32.partialorder %v5401_v32, 8.507059e+37 }
 0xa22   : > { %7555 = vmatmul.msk.bf16.gmra.mxu1 %vm5134_vm15, %v6297_v57  ;;  %v5425_v57 = vmul.f32 %v13662_v39, %v5424_v4  ;;  %v5445_v4 = vsel %vm13715_vm1, %v13664_v33, %v5441_v10  ;;  %v5403_v33 = vand.u32 2147483648, %v13655_v54  ;;  %v8495_v10 = vpop.eup %8494  ;;  %v5400_v54 = vsel %vm13736_vm6, %v13667_v62, %v5396_v58 }
 0xa23   : > { %v5450_v43 = vsel %vm5447_vm3, %v5449_v47, %v5445_v4  ;;  %v8497_v36 = vpop.eup %8496  ;;  %v5223_v62 = vsub.f32 0.0, %v13027_v16 }
 0xa24   : > { %v5426_v17 = vadd.f32 %v13662_v39, %v5425_v57  ;;  %v5418_v57 = vand.u32 2147483648, %v13660_v24  ;;  %v5523_v46 = vmul.f32 %v5450_v43, %v12996_v25  ;;  %v5404_v44 = vor.u32 1.1754944e-38, %v5403_v33 }
 0xa25   : > { %v5222_v25 = vsub.f32 0.0, %v13014_v18 }
 0xa26   : > { %v5430_v9 = vsel %vm13708_vm13, %v13662_v39, %v5426_v17  ;;  %v5419_v22 = vor.u32 1.1754944e-38, %v5418_v57  ;;  %v5405_v12 = vsel %vm5402_vm9, %v5404_v44, %v5400_v54 }
 0xa27   : > { %v5435_v39 = vsel %vm5432_vm2, %v5434_v59, %v5430_v9  ;;  %v5252_v52 = vmul.f32 1.442695, %v5222_v25 }
 0xa28   : > { %v5522_v50 = vmul.f32 %v5435_v39, %v12991_v15 }
 0xa2c   : > { %v7746_v37 = vpop.permute.xlu0 %7745 }
 0xa2d   : > { %v7748_v8 = vunpack.i.h.bf16 %v7746_v37  ;;  %v7747_v2 = vunpack.i.l.bf16 %v7746_v37 }
 0xa2f   : > { %v6286_v49 = vsel %vm3625_vm0, %v5519_v6, %v7748_v8  ;;  %v6285_v56 = vsel %vm3625_vm0, %v5518_v55, %v7747_v2  ;;  %v5416_v55 = vand.u32 2147483647, %v13660_v24  ;;  %v5415_v24 = vsel %vm13743_vm8, %v13686_v48, %v5411_v38 }
 0xa30   : > { %v6298_v19 = vpack.c.bf16 %v6286_v49, %v6285_v56  ;;  %v5268_v8 = vadd.f32 1.0, %v8495_v10  ;;  %v5269_v2 = vadd.f32 1.0, %v8497_v36  ;;  %v5520_v48 = vmul.f32 %v5405_v12, %v12981_v41  ;;  %v13767_v41 = vld [vmem:[%s14171_s7 + $0x1] ss:$0 sm:$0xff] }
 0xa31   : > { %vm5417_vm10 = vcmp.eq.f32.partialorder %v5416_v55, 8.507059e+37  ;;  %v5254_v49 = vmul.f32 1.442695, %v5223_v62  ;;  %6725 = vrot.lane.b32.xlu1 %v13767_v41, %s14821_s16 }
 0xa32   : > { %7556 = vmatmul.msk.bf16.gmra.mxu1 %vm5134_vm15, %v6298_v19  ;;  %v5420_v5 = vsel %vm5417_vm10, %v5419_v22, %v5415_v24  ;;  %8498 = vrcp.f32 %v5268_v8  ;;  %vm5457_vm13 = vweird.f32 %v5268_v8  ;;  %v5463_v54 = vand.u32 2147483648, %v5268_v8 }
 0xa33   : > { %v5521_v27 = vmul.f32 %v5420_v5, %v12986_v1  ;;  %8500 = vrcp.f32 %v5269_v2  ;;  %v5478_v24 = vand.u32 2147483648, %v5269_v2  ;;  %v5461_v36 = vand.u32 2147483647, %v5268_v8 }
 0xa34   : > { %v7756_v6 = vpop.permute.xlu2 %7755  ;;  %8502 = vpow2.f32 %v5252_v52  ;;  %vm5472_vm1 = vweird.f32 %v5269_v2  ;;  %v5476_v44 = vand.u32 2147483647, %v5269_v2 }
 0xa35   : > { %v7758_v17 = vunpack.i.h.bf16 %v7756_v6  ;;  %v7757_v14 = vunpack.i.l.bf16 %v7756_v6  ;;  %8504 = vpow2.f32 %v5254_v49  ;;  %v5479_v12 = vor.u32 1.1754944e-38, %v5478_v24 }
 0xa36   : > { %vm5462_vm3 = vcmp.eq.f32.partialorder %v5461_v36, 8.507059e+37  ;;  %vm5477_vm4 = vcmp.eq.f32.partialorder %v5476_v44, 8.507059e+37 }
 0xa37   : > { %v6290_v37 = vsel %vm3625_vm0, %v5523_v46, %v7758_v17  ;;  %v6289_v15 = vsel %vm3625_vm0, %v5522_v50, %v7757_v14 }
 0xa38   : > { %v6300_v42 = vpack.c.bf16 %v6290_v37, %v6289_v15  ;;  %v8499_v1 = vpop.eup %8498 }
 0xa39   : > { %v8501_v38 = vpop.eup %8500  ;;  %v5453_v33 = vmul.f32 %v8499_v1, %v5268_v8  ;;  %vm5458_vm11 = vweird.f32 %v8499_v1 }
 0xa3a   : > { %v8503_v39 = vpop.eup %8502  ;;  %v5468_v57 = vmul.f32 %v8501_v38, %v5269_v2  ;;  %vm5473_vm12 = vweird.f32 %v8501_v38  ;;  %vm5459_vm14 = vmor %vm5457_vm13, %vm5458_vm11 }
 0xa3b   : > { %v8505_v43 = vpop.eup %8504  ;;  %v13771_v28 = vadd.f32 1.0, %v8503_v39  ;;  %v5454_v55 = vsub.f32 1.0, %v5453_v33  ;;  %vm5474_vm2 = vmor %vm5472_vm1, %vm5473_vm12 }
 0xa3c   : > { %v7751_v9 = vpop.permute.xlu1 %7750  ;;  %v6721_v4 = vpop.permute.xlu2 %6720  ;;  %v13773_v32 = vadd.f32 1.0, %v8505_v43  ;;  %v5469_v6 = vsub.f32 1.0, %v5468_v57 }
 0xa3d   : > { %v7753_v56 = vunpack.i.h.bf16 %v7751_v9  ;;  %v7752_v59 = vunpack.i.l.bf16 %v7751_v9  ;;  %6758 = vmatpush.bf16.msrb.mxu3 %v6721_v4  ;;  %8506 = vrcp.f32 %v13771_v28  ;;  %v5455_v34 = vmul.f32 %v8499_v1, %v5454_v55 }
 0xa3e   : > { %8508 = vrcp.f32 %v13773_v32  ;;  %v5470_v50 = vmul.f32 %v8501_v38, %v5469_v6  ;;  %vm5487_vm7 = vweird.f32 %v13771_v28  ;;  %vm5502_vm9 = vweird.f32 %v13773_v32 }
 0xa3f   : > { %v6288_v47 = vsel %vm3625_vm0, %v5521_v27, %v7753_v56  ;;  %v6287_v19 = vsel %vm3625_vm0, %v5520_v48, %v7752_v59  ;;  %v5456_v17 = vadd.f32 %v8499_v1, %v5455_v34  ;;  %v5506_v39 = vand.u32 2147483647, %v13773_v32 }
 0xa40   : > { %v6299_v58 = vpack.c.bf16 %v6288_v47, %v6287_v19  ;;  %v5471_v14 = vadd.f32 %v8501_v38, %v5470_v50 }
 0xa41   : > { %v5460_v22 = vsel %vm5459_vm14, %v8499_v1, %v5456_v17  ;;  %vm5507_vm12 = vcmp.eq.f32.partialorder %v5506_v39, 8.507059e+37 }
 0xa42   : > { %7557 = vmatmul.msk.bf16.gmra.mxu1 %vm5134_vm15, %v6299_v58  ;;  %v5475_v37 = vsel %vm5474_vm2, %v8501_v38, %v5471_v14  ;;  %v5491_v38 = vand.u32 2147483647, %v13771_v28 }
 0xa43   : > { %v8507_v46 = vpop.eup %8506  ;;  %v5480_v62 = vsel %vm5477_vm4, %v5479_v12, %v5475_v37 }
 0xa44   : > { %v8509_v10 = vpop.eup %8508  ;;  %v5483_v15 = vmul.f32 %v8507_v46, %v13771_v28  ;;  %v5525_v2 = vmul.f32 %v5480_v62, %v13008_v29  ;;  %vm5488_vm5 = vweird.f32 %v8507_v46  ;;  %v5508_v29 = vand.u32 2147483648, %v13773_v32 }
 0xa45   : > { %v5498_v25 = vmul.f32 %v8509_v10, %v13773_v32  ;;  %vm5503_vm6 = vweird.f32 %v8509_v10  ;;  %vm5489_vm8 = vmor %vm5487_vm7, %vm5488_vm5  ;;  %vm5492_vm11 = vcmp.eq.f32.partialorder %v5491_v38, 8.507059e+37 }
 0xa46   : > { %v5484_v48 = vsub.f32 1.0, %v5483_v15  ;;  %vm5504_vm10 = vmor %vm5502_vm9, %vm5503_vm6  ;;  %v5509_v6 = vor.u32 1.1754944e-38, %v5508_v29 }
 0xa47   : > { %v5499_v27 = vsub.f32 1.0, %v5498_v25 }
 0xa48   : > { %v5485_v49 = vmul.f32 %v8507_v46, %v5484_v48 }
 0xa49   : > { %v5500_v56 = vmul.f32 %v8509_v10, %v5499_v27 }
 0xa4a   : > { %v5486_v58 = vadd.f32 %v8507_v46, %v5485_v49 }
 0xa4b   : > { %v5501_v1 = vadd.f32 %v8509_v10, %v5500_v56 }
 0xa4c   : > { %v5490_v43 = vsel %vm5489_vm8, %v8507_v46, %v5486_v58 }
 0xa4d   : > { %v5505_v33 = vsel %vm5504_vm10, %v8509_v10, %v5501_v1 }
 0xa4e   : > { %v5510_v17 = vsel %vm5507_vm12, %v5509_v6, %v5505_v33 }
 0xa4f   : > { %v5527_v36 = vmul.f32 %v5510_v17, %v13027_v16 }
 0xa52   : > { %7558 = vmatmul.msk.bf16.gmra.mxu1 %vm5134_vm15, %v6300_v42  ;;  %v5464_v42 = vor.u32 1.1754944e-38, %v5463_v54 }
 0xa54   : > { %v5465_v5 = vsel %vm5462_vm3, %v5464_v42, %v5460_v22 }
 0xa55   : > { %v5524_v8 = vmul.f32 %v5465_v5, %v13001_v11  ;;  %v5493_v11 = vand.u32 2147483648, %v13771_v28 }
 0xa57   : > { %v5494_v55 = vor.u32 1.1754944e-38, %v5493_v11 }
 0xa59   : > { %v5495_v50 = vsel %vm5492_vm11, %v5494_v55, %v5490_v43 }
 0xa5a   : > { %v5526_v28 = vmul.f32 %v5495_v50, %v13014_v18 }
 0xa5c   : > { %v7761_v52 = vpop.permute.xlu0 %7760 }
 0xa5d   : > { %v7763_v9 = vunpack.i.h.bf16 %v7761_v52  ;;  %v7762_v4 = vunpack.i.l.bf16 %v7761_v52 }
 0xa5f   : > { %v6292_v59 = vsel %vm3625_vm0, %v5525_v2, %v7763_v9  ;;  %v6291_v47 = vsel %vm3625_vm0, %v5524_v8, %v7762_v4 }
 0xa60   : > { %v6301_v19 = vpack.c.bf16 %v6292_v59, %v6291_v47 }
 0xa62   : > { %7559 = vmatmul.msk.bf16.gmra.mxu1 %vm5134_vm15, %v6301_v19 }
 0xa64   : > { %v6719_v50 = vpop.permute.xlu0 %6718 }
 0xa65   : > { %6759 = vmatpush.bf16.msrb.mxu3 %v6719_v50 }
 0xa67   : > { %v6350_v57 = vpop.f32.mrf.mxu1 }
 0xa68   : > { %v6351_v34 = vadd.f32 %v13767_v41, %v6350_v57 }
 0xa6a   : > { %v6390_v14 = vsub.f32 0.0, %v6351_v34 }
 0xa6c   : > { %v6406_v54 = vmul.f32 1.442695, %v6390_v14  ;;  %v7766_v24 = vpop.permute.xlu1 %7765 }
 0xa6d   : > { %v7768_v32 = vunpack.i.h.bf16 %v7766_v24  ;;  %v7767_v44 = vunpack.i.l.bf16 %v7766_v24 }
 0xa6e   : > { %8510 = vpow2.f32 %v6406_v54 }
 0xa6f   : > { %v6294_v46 = vsel %vm3625_vm0, %v5527_v36, %v7768_v32  ;;  %v6293_v10 = vsel %vm3625_vm0, %v5526_v28, %v7767_v44  ;;  %v6352_v22 = vpop.f32.mrf.mxu1 }
 0xa70   : > { %v6302_v37 = vpack.c.bf16 %v6294_v46, %v6293_v10  ;;  %v6353_v15 = vadd.f32 %v13767_v41, %v6352_v22 }
 0xa72   : > { %v6391_v25 = vsub.f32 0.0, %v6353_v15  ;;  %7560 = vmatmul.msk.bf16.gmra.mxu1 %vm5134_vm15, %v6302_v37 }
 0xa74   : > { %v8511_v42 = vpop.eup %8510  ;;  %v6408_v12 = vmul.f32 1.442695, %v6391_v25 }
 0xa75   : > { %v6438_v5 = vadd.f32 1.0, %v8511_v42 }
 0xa76   : > { %8512 = vpow2.f32 %v6408_v12 }
 0xa77   : > { %8514 = vrcp.f32 %v6438_v5  ;;  %v6465_v4 = vand.u32 2147483648, %v6438_v5  ;;  %vm6459_vm14 = vweird.f32 %v6438_v5  ;;  %v6463_v49 = vand.u32 2147483647, %v6438_v5 }
 0xa79   : > { %v6466_v1 = vor.u32 1.1754944e-38, %v6465_v4  ;;  %vm6464_vm2 = vcmp.eq.f32.partialorder %v6463_v49, 8.507059e+37 }
 0xa7c   : > { %v8513_v18 = vpop.eup %8512 }
 0xa7d   : > { %v8515_v16 = vpop.eup %8514  ;;  %v6439_v62 = vadd.f32 1.0, %v8513_v18 }
 0xa7e   : > { %v6455_v48 = vmul.f32 %v8515_v16, %v6438_v5  ;;  %vm6460_vm13 = vweird.f32 %v8515_v16 }
 0xa7f   : > { %8516 = vrcp.f32 %v6439_v62  ;;  %vm6461_vm15 = vmor %vm6459_vm14, %vm6460_vm13  ;;  %v6480_v59 = vand.u32 2147483648, %v6439_v62  ;;  %v6478_v58 = vand.u32 2147483647, %v6439_v62  ;;  %vm6474_vm3 = vweird.f32 %v6439_v62 }
 0xa80   : > { %v6456_v27 = vsub.f32 1.0, %v6455_v48 }
 0xa81   : > { %v6481_v38 = vor.u32 1.1754944e-38, %v6480_v59  ;;  %vm6479_vm5 = vcmp.eq.f32.partialorder %v6478_v58, 8.507059e+37 }
 0xa82   : > { %v6457_v52 = vmul.f32 %v8515_v16, %v6456_v27 }
 0xa84   : > { %v6458_v2 = vadd.f32 %v8515_v16, %v6457_v52 }
 0xa85   : > { %v8517_v8 = vpop.eup %8516 }
 0xa86   : > { %v6470_v9 = vmul.f32 %v8517_v8, %v6439_v62  ;;  %v6462_v47 = vsel %vm6461_vm15, %v8515_v16, %v6458_v2  ;;  %vm6475_vm1 = vweird.f32 %v8517_v8 }
 0xa87   : > { %v6467_v29 = vsel %vm6464_vm2, %v6466_v1, %v6462_v47  ;;  %vm6476_vm4 = vmor %vm6474_vm3, %vm6475_vm1 }
 0xa88   : > { %v6471_v56 = vsub.f32 1.0, %v6470_v9  ;;  %v6694_v57 = vmul.f32 %v6467_v29, %v6351_v34 }
 0xa8a   : > { %v6472_v19 = vmul.f32 %v8517_v8, %v6471_v56 }
 0xa8c   : > { %v6473_v11 = vadd.f32 %v8517_v8, %v6472_v19 }
 0xa8e   : > { %v6477_v39 = vsel %vm6476_vm4, %v8517_v8, %v6473_v11 }
 0xa8f   : > { %v6482_v43 = vsel %vm6479_vm5, %v6481_v38, %v6477_v39  ;;  %v6355_v33 = vpop.f32.mrf.mxu1 }
 0xa90   : > { %v6695_v55 = vmul.f32 %v6482_v43, %v6353_v15  ;;  %v13799_v6 = vadd.f32 %v13767_v41, %v6355_v33 }
 0xa92   : > { %v6710_v17 = vpack.c.bf16 %v6695_v55, %v6694_v57  ;;  %v6392_v14 = vsub.f32 0.0, %v13799_v6 }
 0xa94   : > { %v6410_v54 = vmul.f32 1.442695, %v6392_v14  ;;  %7561 = vmatmul.msk.bf16.vlgmr.msrb.gmra.mxu3 %vm3625_vm0, %v6710_v17 }
 0xa96   : > { %8518 = vpow2.f32 %v6410_v54 }
 0xa97   : > { %v6357_v24 = vpop.f32.mrf.mxu1 }
 0xa98   : > { %v13804_v28 = vadd.f32 %v13767_v41, %v6357_v24 }
 0xa9a   : > { %v6393_v36 = vsub.f32 0.0, %v13804_v28 }
 0xa9c   : > { %v8519_v34 = vpop.eup %8518  ;;  %v6412_v32 = vmul.f32 1.442695, %v6393_v36 }
 0xa9d   : > { %v6440_v44 = vadd.f32 1.0, %v8519_v34 }
 0xa9e   : > { %8520 = vpow2.f32 %v6412_v32 }
 0xa9f   : > { %8522 = vrcp.f32 %v6440_v44  ;;  %v6360_v46 = vpop.f32.mrf.mxu1  ;;  %v6495_v49 = vand.u32 2147483648, %v6440_v44  ;;  %vm6489_vm7 = vweird.f32 %v6440_v44  ;;  %v6493_v59 = vand.u32 2147483647, %v6440_v44 }
 0xaa0   : > { %v13808_v10 = vadd.f32 %v13767_v41, %v6360_v46 }
 0xaa1   : > { %v6496_v39 = vor.u32 1.1754944e-38, %v6495_v49  ;;  %vm6494_vm10 = vcmp.eq.f32.partialorder %v6493_v59, 8.507059e+37 }
 0xaa2   : > { %v6394_v22 = vsub.f32 0.0, %v13808_v10 }
 0xaa4   : > { %v8521_v37 = vpop.eup %8520  ;;  %v6414_v15 = vmul.f32 1.442695, %v6394_v22 }
 0xaa5   : > { %v8523_v25 = vpop.eup %8522  ;;  %v6441_v42 = vadd.f32 1.0, %v8521_v37 }
 0xaa6   : > { %v6485_v12 = vmul.f32 %v8523_v25, %v6440_v44  ;;  %8524 = vpow2.f32 %v6414_v15  ;;  %vm6490_vm6 = vweird.f32 %v8523_v25 }
 0xaa7   : > { %8526 = vrcp.f32 %v6441_v42  ;;  %v6362_v5 = vpop.f32.mrf.mxu1  ;;  %vm6491_vm8 = vmor %vm6489_vm7, %vm6490_vm6  ;;  %v6508_v58 = vand.u32 2147483647, %v6441_v42  ;;  %v6510_v1 = vand.u32 2147483648, %v6441_v42  ;;  %vm6504_vm11 = vweird.f32 %v6441_v42 }
 0xaa8   : > { %v6486_v18 = vsub.f32 1.0, %v6485_v12  ;;  %v13812_v16 = vadd.f32 %v13767_v41, %v6362_v5 }
 0xaa9   : > { %v6511_v17 = vor.u32 1.1754944e-38, %v6510_v1  ;;  %vm6509_vm13 = vcmp.eq.f32.partialorder %v6508_v58, 8.507059e+37 }
 0xaaa   : > { %v6487_v62 = vmul.f32 %v8523_v25, %v6486_v18  ;;  %v6395_v48 = vsub.f32 0.0, %v13812_v16 }
 0xaac   : > { %v8525_v27 = vpop.eup %8524  ;;  %v6416_v52 = vmul.f32 1.442695, %v6395_v48  ;;  %v6488_v9 = vadd.f32 %v8523_v25, %v6487_v62 }
 0xaad   : > { %v8527_v8 = vpop.eup %8526  ;;  %v13815_v2 = vadd.f32 1.0, %v8525_v27 }
 0xaae   : > { %v6500_v4 = vmul.f32 %v8527_v8, %v6441_v42  ;;  %8528 = vpow2.f32 %v6416_v52  ;;  %v6492_v11 = vsel %vm6491_vm8, %v8523_v25, %v6488_v9  ;;  %vm6505_vm9 = vweird.f32 %v8527_v8 }
 0xaaf   : > { %8530 = vrcp.f32 %v13815_v2  ;;  %v6365_v56 = vpop.f32.mrf.mxu1  ;;  %v6497_v50 = vsel %vm6494_vm10, %v6496_v39, %v6492_v11  ;;  %vm6506_vm12 = vmor %vm6504_vm11, %vm6505_vm9  ;;  %vm6519_vm15 = vweird.f32 %v13815_v2  ;;  %v6523_v27 = vand.u32 2147483647, %v13815_v2 }
 0xab0   : > { %v6501_v47 = vsub.f32 1.0, %v6500_v4  ;;  %v13819_v19 = vadd.f32 %v13767_v41, %v6365_v56  ;;  %v6696_v32 = vmul.f32 %v6497_v50, %v13799_v6 }
 0xab1   : > { %vm6524_vm3 = vcmp.eq.f32.partialorder %v6523_v27, 8.507059e+37 }
 0xab2   : > { %v6502_v29 = vmul.f32 %v8527_v8, %v6501_v47  ;;  %v6396_v38 = vsub.f32 0.0, %v13819_v19 }
 0xab4   : > { %v8529_v43 = vpop.eup %8528  ;;  %v6503_v33 = vadd.f32 %v8527_v8, %v6502_v29  ;;  %v6418_v57 = vmul.f32 1.442695, %v6396_v38 }
 0xab5   : > { %v8531_v55 = vpop.eup %8530  ;;  %v6443_v14 = vadd.f32 1.0, %v8529_v43 }
 0xab6   : > { %v6507_v54 = vsel %vm6506_vm12, %v8527_v8, %v6503_v33  ;;  %v6515_v24 = vmul.f32 %v8531_v55, %v13815_v2  ;;  %8532 = vpow2.f32 %v6418_v57  ;;  %vm6520_vm14 = vweird.f32 %v8531_v55 }
 0xab7   : > { %v6512_v36 = vsel %vm6509_vm13, %v6511_v17, %v6507_v54  ;;  %8534 = vrcp.f32 %v6443_v14  ;;  %v6367_v34 = vpop.f32.mrf.mxu1  ;;  %vm6521_vm1 = vmor %vm6519_vm15, %vm6520_vm14  ;;  %v6538_v9 = vand.u32 2147483647, %v6443_v14  ;;  %v6540_v4 = vand.u32 2147483648, %v6443_v14 }
 0xab8   : > { %v6697_v44 = vmul.f32 %v6512_v36, %v13804_v28  ;;  %v6516_v46 = vsub.f32 1.0, %v6515_v24  ;;  %v13826_v22 = vadd.f32 %v13767_v41, %v6367_v34  ;;  %v6525_v28 = vand.u32 2147483648, %v13815_v2 }
 0xab9   : > { %vm6534_vm4 = vweird.f32 %v6443_v14  ;;  %v6541_v38 = vor.u32 1.1754944e-38, %v6540_v4  ;;  %vm6539_vm6 = vcmp.eq.f32.partialorder %v6538_v9, 8.507059e+37 }
 0xaba   : > { %v6711_v37 = vpack.c.bf16 %v6697_v44, %v6696_v32  ;;  %v6517_v15 = vmul.f32 %v8531_v55, %v6516_v46  ;;  %v6397_v25 = vsub.f32 0.0, %v13826_v22  ;;  %v6526_v47 = vor.u32 1.1754944e-38, %v6525_v28 }
 0xabc   : > { %v8533_v42 = vpop.eup %8532  ;;  %v6420_v12 = vmul.f32 1.442695, %v6397_v25  ;;  %7562 = vmatmul.msk.bf16.gmra.mxu3 %vm3625_vm0, %v6711_v37  ;;  %v6518_v62 = vadd.f32 %v8531_v55, %v6517_v15 }
 0xabd   : > { %v8535_v5 = vpop.eup %8534  ;;  %v13830_v18 = vadd.f32 1.0, %v8533_v42 }
 0xabe   : > { %v6530_v6 = vmul.f32 %v8535_v5, %v6443_v14  ;;  %8536 = vpow2.f32 %v6420_v12  ;;  %v6522_v49 = vsel %vm6521_vm1, %v8531_v55, %v6518_v62  ;;  %vm6535_vm2 = vweird.f32 %v8535_v5 }
 0xabf   : > { %8538 = vrcp.f32 %v13830_v18  ;;  %v6370_v48 = vpop.f32.mrf.mxu1  ;;  %v6527_v2 = vsel %vm6524_vm3, %v6526_v47, %v6522_v49  ;;  %vm6536_vm5 = vmor %vm6534_vm4, %vm6535_vm2  ;;  %vm6549_vm8 = vweird.f32 %v13830_v18  ;;  %v6553_v42 = vand.u32 2147483647, %v13830_v18 }
 0xac0   : > { %v6531_v52 = vsub.f32 1.0, %v6530_v6  ;;  %v13837_v8 = vadd.f32 %v13767_v41, %v6370_v48  ;;  %v6698_v50 = vmul.f32 %v6527_v2, %v13808_v10 }
 0xac1   : > { %vm6554_vm11 = vcmp.eq.f32.partialorder %v6553_v42, 8.507059e+37 }
 0xac2   : > { %v6532_v56 = vmul.f32 %v8535_v5, %v6531_v52  ;;  %v6398_v59 = vsub.f32 0.0, %v13837_v8 }
 0xac4   : > { %v8537_v58 = vpop.eup %8536  ;;  %v6533_v1 = vadd.f32 %v8535_v5, %v6532_v56  ;;  %v6422_v11 = vmul.f32 1.442695, %v6398_v59 }
 0xac5   : > { %v8539_v29 = vpop.eup %8538  ;;  %v6445_v39 = vadd.f32 1.0, %v8537_v58 }
 0xac6   : > { %v6537_v43 = vsel %vm6536_vm5, %v8535_v5, %v6533_v1  ;;  %v6545_v33 = vmul.f32 %v8539_v29, %v13830_v18  ;;  %8540 = vpow2.f32 %v6422_v11  ;;  %vm6550_vm7 = vweird.f32 %v8539_v29 }
 0xac7   : > { %v6542_v57 = vsel %vm6539_vm6, %v6541_v38, %v6537_v43  ;;  %8542 = vrcp.f32 %v6445_v39  ;;  %v6372_v55 = vpop.f32.mrf.mxu1  ;;  %vm6551_vm9 = vmor %vm6549_vm8, %vm6550_vm7  ;;  %v6568_v62 = vand.u32 2147483647, %v6445_v39  ;;  %v6570_v6 = vand.u32 2147483648, %v6445_v39 }
 0xac8   : > { %v6699_v17 = vmul.f32 %v6542_v57, %v13812_v16  ;;  %v6546_v54 = vsub.f32 1.0, %v6545_v33  ;;  %v13844_v14 = vadd.f32 %v13767_v41, %v6372_v55  ;;  %v6555_v16 = vand.u32 2147483648, %v13830_v18 }
 0xac9   : > { %vm6564_vm12 = vweird.f32 %v6445_v39  ;;  %v6571_v59 = vor.u32 1.1754944e-38, %v6570_v6  ;;  %vm6569_vm14 = vcmp.eq.f32.partialorder %v6568_v62, 8.507059e+37 }
 0xaca   : > { %v6712_v24 = vpack.c.bf16 %v6699_v17, %v6698_v50  ;;  %v6547_v36 = vmul.f32 %v8539_v29, %v6546_v54  ;;  %v6399_v34 = vsub.f32 0.0, %v13844_v14  ;;  %v6556_v52 = vor.u32 1.1754944e-38, %v6555_v16 }
 0xacc   : > { %v8541_v32 = vpop.eup %8540  ;;  %v6424_v44 = vmul.f32 1.442695, %v6399_v34  ;;  %7563 = vmatmul.msk.bf16.gmra.mxu3 %vm3625_vm0, %v6712_v24  ;;  %v6548_v15 = vadd.f32 %v8539_v29, %v6547_v36 }
 0xacd   : > { %v8543_v46 = vpop.eup %8542  ;;  %v13848_v37 = vadd.f32 1.0, %v8541_v32 }
 0xace   : > { %v6560_v10 = vmul.f32 %v8543_v46, %v6445_v39  ;;  %8544 = vpow2.f32 %v6424_v44  ;;  %v6552_v28 = vsel %vm6551_vm9, %v8539_v29, %v6548_v15  ;;  %vm6565_vm10 = vweird.f32 %v8543_v46 }
 0xacf   : > { %8546 = vrcp.f32 %v13848_v37  ;;  %v6375_v25 = vpop.f32.mrf.mxu1  ;;  %v6557_v18 = vsel %vm6554_vm11, %v6556_v52, %v6552_v28  ;;  %vm6566_vm13 = vmor %vm6564_vm12, %vm6565_vm10  ;;  %vm6579_vm1 = vweird.f32 %v13848_v37  ;;  %v6583_v32 = vand.u32 2147483647, %v13848_v37 }
 0xad0   : > { %v6561_v12 = vsub.f32 1.0, %v6560_v10  ;;  %v13855_v5 = vadd.f32 %v13767_v41, %v6375_v25  ;;  %v6700_v2 = vmul.f32 %v6557_v18, %v13819_v19 }
 0xad1   : > { %vm6584_vm4 = vcmp.eq.f32.partialorder %v6583_v32, 8.507059e+37 }
 0xad2   : > { %v6562_v48 = vmul.f32 %v8543_v46, %v6561_v12  ;;  %v6400_v27 = vsub.f32 0.0, %v13855_v5 }
 0xad4   : > { %v8545_v9 = vpop.eup %8544  ;;  %v6563_v4 = vadd.f32 %v8543_v46, %v6562_v48  ;;  %v6426_v49 = vmul.f32 1.442695, %v6400_v27 }
 0xad5   : > { %v8547_v56 = vpop.eup %8546  ;;  %v6447_v47 = vadd.f32 1.0, %v8545_v9 }
 0xad6   : > { %v6567_v58 = vsel %vm6566_vm13, %v8543_v46, %v6563_v4  ;;  %v6575_v1 = vmul.f32 %v8547_v56, %v13848_v37  ;;  %8548 = vpow2.f32 %v6426_v49  ;;  %vm6580_vm15 = vweird.f32 %v8547_v56 }
 0xad7   : > { %v6572_v11 = vsel %vm6569_vm14, %v6571_v59, %v6567_v58  ;;  %8550 = vrcp.f32 %v6447_v47  ;;  %v6377_v29 = vpop.f32.mrf.mxu1  ;;  %vm6581_vm2 = vmor %vm6579_vm1, %vm6580_vm15  ;;  %v6598_v15 = vand.u32 2147483647, %v6447_v47  ;;  %v6600_v10 = vand.u32 2147483648, %v6447_v47 }
 0xad8   : > { %v6701_v38 = vmul.f32 %v6572_v11, %v13826_v22  ;;  %v6576_v43 = vsub.f32 1.0, %v6575_v1  ;;  %v13862_v39 = vadd.f32 %v13767_v41, %v6377_v29  ;;  %v6585_v22 = vand.u32 2147483648, %v13848_v37 }
 0xad9   : > { %vm6594_vm5 = vweird.f32 %v6447_v47  ;;  %v6601_v27 = vor.u32 1.1754944e-38, %v6600_v10  ;;  %vm6599_vm7 = vcmp.eq.f32.partialorder %v6598_v15, 8.507059e+37 }
 0xada   : > { %v6713_v33 = vpack.c.bf16 %v6701_v38, %v6700_v2  ;;  %v6577_v57 = vmul.f32 %v8547_v56, %v6576_v43  ;;  %v6401_v55 = vsub.f32 0.0, %v13862_v39  ;;  %v6586_v12 = vor.u32 1.1754944e-38, %v6585_v22 }
 0xadc   : > { %v8549_v50 = vpop.eup %8548  ;;  %v6428_v17 = vmul.f32 1.442695, %v6401_v55  ;;  %7564 = vmatmul.msk.bf16.gmra.mxu3 %vm3625_vm0, %v6713_v33  ;;  %v6578_v36 = vadd.f32 %v8547_v56, %v6577_v57 }
 0xadd   : > { %v8551_v54 = vpop.eup %8550  ;;  %v13866_v24 = vadd.f32 1.0, %v8549_v50 }
 0xade   : > { %v6590_v19 = vmul.f32 %v8551_v54, %v6447_v47  ;;  %8552 = vpow2.f32 %v6428_v17  ;;  %v6582_v16 = vsel %vm6581_vm2, %v8547_v56, %v6578_v36  ;;  %vm6595_vm3 = vweird.f32 %v8551_v54 }
 0xadf   : > { %8554 = vrcp.f32 %v13866_v24  ;;  %v6380_v34 = vpop.f32.mrf.mxu1  ;;  %v6587_v37 = vsel %vm6584_vm4, %v6586_v12, %v6582_v16  ;;  %vm6596_vm6 = vmor %vm6594_vm5, %vm6595_vm3  ;;  %vm6609_vm9 = vweird.f32 %v13866_v24  ;;  %v6613_v50 = vand.u32 2147483647, %v13866_v24 }
 0xae0   : > { %v6591_v44 = vsub.f32 1.0, %v6590_v19  ;;  %v13873_v46 = vadd.f32 %v13767_v41, %v6380_v34  ;;  %v6702_v18 = vmul.f32 %v6587_v37, %v13837_v8 }
 0xae1   : > { %vm6614_vm12 = vcmp.eq.f32.partialorder %v6613_v50, 8.507059e+37 }
 0xae2   : > { %v6592_v25 = vmul.f32 %v8551_v54, %v6591_v44  ;;  %v6402_v42 = vsub.f32 0.0, %v13873_v46 }
 0xae4   : > { %v8553_v62 = vpop.eup %8552  ;;  %v6593_v6 = vadd.f32 %v8551_v54, %v6592_v25  ;;  %v6430_v28 = vmul.f32 1.442695, %v6402_v42 }
 0xae5   : > { %v8555_v48 = vpop.eup %8554  ;;  %v6449_v52 = vadd.f32 1.0, %v8553_v62 }
 0xae6   : > { %v6597_v9 = vsel %vm6596_vm6, %v8551_v54, %v6593_v6  ;;  %v6605_v4 = vmul.f32 %v8555_v48, %v13866_v24  ;;  %8556 = vpow2.f32 %v6430_v28  ;;  %vm6610_vm8 = vweird.f32 %v8555_v48 }
 0xae7   : > { %v6602_v49 = vsel %vm6599_vm7, %v6601_v27, %v6597_v9  ;;  %8558 = vrcp.f32 %v6449_v52  ;;  %v6382_v56 = vpop.f32.mrf.mxu1  ;;  %vm6611_vm10 = vmor %vm6609_vm9, %vm6610_vm8  ;;  %v6628_v36 = vand.u32 2147483647, %v6449_v52  ;;  %v6630_v19 = vand.u32 2147483648, %v6449_v52 }
 0xae8   : > { %v6703_v59 = vmul.f32 %v6602_v49, %v13844_v14  ;;  %v6606_v58 = vsub.f32 1.0, %v6605_v4  ;;  %v13880_v47 = vadd.f32 %v13767_v41, %v6382_v56  ;;  %v6615_v14 = vand.u32 2147483648, %v13866_v24 }
 0xae9   : > { %vm6624_vm13 = vweird.f32 %v6449_v52  ;;  %v6631_v42 = vor.u32 1.1754944e-38, %v6630_v19  ;;  %vm6629_vm15 = vcmp.eq.f32.partialorder %v6628_v36, 8.507059e+37 }
 0xaea   : > { %v6714_v1 = vpack.c.bf16 %v6703_v59, %v6702_v18  ;;  %v6607_v11 = vmul.f32 %v8555_v48, %v6606_v58  ;;  %v6403_v29 = vsub.f32 0.0, %v13880_v47  ;;  %v6616_v44 = vor.u32 1.1754944e-38, %v6615_v14 }
 0xaec   : > { %v8557_v2 = vpop.eup %8556  ;;  %v6432_v38 = vmul.f32 1.442695, %v6403_v29  ;;  %7565 = vmatmul.msk.bf16.gmra.mxu3 %vm3625_vm0, %v6714_v1  ;;  %v6608_v57 = vadd.f32 %v8555_v48, %v6607_v11 }
 0xaed   : > { %v8559_v43 = vpop.eup %8558  ;;  %v13884_v33 = vadd.f32 1.0, %v8557_v2 }
 0xaee   : > { %v6620_v8 = vmul.f32 %v8559_v43, %v6449_v52  ;;  %8560 = vpow2.f32 %v6432_v38  ;;  %v6612_v22 = vsel %vm6611_vm10, %v8555_v48, %v6608_v57  ;;  %vm6625_vm11 = vweird.f32 %v8559_v43 }
 0xaef   : > { %8562 = vrcp.f32 %v13884_v33  ;;  %v6385_v55 = vpop.f32.mrf.mxu1  ;;  %v6617_v24 = vsel %vm6614_vm12, %v6616_v44, %v6612_v22  ;;  %vm6626_vm14 = vmor %vm6624_vm13, %vm6625_vm11  ;;  %vm6639_vm2 = vweird.f32 %v13884_v33 }
 0xaf0   : > { %v6621_v17 = vsub.f32 1.0, %v6620_v8  ;;  %v13891_v54 = vadd.f32 %v13767_v41, %v6385_v55  ;;  %v6704_v37 = vmul.f32 %v6617_v24, %v13855_v5  ;;  %v6645_v5 = vand.u32 2147483648, %v13884_v33 }
 0xaf2   : > { %v6622_v34 = vmul.f32 %v8559_v43, %v6621_v17  ;;  %v6404_v32 = vsub.f32 0.0, %v13891_v54  ;;  %v6646_v8 = vor.u32 1.1754944e-38, %v6645_v5 }
 0xaf4   : > { %v8561_v15 = vpop.eup %8560  ;;  %v6623_v10 = vadd.f32 %v8559_v43, %v6622_v34  ;;  %v6434_v16 = vmul.f32 1.442695, %v6404_v32 }
 0xaf5   : > { %v8563_v25 = vpop.eup %8562  ;;  %v6451_v12 = vadd.f32 1.0, %v8561_v15 }
 0xaf6   : > { %v6627_v62 = vsel %vm6626_vm14, %v8559_v43, %v6623_v10  ;;  %v6635_v6 = vmul.f32 %v8563_v25, %v13884_v33  ;;  %8564 = vpow2.f32 %v6434_v16  ;;  %vm6640_vm1 = vweird.f32 %v8563_v25 }
 0xaf7   : > { %v6632_v28 = vsel %vm6629_vm15, %v6631_v42, %v6627_v62  ;;  %8566 = vrcp.f32 %v6451_v12  ;;  %v6387_v48 = vpop.f32.mrf.mxu1  ;;  %vm6641_vm3 = vmor %vm6639_vm2, %vm6640_vm1  ;;  %v6660_v2 = vand.u32 2147483648, %v6451_v12  ;;  %v6658_v57 = vand.u32 2147483647, %v6451_v12 }
 0xaf8   : > { %v6705_v27 = vmul.f32 %v6632_v28, %v13862_v39  ;;  %v6636_v9 = vsub.f32 1.0, %v6635_v6  ;;  %v13898_v52 = vadd.f32 %v13767_v41, %v6387_v48  ;;  %v6643_v41 = vand.u32 2147483647, %v13884_v33 }
 0xaf9   : > { %vm6654_vm6 = vweird.f32 %v6451_v12  ;;  %v6661_v36 = vor.u32 1.1754944e-38, %v6660_v2  ;;  %vm6659_vm8 = vcmp.eq.f32.partialorder %v6658_v57, 8.507059e+37  ;;  %vm7147_vm2 = vcmask 15360  }
 0xafa   : > { %v6715_v4 = vpack.c.bf16 %v6705_v27, %v6704_v37  ;;  %v6637_v49 = vmul.f32 %v8563_v25, %v6636_v9  ;;  %v6405_v56 = vsub.f32 0.0, %v13898_v52  ;;  %vm6644_vm5 = vcmp.eq.f32.partialorder %v6643_v41, 8.507059e+37 }
 0xafc   : > { %v8565_v18 = vpop.eup %8564  ;;  %v6436_v59 = vmul.f32 1.442695, %v6405_v56  ;;  %7566 = vmatmul.msk.bf16.gmra.mxu3 %vm3625_vm0, %v6715_v4  ;;  %v6638_v11 = vadd.f32 %v8563_v25, %v6637_v49  ;;  %v13908_v49 = vpop.permute.xlu1 %6725 }
 0xafd   : > { %v8567_v58 = vpop.eup %8566  ;;  %v6452_v1 = vadd.f32 1.0, %v8565_v18 }
 0xafe   : > { %v6650_v29 = vmul.f32 %v8567_v58, %v6451_v12  ;;  %8568 = vpow2.f32 %v6436_v59  ;;  %v6642_v38 = vsel %vm6641_vm3, %v8563_v25, %v6638_v11  ;;  %vm6655_vm4 = vweird.f32 %v8567_v58 }
 0xaff   : > { %8570 = vrcp.f32 %v6452_v1  ;;  %v6647_v17 = vsel %vm6644_vm5, %v6646_v8, %v6642_v38  ;;  %vm6656_vm7 = vmor %vm6654_vm6, %vm6655_vm4  ;;  %v6675_v12 = vand.u32 2147483648, %v6452_v1  ;;  %vm6669_vm10 = vweird.f32 %v6452_v1 }
 0xb00   : > { %v6651_v39 = vsub.f32 1.0, %v6650_v29  ;;  %v6706_v32 = vmul.f32 %v6647_v17, %v13873_v46  ;;  %v6673_v62 = vand.u32 2147483647, %v6452_v1  ;;  %vm7164_vm3 = vcmask 23552  }
 0xb02   : > { %v6652_v43 = vmul.f32 %v8567_v58, %v6651_v39  ;;  %vm6674_vm13 = vcmp.eq.f32.partialorder %v6673_v62, 8.507059e+37 }
 0xb04   : > { %v8569_v14 = vpop.eup %8568  ;;  %v6653_v55 = vadd.f32 %v8567_v58, %v6652_v43 }
 0xb05   : > { %v8571_v50 = vpop.eup %8570  ;;  %v6453_v19 = vadd.f32 1.0, %v8569_v14 }
 0xb06   : > { %v6657_v22 = vsel %vm6656_vm7, %v8567_v58, %v6653_v55  ;;  %v6665_v33 = vmul.f32 %v8571_v50, %v6452_v1  ;;  %vm6670_vm9 = vweird.f32 %v8571_v50 }
 0xb07   : > { %v6662_v34 = vsel %vm6659_vm8, %v6661_v36, %v6657_v22  ;;  %8572 = vrcp.f32 %v6453_v19  ;;  %vm6671_vm11 = vmor %vm6669_vm10, %vm6670_vm9  ;;  %v6690_v28 = vand.u32 2147483648, %v6453_v19  ;;  %v6688_v46 = vand.u32 2147483647, %v6453_v19 }
 0xb08   : > { %v6707_v44 = vmul.f32 %v6662_v34, %v13880_v47  ;;  %v6666_v15 = vsub.f32 1.0, %v6665_v33  ;;  %v6676_v47 = vor.u32 1.1754944e-38, %v6675_v12  ;;  %vm6684_vm14 = vweird.f32 %v6453_v19 }
 0xb09   : > { %v6691_v4 = vor.u32 1.1754944e-38, %v6690_v28  ;;  %vm6689_vm1 = vcmp.eq.f32.partialorder %v6688_v46, 8.507059e+37 }
 0xb0a   : > { %v6716_v10 = vpack.c.bf16 %v6707_v44, %v6706_v32  ;;  %v6667_v16 = vmul.f32 %v8571_v50, %v6666_v15 }
 0xb0c   : > { %7567 = vmatmul.msk.bf16.gmra.mxu3 %vm3625_vm0, %v6716_v10  ;;  %v6668_v24 = vadd.f32 %v8571_v50, %v6667_v16 }
 0xb0d   : > { %v8573_v25 = vpop.eup %8572 }
 0xb0e   : > { %v6680_v42 = vmul.f32 %v8573_v25, %v6453_v19  ;;  %v6672_v48 = vsel %vm6671_vm11, %v8571_v50, %v6668_v24  ;;  %vm6685_vm12 = vweird.f32 %v8573_v25 }
 0xb0f   : > { %v6677_v9 = vsel %vm6674_vm13, %v6676_v47, %v6672_v48  ;;  %vm6686_vm15 = vmor %vm6684_vm14, %vm6685_vm12 }
 0xb10   : > { %v6681_v6 = vsub.f32 1.0, %v6680_v42  ;;  %v6708_v58 = vmul.f32 %v6677_v9, %v13891_v54 }
 0xb12   : > { %v6682_v37 = vmul.f32 %v8573_v25, %v6681_v6 }
 0xb14   : > { %v6683_v27 = vadd.f32 %v8573_v25, %v6682_v37 }
 0xb16   : > { %v6687_v56 = vsel %vm6686_vm15, %v8573_v25, %v6683_v27 }
 0xb17   : > { %v6692_v18 = vsel %vm6689_vm1, %v6691_v4, %v6687_v56  ;;  %v6761_v59 = vpop.f32.mrf.mxu3  ;;  %v15724_v4 = vld [vmem:[#allocation87_spill] sm:$0xff] }
 0xb18   : > { %v6709_v1 = vmul.f32 %v6692_v18, %v13898_v52  ;;  %v13913_v11 = vadd.f32 %v6761_v59, %v13908_v49  ;;  %v15725_v18 = vld [vmem:[#allocation71_spill] sm:$0xff] }
 0xb1a   : > { %v6717_v29 = vpack.c.bf16 %v6709_v1, %v6708_v58  ;;  %6843 = vrot.lane.b32.xlu2 %v13913_v11, %s8716_s28  ;;  %v15726_v1 = vld [vmem:[#allocation93_spill] sm:$0xff] }
 0xb1c   : > { %7568 = vmatmul.msk.bf16.gmra.mxu3 %vm3625_vm0, %v6717_v29  ;;  %vm6825_vm0 = vcmask 7168  }
 0xb1f   : > { %v6763_v5 = vpop.f32.mrf.mxu3 }
 0xb20   : > { %v13919_v41 = vadd.f32 %v6763_v5, %v13908_v49  ;;  %v15727_v5 = vld [vmem:[#allocation99_spill] sm:$0xff] }
 0xb22   : > { %v6802_v39 = vpack.c.bf16 %v13919_v41, %v13913_v11  ;;  %6845 = vrot.lane.b32.xlu0 %v13919_v41, %s8716_s28 }
 0xb3f   : > { %v6766_v54 = vpop.f32.mrf.mxu3 }
 0xb40   : > { %v13926_v52 = vadd.f32 %v6766_v54, %v13908_v49 }
 0xb42   : > { %6847 = vrot.lane.b32.xlu1 %v13926_v52, %s8716_s28 }
 0xb47   : > { %v6768_v2 = vpop.f32.mrf.mxu3 }
 0xb48   : > { %v13931_v38 = vadd.f32 %v6768_v2, %v13908_v49 }
 0xb4a   : > { %v6803_v43 = vpack.c.bf16 %v13931_v38, %v13926_v52  ;;  %6849 = vrot.lane.b32.xlu2 %v13931_v38, %s8716_s28 }
 0xb4f   : > { %v6771_v57 = vpop.f32.mrf.mxu3 }
 0xb50   : > { %v13938_v8 = vadd.f32 %v6771_v57, %v13908_v49  ;;  %v15728_v57 = vld [vmem:[#allocation80_spill] sm:$0xff] }
 0xb52   : > { %6851 = vrot.lane.b32.xlu0 %v13938_v8, %s8716_s28 }
 0xb57   : > { %v6773_v14 = vpop.f32.mrf.mxu3 }
 0xb58   : > { %v13943_v55 = vadd.f32 %v6773_v14, %v13908_v49 }
 0xb5a   : > { %v6804_v50 = vpack.c.bf16 %v13943_v55, %v13938_v8  ;;  %6853 = vrot.lane.b32.xlu1 %v13943_v55, %s8716_s28  ;;  %v15735_v8 = vld [vmem:[#allocation51_spill] sm:$0xff] }
 0xb5f   : > { %v6776_v17 = vpop.f32.mrf.mxu3 }
 0xb60   : > { %v6777_v36 = vadd.f32 %v6776_v17, %v13908_v49 }
 0xb62   : > { %6855 = vrot.lane.b32.xlu2 %v6777_v36, %s8716_s28 }
 0xb67   : > { %v6778_v19 = vpop.f32.mrf.mxu3 }
 0xb68   : > { %v6779_v22 = vadd.f32 %v6778_v19, %v13908_v49 }
 0xb6a   : > { %v6805_v33 = vpack.c.bf16 %v6779_v22, %v6777_v36  ;;  %6857 = vrot.lane.b32.xlu0 %v6779_v22, %s8716_s28  ;;  %v15729_v36 = vld [vmem:[#allocation48_spill] sm:$0xff] }
 0xb6b   : > { %v15730_v22 = vld [vmem:[#allocation188_spill] sm:$0xff] }
 0xb6f   : > { %v6781_v34 = vpop.f32.mrf.mxu3 }
 0xb70   : > { %v6782_v32 = vadd.f32 %v6781_v34, %v13908_v49 }
 0xb72   : > { %6859 = vrot.lane.b32.xlu1 %v6782_v32, %s8716_s28 }
 0xb74   : > { %v6844_v62 = vpop.permute.xlu2 %6843 }
 0xb75   : > { %v6923_v28 = vmul.f32 %v6844_v62, %v13226_v23  ;;  %v6891_v46 = vmul.f32 %v6844_v62, %v13142_v51  ;;  %v6907_v59 = vmul.f32 %v6844_v62, %v15725_v18 }
 0xb77   : > { %v6783_v44 = vpop.f32.mrf.mxu3 }
 0xb78   : > { %v6784_v15 = vadd.f32 %v6783_v44, %v13908_v49 }
 0xb7a   : > { %6861 = vrot.lane.b32.xlu2 %v6784_v15, %s8716_s28  ;;  %v6806_v17 = vpack.c.bf16 %v6784_v15, %v6782_v32  ;;  %v15733_v32 = vld [vmem:[#allocation129_spill] sm:$0xff] }
 0xb7f   : > { %v6786_v10 = vpop.f32.mrf.mxu3 }
 0xb80   : > { %v6787_v16 = vadd.f32 %v6786_v10, %v13908_v49  ;;  %v15731_v10 = vld [vmem:[#allocation57_spill] sm:$0xff] }
 0xb82   : > { %6863 = vrot.lane.b32.xlu0 %v6787_v16, %s8716_s28 }
 0xb87   : > { %v6788_v25 = vpop.f32.mrf.mxu3 }
 0xb88   : > { %v6789_v24 = vadd.f32 %v6788_v25, %v13908_v49  ;;  %v15732_v25 = vld [vmem:[#allocation122_spill] sm:$0xff] }
 0xb8a   : > { %6865 = vrot.lane.b32.xlu1 %v6789_v24, %s8716_s28  ;;  %v6807_v2 = vpack.c.bf16 %v6789_v24, %v6787_v16 }
 0xb8f   : > { %v6791_v42 = vpop.f32.mrf.mxu3 }
 0xb90   : > { %v6792_v12 = vadd.f32 %v6791_v42, %v13908_v49 }
 0xb92   : > { %6867 = vrot.lane.b32.xlu2 %v6792_v12, %s8716_s28 }
 0xb94   : > { %v6846_v27 = vpop.permute.xlu0 %6845 }
 0xb95   : > { %v6924_v23 = vmul.f32 %v6846_v27, %v15724_v4  ;;  %v6908_v29 = vmul.f32 %v6846_v27, %v15726_v1  ;;  %v6892_v54 = vmul.f32 %v6846_v27, %v15727_v5  ;;  %v15740_v4 = vld [vmem:[#allocation114_spill] sm:$0xff] }
 0xb97   : > { %v6793_v6 = vpop.f32.mrf.mxu3 }
 0xb98   : > { %v6794_v48 = vadd.f32 %v6793_v6, %v13908_v49 }
 0xb9a   : > { %6869 = vrot.lane.b32.xlu0 %v6794_v48, %s8716_s28  ;;  %7083 = vrot.lane.b32.xlu2 %v6923_v28, %s8717_s29  ;;  %v6808_v51 = vpack.c.bf16 %v6794_v48, %v6792_v12  ;;  %v15734_v12 = vld [vmem:[#allocation152_spill] sm:$0xff] }
 0xb9b   : > { %v15737_v28 = vld [vmem:[#allocation108_spill] sm:$0xff] }
 0xb9f   : > { %v6796_v37 = vpop.f32.mrf.mxu3 }
 0xba0   : > { %v6797_v47 = vadd.f32 %v6796_v37, %v13908_v49 }
 0xba2   : > { %6955 = vrot.lane.b32.xlu0 %v6891_v46, %s14821_s16  ;;  %6871 = vrot.lane.b32.xlu1 %v6797_v47, %s8716_s28  ;;  %v15739_v46 = vld [vmem:[#allocation56_spill] sm:$0xff] }
 0xba4   : > { %v6850_v44 = vpop.permute.xlu2 %6849 }
 0xba5   : > { %v6894_v16 = vmul.f32 %v6850_v44, %v15731_v10  ;;  %v6926_v24 = vmul.f32 %v6850_v44, %v15732_v25  ;;  %v6910_v15 = vmul.f32 %v6850_v44, %v15733_v32 }
 0xba7   : > { %v6798_v9 = vpop.f32.mrf.mxu3 }
 0xba8   : > { %v6799_v56 = vadd.f32 %v6798_v9, %v13908_v49 }
 0xbaa   : > { %v6809_v58 = vpack.c.bf16 %v6799_v56, %v6797_v47  ;;  %7085 = vrot.lane.b32.xlu0 %v6924_v23, %s8717_s29  ;;  %6873 = vrot.lane.b32.xlu2 %v6799_v56, %s8716_s28 }
 0xbab   : > { %7019 = vrot.lane.b32.xlu1 %v6907_v59, %s8718_s19  ;;  %v15741_v59 = vld [vmem:[#allocation23_spill] sm:$0xff] }
 0xbac   : > { %6810 = vmatpush.bf16.msra.mxu1 %v6809_v58 }
 0xbb0   : > { %6811 = vmatpush.bf16.msra.mxu1 %v6808_v51  ;;  %v15742_v51 = vld [vmem:[#allocation109_spill] sm:$0xff] }
 0xbb2   : > { %7021 = vrot.lane.b32.xlu2 %v6908_v29, %s8718_s19  ;;  %v15743_v29 = vld [vmem:[#allocation24_spill] sm:$0xff] }
 0xbb3   : > { %6957 = vrot.lane.b32.xlu1 %v6892_v54, %s14821_s16  ;;  %v15744_v54 = vld [vmem:[#allocation89_spill] sm:$0xff] }
 0xbb4   : > { %v6848_v49 = vpop.permute.xlu1 %6847  ;;  %6812 = vmatpush.bf16.msra.mxu1 %v6807_v2 }
 0xbb5   : > { %v6909_v14 = vmul.f32 %v6848_v49, %v15728_v57  ;;  %v6893_v19 = vmul.f32 %v6848_v49, %v15729_v36  ;;  %v6925_v34 = vmul.f32 %v6848_v49, %v15730_v22  ;;  %v15747_v36 = vld [vmem:[#allocation189_spill] sm:$0xff] }
 0xbb6   : > { %v15748_v22 = vld [vmem:[#allocation33_spill] sm:$0xff] }
 0xbb7   : > { %7023 = vrot.lane.b32.xlu0 %v6909_v14, %s8718_s19  ;;  %v15746_v14 = vld [vmem:[#allocation64_spill] sm:$0xff] }
 0xbb8   : > { %6813 = vmatpush.bf16.msra.mxu1 %v6806_v17 }
 0xbba   : > { %6959 = vrot.lane.b32.xlu2 %v6893_v19, %s14821_s16 }
 0xbbb   : > { %7087 = vrot.lane.b32.xlu1 %v6925_v34, %s8717_s29 }
 0xbbc   : > { %6814 = vmatpush.bf16.msra.mxu1 %v6805_v33 }
 0xbbf   : > { %6961 = vrot.lane.b32.xlu0 %v6894_v16, %s14821_s16  ;;  %v15749_v16 = vld [vmem:[#allocation40_spill] sm:$0xff] }
 0xbc0   : > { %6815 = vmatpush.bf16.msra.mxu1 %v6804_v50 }
 0xbc2   : > { %7089 = vrot.lane.b32.xlu2 %v6926_v24, %s8717_s29  ;;  %v15750_v24 = vld [vmem:[#allocation83_spill] sm:$0xff] }
 0xbc3   : > { %7025 = vrot.lane.b32.xlu1 %v6910_v15, %s8718_s19 }
 0xbc4   : > { %v6852_v42 = vpop.permute.xlu0 %6851  ;;  %6816 = vmatpush.bf16.msra.mxu1 %v6803_v43  ;;  %v6856_v43 = vpop.permute.xlu2 %6855 }
 0xbc5   : > { %v6927_v33 = vmul.f32 %v6852_v42, %v13265_v53  ;;  %v6911_v62 = vmul.f32 %v6852_v42, %v15734_v12  ;;  %v6895_v55 = vmul.f32 %v6852_v42, %v15735_v8  ;;  %v6897_v11 = vmul.f32 %v6856_v43, %v13157_v40  ;;  %v15752_v8 = vld [vmem:[#allocation102_spill] sm:$0xff] }
 0xbc6   : > { %v6929_v41 = vmul.f32 %v6856_v43, %v13297_v31  ;;  %v15738_v31 = vld [vmem:[#allocation106_spill] sm:$0xff] }
 0xbc7   : > { %7091 = vrot.lane.b32.xlu0 %v6927_v33, %s8717_s29  ;;  %v15751_v33 = vld [vmem:[#allocation15_spill] sm:$0xff] }
 0xbc8   : > { %6817 = vmatpush.bf16.msra.mxu1 %v6802_v39  ;;  %v15736_v39 = vld [vmem:[#allocation168_spill] sm:$0xff] }
 0xbc9   : > { %v6913_v6 = vmul.f32 %v6856_v43, %v15736_v39 }
 0xbca   : > { %7027 = vrot.lane.b32.xlu2 %v6911_v62, %s8718_s19 }
 0xbcb   : > { %6963 = vrot.lane.b32.xlu1 %v6895_v55, %s14821_s16 }
 0xbcc   : > { %v6854_v50 = vpop.permute.xlu1 %6853 }
 0xbcd   : > { %v6912_v52 = vmul.f32 %v6854_v50, %v13195_v60  ;;  %v6896_v53 = vmul.f32 %v6854_v50, %v13155_v0  ;;  %v6928_v38 = vmul.f32 %v6854_v50, %v13278_v13 }
 0xbcf   : > { %7029 = vrot.lane.b32.xlu0 %v6912_v52, %s8718_s19 }
 0xbd2   : > { %6965 = vrot.lane.b32.xlu2 %v6896_v53, %s14821_s16 }
 0xbd3   : > { %7093 = vrot.lane.b32.xlu1 %v6928_v38, %s8717_s29 }
 0xbd7   : > { %6967 = vrot.lane.b32.xlu0 %v6897_v11, %s14821_s16 }
 0xbda   : > { %7095 = vrot.lane.b32.xlu2 %v6929_v41, %s8717_s29 }
 0xbdb   : > { %7031 = vrot.lane.b32.xlu1 %v6913_v6, %s8718_s19 }
 0xbdc   : > { %v6858_v0 = vpop.permute.xlu0 %6857 }
 0xbdd   : > { %v6930_v60 = vmul.f32 %v6858_v0, %v13313_v7  ;;  %v6914_v13 = vmul.f32 %v6858_v0, %v13200_v45  ;;  %v6898_v48 = vmul.f32 %v6858_v0, %v15737_v28  ;;  %v6862_v7 = vpop.permute.xlu2 %6861 }
 0xbde   : > { %v6900_v45 = vmul.f32 %v6862_v7, %v13165_v35  ;;  %v6932_v9 = vmul.f32 %v6862_v7, %v13350_v26  ;;  %v6916_v23 = vmul.f32 %v6862_v7, %v15740_v4 }
 0xbdf   : > { %7097 = vrot.lane.b32.xlu0 %v6930_v60, %s8717_s29 }
 0xbe2   : > { %7033 = vrot.lane.b32.xlu2 %v6914_v13, %s8718_s19  ;;  %v15753_v13 = vld [vmem:[#allocation204_spill] sm:$0xff] }
 0xbe3   : > { %6969 = vrot.lane.b32.xlu1 %v6898_v48, %s14821_s16 }
 0xbe4   : > { %v6860_v40 = vpop.permute.xlu1 %6859 }
 0xbe5   : > { %v6915_v37 = vmul.f32 %v6860_v40, %v15738_v31  ;;  %v6899_v47 = vmul.f32 %v6860_v40, %v15739_v46  ;;  %v6931_v27 = vmul.f32 %v6860_v40, %v13332_v61 }
 0xbe7   : > { %7035 = vrot.lane.b32.xlu0 %v6915_v37, %s8718_s19 }
 0xbea   : > { %6971 = vrot.lane.b32.xlu2 %v6899_v47, %s14821_s16 }
 0xbeb   : > { %7099 = vrot.lane.b32.xlu1 %v6931_v27, %s8717_s29 }
 0xbec   : > { %v6868_v56 = vpop.permute.xlu2 %6867 }
 0xbed   : > { %v6903_v17 = vmul.f32 %v6868_v56, %v15746_v14  ;;  %v6935_v19 = vmul.f32 %v6868_v56, %v15747_v36  ;;  %v6919_v34 = vmul.f32 %v6868_v56, %v15748_v22 }
 0xbef   : > { %6973 = vrot.lane.b32.xlu0 %v6900_v45, %s14821_s16 }
 0xbf2   : > { %7101 = vrot.lane.b32.xlu2 %v6932_v9, %s8717_s29 }
 0xbf3   : > { %7037 = vrot.lane.b32.xlu1 %v6916_v23, %s8718_s19 }
 0xbf4   : > { %v6864_v18 = vpop.permute.xlu0 %6863  ;;  %v7084_v26 = vpop.permute.xlu2 %7083 }
 0xbf5   : > { %v6933_v61 = vmul.f32 %v6864_v18, %v13369_v20  ;;  %v6917_v58 = vmul.f32 %v6864_v18, %v15741_v59  ;;  %v6901_v35 = vmul.f32 %v6864_v18, %v15742_v51  ;;  %v15745_v20 = vld [vmem:[#allocation128_spill] sm:$0xff] }
 0xbf7   : > { %7103 = vrot.lane.b32.xlu0 %v6933_v61, %s8717_s29 }
 0xbfa   : > { %7039 = vrot.lane.b32.xlu2 %v6917_v58, %s8718_s19 }
 0xbfb   : > { %6975 = vrot.lane.b32.xlu1 %v6901_v35, %s14821_s16 }
 0xbfc   : > { %v6866_v1 = vpop.permute.xlu1 %6865 }
 0xbfd   : > { %v6918_v5 = vmul.f32 %v6866_v1, %v15743_v29  ;;  %v6902_v2 = vmul.f32 %v6866_v1, %v15744_v54  ;;  %v6934_v49 = vmul.f32 %v6866_v1, %v15745_v20 }
 0xbff   : > { %7041 = vrot.lane.b32.xlu0 %v6918_v5, %s8718_s19 }
 0xc02   : > { %6977 = vrot.lane.b32.xlu2 %v6902_v2, %s14821_s16 }
 0xc03   : > { %7105 = vrot.lane.b32.xlu1 %v6934_v49, %s8717_s29 }
 0xc04   : > { %v6874_v57 = vpop.permute.xlu2 %6873 }
 0xc05   : > { %v6922_v50 = vmul.f32 %v6874_v57, %v13220_v21  ;;  %v602_v21 = vld [vmem:[%s558_s26] sm:$0xff]  ;;  %v6906_v38 = vmul.f32 %v6874_v57, %v13180_v3  ;;  %v6938_v39 = vmul.f32 %v6874_v57, %v13507_v63 }
 0xc06   : > { %v6801_v11 = vpack.c.bf16 %v602_v21, %v602_v21 }
 0xc07   : > { %6979 = vrot.lane.b32.xlu0 %v6903_v17, %s14821_s16 }
 0xc08   : > { %6818 = vmatmul.bf16.vlgmr.msra.gmra.mxu1 %v6801_v11 }
 0xc0a   : > { %7107 = vrot.lane.b32.xlu2 %v6935_v19, %s8717_s29 }
 0xc0b   : > { %7043 = vrot.lane.b32.xlu1 %v6919_v34, %s8718_s19 }
 0xc0c   : > { %v7022_v44 = vpop.permute.xlu2 %7021  ;;  %v6870_v10 = vpop.permute.xlu0 %6869 }
 0xc0d   : > { %v6920_v25 = vmul.f32 %v6870_v10, %v15749_v16  ;;  %v6904_v32 = vmul.f32 %v6870_v10, %v15750_v24  ;;  %v6936_v28 = vmul.f32 %v6870_v10, %v15753_v13 }
 0xc12   : > { %7045 = vrot.lane.b32.xlu2 %v6920_v25, %s8718_s19 }
 0xc13   : > { %6981 = vrot.lane.b32.xlu1 %v6904_v32, %s14821_s16 }
 0xc14   : > { %v6960_v15 = vpop.permute.xlu2 %6959  ;;  %v6872_v42 = vpop.permute.xlu1 %6871 }
 0xc15   : > { %v6921_v12 = vmul.f32 %v6872_v42, %v15751_v33  ;;  %v6956_v62 = vpop.permute.xlu0 %6955  ;;  %v6905_v55 = vmul.f32 %v6872_v42, %v15752_v8  ;;  %v6937_v6 = vmul.f32 %v6872_v42, %v13460_v30 }
 0xc17   : > { %7047 = vrot.lane.b32.xlu0 %v6921_v12, %s8718_s19 }
 0xc1a   : > { %6983 = vrot.lane.b32.xlu2 %v6905_v55, %s14821_s16 }
 0xc1b   : > { %7049 = vrot.lane.b32.xlu1 %v6922_v50, %s8718_s19 }
 0xc1c   : > { %v7090_v52 = vpop.permute.xlu2 %7089 }
 0xc1d   : > { %v7020_v53 = vpop.permute.xlu1 %7019  ;;  %v7086_v0 = vpop.permute.xlu0 %7085 }
 0xc1e   : > { %v7131_v43 = vsel %vm6825_vm0, %v6956_v62, %v7020_v53 }
 0xc1f   : > { %v7148_v41 = vsel %vm7147_vm2, %v7131_v43, %v7084_v26  ;;  %6985 = vrot.lane.b32.xlu0 %v6906_v38, %s14821_s16 }
 0xc20   : > { %7165 = vst.msk [vmem:[%s14075_s11] sm:$0xff] %vm7164_vm3, %v7148_v41 }
 0xc22   : > { %7113 = vrot.lane.b32.xlu2 %v6938_v39, %s8717_s29 }
 0xc23   : > { %7111 = vrot.lane.b32.xlu1 %v6937_v6, %s8717_s29 }
 0xc24   : > { %v7028_v3 = vpop.permute.xlu2 %7027 }
 0xc25   : > { %v6958_v60 = vpop.permute.xlu1 %6957 }
 0xc26   : > { %v7132_v63 = vsel %vm6825_vm0, %v6958_v60, %v7022_v44 }
 0xc27   : > { %v7149_v48 = vsel %vm7147_vm2, %v7132_v63, %v7086_v0  ;;  %7109 = vrot.lane.b32.xlu0 %v6936_v28, %s8717_s29 }
 0xc28   : > { %7166 = vst.msk [vmem:[%s14075_s11 + $0x8] sm:$0xff] %vm7164_vm3, %v7149_v48 }
 0xc29   : > { %v7024_v30 = vpop.permute.xlu0 %7023 }
 0xc2a   : > { %v7133_v40 = vsel %vm6825_vm0, %v6960_v15, %v7024_v30 }
 0xc2c   : > { %v6966_v46 = vpop.permute.xlu2 %6965 }
 0xc2d   : > { %v7088_v31 = vpop.permute.xlu1 %7087 }
 0xc2e   : > { %v7150_v37 = vsel %vm7147_vm2, %v7133_v40, %v7088_v31 }
 0xc2f   : > { %7167 = vst.msk [vmem:[%s14075_s11 + $0x10] sm:$0xff] %vm7164_vm3, %v7150_v37 }
 0xc31   : > { %v6962_v47 = vpop.permute.xlu0 %6961 }
 0xc34   : > { %v7096_v9 = vpop.permute.xlu2 %7095 }
 0xc35   : > { %v7026_v27 = vpop.permute.xlu1 %7025 }
 0xc36   : > { %v7134_v7 = vsel %vm6825_vm0, %v6962_v47, %v7026_v27 }
 0xc37   : > { %v7151_v45 = vsel %vm7147_vm2, %v7134_v7, %v7090_v52 }
 0xc38   : > { %7168 = vst.msk [vmem:[%s14075_s11 + $0x18] sm:$0xff] %vm7164_vm3, %v7151_v45 }
 0xc39   : > { %v7092_v4 = vpop.permute.xlu0 %7091 }
 0xc3c   : > { %v7034_v59 = vpop.permute.xlu2 %7033 }
 0xc3d   : > { %v6964_v23 = vpop.permute.xlu1 %6963 }
 0xc3e   : > { %v7135_v56 = vsel %vm6825_vm0, %v6964_v23, %v7028_v3 }
 0xc3f   : > { %v7152_v18 = vsel %vm7147_vm2, %v7135_v56, %v7092_v4 }
 0xc40   : > { %7169 = vst.msk [vmem:[%s14075_s11 + $0x20] sm:$0xff] %vm7164_vm3, %v7152_v18 }
 0xc41   : > { %v7030_v61 = vpop.permute.xlu0 %7029 }
 0xc42   : > { %v7136_v58 = vsel %vm6825_vm0, %v6966_v46, %v7030_v61 }
 0xc44   : > { %v6972_v1 = vpop.permute.xlu2 %6971 }
 0xc45   : > { %v7094_v51 = vpop.permute.xlu1 %7093 }
 0xc46   : > { %v7153_v35 = vsel %vm7147_vm2, %v7136_v58, %v7094_v51 }
 0xc47   : > { %7170 = vst.msk [vmem:[%s14075_s11 + $0x28] sm:$0xff] %vm7164_vm3, %v7153_v35 }
 0xc49   : > { %v6968_v26 = vpop.permute.xlu0 %6967 }
 0xc4c   : > { %v7102_v57 = vpop.permute.xlu2 %7101 }
 0xc4d   : > { %v7032_v29 = vpop.permute.xlu1 %7031 }
 0xc4e   : > { %v7137_v5 = vsel %vm6825_vm0, %v6968_v26, %v7032_v29 }
 0xc4f   : > { %v7154_v54 = vsel %vm7147_vm2, %v7137_v5, %v7096_v9 }
 0xc50   : > { %7171 = vst.msk [vmem:[%s14075_s11 + $0x30] sm:$0xff] %vm7164_vm3, %v7154_v54 }
 0xc51   : > { %v7098_v2 = vpop.permute.xlu0 %7097 }
 0xc54   : > { %v7040_v34 = vpop.permute.xlu2 %7039 }
 0xc55   : > { %v6970_v20 = vpop.permute.xlu1 %6969 }
 0xc56   : > { %v7138_v49 = vsel %vm6825_vm0, %v6970_v20, %v7034_v59 }
 0xc57   : > { %v7155_v14 = vsel %vm7147_vm2, %v7138_v49, %v7098_v2 }
 0xc58   : > { %7172 = vst.msk [vmem:[%s14075_s11 + $0x38] sm:$0xff] %vm7164_vm3, %v7155_v14 }
 0xc59   : > { %v7036_v17 = vpop.permute.xlu0 %7035 }
 0xc5a   : > { %v7139_v36 = vsel %vm6825_vm0, %v6972_v1, %v7036_v17 }
 0xc5c   : > { %v6978_v32 = vpop.permute.xlu2 %6977 }
 0xc5d   : > { %v7100_v19 = vpop.permute.xlu1 %7099 }
 0xc5e   : > { %v7156_v22 = vsel %vm7147_vm2, %v7139_v36, %v7100_v19 }
 0xc5f   : > { %7173 = vst.msk [vmem:[%s14075_s11 + $0x40] sm:$0xff] %vm7164_vm3, %v7156_v22 }
 0xc61   : > { %v6974_v44 = vpop.permute.xlu0 %6973 }
 0xc64   : > { %v7108_v62 = vpop.permute.xlu2 %7107 }
 0xc65   : > { %v7038_v10 = vpop.permute.xlu1 %7037 }
 0xc66   : > { %v7140_v16 = vsel %vm6825_vm0, %v6974_v44, %v7038_v10 }
 0xc67   : > { %v7157_v25 = vsel %vm7147_vm2, %v7140_v16, %v7102_v57 }
 0xc68   : > { %7174 = vst.msk [vmem:[%s14075_s11 + $0x48] sm:$0xff] %vm7164_vm3, %v7157_v25 }
 0xc69   : > { %v7104_v24 = vpop.permute.xlu0 %7103 }
 0xc6c   : > { %v7046_v38 = vpop.permute.xlu2 %7045 }
 0xc6d   : > { %v6976_v15 = vpop.permute.xlu1 %6975 }
 0xc6e   : > { %v7141_v42 = vsel %vm6825_vm0, %v6976_v15, %v7040_v34 }
 0xc6f   : > { %v7158_v33 = vsel %vm7147_vm2, %v7141_v42, %v7104_v24 }
 0xc70   : > { %7175 = vst.msk [vmem:[%s14075_s11 + $0x50] sm:$0xff] %vm7164_vm3, %v7158_v33 }
 0xc71   : > { %v7042_v12 = vpop.permute.xlu0 %7041 }
 0xc72   : > { %v7142_v8 = vsel %vm6825_vm0, %v6978_v32, %v7042_v12 }
 0xc74   : > { %v6984_v41 = vpop.permute.xlu2 %6983 }
 0xc75   : > { %v7106_v55 = vpop.permute.xlu1 %7105 }
 0xc76   : > { %v7159_v50 = vsel %vm7147_vm2, %v7142_v8, %v7106_v55 }
 0xc77   : > { %7176 = vst.msk [vmem:[%s14075_s11 + $0x58] sm:$0xff] %vm7164_vm3, %v7159_v50 }
 0xc79   : > { %v6980_v52 = vpop.permute.xlu0 %6979 }
 0xc7c   : > { %v7114_v3 = vpop.permute.xlu2 %7113 }
 0xc7d   : > { %v7044_v53 = vpop.permute.xlu1 %7043 }
 0xc7e   : > { %v7143_v21 = vsel %vm6825_vm0, %v6980_v52, %v7044_v53 }
 0xc7f   : > { %v7160_v43 = vsel %vm7147_vm2, %v7143_v21, %v7108_v62 }
 0xc80   : > { %7177 = vst.msk [vmem:[%s14075_s11 + $0x60] sm:$0xff] %vm7164_vm3, %v7160_v43 }
 0xc85   : > { %v6982_v11 = vpop.permute.xlu1 %6981  ;;  %v6819_v37 = vpop.f32.mrf.mxu1 }
 0xc86   : > { %v7144_v30 = vsel %vm6825_vm0, %v6982_v11, %v7046_v38  ;;  %v6823_v46 = vmul.f32 2.5, %v6819_v37 }
 0xc88   : > { %v6824_v47 = vadd.f32 -1.3, %v6823_v46 }
 0xc89   : > { %v7048_v39 = vpop.permute.xlu0 %7047 }
 0xc8a   : > { %v7145_v28 = vsel %vm6825_vm0, %v6984_v41, %v7048_v39  ;;  %6826 = vst.msk [vmem:[%s562_s14] sm:$0xff] %vm6825_vm0, %v6824_v47 }
 0xc8d   : > { %v7050_v6 = vpop.permute.xlu1 %7049  ;;  %v6821_v27 = vpop.f32.mrf.mxu1 }
 0xc91   : > { %v6986_v0 = vpop.permute.xlu0 %6985 }
 0xc92   : > { %v7146_v60 = vsel %vm6825_vm0, %v6986_v0, %v7050_v6 }
 0xc93   : > { %v7163_v13 = vsel %vm7147_vm2, %v7146_v60, %v7114_v3 }
 0xc94   : > { %7180 = vst.msk [vmem:[%s14075_s11 + $0x78] sm:$0xff] %vm7164_vm3, %v7163_v13 }
 0xc95   : > { %v7112_v63 = vpop.permute.xlu1 %7111 }
 0xc96   : > { %v7162_v48 = vsel %vm7147_vm2, %v7145_v28, %v7112_v63 }
 0xc97   : > { %7179 = vst.msk [vmem:[%s14075_s11 + $0x70] sm:$0xff] %vm7164_vm3, %v7162_v48 }
 0xc99   : > { %v7110_v40 = vpop.permute.xlu0 %7109 }
 0xc9a   : > { %v7161_v31 = vsel %vm7147_vm2, %v7144_v30, %v7110_v40 }
 0xc9b   : > { %7178 = vst.msk [vmem:[%s14075_s11 + $0x68] sm:$0xff] %vm7164_vm3, %v7161_v31 }
 0xc9c PF: > { %p19_p13 = scmp.ge.s32.totalorder %s8788_s13, 4   ;;  %s15754_s30 = smov %s8700_s10 }
 0xc9d   : > { %s15755_s10 = smov %s8799_s17  ;;  %s15756_s11 = smov %s8788_s13 }
 0xc9e   :  { %21 = sbr.rel (!%p19_p13) target bundleno = 3 (0x3), region = 159 }
 0xca3   :  { %7217 = vsyncpa [#allocation3], 1 }
 0xca4   :  { %7219 = vsyncpa [#allocation3 + $0x1], 1 }
 0xca5   :  { %7220 = vsyncpa [#allocation4], 1 }
 0xca6   :  { %7222 = vsyncpa [#allocation4 + $0x1], 1 }

</bundles_post_ra>
